<compile_context>
chip_gen: v7x
topology: tpu7x:2x2x1
jax: 0.10.0
libtpu: 0.0.40
codegen_flags: <defaults>
</compile_context>

<pallas_src>
import functools

import numpy as np
import jax
import jax.numpy as jnp
from jax.experimental import pallas as pl
from jax.experimental.pallas import tpu as pltpu

# module configuration (matches the constants in final_step.py)
N_SCALE = 1
N_LAYER = 5
IN_CHANNEL = 3
N_FILTER = 4

M_ALIGN = 16  # GEMM M rounded up to a bf16-friendly sublane multiple


def _round_up(x, m):
    return (x + m - 1) // m * m


# ----------------------------- Pallas kernels -----------------------------

def _conv_fused_kernel(x_ref, w_ref, b_ref, o_ref, *,
                       offsets, m_rows, m_valid, width, wo, n_valid,
                       mode, slope, eps):
    """Fused conv for ONE sample: in-VMEM im2col + GEMM + bias + epilogue.

    x_ref: (1, Lp, Cx)   flattened (space-to-depth'd / padded) sample rows
    w_ref: (T, Cx, Cout) per-tap weights (bf16)
    b_ref: (1, Cout)
    o_ref: (1, m_rows, Cout); row r = i*width + j holds output pixel (i, j);
           rows with j >= wo or r >= m_valid are garbage and sliced off outside.
    """
    cout = o_ref.shape[-1]
    acc = jnp.zeros((m_rows, cout), jnp.float32)
    for t, off in enumerate(offsets):                    # static tap unroll
        p = x_ref[0, off:off + m_rows, :].astype(jnp.bfloat16)
        acc = acc + jnp.dot(p, w_ref[t], preferred_element_type=jnp.float32)
    acc = acc + b_ref[...]

    if mode == "lrelu":
        acc = jnp.where(acc >= 0, acc, slope * acc)
    elif mode == "in_lrelu":
        # InstanceNorm2d (affine=False, biased var) over valid rows only.
        r = jax.lax.broadcasted_iota(jnp.int32, (m_rows, 1), 0)
        valid = jnp.logical_and(r % width < wo, r < m_valid).astype(jnp.float32)
        mean = jnp.sum(acc * valid, axis=0, keepdims=True) / n_valid
        cen = (acc - mean) * valid
        var = jnp.sum(cen * cen, axis=0, keepdims=True) / n_valid
        acc = (acc - mean) * jax.lax.rsqrt(var + eps)
        acc = jnp.where(acc >= 0, acc, slope * acc)
    elif mode == "sigmoid":
        acc = pl.reciprocal(1.0 + jnp.exp(-acc), approx=True)

    o_ref[0] = acc.astype(o_ref.dtype)


def _avgpool_kernel(p_ref, r_ref, o_ref):
    """AvgPool: sum of 9 window taps times static 1/valid_count."""
    s = jnp.sum(p_ref[0], axis=1)          # (M, C)
    o_ref[0] = s * r_ref[...]              # (M, 1) broadcast


# ------------------------------- conv wrapper -------------------------------

def conv_block(x, w, b, *, stride, mode, slope=0.2, eps=1e-5):
    """Conv2d(k=4, pad=1, padding_mode='reflect', bias) + fused epilogue. NHWC."""
    n, h, wd, cin = x.shape
    k, pad = 4, 1
    assert h > pad and wd > pad, "reflect padding requires spatial dim > pad"
    cout = w.shape[3]
    xp = jnp.pad(x, ((0, 0), (pad, pad), (pad, pad), (0, 0)), mode="reflect")
    hp, wp = h + 2 * pad, wd + 2 * pad
    ho = (hp - k) // stride + 1
    wo = (wp - k) // stride + 1

    if stride == 2:
        # space-to-depth: 4x4/s2 conv == 2x2/s1 conv over (Hp/2, Wp/2, 4*Cin)
        assert hp % 2 == 0 and wp % 2 == 0
        hs, ws = hp // 2, wp // 2
        xs = xp.reshape(n, hs, 2, ws, 2, cin).transpose(0, 1, 3, 2, 4, 5)
        xs = xs.reshape(n, hs * ws, 4 * cin)
        wt = w.reshape(2, 2, 2, 2, cin, cout).transpose(0, 2, 1, 3, 4, 5)
        wt = wt.reshape(4, 4 * cin, cout)
        width, cx = ws, 4 * cin
        offsets = tuple(kh * ws + kw for kh in range(2) for kw in range(2))
    else:  # stride == 1, plain 4x4 taps on the padded input
        xs = xp.reshape(n, hp * wp, cin)
        wt = w.reshape(k * k, cin, cout)
        width, cx = wp, cin
        offsets = tuple(kh * wp + kw for kh in range(k) for kw in range(k))

    m_valid = (ho - 1) * width + wo          # rows actually referenced by outputs
    m_rows = _round_up(m_valid, M_ALIGN)     # aligned GEMM M
    lp = xs.shape[1]
    lp_need = max(offsets) + m_rows          # keep every tap slice in bounds
    if lp_need > lp:
        xs = jnp.pad(xs, ((0, 0), (0, lp_need - lp), (0, 0)))
    lp = xs.shape[1]

    out = pl.pallas_call(
        functools.partial(
            _conv_fused_kernel, offsets=offsets, m_rows=m_rows, m_valid=m_valid,
            width=width, wo=wo, n_valid=float(ho * wo), mode=mode,
            slope=slope, eps=eps),
        out_shape=jax.ShapeDtypeStruct((n, m_rows, cout), jnp.float32),
        grid=(n,),
        in_specs=[pl.BlockSpec((1, lp, cx), lambda i: (i, 0, 0)),
                  pl.BlockSpec((len(offsets), cx, cout), lambda i: (0, 0, 0)),
                  pl.BlockSpec((1, cout), lambda i: (0, 0))],
        out_specs=pl.BlockSpec((1, m_rows, cout), lambda i: (i, 0, 0)),
        compiler_params=pltpu.CompilerParams(dimension_semantics=("parallel",)),
    )(xs, wt.astype(jnp.bfloat16), b.reshape(1, cout))

    # row r = i*width + j -> output (i, j); drop the j >= wo (boundary) rows.
    total = ho * width
    if total > m_rows:
        out = jnp.pad(out, ((0, 0), (0, total - m_rows), (0, 0)))
    out = out[:, :total].reshape(n, ho, width, cout)[:, :, :wo, :]
    return out


# ------------------------------- avg pool ----------------------------------

def _extract_patches(xp, k, stride, ho, wo):
    cols = []
    for kh in range(k):
        for kw in range(k):
            cols.append(xp[:, kh:kh + stride * (ho - 1) + 1:stride,
                              kw:kw + stride * (wo - 1) + 1:stride, :])
    return jnp.stack(cols, axis=3)


def _pool_inv_counts(h, w):
    """Static 1/count map for AvgPool2d(3,2,1,count_include_pad=False)."""
    ho, wo = (h + 2 - 3) // 2 + 1, (w + 2 - 3) // 2 + 1
    cnt = np.zeros((ho, wo), np.float32)
    for i in range(ho):
        for j in range(wo):
            h0, w0 = 2 * i - 1, 2 * j - 1
            cnt[i, j] = ((min(h0 + 3, h) - max(h0, 0)) *
                         (min(w0 + 3, w) - max(w0, 0)))
    return (1.0 / cnt).reshape(ho * wo, 1)


def avgpool_3x3_s2_p1(x):
    """AvgPool2d(3, stride=2, padding=1, count_include_pad=False), NHWC."""
    n, h, w, c = x.shape
    ho, wo = (h + 2 - 3) // 2 + 1, (w + 2 - 3) // 2 + 1
    xp = jnp.pad(x, ((0, 0), (1, 1), (1, 1), (0, 0)))            # zero pad
    patches = _extract_patches(xp, 3, 2, ho, wo).reshape(n, ho * wo, 9, c)
    inv_cnt = jnp.asarray(_pool_inv_counts(h, w))                # static constant
    out = pl.pallas_call(
        _avgpool_kernel,
        out_shape=jax.ShapeDtypeStruct((n, ho * wo, c), jnp.float32),
        grid=(n,),
        in_specs=[pl.BlockSpec((1, ho * wo, 9, c), lambda i: (i, 0, 0, 0)),
                  pl.BlockSpec((ho * wo, 1), lambda i: (0, 0))],
        out_specs=pl.BlockSpec((1, ho * wo, c), lambda i: (i, 0, 0)),
        compiler_params=pltpu.CompilerParams(dimension_semantics=("parallel",)),
    )(patches, inv_cnt)
    return out.reshape(n, ho, wo, c)


# ------------------------------ model glue ---------------------------------

def init_patchgan_params(key, n_layer, in_channel, n_filter):
    """Deterministic init of the 6 conv layers of one patchGAN (k=4 each)."""
    chans = [in_channel, n_filter]
    nf = n_filter
    for _ in range(n_layer - 1):
        nf *= 2
        chans.append(nf)
    chans.append(1)  # final 1-channel conv
    params = []
    for cin, cout in zip(chans[:-1], chans[1:]):
        key, kw_, kb_ = jax.random.split(key, 3)
        bound = 1.0 / ((cin * 4 * 4) ** 0.5)
        w = jax.random.uniform(kw_, (4, 4, cin, cout), jnp.float32, -bound, bound)
        b = jax.random.uniform(kb_, (cout,), jnp.float32, -bound, bound)
        params.append((w, b))
    return params


def patchgan_forward(x, params):
    # conv (s2, p1, reflect) + LeakyReLU(0.2)
    h = conv_block(x, *params[0], stride=2, mode="lrelu")
    # (n_layer - 1) x [conv -> InstanceNorm2d -> LeakyReLU(0.2)]  (fused epilogue)
    for l in range(1, len(params) - 1):
        h = conv_block(h, *params[l], stride=2, mode="in_lrelu")
    # final conv (s1, p1, reflect) -> Sigmoid
    h = conv_block(h, *params[-1], stride=1, mode="sigmoid")
    return h


def msdisc_forward(x_nchw, all_params):
    """MSDisc.forward: list of per-scale patchGAN outputs (NCHW in/out)."""
    x = jnp.transpose(x_nchw, (0, 2, 3, 1))                 # NCHW -> NHWC
    outputs = []
    for s, params in enumerate(all_params):
        out = patchgan_forward(x, params)
        outputs.append(jnp.transpose(out, (0, 3, 1, 2)))    # back to NCHW
        if s + 1 < len(all_params):                         # skip dead last pool
            x = avgpool_3x3_s2_p1(x)
    return outputs


if __name__ == "__main__":
    key = jax.random.PRNGKey(0)
    kx, kp = jax.random.split(key)
    # NCHW input: batch=2, channels=3, spatial=64
    # (5 stride-2 convs -> 2x2, final k4/s1/p1 conv -> 1x1 patch map)
    x = jax.random.normal(kx, (2, IN_CHANNEL, 64, 64), jnp.float32)

    all_params = []
    for _ in range(N_SCALE):
        kp, ks = jax.random.split(kp)
        all_params.append(init_patchgan_params(ks, N_LAYER, IN_CHANNEL, N_FILTER))

    fwd = jax.jit(msdisc_forward)
    outs = jax.block_until_ready(fwd(x, all_params))
    assert outs[0].shape == (2, 1, 1, 1)
    print("KERNEL_OK")
</pallas_src>

<mosaic_0001>
module attributes {stable_mosaic.version = 11 : i64} {
  func.func @_conv_fused_kernel(%arg0: i32, %arg1: memref<1x1090x12xf32, #tpu.memory_space<vmem>>, %arg2: memref<4x12x4xbf16, #tpu.memory_space<vmem>>, %arg3: memref<1x4xf32, #tpu.memory_space<vmem>>, %arg4: memref<1x1056x4xf32, #tpu.memory_space<vmem>>) attributes {dimension_semantics = [#tpu.dimension_semantics<parallel>], iteration_bounds = array<i64: 2>, scalar_prefetch = 0 : i64, scratch_operands = 0 : i64, tpu.core_type = #tpu.core_type<tc>, window_params = [{transform_indices = @transform_0, window_bounds = array<i64: 1, 1090, 12>}, {pipeline_mode = #tpu.pipeline_mode<synchronous>, transform_indices = @transform_1, window_bounds = array<i64: 4, 12, 4>}, {pipeline_mode = #tpu.pipeline_mode<synchronous>, transform_indices = @transform_2, window_bounds = array<i64: 1, 4>}, {transform_indices = @transform_3, window_bounds = array<i64: 1, 1056, 4>}]} {
    %cst = arith.constant 0.000000e+00 : f32
    %0 = vector.broadcast %cst : f32 to vector<1056x4xf32>
    %c0 = arith.constant 0 : index
    %c0_0 = arith.constant 0 : index
    %c0_1 = arith.constant 0 : index
    %1 = vector.load %arg1[%c0, %c0_0, %c0_1] : memref<1x1090x12xf32, #tpu.memory_space<vmem>>, vector<1x1056x12xf32>
    %2 = vector.shape_cast %1 : vector<1x1056x12xf32> to vector<1056x12xf32>
    %3 = arith.truncf %2 : vector<1056x12xf32> to vector<1056x12xbf16>
    %c0_2 = arith.constant 0 : index
    %c0_3 = arith.constant 0 : index
    %c0_4 = arith.constant 0 : index
    %4 = vector.load %arg2[%c0_2, %c0_3, %c0_4] : memref<4x12x4xbf16, #tpu.memory_space<vmem>>, vector<1x12x4xbf16>
    %5 = vector.shape_cast %4 : vector<1x12x4xbf16> to vector<12x4xbf16>
    %cst_5 = arith.constant dense<0.000000e+00> : vector<1056x4xf32>
    %6 = tpu.matmul %3, %5, %cst_5 {dimension_numbers = #tpu.dot_dimension_numbers<[1], [0], [0], [1], [0, 0, 1, 1], [], []>} : vector<1056x12xbf16>, vector<12x4xbf16>, vector<1056x4xf32> -> vector<1056x4xf32>
    %7 = arith.addf %0, %6 : vector<1056x4xf32>
    %c0_6 = arith.constant 0 : index
    %c1 = arith.constant 1 : index
    %c0_7 = arith.constant 0 : index
    %8 = vector.load %arg1[%c0_6, %c1, %c0_7] : memref<1x1090x12xf32, #tpu.memory_space<vmem>>, vector<1x1056x12xf32>
    %9 = vector.shape_cast %8 : vector<1x1056x12xf32> to vector<1056x12xf32>
    %10 = arith.truncf %9 : vector<1056x12xf32> to vector<1056x12xbf16>
    %c1_8 = arith.constant 1 : index
    %c0_9 = arith.constant 0 : index
    %c0_10 = arith.constant 0 : index
    %11 = vector.load %arg2[%c1_8, %c0_9, %c0_10] : memref<4x12x4xbf16, #tpu.memory_space<vmem>>, vector<1x12x4xbf16>
    %12 = vector.shape_cast %11 : vector<1x12x4xbf16> to vector<12x4xbf16>
    %cst_11 = arith.constant dense<0.000000e+00> : vector<1056x4xf32>
    %13 = tpu.matmul %10, %12, %cst_11 {dimension_numbers = #tpu.dot_dimension_numbers<[1], [0], [0], [1], [0, 0, 1, 1], [], []>} : vector<1056x12xbf16>, vector<12x4xbf16>, vector<1056x4xf32> -> vector<1056x4xf32>
    %14 = arith.addf %7, %13 : vector<1056x4xf32>
    %c0_12 = arith.constant 0 : index
    %c33 = arith.constant 33 : index
    %c0_13 = arith.constant 0 : index
    %15 = vector.load %arg1[%c0_12, %c33, %c0_13] : memref<1x1090x12xf32, #tpu.memory_space<vmem>>, vector<1x1056x12xf32>
    %16 = vector.shape_cast %15 : vector<1x1056x12xf32> to vector<1056x12xf32>
    %17 = arith.truncf %16 : vector<1056x12xf32> to vector<1056x12xbf16>
    %c2 = arith.constant 2 : index
    %c0_14 = arith.constant 0 : index
    %c0_15 = arith.constant 0 : index
    %18 = vector.load %arg2[%c2, %c0_14, %c0_15] : memref<4x12x4xbf16, #tpu.memory_space<vmem>>, vector<1x12x4xbf16>
    %19 = vector.shape_cast %18 : vector<1x12x4xbf16> to vector<12x4xbf16>
    %cst_16 = arith.constant dense<0.000000e+00> : vector<1056x4xf32>
    %20 = tpu.matmul %17, %19, %cst_16 {dimension_numbers = #tpu.dot_dimension_numbers<[1], [0], [0], [1], [0, 0, 1, 1], [], []>} : vector<1056x12xbf16>, vector<12x4xbf16>, vector<1056x4xf32> -> vector<1056x4xf32>
    %21 = arith.addf %14, %20 : vector<1056x4xf32>
    %c0_17 = arith.constant 0 : index
    %c34 = arith.constant 34 : index
    %c0_18 = arith.constant 0 : index
    %22 = vector.load %arg1[%c0_17, %c34, %c0_18] : memref<1x1090x12xf32, #tpu.memory_space<vmem>>, vector<1x1056x12xf32>
    %23 = vector.shape_cast %22 : vector<1x1056x12xf32> to vector<1056x12xf32>
    %24 = arith.truncf %23 : vector<1056x12xf32> to vector<1056x12xbf16>
    %c3 = arith.constant 3 : index
    %c0_19 = arith.constant 0 : index
    %c0_20 = arith.constant 0 : index
    %25 = vector.load %arg2[%c3, %c0_19, %c0_20] : memref<4x12x4xbf16, #tpu.memory_space<vmem>>, vector<1x12x4xbf16>
    %26 = vector.shape_cast %25 : vector<1x12x4xbf16> to vector<12x4xbf16>
    %cst_21 = arith.constant dense<0.000000e+00> : vector<1056x4xf32>
    %27 = tpu.matmul %24, %26, %cst_21 {dimension_numbers = #tpu.dot_dimension_numbers<[1], [0], [0], [1], [0, 0, 1, 1], [], []>} : vector<1056x12xbf16>, vector<12x4xbf16>, vector<1056x4xf32> -> vector<1056x4xf32>
    %28 = arith.addf %21, %27 : vector<1056x4xf32>
    %c0_22 = arith.constant 0 : index
    %c0_23 = arith.constant 0 : index
    %29 = vector.load %arg3[%c0_22, %c0_23] : memref<1x4xf32, #tpu.memory_space<vmem>>, vector<1x4xf32>
    %30 = vector.broadcast %29 : vector<1x4xf32> to vector<1056x4xf32>
    %31 = arith.addf %28, %30 : vector<1056x4xf32>
    %cst_24 = arith.constant 0.000000e+00 : f32
    %32 = vector.broadcast %cst_24 : f32 to vector<1056x4xf32>
    %33 = arith.cmpf oge, %31, %32 : vector<1056x4xf32>
    %cst_25 = arith.constant 2.000000e-01 : f32
    %34 = vector.broadcast %cst_25 : f32 to vector<1056x4xf32>
    %35 = arith.mulf %34, %31 : vector<1056x4xf32>
    %36 = arith.select %33, %31, %35 : vector<1056x4xi1>, vector<1056x4xf32>
    %c0_26 = arith.constant 0 : index
    %c0_27 = arith.constant 0 : index
    %c0_28 = arith.constant 0 : index
    %37 = vector.load %arg4[%c0_26, %c0_27, %c0_28] : memref<1x1056x4xf32, #tpu.memory_space<vmem>>, vector<1x1056x4xf32>
    %38 = vector.shape_cast %37 : vector<1x1056x4xf32> to vector<1056x4xf32>
    %39 = vector.shape_cast %36 : vector<1056x4xf32> to vector<1x1056x4xf32>
    tpu.vector_store %arg4[%c0_26, %c0_27, %c0_28], %39 {strides = array<i32>} : memref<1x1056x4xf32, #tpu.memory_space<vmem>>, vector<1x1056x4xf32>,
    return
  }
  func.func @transform_0(%arg0: i32) -> (i32, i32, i32) {
    %c0_i32 = arith.constant 0 : i32
    %c0_i32_0 = arith.constant 0 : i32
    %c0_i32_1 = arith.constant 0 : i32
    return %arg0, %c0_i32, %c0_i32_0 : i32, i32, i32
  }
  func.func @transform_1(%arg0: i32) -> (i32, i32, i32) {
    %c0_i32 = arith.constant 0 : i32
    %c0_i32_0 = arith.constant 0 : i32
    %c0_i32_1 = arith.constant 0 : i32
    %c0_i32_2 = arith.constant 0 : i32
    return %c0_i32, %c0_i32_0, %c0_i32_1 : i32, i32, i32
  }
  func.func @transform_2(%arg0: i32) -> (i32, i32) {
    %c0_i32 = arith.constant 0 : i32
    %c0_i32_0 = arith.constant 0 : i32
    %c0_i32_1 = arith.constant 0 : i32
    return %c0_i32, %c0_i32_0 : i32, i32
  }
  func.func @transform_3(%arg0: i32) -> (i32, i32, i32) {
    %c0_i32 = arith.constant 0 : i32
    %c0_i32_0 = arith.constant 0 : i32
    %c0_i32_1 = arith.constant 0 : i32
    return %arg0, %c0_i32, %c0_i32_0 : i32, i32, i32
  }
}

module attributes {stable_mosaic.version = 11 : i64} {
  func.func @_conv_fused_kernel(%arg0: i32, %arg1: memref<1x290x16xf32, #tpu.memory_space<vmem>>, %arg2: memref<4x16x8xbf16, #tpu.memory_space<vmem>>, %arg3: memref<1x8xf32, #tpu.memory_space<vmem>>, %arg4: memref<1x272x8xf32, #tpu.memory_space<vmem>>) attributes {dimension_semantics = [#tpu.dimension_semantics<parallel>], iteration_bounds = array<i64: 2>, scalar_prefetch = 0 : i64, scratch_operands = 0 : i64, tpu.core_type = #tpu.core_type<tc>, window_params = [{transform_indices = @transform_0, window_bounds = array<i64: 1, 290, 16>}, {pipeline_mode = #tpu.pipeline_mode<synchronous>, transform_indices = @transform_1, window_bounds = array<i64: 4, 16, 8>}, {pipeline_mode = #tpu.pipeline_mode<synchronous>, transform_indices = @transform_2, window_bounds = array<i64: 1, 8>}, {transform_indices = @transform_3, window_bounds = array<i64: 1, 272, 8>}]} {
    %cst = arith.constant 0.000000e+00 : f32
    %0 = vector.broadcast %cst : f32 to vector<272x8xf32>
    %c0 = arith.constant 0 : index
    %c0_0 = arith.constant 0 : index
    %c0_1 = arith.constant 0 : index
    %1 = vector.load %arg1[%c0, %c0_0, %c0_1] : memref<1x290x16xf32, #tpu.memory_space<vmem>>, vector<1x272x16xf32>
    %2 = vector.shape_cast %1 : vector<1x272x16xf32> to vector<272x16xf32>
    %3 = arith.truncf %2 : vector<272x16xf32> to vector<272x16xbf16>
    %c0_2 = arith.constant 0 : index
    %c0_3 = arith.constant 0 : index
    %c0_4 = arith.constant 0 : index
    %4 = vector.load %arg2[%c0_2, %c0_3, %c0_4] : memref<4x16x8xbf16, #tpu.memory_space<vmem>>, vector<1x16x8xbf16>
    %5 = vector.shape_cast %4 : vector<1x16x8xbf16> to vector<16x8xbf16>
    %cst_5 = arith.constant dense<0.000000e+00> : vector<272x8xf32>
    %6 = tpu.matmul %3, %5, %cst_5 {dimension_numbers = #tpu.dot_dimension_numbers<[1], [0], [0], [1], [0, 0, 1, 1], [], []>} : vector<272x16xbf16>, vector<16x8xbf16>, vector<272x8xf32> -> vector<272x8xf32>
    %7 = arith.addf %0, %6 : vector<272x8xf32>
    %c0_6 = arith.constant 0 : index
    %c1 = arith.constant 1 : index
    %c0_7 = arith.constant 0 : index
    %8 = vector.load %arg1[%c0_6, %c1, %c0_7] : memref<1x290x16xf32, #tpu.memory_space<vmem>>, vector<1x272x16xf32>
    %9 = vector.shape_cast %8 : vector<1x272x16xf32> to vector<272x16xf32>
    %10 = arith.truncf %9 : vector<272x16xf32> to vector<272x16xbf16>
    %c1_8 = arith.constant 1 : index
    %c0_9 = arith.constant 0 : index
    %c0_10 = arith.constant 0 : index
    %11 = vector.load %arg2[%c1_8, %c0_9, %c0_10] : memref<4x16x8xbf16, #tpu.memory_space<vmem>>, vector<1x16x8xbf16>
    %12 = vector.shape_cast %11 : vector<1x16x8xbf16> to vector<16x8xbf16>
    %cst_11 = arith.constant dense<0.000000e+00> : vector<272x8xf32>
    %13 = tpu.matmul %10, %12, %cst_11 {dimension_numbers = #tpu.dot_dimension_numbers<[1], [0], [0], [1], [0, 0, 1, 1], [], []>} : vector<272x16xbf16>, vector<16x8xbf16>, vector<272x8xf32> -> vector<272x8xf32>
    %14 = arith.addf %7, %13 : vector<272x8xf32>
    %c0_12 = arith.constant 0 : index
    %c17 = arith.constant 17 : index
    %c0_13 = arith.constant 0 : index
    %15 = vector.load %arg1[%c0_12, %c17, %c0_13] : memref<1x290x16xf32, #tpu.memory_space<vmem>>, vector<1x272x16xf32>
    %16 = vector.shape_cast %15 : vector<1x272x16xf32> to vector<272x16xf32>
    %17 = arith.truncf %16 : vector<272x16xf32> to vector<272x16xbf16>
    %c2 = arith.constant 2 : index
    %c0_14 = arith.constant 0 : index
    %c0_15 = arith.constant 0 : index
    %18 = vector.load %arg2[%c2, %c0_14, %c0_15] : memref<4x16x8xbf16, #tpu.memory_space<vmem>>, vector<1x16x8xbf16>
    %19 = vector.shape_cast %18 : vector<1x16x8xbf16> to vector<16x8xbf16>
    %cst_16 = arith.constant dense<0.000000e+00> : vector<272x8xf32>
    %20 = tpu.matmul %17, %19, %cst_16 {dimension_numbers = #tpu.dot_dimension_numbers<[1], [0], [0], [1], [0, 0, 1, 1], [], []>} : vector<272x16xbf16>, vector<16x8xbf16>, vector<272x8xf32> -> vector<272x8xf32>
    %21 = arith.addf %14, %20 : vector<272x8xf32>
    %c0_17 = arith.constant 0 : index
    %c18 = arith.constant 18 : index
    %c0_18 = arith.constant 0 : index
    %22 = vector.load %arg1[%c0_17, %c18, %c0_18] : memref<1x290x16xf32, #tpu.memory_space<vmem>>, vector<1x272x16xf32>
    %23 = vector.shape_cast %22 : vector<1x272x16xf32> to vector<272x16xf32>
    %24 = arith.truncf %23 : vector<272x16xf32> to vector<272x16xbf16>
    %c3 = arith.constant 3 : index
    %c0_19 = arith.constant 0 : index
    %c0_20 = arith.constant 0 : index
    %25 = vector.load %arg2[%c3, %c0_19, %c0_20] : memref<4x16x8xbf16, #tpu.memory_space<vmem>>, vector<1x16x8xbf16>
    %26 = vector.shape_cast %25 : vector<1x16x8xbf16> to vector<16x8xbf16>
    %cst_21 = arith.constant dense<0.000000e+00> : vector<272x8xf32>
    %27 = tpu.matmul %24, %26, %cst_21 {dimension_numbers = #tpu.dot_dimension_numbers<[1], [0], [0], [1], [0, 0, 1, 1], [], []>} : vector<272x16xbf16>, vector<16x8xbf16>, vector<272x8xf32> -> vector<272x8xf32>
    %28 = arith.addf %21, %27 : vector<272x8xf32>
    %c0_22 = arith.constant 0 : index
    %c0_23 = arith.constant 0 : index
    %29 = vector.load %arg3[%c0_22, %c0_23] : memref<1x8xf32, #tpu.memory_space<vmem>>, vector<1x8xf32>
    %30 = vector.broadcast %29 : vector<1x8xf32> to vector<272x8xf32>
    %31 = arith.addf %28, %30 : vector<272x8xf32>
    %32 = tpu.iota {dimensions = array<i32: 0>} : vector<272x1xi32>
    %c17_i32 = arith.constant 17 : i32
    %c0_i32 = arith.constant 0 : i32
    %33 = arith.cmpi eq, %c17_i32, %c0_i32 : i32
    %c1_i32 = arith.constant 1 : i32
    %34 = arith.select %33, %c1_i32, %c17_i32 : i32
    %35 = vector.broadcast %34 : i32 to vector<272x1xi32>
    %36 = arith.remsi %32, %35 : vector<272x1xi32>
    %c0_i32_24 = arith.constant 0 : i32
    %37 = vector.broadcast %c0_i32_24 : i32 to vector<272x1xi32>
    %38 = arith.cmpi ne, %36, %37 : vector<272x1xi32>
    %c0_i32_25 = arith.constant 0 : i32
    %39 = vector.broadcast %c0_i32_25 : i32 to vector<272x1xi32>
    %40 = arith.cmpi slt, %36, %39 : vector<272x1xi32>
    %c0_i32_26 = arith.constant 0 : i32
    %41 = arith.cmpi slt, %34, %c0_i32_26 : i32
    %42 = vector.broadcast %41 : i1 to vector<272x1xi1>
    %43 = vector.broadcast %42 : vector<272x1xi1> to vector<272x1xi1>
    %44 = arith.xori %40, %43 : vector<272x1xi1>
    %45 = arith.andi %44, %38 : vector<272x1xi1>
    %46 = vector.broadcast %34 : i32 to vector<272x1xi32>
    %47 = arith.addi %36, %46 : vector<272x1xi32>
    %48 = arith.select %45, %47, %36 : vector<272x1xi1>, vector<272x1xi32>
    %c16_i32 = arith.constant 16 : i32
    %49 = vector.broadcast %c16_i32 : i32 to vector<272x1xi32>
    %50 = arith.cmpi slt, %48, %49 : vector<272x1xi32>
    %c271_i32 = arith.constant 271 : i32
    %51 = vector.broadcast %c271_i32 : i32 to vector<272x1xi32>
    %52 = arith.cmpi slt, %32, %51 : vector<272x1xi32>
    %53 = arith.andi %50, %52 : vector<272x1xi1>
    %54 = arith.extui %53 : vector<272x1xi1> to vector<272x1xi32>
    %55 = arith.sitofp %54 : vector<272x1xi32> to vector<272x1xf32>
    %56 = vector.broadcast %55 : vector<272x1xf32> to vector<272x8xf32>
    %57 = arith.mulf %31, %56 : vector<272x8xf32>
    %cst_27 = arith.constant dense<0.000000e+00> : vector<8xf32>
    %58 = vector.multi_reduction <add>, %57, %cst_27 [0] : vector<272x8xf32> to vector<8xf32>
    %59 = vector.shape_cast %58 : vector<8xf32> to vector<1x8xf32>
    %cst_28 = arith.constant 2.560000e+02 : f32
    %60 = vector.broadcast %cst_28 : f32 to vector<1x8xf32>
    %61 = arith.divf %59, %60 : vector<1x8xf32>
    %62 = vector.broadcast %61 : vector<1x8xf32> to vector<272x8xf32>
    %63 = arith.subf %31, %62 : vector<272x8xf32>
    %64 = vector.broadcast %55 : vector<272x1xf32> to vector<272x8xf32>
    %65 = arith.mulf %63, %64 : vector<272x8xf32>
    %66 = arith.mulf %65, %65 : vector<272x8xf32>
    %cst_29 = arith.constant dense<0.000000e+00> : vector<8xf32>
    %67 = vector.multi_reduction <add>, %66, %cst_29 [0] : vector<272x8xf32> to vector<8xf32>
    %68 = vector.shape_cast %67 : vector<8xf32> to vector<1x8xf32>
    %cst_30 = arith.constant 2.560000e+02 : f32
    %69 = vector.broadcast %cst_30 : f32 to vector<1x8xf32>
    %70 = arith.divf %68, %69 : vector<1x8xf32>
    %71 = vector.broadcast %61 : vector<1x8xf32> to vector<272x8xf32>
    %72 = arith.subf %31, %71 : vector<272x8xf32>
    %cst_31 = arith.constant 9.99999974E-6 : f32
    %73 = vector.broadcast %cst_31 : f32 to vector<1x8xf32>
    %74 = arith.addf %70, %73 : vector<1x8xf32>
    %75 = math.rsqrt %74 : vector<1x8xf32>
    %76 = vector.broadcast %75 : vector<1x8xf32> to vector<272x8xf32>
    %77 = arith.mulf %72, %76 : vector<272x8xf32>
    %cst_32 = arith.constant 0.000000e+00 : f32
    %78 = vector.broadcast %cst_32 : f32 to vector<272x8xf32>
    %79 = arith.cmpf oge, %77, %78 : vector<272x8xf32>
    %cst_33 = arith.constant 2.000000e-01 : f32
    %80 = vector.broadcast %cst_33 : f32 to vector<272x8xf32>
    %81 = arith.mulf %80, %77 : vector<272x8xf32>
    %82 = arith.select %79, %77, %81 : vector<272x8xi1>, vector<272x8xf32>
    %c0_34 = arith.constant 0 : index
    %c0_35 = arith.constant 0 : index
    %c0_36 = arith.constant 0 : index
    %83 = vector.load %arg4[%c0_34, %c0_35, %c0_36] : memref<1x272x8xf32, #tpu.memory_space<vmem>>, vector<1x272x8xf32>
    %84 = vector.shape_cast %83 : vector<1x272x8xf32> to vector<272x8xf32>
    %85 = vector.shape_cast %82 : vector<272x8xf32> to vector<1x272x8xf32>
    tpu.vector_store %arg4[%c0_34, %c0_35, %c0_36], %85 {strides = array<i32>} : memref<1x272x8xf32, #tpu.memory_space<vmem>>, vector<1x272x8xf32>,
    return
  }
  func.func @transform_0(%arg0: i32) -> (i32, i32, i32) {
    %c0_i32 = arith.constant 0 : i32
    %c0_i32_0 = arith.constant 0 : i32
    %c0_i32_1 = arith.constant 0 : i32
    return %arg0, %c0_i32, %c0_i32_0 : i32, i32, i32
  }
  func.func @transform_1(%arg0: i32) -> (i32, i32, i32) {
    %c0_i32 = arith.constant 0 : i32
    %c0_i32_0 = arith.constant 0 : i32
    %c0_i32_1 = arith.constant 0 : i32
    %c0_i32_2 = arith.constant 0 : i32
    return %c0_i32, %c0_i32_0, %c0_i32_1 : i32, i32, i32
  }
  func.func @transform_2(%arg0: i32) -> (i32, i32) {
    %c0_i32 = arith.constant 0 : i32
    %c0_i32_0 = arith.constant 0 : i32
    %c0_i32_1 = arith.constant 0 : i32
    return %c0_i32, %c0_i32_0 : i32, i32
  }
  func.func @transform_3(%arg0: i32) -> (i32, i32, i32) {
    %c0_i32 = arith.constant 0 : i32
    %c0_i32_0 = arith.constant 0 : i32
    %c0_i32_1 = arith.constant 0 : i32
    return %arg0, %c0_i32, %c0_i32_0 : i32, i32, i32
  }
}

module attributes {stable_mosaic.version = 11 : i64} {
  func.func @_conv_fused_kernel(%arg0: i32, %arg1: memref<1x90x32xf32, #tpu.memory_space<vmem>>, %arg2: memref<4x32x16xbf16, #tpu.memory_space<vmem>>, %arg3: memref<1x16xf32, #tpu.memory_space<vmem>>, %arg4: memref<1x80x16xf32, #tpu.memory_space<vmem>>) attributes {dimension_semantics = [#tpu.dimension_semantics<parallel>], iteration_bounds = array<i64: 2>, scalar_prefetch = 0 : i64, scratch_operands = 0 : i64, tpu.core_type = #tpu.core_type<tc>, window_params = [{transform_indices = @transform_0, window_bounds = array<i64: 1, 90, 32>}, {pipeline_mode = #tpu.pipeline_mode<synchronous>, transform_indices = @transform_1, window_bounds = array<i64: 4, 32, 16>}, {pipeline_mode = #tpu.pipeline_mode<synchronous>, transform_indices = @transform_2, window_bounds = array<i64: 1, 16>}, {transform_indices = @transform_3, window_bounds = array<i64: 1, 80, 16>}]} {
    %cst = arith.constant 0.000000e+00 : f32
    %0 = vector.broadcast %cst : f32 to vector<80x16xf32>
    %c0 = arith.constant 0 : index
    %c0_0 = arith.constant 0 : index
    %c0_1 = arith.constant 0 : index
    %1 = vector.load %arg1[%c0, %c0_0, %c0_1] : memref<1x90x32xf32, #tpu.memory_space<vmem>>, vector<1x80x32xf32>
    %2 = vector.shape_cast %1 : vector<1x80x32xf32> to vector<80x32xf32>
    %3 = arith.truncf %2 : vector<80x32xf32> to vector<80x32xbf16>
    %c0_2 = arith.constant 0 : index
    %c0_3 = arith.constant 0 : index
    %c0_4 = arith.constant 0 : index
    %4 = vector.load %arg2[%c0_2, %c0_3, %c0_4] : memref<4x32x16xbf16, #tpu.memory_space<vmem>>, vector<1x32x16xbf16>
    %5 = vector.shape_cast %4 : vector<1x32x16xbf16> to vector<32x16xbf16>
    %cst_5 = arith.constant dense<0.000000e+00> : vector<80x16xf32>
    %6 = tpu.matmul %3, %5, %cst_5 {dimension_numbers = #tpu.dot_dimension_numbers<[1], [0], [0], [1], [0, 0, 1, 1], [], []>} : vector<80x32xbf16>, vector<32x16xbf16>, vector<80x16xf32> -> vector<80x16xf32>
    %7 = arith.addf %0, %6 : vector<80x16xf32>
    %c0_6 = arith.constant 0 : index
    %c1 = arith.constant 1 : index
    %c0_7 = arith.constant 0 : index
    %8 = vector.load %arg1[%c0_6, %c1, %c0_7] : memref<1x90x32xf32, #tpu.memory_space<vmem>>, vector<1x80x32xf32>
    %9 = vector.shape_cast %8 : vector<1x80x32xf32> to vector<80x32xf32>
    %10 = arith.truncf %9 : vector<80x32xf32> to vector<80x32xbf16>
    %c1_8 = arith.constant 1 : index
    %c0_9 = arith.constant 0 : index
    %c0_10 = arith.constant 0 : index
    %11 = vector.load %arg2[%c1_8, %c0_9, %c0_10] : memref<4x32x16xbf16, #tpu.memory_space<vmem>>, vector<1x32x16xbf16>
    %12 = vector.shape_cast %11 : vector<1x32x16xbf16> to vector<32x16xbf16>
    %cst_11 = arith.constant dense<0.000000e+00> : vector<80x16xf32>
    %13 = tpu.matmul %10, %12, %cst_11 {dimension_numbers = #tpu.dot_dimension_numbers<[1], [0], [0], [1], [0, 0, 1, 1], [], []>} : vector<80x32xbf16>, vector<32x16xbf16>, vector<80x16xf32> -> vector<80x16xf32>
    %14 = arith.addf %7, %13 : vector<80x16xf32>
    %c0_12 = arith.constant 0 : index
    %c9 = arith.constant 9 : index
    %c0_13 = arith.constant 0 : index
    %15 = vector.load %arg1[%c0_12, %c9, %c0_13] : memref<1x90x32xf32, #tpu.memory_space<vmem>>, vector<1x80x32xf32>
    %16 = vector.shape_cast %15 : vector<1x80x32xf32> to vector<80x32xf32>
    %17 = arith.truncf %16 : vector<80x32xf32> to vector<80x32xbf16>
    %c2 = arith.constant 2 : index
    %c0_14 = arith.constant 0 : index
    %c0_15 = arith.constant 0 : index
    %18 = vector.load %arg2[%c2, %c0_14, %c0_15] : memref<4x32x16xbf16, #tpu.memory_space<vmem>>, vector<1x32x16xbf16>
    %19 = vector.shape_cast %18 : vector<1x32x16xbf16> to vector<32x16xbf16>
    %cst_16 = arith.constant dense<0.000000e+00> : vector<80x16xf32>
    %20 = tpu.matmul %17, %19, %cst_16 {dimension_numbers = #tpu.dot_dimension_numbers<[1], [0], [0], [1], [0, 0, 1, 1], [], []>} : vector<80x32xbf16>, vector<32x16xbf16>, vector<80x16xf32> -> vector<80x16xf32>
    %21 = arith.addf %14, %20 : vector<80x16xf32>
    %c0_17 = arith.constant 0 : index
    %c10 = arith.constant 10 : index
    %c0_18 = arith.constant 0 : index
    %22 = vector.load %arg1[%c0_17, %c10, %c0_18] : memref<1x90x32xf32, #tpu.memory_space<vmem>>, vector<1x80x32xf32>
    %23 = vector.shape_cast %22 : vector<1x80x32xf32> to vector<80x32xf32>
    %24 = arith.truncf %23 : vector<80x32xf32> to vector<80x32xbf16>
    %c3 = arith.constant 3 : index
    %c0_19 = arith.constant 0 : index
    %c0_20 = arith.constant 0 : index
    %25 = vector.load %arg2[%c3, %c0_19, %c0_20] : memref<4x32x16xbf16, #tpu.memory_space<vmem>>, vector<1x32x16xbf16>
    %26 = vector.shape_cast %25 : vector<1x32x16xbf16> to vector<32x16xbf16>
    %cst_21 = arith.constant dense<0.000000e+00> : vector<80x16xf32>
    %27 = tpu.matmul %24, %26, %cst_21 {dimension_numbers = #tpu.dot_dimension_numbers<[1], [0], [0], [1], [0, 0, 1, 1], [], []>} : vector<80x32xbf16>, vector<32x16xbf16>, vector<80x16xf32> -> vector<80x16xf32>
    %28 = arith.addf %21, %27 : vector<80x16xf32>
    %c0_22 = arith.constant 0 : index
    %c0_23 = arith.constant 0 : index
    %29 = vector.load %arg3[%c0_22, %c0_23] : memref<1x16xf32, #tpu.memory_space<vmem>>, vector<1x16xf32>
    %30 = vector.broadcast %29 : vector<1x16xf32> to vector<80x16xf32>
    %31 = arith.addf %28, %30 : vector<80x16xf32>
    %32 = tpu.iota {dimensions = array<i32: 0>} : vector<80x1xi32>
    %c9_i32 = arith.constant 9 : i32
    %c0_i32 = arith.constant 0 : i32
    %33 = arith.cmpi eq, %c9_i32, %c0_i32 : i32
    %c1_i32 = arith.constant 1 : i32
    %34 = arith.select %33, %c1_i32, %c9_i32 : i32
    %35 = vector.broadcast %34 : i32 to vector<80x1xi32>
    %36 = arith.remsi %32, %35 : vector<80x1xi32>
    %c0_i32_24 = arith.constant 0 : i32
    %37 = vector.broadcast %c0_i32_24 : i32 to vector<80x1xi32>
    %38 = arith.cmpi ne, %36, %37 : vector<80x1xi32>
    %c0_i32_25 = arith.constant 0 : i32
    %39 = vector.broadcast %c0_i32_25 : i32 to vector<80x1xi32>
    %40 = arith.cmpi slt, %36, %39 : vector<80x1xi32>
    %c0_i32_26 = arith.constant 0 : i32
    %41 = arith.cmpi slt, %34, %c0_i32_26 : i32
    %42 = vector.broadcast %41 : i1 to vector<80x1xi1>
    %43 = vector.broadcast %42 : vector<80x1xi1> to vector<80x1xi1>
    %44 = arith.xori %40, %43 : vector<80x1xi1>
    %45 = arith.andi %44, %38 : vector<80x1xi1>
    %46 = vector.broadcast %34 : i32 to vector<80x1xi32>
    %47 = arith.addi %36, %46 : vector<80x1xi32>
    %48 = arith.select %45, %47, %36 : vector<80x1xi1>, vector<80x1xi32>
    %c8_i32 = arith.constant 8 : i32
    %49 = vector.broadcast %c8_i32 : i32 to vector<80x1xi32>
    %50 = arith.cmpi slt, %48, %49 : vector<80x1xi32>
    %c71_i32 = arith.constant 71 : i32
    %51 = vector.broadcast %c71_i32 : i32 to vector<80x1xi32>
    %52 = arith.cmpi slt, %32, %51 : vector<80x1xi32>
    %53 = arith.andi %50, %52 : vector<80x1xi1>
    %54 = arith.extui %53 : vector<80x1xi1> to vector<80x1xi32>
    %55 = arith.sitofp %54 : vector<80x1xi32> to vector<80x1xf32>
    %56 = vector.broadcast %55 : vector<80x1xf32> to vector<80x16xf32>
    %57 = arith.mulf %31, %56 : vector<80x16xf32>
    %cst_27 = arith.constant dense<0.000000e+00> : vector<16xf32>
    %58 = vector.multi_reduction <add>, %57, %cst_27 [0] : vector<80x16xf32> to vector<16xf32>
    %59 = vector.shape_cast %58 : vector<16xf32> to vector<1x16xf32>
    %cst_28 = arith.constant 6.400000e+01 : f32
    %60 = vector.broadcast %cst_28 : f32 to vector<1x16xf32>
    %61 = arith.divf %59, %60 : vector<1x16xf32>
    %62 = vector.broadcast %61 : vector<1x16xf32> to vector<80x16xf32>
    %63 = arith.subf %31, %62 : vector<80x16xf32>
    %64 = vector.broadcast %55 : vector<80x1xf32> to vector<80x16xf32>
    %65 = arith.mulf %63, %64 : vector<80x16xf32>
    %66 = arith.mulf %65, %65 : vector<80x16xf32>
    %cst_29 = arith.constant dense<0.000000e+00> : vector<16xf32>
    %67 = vector.multi_reduction <add>, %66, %cst_29 [0] : vector<80x16xf32> to vector<16xf32>
    %68 = vector.shape_cast %67 : vector<16xf32> to vector<1x16xf32>
    %cst_30 = arith.constant 6.400000e+01 : f32
    %69 = vector.broadcast %cst_30 : f32 to vector<1x16xf32>
    %70 = arith.divf %68, %69 : vector<1x16xf32>
    %71 = vector.broadcast %61 : vector<1x16xf32> to vector<80x16xf32>
    %72 = arith.subf %31, %71 : vector<80x16xf32>
    %cst_31 = arith.constant 9.99999974E-6 : f32
    %73 = vector.broadcast %cst_31 : f32 to vector<1x16xf32>
    %74 = arith.addf %70, %73 : vector<1x16xf32>
    %75 = math.rsqrt %74 : vector<1x16xf32>
    %76 = vector.broadcast %75 : vector<1x16xf32> to vector<80x16xf32>
    %77 = arith.mulf %72, %76 : vector<80x16xf32>
    %cst_32 = arith.constant 0.000000e+00 : f32
    %78 = vector.broadcast %cst_32 : f32 to vector<80x16xf32>
    %79 = arith.cmpf oge, %77, %78 : vector<80x16xf32>
    %cst_33 = arith.constant 2.000000e-01 : f32
    %80 = vector.broadcast %cst_33 : f32 to vector<80x16xf32>
    %81 = arith.mulf %80, %77 : vector<80x16xf32>
    %82 = arith.select %79, %77, %81 : vector<80x16xi1>, vector<80x16xf32>
    %c0_34 = arith.constant 0 : index
    %c0_35 = arith.constant 0 : index
    %c0_36 = arith.constant 0 : index
    %83 = vector.load %arg4[%c0_34, %c0_35, %c0_36] : memref<1x80x16xf32, #tpu.memory_space<vmem>>, vector<1x80x16xf32>
    %84 = vector.shape_cast %83 : vector<1x80x16xf32> to vector<80x16xf32>
    %85 = vector.shape_cast %82 : vector<80x16xf32> to vector<1x80x16xf32>
    tpu.vector_store %arg4[%c0_34, %c0_35, %c0_36], %85 {strides = array<i32>} : memref<1x80x16xf32, #tpu.memory_space<vmem>>, vector<1x80x16xf32>,
    return
  }
  func.func @transform_0(%arg0: i32) -> (i32, i32, i32) {
    %c0_i32 = arith.constant 0 : i32
    %c0_i32_0 = arith.constant 0 : i32
    %c0_i32_1 = arith.constant 0 : i32
    return %arg0, %c0_i32, %c0_i32_0 : i32, i32, i32
  }
  func.func @transform_1(%arg0: i32) -> (i32, i32, i32) {
    %c0_i32 = arith.constant 0 : i32
    %c0_i32_0 = arith.constant 0 : i32
    %c0_i32_1 = arith.constant 0 : i32
    %c0_i32_2 = arith.constant 0 : i32
    return %c0_i32, %c0_i32_0, %c0_i32_1 : i32, i32, i32
  }
  func.func @transform_2(%arg0: i32) -> (i32, i32) {
    %c0_i32 = arith.constant 0 : i32
    %c0_i32_0 = arith.constant 0 : i32
    %c0_i32_1 = arith.constant 0 : i32
    return %c0_i32, %c0_i32_0 : i32, i32
  }
  func.func @transform_3(%arg0: i32) -> (i32, i32, i32) {
    %c0_i32 = arith.constant 0 : i32
    %c0_i32_0 = arith.constant 0 : i32
    %c0_i32_1 = arith.constant 0 : i32
    return %arg0, %c0_i32, %c0_i32_0 : i32, i32, i32
  }
}

module attributes {stable_mosaic.version = 11 : i64} {
  func.func @_conv_fused_kernel(%arg0: i32, %arg1: memref<1x38x64xf32, #tpu.memory_space<vmem>>, %arg2: memref<4x64x32xbf16, #tpu.memory_space<vmem>>, %arg3: memref<1x32xf32, #tpu.memory_space<vmem>>, %arg4: memref<1x32x32xf32, #tpu.memory_space<vmem>>) attributes {dimension_semantics = [#tpu.dimension_semantics<parallel>], iteration_bounds = array<i64: 2>, scalar_prefetch = 0 : i64, scratch_operands = 0 : i64, tpu.core_type = #tpu.core_type<tc>, window_params = [{transform_indices = @transform_0, window_bounds = array<i64: 1, 38, 64>}, {pipeline_mode = #tpu.pipeline_mode<synchronous>, transform_indices = @transform_1, window_bounds = array<i64: 4, 64, 32>}, {pipeline_mode = #tpu.pipeline_mode<synchronous>, transform_indices = @transform_2, window_bounds = array<i64: 1, 32>}, {transform_indices = @transform_3, window_bounds = array<i64: 1, 32, 32>}]} {
    %cst = arith.constant 0.000000e+00 : f32
    %0 = vector.broadcast %cst : f32 to vector<32x32xf32>
    %c0 = arith.constant 0 : index
    %c0_0 = arith.constant 0 : index
    %c0_1 = arith.constant 0 : index
    %1 = vector.load %arg1[%c0, %c0_0, %c0_1] : memref<1x38x64xf32, #tpu.memory_space<vmem>>, vector<1x32x64xf32>
    %2 = vector.shape_cast %1 : vector<1x32x64xf32> to vector<32x64xf32>
    %3 = arith.truncf %2 : vector<32x64xf32> to vector<32x64xbf16>
    %c0_2 = arith.constant 0 : index
    %c0_3 = arith.constant 0 : index
    %c0_4 = arith.constant 0 : index
    %4 = vector.load %arg2[%c0_2, %c0_3, %c0_4] : memref<4x64x32xbf16, #tpu.memory_space<vmem>>, vector<1x64x32xbf16>
    %5 = vector.shape_cast %4 : vector<1x64x32xbf16> to vector<64x32xbf16>
    %cst_5 = arith.constant dense<0.000000e+00> : vector<32x32xf32>
    %6 = tpu.matmul %3, %5, %cst_5 {dimension_numbers = #tpu.dot_dimension_numbers<[1], [0], [0], [1], [0, 0, 1, 1], [], []>} : vector<32x64xbf16>, vector<64x32xbf16>, vector<32x32xf32> -> vector<32x32xf32>
    %7 = arith.addf %0, %6 : vector<32x32xf32>
    %c0_6 = arith.constant 0 : index
    %c1 = arith.constant 1 : index
    %c0_7 = arith.constant 0 : index
    %8 = vector.load %arg1[%c0_6, %c1, %c0_7] : memref<1x38x64xf32, #tpu.memory_space<vmem>>, vector<1x32x64xf32>
    %9 = vector.shape_cast %8 : vector<1x32x64xf32> to vector<32x64xf32>
    %10 = arith.truncf %9 : vector<32x64xf32> to vector<32x64xbf16>
    %c1_8 = arith.constant 1 : index
    %c0_9 = arith.constant 0 : index
    %c0_10 = arith.constant 0 : index
    %11 = vector.load %arg2[%c1_8, %c0_9, %c0_10] : memref<4x64x32xbf16, #tpu.memory_space<vmem>>, vector<1x64x32xbf16>
    %12 = vector.shape_cast %11 : vector<1x64x32xbf16> to vector<64x32xbf16>
    %cst_11 = arith.constant dense<0.000000e+00> : vector<32x32xf32>
    %13 = tpu.matmul %10, %12, %cst_11 {dimension_numbers = #tpu.dot_dimension_numbers<[1], [0], [0], [1], [0, 0, 1, 1], [], []>} : vector<32x64xbf16>, vector<64x32xbf16>, vector<32x32xf32> -> vector<32x32xf32>
    %14 = arith.addf %7, %13 : vector<32x32xf32>
    %c0_12 = arith.constant 0 : index
    %c5 = arith.constant 5 : index
    %c0_13 = arith.constant 0 : index
    %15 = vector.load %arg1[%c0_12, %c5, %c0_13] : memref<1x38x64xf32, #tpu.memory_space<vmem>>, vector<1x32x64xf32>
    %16 = vector.shape_cast %15 : vector<1x32x64xf32> to vector<32x64xf32>
    %17 = arith.truncf %16 : vector<32x64xf32> to vector<32x64xbf16>
    %c2 = arith.constant 2 : index
    %c0_14 = arith.constant 0 : index
    %c0_15 = arith.constant 0 : index
    %18 = vector.load %arg2[%c2, %c0_14, %c0_15] : memref<4x64x32xbf16, #tpu.memory_space<vmem>>, vector<1x64x32xbf16>
    %19 = vector.shape_cast %18 : vector<1x64x32xbf16> to vector<64x32xbf16>
    %cst_16 = arith.constant dense<0.000000e+00> : vector<32x32xf32>
    %20 = tpu.matmul %17, %19, %cst_16 {dimension_numbers = #tpu.dot_dimension_numbers<[1], [0], [0], [1], [0, 0, 1, 1], [], []>} : vector<32x64xbf16>, vector<64x32xbf16>, vector<32x32xf32> -> vector<32x32xf32>
    %21 = arith.addf %14, %20 : vector<32x32xf32>
    %c0_17 = arith.constant 0 : index
    %c6 = arith.constant 6 : index
    %c0_18 = arith.constant 0 : index
    %22 = vector.load %arg1[%c0_17, %c6, %c0_18] : memref<1x38x64xf32, #tpu.memory_space<vmem>>, vector<1x32x64xf32>
    %23 = vector.shape_cast %22 : vector<1x32x64xf32> to vector<32x64xf32>
    %24 = arith.truncf %23 : vector<32x64xf32> to vector<32x64xbf16>
    %c3 = arith.constant 3 : index
    %c0_19 = arith.constant 0 : index
    %c0_20 = arith.constant 0 : index
    %25 = vector.load %arg2[%c3, %c0_19, %c0_20] : memref<4x64x32xbf16, #tpu.memory_space<vmem>>, vector<1x64x32xbf16>
    %26 = vector.shape_cast %25 : vector<1x64x32xbf16> to vector<64x32xbf16>
    %cst_21 = arith.constant dense<0.000000e+00> : vector<32x32xf32>
    %27 = tpu.matmul %24, %26, %cst_21 {dimension_numbers = #tpu.dot_dimension_numbers<[1], [0], [0], [1], [0, 0, 1, 1], [], []>} : vector<32x64xbf16>, vector<64x32xbf16>, vector<32x32xf32> -> vector<32x32xf32>
    %28 = arith.addf %21, %27 : vector<32x32xf32>
    %c0_22 = arith.constant 0 : index
    %c0_23 = arith.constant 0 : index
    %29 = vector.load %arg3[%c0_22, %c0_23] : memref<1x32xf32, #tpu.memory_space<vmem>>, vector<1x32xf32>
    %30 = vector.broadcast %29 : vector<1x32xf32> to vector<32x32xf32>
    %31 = arith.addf %28, %30 : vector<32x32xf32>
    %32 = tpu.iota {dimensions = array<i32: 0>} : vector<32x1xi32>
    %c5_i32 = arith.constant 5 : i32
    %c0_i32 = arith.constant 0 : i32
    %33 = arith.cmpi eq, %c5_i32, %c0_i32 : i32
    %c1_i32 = arith.constant 1 : i32
    %34 = arith.select %33, %c1_i32, %c5_i32 : i32
    %35 = vector.broadcast %34 : i32 to vector<32x1xi32>
    %36 = arith.remsi %32, %35 : vector<32x1xi32>
    %c0_i32_24 = arith.constant 0 : i32
    %37 = vector.broadcast %c0_i32_24 : i32 to vector<32x1xi32>
    %38 = arith.cmpi ne, %36, %37 : vector<32x1xi32>
    %c0_i32_25 = arith.constant 0 : i32
    %39 = vector.broadcast %c0_i32_25 : i32 to vector<32x1xi32>
    %40 = arith.cmpi slt, %36, %39 : vector<32x1xi32>
    %c0_i32_26 = arith.constant 0 : i32
    %41 = arith.cmpi slt, %34, %c0_i32_26 : i32
    %42 = vector.broadcast %41 : i1 to vector<32x1xi1>
    %43 = vector.broadcast %42 : vector<32x1xi1> to vector<32x1xi1>
    %44 = arith.xori %40, %43 : vector<32x1xi1>
    %45 = arith.andi %44, %38 : vector<32x1xi1>
    %46 = vector.broadcast %34 : i32 to vector<32x1xi32>
    %47 = arith.addi %36, %46 : vector<32x1xi32>
    %48 = arith.select %45, %47, %36 : vector<32x1xi1>, vector<32x1xi32>
    %c4_i32 = arith.constant 4 : i32
    %49 = vector.broadcast %c4_i32 : i32 to vector<32x1xi32>
    %50 = arith.cmpi slt, %48, %49 : vector<32x1xi32>
    %c19_i32 = arith.constant 19 : i32
    %51 = vector.broadcast %c19_i32 : i32 to vector<32x1xi32>
    %52 = arith.cmpi slt, %32, %51 : vector<32x1xi32>
    %53 = arith.andi %50, %52 : vector<32x1xi1>
    %54 = arith.extui %53 : vector<32x1xi1> to vector<32x1xi32>
    %55 = arith.sitofp %54 : vector<32x1xi32> to vector<32x1xf32>
    %56 = vector.broadcast %55 : vector<32x1xf32> to vector<32x32xf32>
    %57 = arith.mulf %31, %56 : vector<32x32xf32>
    %cst_27 = arith.constant dense<0.000000e+00> : vector<32xf32>
    %58 = vector.multi_reduction <add>, %57, %cst_27 [0] : vector<32x32xf32> to vector<32xf32>
    %59 = vector.shape_cast %58 : vector<32xf32> to vector<1x32xf32>
    %cst_28 = arith.constant 1.600000e+01 : f32
    %60 = vector.broadcast %cst_28 : f32 to vector<1x32xf32>
    %61 = arith.divf %59, %60 : vector<1x32xf32>
    %62 = vector.broadcast %61 : vector<1x32xf32> to vector<32x32xf32>
    %63 = arith.subf %31, %62 : vector<32x32xf32>
    %64 = vector.broadcast %55 : vector<32x1xf32> to vector<32x32xf32>
    %65 = arith.mulf %63, %64 : vector<32x32xf32>
    %66 = arith.mulf %65, %65 : vector<32x32xf32>
    %cst_29 = arith.constant dense<0.000000e+00> : vector<32xf32>
    %67 = vector.multi_reduction <add>, %66, %cst_29 [0] : vector<32x32xf32> to vector<32xf32>
    %68 = vector.shape_cast %67 : vector<32xf32> to vector<1x32xf32>
    %cst_30 = arith.constant 1.600000e+01 : f32
    %69 = vector.broadcast %cst_30 : f32 to vector<1x32xf32>
    %70 = arith.divf %68, %69 : vector<1x32xf32>
    %71 = vector.broadcast %61 : vector<1x32xf32> to vector<32x32xf32>
    %72 = arith.subf %31, %71 : vector<32x32xf32>
    %cst_31 = arith.constant 9.99999974E-6 : f32
    %73 = vector.broadcast %cst_31 : f32 to vector<1x32xf32>
    %74 = arith.addf %70, %73 : vector<1x32xf32>
    %75 = math.rsqrt %74 : vector<1x32xf32>
    %76 = vector.broadcast %75 : vector<1x32xf32> to vector<32x32xf32>
    %77 = arith.mulf %72, %76 : vector<32x32xf32>
    %cst_32 = arith.constant 0.000000e+00 : f32
    %78 = vector.broadcast %cst_32 : f32 to vector<32x32xf32>
    %79 = arith.cmpf oge, %77, %78 : vector<32x32xf32>
    %cst_33 = arith.constant 2.000000e-01 : f32
    %80 = vector.broadcast %cst_33 : f32 to vector<32x32xf32>
    %81 = arith.mulf %80, %77 : vector<32x32xf32>
    %82 = arith.select %79, %77, %81 : vector<32x32xi1>, vector<32x32xf32>
    %c0_34 = arith.constant 0 : index
    %c0_35 = arith.constant 0 : index
    %c0_36 = arith.constant 0 : index
    %83 = vector.load %arg4[%c0_34, %c0_35, %c0_36] : memref<1x32x32xf32, #tpu.memory_space<vmem>>, vector<1x32x32xf32>
    %84 = vector.shape_cast %83 : vector<1x32x32xf32> to vector<32x32xf32>
    %85 = vector.shape_cast %82 : vector<32x32xf32> to vector<1x32x32xf32>
    tpu.vector_store %arg4[%c0_34, %c0_35, %c0_36], %85 {strides = array<i32>} : memref<1x32x32xf32, #tpu.memory_space<vmem>>, vector<1x32x32xf32>,
    return
  }
  func.func @transform_0(%arg0: i32) -> (i32, i32, i32) {
    %c0_i32 = arith.constant 0 : i32
    %c0_i32_0 = arith.constant 0 : i32
    %c0_i32_1 = arith.constant 0 : i32
    return %arg0, %c0_i32, %c0_i32_0 : i32, i32, i32
  }
  func.func @transform_1(%arg0: i32) -> (i32, i32, i32) {
    %c0_i32 = arith.constant 0 : i32
    %c0_i32_0 = arith.constant 0 : i32
    %c0_i32_1 = arith.constant 0 : i32
    %c0_i32_2 = arith.constant 0 : i32
    return %c0_i32, %c0_i32_0, %c0_i32_1 : i32, i32, i32
  }
  func.func @transform_2(%arg0: i32) -> (i32, i32) {
    %c0_i32 = arith.constant 0 : i32
    %c0_i32_0 = arith.constant 0 : i32
    %c0_i32_1 = arith.constant 0 : i32
    return %c0_i32, %c0_i32_0 : i32, i32
  }
  func.func @transform_3(%arg0: i32) -> (i32, i32, i32) {
    %c0_i32 = arith.constant 0 : i32
    %c0_i32_0 = arith.constant 0 : i32
    %c0_i32_1 = arith.constant 0 : i32
    return %arg0, %c0_i32, %c0_i32_0 : i32, i32, i32
  }
}

module attributes {stable_mosaic.version = 11 : i64} {
  func.func @_conv_fused_kernel(%arg0: i32, %arg1: memref<1x20x128xf32, #tpu.memory_space<vmem>>, %arg2: memref<4x128x64xbf16, #tpu.memory_space<vmem>>, %arg3: memref<1x64xf32, #tpu.memory_space<vmem>>, %arg4: memref<1x16x64xf32, #tpu.memory_space<vmem>>) attributes {dimension_semantics = [#tpu.dimension_semantics<parallel>], iteration_bounds = array<i64: 2>, scalar_prefetch = 0 : i64, scratch_operands = 0 : i64, tpu.core_type = #tpu.core_type<tc>, window_params = [{transform_indices = @transform_0, window_bounds = array<i64: 1, 20, 128>}, {pipeline_mode = #tpu.pipeline_mode<synchronous>, transform_indices = @transform_1, window_bounds = array<i64: 4, 128, 64>}, {pipeline_mode = #tpu.pipeline_mode<synchronous>, transform_indices = @transform_2, window_bounds = array<i64: 1, 64>}, {transform_indices = @transform_3, window_bounds = array<i64: 1, 16, 64>}]} {
    %cst = arith.constant 0.000000e+00 : f32
    %0 = vector.broadcast %cst : f32 to vector<16x64xf32>
    %c0 = arith.constant 0 : index
    %c0_0 = arith.constant 0 : index
    %c0_1 = arith.constant 0 : index
    %1 = vector.load %arg1[%c0, %c0_0, %c0_1] : memref<1x20x128xf32, #tpu.memory_space<vmem>>, vector<1x16x128xf32>
    %2 = vector.shape_cast %1 : vector<1x16x128xf32> to vector<16x128xf32>
    %3 = arith.truncf %2 : vector<16x128xf32> to vector<16x128xbf16>
    %c0_2 = arith.constant 0 : index
    %c0_3 = arith.constant 0 : index
    %c0_4 = arith.constant 0 : index
    %4 = vector.load %arg2[%c0_2, %c0_3, %c0_4] : memref<4x128x64xbf16, #tpu.memory_space<vmem>>, vector<1x128x64xbf16>
    %5 = vector.shape_cast %4 : vector<1x128x64xbf16> to vector<128x64xbf16>
    %cst_5 = arith.constant dense<0.000000e+00> : vector<16x64xf32>
    %6 = tpu.matmul %3, %5, %cst_5 {dimension_numbers = #tpu.dot_dimension_numbers<[1], [0], [0], [1], [0, 0, 1, 1], [], []>} : vector<16x128xbf16>, vector<128x64xbf16>, vector<16x64xf32> -> vector<16x64xf32>
    %7 = arith.addf %0, %6 : vector<16x64xf32>
    %c0_6 = arith.constant 0 : index
    %c1 = arith.constant 1 : index
    %c0_7 = arith.constant 0 : index
    %8 = vector.load %arg1[%c0_6, %c1, %c0_7] : memref<1x20x128xf32, #tpu.memory_space<vmem>>, vector<1x16x128xf32>
    %9 = vector.shape_cast %8 : vector<1x16x128xf32> to vector<16x128xf32>
    %10 = arith.truncf %9 : vector<16x128xf32> to vector<16x128xbf16>
    %c1_8 = arith.constant 1 : index
    %c0_9 = arith.constant 0 : index
    %c0_10 = arith.constant 0 : index
    %11 = vector.load %arg2[%c1_8, %c0_9, %c0_10] : memref<4x128x64xbf16, #tpu.memory_space<vmem>>, vector<1x128x64xbf16>
    %12 = vector.shape_cast %11 : vector<1x128x64xbf16> to vector<128x64xbf16>
    %cst_11 = arith.constant dense<0.000000e+00> : vector<16x64xf32>
    %13 = tpu.matmul %10, %12, %cst_11 {dimension_numbers = #tpu.dot_dimension_numbers<[1], [0], [0], [1], [0, 0, 1, 1], [], []>} : vector<16x128xbf16>, vector<128x64xbf16>, vector<16x64xf32> -> vector<16x64xf32>
    %14 = arith.addf %7, %13 : vector<16x64xf32>
    %c0_12 = arith.constant 0 : index
    %c3 = arith.constant 3 : index
    %c0_13 = arith.constant 0 : index
    %15 = vector.load %arg1[%c0_12, %c3, %c0_13] : memref<1x20x128xf32, #tpu.memory_space<vmem>>, vector<1x16x128xf32>
    %16 = vector.shape_cast %15 : vector<1x16x128xf32> to vector<16x128xf32>
    %17 = arith.truncf %16 : vector<16x128xf32> to vector<16x128xbf16>
    %c2 = arith.constant 2 : index
    %c0_14 = arith.constant 0 : index
    %c0_15 = arith.constant 0 : index
    %18 = vector.load %arg2[%c2, %c0_14, %c0_15] : memref<4x128x64xbf16, #tpu.memory_space<vmem>>, vector<1x128x64xbf16>
    %19 = vector.shape_cast %18 : vector<1x128x64xbf16> to vector<128x64xbf16>
    %cst_16 = arith.constant dense<0.000000e+00> : vector<16x64xf32>
    %20 = tpu.matmul %17, %19, %cst_16 {dimension_numbers = #tpu.dot_dimension_numbers<[1], [0], [0], [1], [0, 0, 1, 1], [], []>} : vector<16x128xbf16>, vector<128x64xbf16>, vector<16x64xf32> -> vector<16x64xf32>
    %21 = arith.addf %14, %20 : vector<16x64xf32>
    %c0_17 = arith.constant 0 : index
    %c4 = arith.constant 4 : index
    %c0_18 = arith.constant 0 : index
    %22 = vector.load %arg1[%c0_17, %c4, %c0_18] : memref<1x20x128xf32, #tpu.memory_space<vmem>>, vector<1x16x128xf32>
    %23 = vector.shape_cast %22 : vector<1x16x128xf32> to vector<16x128xf32>
    %24 = arith.truncf %23 : vector<16x128xf32> to vector<16x128xbf16>
    %c3_19 = arith.constant 3 : index
    %c0_20 = arith.constant 0 : index
    %c0_21 = arith.constant 0 : index
    %25 = vector.load %arg2[%c3_19, %c0_20, %c0_21] : memref<4x128x64xbf16, #tpu.memory_space<vmem>>, vector<1x128x64xbf16>
    %26 = vector.shape_cast %25 : vector<1x128x64xbf16> to vector<128x64xbf16>
    %cst_22 = arith.constant dense<0.000000e+00> : vector<16x64xf32>
    %27 = tpu.matmul %24, %26, %cst_22 {dimension_numbers = #tpu.dot_dimension_numbers<[1], [0], [0], [1], [0, 0, 1, 1], [], []>} : vector<16x128xbf16>, vector<128x64xbf16>, vector<16x64xf32> -> vector<16x64xf32>
    %28 = arith.addf %21, %27 : vector<16x64xf32>
    %c0_23 = arith.constant 0 : index
    %c0_24 = arith.constant 0 : index
    %29 = vector.load %arg3[%c0_23, %c0_24] : memref<1x64xf32, #tpu.memory_space<vmem>>, vector<1x64xf32>
    %30 = vector.broadcast %29 : vector<1x64xf32> to vector<16x64xf32>
    %31 = arith.addf %28, %30 : vector<16x64xf32>
    %32 = tpu.iota {dimensions = array<i32: 0>} : vector<16x1xi32>
    %c3_i32 = arith.constant 3 : i32
    %c0_i32 = arith.constant 0 : i32
    %33 = arith.cmpi eq, %c3_i32, %c0_i32 : i32
    %c1_i32 = arith.constant 1 : i32
    %34 = arith.select %33, %c1_i32, %c3_i32 : i32
    %35 = vector.broadcast %34 : i32 to vector<16x1xi32>
    %36 = arith.remsi %32, %35 : vector<16x1xi32>
    %c0_i32_25 = arith.constant 0 : i32
    %37 = vector.broadcast %c0_i32_25 : i32 to vector<16x1xi32>
    %38 = arith.cmpi ne, %36, %37 : vector<16x1xi32>
    %c0_i32_26 = arith.constant 0 : i32
    %39 = vector.broadcast %c0_i32_26 : i32 to vector<16x1xi32>
    %40 = arith.cmpi slt, %36, %39 : vector<16x1xi32>
    %c0_i32_27 = arith.constant 0 : i32
    %41 = arith.cmpi slt, %34, %c0_i32_27 : i32
    %42 = vector.broadcast %41 : i1 to vector<16x1xi1>
    %43 = vector.broadcast %42 : vector<16x1xi1> to vector<16x1xi1>
    %44 = arith.xori %40, %43 : vector<16x1xi1>
    %45 = arith.andi %44, %38 : vector<16x1xi1>
    %46 = vector.broadcast %34 : i32 to vector<16x1xi32>
    %47 = arith.addi %36, %46 : vector<16x1xi32>
    %48 = arith.select %45, %47, %36 : vector<16x1xi1>, vector<16x1xi32>
    %c2_i32 = arith.constant 2 : i32
    %49 = vector.broadcast %c2_i32 : i32 to vector<16x1xi32>
    %50 = arith.cmpi slt, %48, %49 : vector<16x1xi32>
    %c5_i32 = arith.constant 5 : i32
    %51 = vector.broadcast %c5_i32 : i32 to vector<16x1xi32>
    %52 = arith.cmpi slt, %32, %51 : vector<16x1xi32>
    %53 = arith.andi %50, %52 : vector<16x1xi1>
    %54 = arith.extui %53 : vector<16x1xi1> to vector<16x1xi32>
    %55 = arith.sitofp %54 : vector<16x1xi32> to vector<16x1xf32>
    %56 = vector.broadcast %55 : vector<16x1xf32> to vector<16x64xf32>
    %57 = arith.mulf %31, %56 : vector<16x64xf32>
    %cst_28 = arith.constant dense<0.000000e+00> : vector<64xf32>
    %58 = vector.multi_reduction <add>, %57, %cst_28 [0] : vector<16x64xf32> to vector<64xf32>
    %59 = vector.shape_cast %58 : vector<64xf32> to vector<1x64xf32>
    %cst_29 = arith.constant 4.000000e+00 : f32
    %60 = vector.broadcast %cst_29 : f32 to vector<1x64xf32>
    %61 = arith.divf %59, %60 : vector<1x64xf32>
    %62 = vector.broadcast %61 : vector<1x64xf32> to vector<16x64xf32>
    %63 = arith.subf %31, %62 : vector<16x64xf32>
    %64 = vector.broadcast %55 : vector<16x1xf32> to vector<16x64xf32>
    %65 = arith.mulf %63, %64 : vector<16x64xf32>
    %66 = arith.mulf %65, %65 : vector<16x64xf32>
    %cst_30 = arith.constant dense<0.000000e+00> : vector<64xf32>
    %67 = vector.multi_reduction <add>, %66, %cst_30 [0] : vector<16x64xf32> to vector<64xf32>
    %68 = vector.shape_cast %67 : vector<64xf32> to vector<1x64xf32>
    %cst_31 = arith.constant 4.000000e+00 : f32
    %69 = vector.broadcast %cst_31 : f32 to vector<1x64xf32>
    %70 = arith.divf %68, %69 : vector<1x64xf32>
    %71 = vector.broadcast %61 : vector<1x64xf32> to vector<16x64xf32>
    %72 = arith.subf %31, %71 : vector<16x64xf32>
    %cst_32 = arith.constant 9.99999974E-6 : f32
    %73 = vector.broadcast %cst_32 : f32 to vector<1x64xf32>
    %74 = arith.addf %70, %73 : vector<1x64xf32>
    %75 = math.rsqrt %74 : vector<1x64xf32>
    %76 = vector.broadcast %75 : vector<1x64xf32> to vector<16x64xf32>
    %77 = arith.mulf %72, %76 : vector<16x64xf32>
    %cst_33 = arith.constant 0.000000e+00 : f32
    %78 = vector.broadcast %cst_33 : f32 to vector<16x64xf32>
    %79 = arith.cmpf oge, %77, %78 : vector<16x64xf32>
    %cst_34 = arith.constant 2.000000e-01 : f32
    %80 = vector.broadcast %cst_34 : f32 to vector<16x64xf32>
    %81 = arith.mulf %80, %77 : vector<16x64xf32>
    %82 = arith.select %79, %77, %81 : vector<16x64xi1>, vector<16x64xf32>
    %c0_35 = arith.constant 0 : index
    %c0_36 = arith.constant 0 : index
    %c0_37 = arith.constant 0 : index
    %83 = vector.load %arg4[%c0_35, %c0_36, %c0_37] : memref<1x16x64xf32, #tpu.memory_space<vmem>>, vector<1x16x64xf32>
    %84 = vector.shape_cast %83 : vector<1x16x64xf32> to vector<16x64xf32>
    %85 = vector.shape_cast %82 : vector<16x64xf32> to vector<1x16x64xf32>
    tpu.vector_store %arg4[%c0_35, %c0_36, %c0_37], %85 {strides = array<i32>} : memref<1x16x64xf32, #tpu.memory_space<vmem>>, vector<1x16x64xf32>,
    return
  }
  func.func @transform_0(%arg0: i32) -> (i32, i32, i32) {
    %c0_i32 = arith.constant 0 : i32
    %c0_i32_0 = arith.constant 0 : i32
    %c0_i32_1 = arith.constant 0 : i32
    return %arg0, %c0_i32, %c0_i32_0 : i32, i32, i32
  }
  func.func @transform_1(%arg0: i32) -> (i32, i32, i32) {
    %c0_i32 = arith.constant 0 : i32
    %c0_i32_0 = arith.constant 0 : i32
    %c0_i32_1 = arith.constant 0 : i32
    %c0_i32_2 = arith.constant 0 : i32
    return %c0_i32, %c0_i32_0, %c0_i32_1 : i32, i32, i32
  }
  func.func @transform_2(%arg0: i32) -> (i32, i32) {
    %c0_i32 = arith.constant 0 : i32
    %c0_i32_0 = arith.constant 0 : i32
    %c0_i32_1 = arith.constant 0 : i32
    return %c0_i32, %c0_i32_0 : i32, i32
  }
  func.func @transform_3(%arg0: i32) -> (i32, i32, i32) {
    %c0_i32 = arith.constant 0 : i32
    %c0_i32_0 = arith.constant 0 : i32
    %c0_i32_1 = arith.constant 0 : i32
    return %arg0, %c0_i32, %c0_i32_0 : i32, i32, i32
  }
}

module attributes {stable_mosaic.version = 11 : i64} {
  func.func @_conv_fused_kernel(%arg0: i32, %arg1: memref<1x31x64xf32, #tpu.memory_space<vmem>>, %arg2: memref<16x64x1xbf16, #tpu.memory_space<vmem>>, %arg3: memref<1x1xf32, #tpu.memory_space<vmem>>, %arg4: memref<1x16x1xf32, #tpu.memory_space<vmem>>) attributes {dimension_semantics = [#tpu.dimension_semantics<parallel>], iteration_bounds = array<i64: 2>, scalar_prefetch = 0 : i64, scratch_operands = 0 : i64, tpu.core_type = #tpu.core_type<tc>, window_params = [{transform_indices = @transform_0, window_bounds = array<i64: 1, 31, 64>}, {pipeline_mode = #tpu.pipeline_mode<synchronous>, transform_indices = @transform_1, window_bounds = array<i64: 16, 64, 1>}, {pipeline_mode = #tpu.pipeline_mode<synchronous>, transform_indices = @transform_2, window_bounds = array<i64: 1, 1>}, {transform_indices = @transform_3, window_bounds = array<i64: 1, 16, 1>}]} {
    %cst = arith.constant 0.000000e+00 : f32
    %0 = vector.broadcast %cst : f32 to vector<16x1xf32>
    %c0 = arith.constant 0 : index
    %c0_0 = arith.constant 0 : index
    %c0_1 = arith.constant 0 : index
    %1 = vector.load %arg1[%c0, %c0_0, %c0_1] : memref<1x31x64xf32, #tpu.memory_space<vmem>>, vector<1x16x64xf32>
    %2 = vector.shape_cast %1 : vector<1x16x64xf32> to vector<16x64xf32>
    %3 = arith.truncf %2 : vector<16x64xf32> to vector<16x64xbf16>
    %c0_2 = arith.constant 0 : index
    %c0_3 = arith.constant 0 : index
    %c0_4 = arith.constant 0 : index
    %4 = vector.load %arg2[%c0_2, %c0_3, %c0_4] : memref<16x64x1xbf16, #tpu.memory_space<vmem>>, vector<1x64x1xbf16>
    %5 = vector.shape_cast %4 : vector<1x64x1xbf16> to vector<64x1xbf16>
    %cst_5 = arith.constant dense<0.000000e+00> : vector<16x1xf32>
    %6 = tpu.matmul %3, %5, %cst_5 {dimension_numbers = #tpu.dot_dimension_numbers<[1], [0], [0], [1], [0, 0, 1, 1], [], []>} : vector<16x64xbf16>, vector<64x1xbf16>, vector<16x1xf32> -> vector<16x1xf32>
    %7 = arith.addf %0, %6 : vector<16x1xf32>
    %c0_6 = arith.constant 0 : index
    %c1 = arith.constant 1 : index
    %c0_7 = arith.constant 0 : index
    %8 = vector.load %arg1[%c0_6, %c1, %c0_7] : memref<1x31x64xf32, #tpu.memory_space<vmem>>, vector<1x16x64xf32>
    %9 = vector.shape_cast %8 : vector<1x16x64xf32> to vector<16x64xf32>
    %10 = arith.truncf %9 : vector<16x64xf32> to vector<16x64xbf16>
    %c1_8 = arith.constant 1 : index
    %c0_9 = arith.constant 0 : index
    %c0_10 = arith.constant 0 : index
    %11 = vector.load %arg2[%c1_8, %c0_9, %c0_10] : memref<16x64x1xbf16, #tpu.memory_space<vmem>>, vector<1x64x1xbf16>
    %12 = vector.shape_cast %11 : vector<1x64x1xbf16> to vector<64x1xbf16>
    %cst_11 = arith.constant dense<0.000000e+00> : vector<16x1xf32>
    %13 = tpu.matmul %10, %12, %cst_11 {dimension_numbers = #tpu.dot_dimension_numbers<[1], [0], [0], [1], [0, 0, 1, 1], [], []>} : vector<16x64xbf16>, vector<64x1xbf16>, vector<16x1xf32> -> vector<16x1xf32>
    %14 = arith.addf %7, %13 : vector<16x1xf32>
    %c0_12 = arith.constant 0 : index
    %c2 = arith.constant 2 : index
    %c0_13 = arith.constant 0 : index
    %15 = vector.load %arg1[%c0_12, %c2, %c0_13] : memref<1x31x64xf32, #tpu.memory_space<vmem>>, vector<1x16x64xf32>
    %16 = vector.shape_cast %15 : vector<1x16x64xf32> to vector<16x64xf32>
    %17 = arith.truncf %16 : vector<16x64xf32> to vector<16x64xbf16>
    %c2_14 = arith.constant 2 : index
    %c0_15 = arith.constant 0 : index
    %c0_16 = arith.constant 0 : index
    %18 = vector.load %arg2[%c2_14, %c0_15, %c0_16] : memref<16x64x1xbf16, #tpu.memory_space<vmem>>, vector<1x64x1xbf16>
    %19 = vector.shape_cast %18 : vector<1x64x1xbf16> to vector<64x1xbf16>
    %cst_17 = arith.constant dense<0.000000e+00> : vector<16x1xf32>
    %20 = tpu.matmul %17, %19, %cst_17 {dimension_numbers = #tpu.dot_dimension_numbers<[1], [0], [0], [1], [0, 0, 1, 1], [], []>} : vector<16x64xbf16>, vector<64x1xbf16>, vector<16x1xf32> -> vector<16x1xf32>
    %21 = arith.addf %14, %20 : vector<16x1xf32>
    %c0_18 = arith.constant 0 : index
    %c3 = arith.constant 3 : index
    %c0_19 = arith.constant 0 : index
    %22 = vector.load %arg1[%c0_18, %c3, %c0_19] : memref<1x31x64xf32, #tpu.memory_space<vmem>>, vector<1x16x64xf32>
    %23 = vector.shape_cast %22 : vector<1x16x64xf32> to vector<16x64xf32>
    %24 = arith.truncf %23 : vector<16x64xf32> to vector<16x64xbf16>
    %c3_20 = arith.constant 3 : index
    %c0_21 = arith.constant 0 : index
    %c0_22 = arith.constant 0 : index
    %25 = vector.load %arg2[%c3_20, %c0_21, %c0_22] : memref<16x64x1xbf16, #tpu.memory_space<vmem>>, vector<1x64x1xbf16>
    %26 = vector.shape_cast %25 : vector<1x64x1xbf16> to vector<64x1xbf16>
    %cst_23 = arith.constant dense<0.000000e+00> : vector<16x1xf32>
    %27 = tpu.matmul %24, %26, %cst_23 {dimension_numbers = #tpu.dot_dimension_numbers<[1], [0], [0], [1], [0, 0, 1, 1], [], []>} : vector<16x64xbf16>, vector<64x1xbf16>, vector<16x1xf32> -> vector<16x1xf32>
    %28 = arith.addf %21, %27 : vector<16x1xf32>
    %c0_24 = arith.constant 0 : index
    %c4 = arith.constant 4 : index
    %c0_25 = arith.constant 0 : index
    %29 = vector.load %arg1[%c0_24, %c4, %c0_25] : memref<1x31x64xf32, #tpu.memory_space<vmem>>, vector<1x16x64xf32>
    %30 = vector.shape_cast %29 : vector<1x16x64xf32> to vector<16x64xf32>
    %31 = arith.truncf %30 : vector<16x64xf32> to vector<16x64xbf16>
    %c4_26 = arith.constant 4 : index
    %c0_27 = arith.constant 0 : index
    %c0_28 = arith.constant 0 : index
    %32 = vector.load %arg2[%c4_26, %c0_27, %c0_28] : memref<16x64x1xbf16, #tpu.memory_space<vmem>>, vector<1x64x1xbf16>
    %33 = vector.shape_cast %32 : vector<1x64x1xbf16> to vector<64x1xbf16>
    %cst_29 = arith.constant dense<0.000000e+00> : vector<16x1xf32>
    %34 = tpu.matmul %31, %33, %cst_29 {dimension_numbers = #tpu.dot_dimension_numbers<[1], [0], [0], [1], [0, 0, 1, 1], [], []>} : vector<16x64xbf16>, vector<64x1xbf16>, vector<16x1xf32> -> vector<16x1xf32>
    %35 = arith.addf %28, %34 : vector<16x1xf32>
    %c0_30 = arith.constant 0 : index
    %c5 = arith.constant 5 : index
    %c0_31 = arith.constant 0 : index
    %36 = vector.load %arg1[%c0_30, %c5, %c0_31] : memref<1x31x64xf32, #tpu.memory_space<vmem>>, vector<1x16x64xf32>
    %37 = vector.shape_cast %36 : vector<1x16x64xf32> to vector<16x64xf32>
    %38 = arith.truncf %37 : vector<16x64xf32> to vector<16x64xbf16>
    %c5_32 = arith.constant 5 : index
    %c0_33 = arith.constant 0 : index
    %c0_34 = arith.constant 0 : index
    %39 = vector.load %arg2[%c5_32, %c0_33, %c0_34] : memref<16x64x1xbf16, #tpu.memory_space<vmem>>, vector<1x64x1xbf16>
    %40 = vector.shape_cast %39 : vector<1x64x1xbf16> to vector<64x1xbf16>
    %cst_35 = arith.constant dense<0.000000e+00> : vector<16x1xf32>
    %41 = tpu.matmul %38, %40, %cst_35 {dimension_numbers = #tpu.dot_dimension_numbers<[1], [0], [0], [1], [0, 0, 1, 1], [], []>} : vector<16x64xbf16>, vector<64x1xbf16>, vector<16x1xf32> -> vector<16x1xf32>
    %42 = arith.addf %35, %41 : vector<16x1xf32>
    %c0_36 = arith.constant 0 : index
    %c6 = arith.constant 6 : index
    %c0_37 = arith.constant 0 : index
    %43 = vector.load %arg1[%c0_36, %c6, %c0_37] : memref<1x31x64xf32, #tpu.memory_space<vmem>>, vector<1x16x64xf32>
    %44 = vector.shape_cast %43 : vector<1x16x64xf32> to vector<16x64xf32>
    %45 = arith.truncf %44 : vector<16x64xf32> to vector<16x64xbf16>
    %c6_38 = arith.constant 6 : index
    %c0_39 = arith.constant 0 : index
    %c0_40 = arith.constant 0 : index
    %46 = vector.load %arg2[%c6_38, %c0_39, %c0_40] : memref<16x64x1xbf16, #tpu.memory_space<vmem>>, vector<1x64x1xbf16>
    %47 = vector.shape_cast %46 : vector<1x64x1xbf16> to vector<64x1xbf16>
    %cst_41 = arith.constant dense<0.000000e+00> : vector<16x1xf32>
    %48 = tpu.matmul %45, %47, %cst_41 {dimension_numbers = #tpu.dot_dimension_numbers<[1], [0], [0], [1], [0, 0, 1, 1], [], []>} : vector<16x64xbf16>, vector<64x1xbf16>, vector<16x1xf32> -> vector<16x1xf32>
    %49 = arith.addf %42, %48 : vector<16x1xf32>
    %c0_42 = arith.constant 0 : index
    %c7 = arith.constant 7 : index
    %c0_43 = arith.constant 0 : index
    %50 = vector.load %arg1[%c0_42, %c7, %c0_43] : memref<1x31x64xf32, #tpu.memory_space<vmem>>, vector<1x16x64xf32>
    %51 = vector.shape_cast %50 : vector<1x16x64xf32> to vector<16x64xf32>
    %52 = arith.truncf %51 : vector<16x64xf32> to vector<16x64xbf16>
    %c7_44 = arith.constant 7 : index
    %c0_45 = arith.constant 0 : index
    %c0_46 = arith.constant 0 : index
    %53 = vector.load %arg2[%c7_44, %c0_45, %c0_46] : memref<16x64x1xbf16, #tpu.memory_space<vmem>>, vector<1x64x1xbf16>
    %54 = vector.shape_cast %53 : vector<1x64x1xbf16> to vector<64x1xbf16>
    %cst_47 = arith.constant dense<0.000000e+00> : vector<16x1xf32>
    %55 = tpu.matmul %52, %54, %cst_47 {dimension_numbers = #tpu.dot_dimension_numbers<[1], [0], [0], [1], [0, 0, 1, 1], [], []>} : vector<16x64xbf16>, vector<64x1xbf16>, vector<16x1xf32> -> vector<16x1xf32>
    %56 = arith.addf %49, %55 : vector<16x1xf32>
    %c0_48 = arith.constant 0 : index
    %c8 = arith.constant 8 : index
    %c0_49 = arith.constant 0 : index
    %57 = vector.load %arg1[%c0_48, %c8, %c0_49] : memref<1x31x64xf32, #tpu.memory_space<vmem>>, vector<1x16x64xf32>
    %58 = vector.shape_cast %57 : vector<1x16x64xf32> to vector<16x64xf32>
    %59 = arith.truncf %58 : vector<16x64xf32> to vector<16x64xbf16>
    %c8_50 = arith.constant 8 : index
    %c0_51 = arith.constant 0 : index
    %c0_52 = arith.constant 0 : index
    %60 = vector.load %arg2[%c8_50, %c0_51, %c0_52] : memref<16x64x1xbf16, #tpu.memory_space<vmem>>, vector<1x64x1xbf16>
    %61 = vector.shape_cast %60 : vector<1x64x1xbf16> to vector<64x1xbf16>
    %cst_53 = arith.constant dense<0.000000e+00> : vector<16x1xf32>
    %62 = tpu.matmul %59, %61, %cst_53 {dimension_numbers = #tpu.dot_dimension_numbers<[1], [0], [0], [1], [0, 0, 1, 1], [], []>} : vector<16x64xbf16>, vector<64x1xbf16>, vector<16x1xf32> -> vector<16x1xf32>
    %63 = arith.addf %56, %62 : vector<16x1xf32>
    %c0_54 = arith.constant 0 : index
    %c9 = arith.constant 9 : index
    %c0_55 = arith.constant 0 : index
    %64 = vector.load %arg1[%c0_54, %c9, %c0_55] : memref<1x31x64xf32, #tpu.memory_space<vmem>>, vector<1x16x64xf32>
    %65 = vector.shape_cast %64 : vector<1x16x64xf32> to vector<16x64xf32>
    %66 = arith.truncf %65 : vector<16x64xf32> to vector<16x64xbf16>
    %c9_56 = arith.constant 9 : index
    %c0_57 = arith.constant 0 : index
    %c0_58 = arith.constant 0 : index
    %67 = vector.load %arg2[%c9_56, %c0_57, %c0_58] : memref<16x64x1xbf16, #tpu.memory_space<vmem>>, vector<1x64x1xbf16>
    %68 = vector.shape_cast %67 : vector<1x64x1xbf16> to vector<64x1xbf16>
    %cst_59 = arith.constant dense<0.000000e+00> : vector<16x1xf32>
    %69 = tpu.matmul %66, %68, %cst_59 {dimension_numbers = #tpu.dot_dimension_numbers<[1], [0], [0], [1], [0, 0, 1, 1], [], []>} : vector<16x64xbf16>, vector<64x1xbf16>, vector<16x1xf32> -> vector<16x1xf32>
    %70 = arith.addf %63, %69 : vector<16x1xf32>
    %c0_60 = arith.constant 0 : index
    %c10 = arith.constant 10 : index
    %c0_61 = arith.constant 0 : index
    %71 = vector.load %arg1[%c0_60, %c10, %c0_61] : memref<1x31x64xf32, #tpu.memory_space<vmem>>, vector<1x16x64xf32>
    %72 = vector.shape_cast %71 : vector<1x16x64xf32> to vector<16x64xf32>
    %73 = arith.truncf %72 : vector<16x64xf32> to vector<16x64xbf16>
    %c10_62 = arith.constant 10 : index
    %c0_63 = arith.constant 0 : index
    %c0_64 = arith.constant 0 : index
    %74 = vector.load %arg2[%c10_62, %c0_63, %c0_64] : memref<16x64x1xbf16, #tpu.memory_space<vmem>>, vector<1x64x1xbf16>
    %75 = vector.shape_cast %74 : vector<1x64x1xbf16> to vector<64x1xbf16>
    %cst_65 = arith.constant dense<0.000000e+00> : vector<16x1xf32>
    %76 = tpu.matmul %73, %75, %cst_65 {dimension_numbers = #tpu.dot_dimension_numbers<[1], [0], [0], [1], [0, 0, 1, 1], [], []>} : vector<16x64xbf16>, vector<64x1xbf16>, vector<16x1xf32> -> vector<16x1xf32>
    %77 = arith.addf %70, %76 : vector<16x1xf32>
    %c0_66 = arith.constant 0 : index
    %c11 = arith.constant 11 : index
    %c0_67 = arith.constant 0 : index
    %78 = vector.load %arg1[%c0_66, %c11, %c0_67] : memref<1x31x64xf32, #tpu.memory_space<vmem>>, vector<1x16x64xf32>
    %79 = vector.shape_cast %78 : vector<1x16x64xf32> to vector<16x64xf32>
    %80 = arith.truncf %79 : vector<16x64xf32> to vector<16x64xbf16>
    %c11_68 = arith.constant 11 : index
    %c0_69 = arith.constant 0 : index
    %c0_70 = arith.constant 0 : index
    %81 = vector.load %arg2[%c11_68, %c0_69, %c0_70] : memref<16x64x1xbf16, #tpu.memory_space<vmem>>, vector<1x64x1xbf16>
    %82 = vector.shape_cast %81 : vector<1x64x1xbf16> to vector<64x1xbf16>
    %cst_71 = arith.constant dense<0.000000e+00> : vector<16x1xf32>
    %83 = tpu.matmul %80, %82, %cst_71 {dimension_numbers = #tpu.dot_dimension_numbers<[1], [0], [0], [1], [0, 0, 1, 1], [], []>} : vector<16x64xbf16>, vector<64x1xbf16>, vector<16x1xf32> -> vector<16x1xf32>
    %84 = arith.addf %77, %83 : vector<16x1xf32>
    %c0_72 = arith.constant 0 : index
    %c12 = arith.constant 12 : index
    %c0_73 = arith.constant 0 : index
    %85 = vector.load %arg1[%c0_72, %c12, %c0_73] : memref<1x31x64xf32, #tpu.memory_space<vmem>>, vector<1x16x64xf32>
    %86 = vector.shape_cast %85 : vector<1x16x64xf32> to vector<16x64xf32>
    %87 = arith.truncf %86 : vector<16x64xf32> to vector<16x64xbf16>
    %c12_74 = arith.constant 12 : index
    %c0_75 = arith.constant 0 : index
    %c0_76 = arith.constant 0 : index
    %88 = vector.load %arg2[%c12_74, %c0_75, %c0_76] : memref<16x64x1xbf16, #tpu.memory_space<vmem>>, vector<1x64x1xbf16>
    %89 = vector.shape_cast %88 : vector<1x64x1xbf16> to vector<64x1xbf16>
    %cst_77 = arith.constant dense<0.000000e+00> : vector<16x1xf32>
    %90 = tpu.matmul %87, %89, %cst_77 {dimension_numbers = #tpu.dot_dimension_numbers<[1], [0], [0], [1], [0, 0, 1, 1], [], []>} : vector<16x64xbf16>, vector<64x1xbf16>, vector<16x1xf32> -> vector<16x1xf32>
    %91 = arith.addf %84, %90 : vector<16x1xf32>
    %c0_78 = arith.constant 0 : index
    %c13 = arith.constant 13 : index
    %c0_79 = arith.constant 0 : index
    %92 = vector.load %arg1[%c0_78, %c13, %c0_79] : memref<1x31x64xf32, #tpu.memory_space<vmem>>, vector<1x16x64xf32>
    %93 = vector.shape_cast %92 : vector<1x16x64xf32> to vector<16x64xf32>
    %94 = arith.truncf %93 : vector<16x64xf32> to vector<16x64xbf16>
    %c13_80 = arith.constant 13 : index
    %c0_81 = arith.constant 0 : index
    %c0_82 = arith.constant 0 : index
    %95 = vector.load %arg2[%c13_80, %c0_81, %c0_82] : memref<16x64x1xbf16, #tpu.memory_space<vmem>>, vector<1x64x1xbf16>
    %96 = vector.shape_cast %95 : vector<1x64x1xbf16> to vector<64x1xbf16>
    %cst_83 = arith.constant dense<0.000000e+00> : vector<16x1xf32>
    %97 = tpu.matmul %94, %96, %cst_83 {dimension_numbers = #tpu.dot_dimension_numbers<[1], [0], [0], [1], [0, 0, 1, 1], [], []>} : vector<16x64xbf16>, vector<64x1xbf16>, vector<16x1xf32> -> vector<16x1xf32>
    %98 = arith.addf %91, %97 : vector<16x1xf32>
    %c0_84 = arith.constant 0 : index
    %c14 = arith.constant 14 : index
    %c0_85 = arith.constant 0 : index
    %99 = vector.load %arg1[%c0_84, %c14, %c0_85] : memref<1x31x64xf32, #tpu.memory_space<vmem>>, vector<1x16x64xf32>
    %100 = vector.shape_cast %99 : vector<1x16x64xf32> to vector<16x64xf32>
    %101 = arith.truncf %100 : vector<16x64xf32> to vector<16x64xbf16>
    %c14_86 = arith.constant 14 : index
    %c0_87 = arith.constant 0 : index
    %c0_88 = arith.constant 0 : index
    %102 = vector.load %arg2[%c14_86, %c0_87, %c0_88] : memref<16x64x1xbf16, #tpu.memory_space<vmem>>, vector<1x64x1xbf16>
    %103 = vector.shape_cast %102 : vector<1x64x1xbf16> to vector<64x1xbf16>
    %cst_89 = arith.constant dense<0.000000e+00> : vector<16x1xf32>
    %104 = tpu.matmul %101, %103, %cst_89 {dimension_numbers = #tpu.dot_dimension_numbers<[1], [0], [0], [1], [0, 0, 1, 1], [], []>} : vector<16x64xbf16>, vector<64x1xbf16>, vector<16x1xf32> -> vector<16x1xf32>
    %105 = arith.addf %98, %104 : vector<16x1xf32>
    %c0_90 = arith.constant 0 : index
    %c15 = arith.constant 15 : index
    %c0_91 = arith.constant 0 : index
    %106 = vector.load %arg1[%c0_90, %c15, %c0_91] : memref<1x31x64xf32, #tpu.memory_space<vmem>>, vector<1x16x64xf32>
    %107 = vector.shape_cast %106 : vector<1x16x64xf32> to vector<16x64xf32>
    %108 = arith.truncf %107 : vector<16x64xf32> to vector<16x64xbf16>
    %c15_92 = arith.constant 15 : index
    %c0_93 = arith.constant 0 : index
    %c0_94 = arith.constant 0 : index
    %109 = vector.load %arg2[%c15_92, %c0_93, %c0_94] : memref<16x64x1xbf16, #tpu.memory_space<vmem>>, vector<1x64x1xbf16>
    %110 = vector.shape_cast %109 : vector<1x64x1xbf16> to vector<64x1xbf16>
    %cst_95 = arith.constant dense<0.000000e+00> : vector<16x1xf32>
    %111 = tpu.matmul %108, %110, %cst_95 {dimension_numbers = #tpu.dot_dimension_numbers<[1], [0], [0], [1], [0, 0, 1, 1], [], []>} : vector<16x64xbf16>, vector<64x1xbf16>, vector<16x1xf32> -> vector<16x1xf32>
    %112 = arith.addf %105, %111 : vector<16x1xf32>
    %c0_96 = arith.constant 0 : index
    %c0_97 = arith.constant 0 : index
    %113 = vector.load %arg3[%c0_96, %c0_97] : memref<1x1xf32, #tpu.memory_space<vmem>>, vector<1x1xf32>
    %114 = vector.broadcast %113 : vector<1x1xf32> to vector<16x1xf32>
    %115 = arith.addf %112, %114 : vector<16x1xf32>
    %cst_98 = arith.constant 0.000000e+00 : f32
    %116 = vector.broadcast %cst_98 : f32 to vector<16x1xf32>
    %117 = arith.subf %116, %115 : vector<16x1xf32>
    %118 = math.exp %117 : vector<16x1xf32>
    %cst_99 = arith.constant 1.000000e+00 : f32
    %119 = vector.broadcast %cst_99 : f32 to vector<16x1xf32>
    %120 = arith.addf %119, %118 : vector<16x1xf32>
    %121 = tpu.reciprocal %120 {approx = true} : vector<16x1xf32> -> vector<16x1xf32>
    %c0_100 = arith.constant 0 : index
    %c0_101 = arith.constant 0 : index
    %c0_102 = arith.constant 0 : index
    %122 = vector.load %arg4[%c0_100, %c0_101, %c0_102] : memref<1x16x1xf32, #tpu.memory_space<vmem>>, vector<1x16x1xf32>
    %123 = vector.shape_cast %122 : vector<1x16x1xf32> to vector<16x1xf32>
    %124 = vector.shape_cast %121 : vector<16x1xf32> to vector<1x16x1xf32>
    tpu.vector_store %arg4[%c0_100, %c0_101, %c0_102], %124 {strides = array<i32>} : memref<1x16x1xf32, #tpu.memory_space<vmem>>, vector<1x16x1xf32>,
    return
  }
  func.func @transform_0(%arg0: i32) -> (i32, i32, i32) {
    %c0_i32 = arith.constant 0 : i32
    %c0_i32_0 = arith.constant 0 : i32
    %c0_i32_1 = arith.constant 0 : i32
    return %arg0, %c0_i32, %c0_i32_0 : i32, i32, i32
  }
  func.func @transform_1(%arg0: i32) -> (i32, i32, i32) {
    %c0_i32 = arith.constant 0 : i32
    %c0_i32_0 = arith.constant 0 : i32
    %c0_i32_1 = arith.constant 0 : i32
    %c0_i32_2 = arith.constant 0 : i32
    return %c0_i32, %c0_i32_0, %c0_i32_1 : i32, i32, i32
  }
  func.func @transform_2(%arg0: i32) -> (i32, i32) {
    %c0_i32 = arith.constant 0 : i32
    %c0_i32_0 = arith.constant 0 : i32
    %c0_i32_1 = arith.constant 0 : i32
    return %c0_i32, %c0_i32_0 : i32, i32
  }
  func.func @transform_3(%arg0: i32) -> (i32, i32, i32) {
    %c0_i32 = arith.constant 0 : i32
    %c0_i32_0 = arith.constant 0 : i32
    %c0_i32_1 = arith.constant 0 : i32
    return %arg0, %c0_i32, %c0_i32_0 : i32, i32, i32
  }
}

</mosaic_0001>

<bundles_post_ra>
// kernel: msdisc_forward.6
= control target key start
LH: loop header
LB: loop body
LE: loop exit
PB: predicated region body
PF: predicated region fallthrough
CT: control target
= control target key end

     0   :  { %s6564_s12 = smov 0   ;;  %s7684_s0 = inlined_call_operand.vmem [shape: f32[2,1090,12], index: 0, kind: input, shape index: {}]   ;;  %s7685_s1 = inlined_call_operand.vmem [shape: bf16[4,12,4], index: 1, kind: input, shape index: {}]   ;;  %s7686_s2 = inlined_call_operand.vmem [shape: f32[1,4], index: 2, kind: input, shape index: {}]   ;;  %s7687_s3 = inlined_call_operand.vmem [shape: f32[2,1056,4], index: 3, kind: output, shape index: {}]  }
   0x1 LB: > { %s5032_s13 = sadd.s32 4294967295, %s6542_s12   ;;  %p5036_p0 = scmp.ge.s32.totalorder %s6542_s12, 1  ;;  %s6542_s12 = sphi %s6564_s12, %s13_s12  }
   0x2   : > { %p137_p1 = scmp.lt.s32.totalorder %s6542_s12, 3 }
   0x4   : > { %p138_p2 = pnand %p5036_p0, %p137_p1 }
   0x5   : > { %v6530_v0 = vld [vmem:[%s7685_s1 + $0x8] sm:$0x3f] (!%p138_p2)   ;;  %vm777_vm0 = vcmask (!%p138_p2), 1045504   ;;  %p161_p3 = scmp.lt.s32.totalorder (!%p138_p2), %s5032_s13, 1  ;;  %v6531_v1 = vld [vmem:[%s7685_s1 + $0x10] sm:$0x3f] (!%p138_p2)  }
   0x6   : > { %141 = sbr.rel (%p138_p2) target bundleno = 765 (0x2fd), region = 32  ;;  %6516 = vmatprep.subr.msk.bf16.mxu1 (!%p138_p2), %vm777_vm0, %v6530_v0  ;;  %v779_v2 = vsel (!%p138_p2), %vm777_vm0, %v6530_v0, 0  ;;  %v6532_v3 = vld [vmem:[%s7685_s1] sm:$0x3f] (!%p138_p2)   ;;  %6518 = vmatprep.subr.msk.bf16.mxu0 (!%p138_p2), %vm777_vm0, %v6531_v1  ;;  %v2514_v4 = vsel (!%p138_p2), %vm777_vm0, %v6531_v1, 0  ;;  %vm578_vm1 = vcmask (!%p138_p2), 97280  }
   0x7   : > { %5585 = vmatpush3.bf16.msra.mxu1 (!%p138_p2), %v779_v2  ;;  %5853 = vmatpush3.bf16.msra.mxu0 (!%p138_p2), %v2514_v4  ;;  %v6533_v5 = vld [vmem:[%s7685_s1 + $0x18] sm:$0x3f] (!%p138_p2)   ;;  %v1546_v15 = vsel (!%p138_p2), %vm777_vm0, %v6532_v3, 0  ;;  %vm4844_vm2 = vcmask (!%p138_p2), 31744  }
   0x8   : > { %6517 = vmatprep.subr.msk.bf16.mxu1 (!%p138_p2), %vm777_vm0, %v6532_v3  ;;  %6519 = vmatprep.subr.msk.bf16.mxu0 (!%p138_p2), %vm777_vm0, %v6533_v5  ;;  %v3614_v20 = vsel (!%p138_p2), %vm777_vm0, %v6533_v5, 0 }
   0xd   : > { %s7689_s13 = smov (!%p161_p3, %s5032_s13), 1 }
   0xe   : > { %s6520_s20 = smul.u32 1096, %s7689_s13 }
   0xf   : > { %s6521_s28 = smul.u32 1056, %s7689_s13 }
  0x10   : > { %s6595_s25 = scalar_lea.vmem %s7684_s0, %s6520_s20 }
  0x11   : > { %v372_v6 = vld [vmem:[%s6595_s25 + $0x1] sm:$0xff]  ;;  %v373_v7 = vld [vmem:[%s6595_s25 + $0x9] sm:$0xff]  ;;  %v374_v11 = vld [vmem:[%s6595_s25 + $0x11] sm:$0xff]  ;;  %s7218_s4 = scalar_lea.vmem %s7687_s3, %s6521_s28 }
  0x12   : > { %v2109_v8 = vld [vmem:[%s6595_s25 + $0x21] sm:$0xff]  ;;  %v504_v9 = vpack.c.bf16 %v373_v7, %v372_v6  ;;  %v2110_v10 = vld [vmem:[%s6595_s25 + $0x29] sm:$0xff]  ;;  %v375_v12 = vld [vmem:[%s6595_s25 + $0x19] sm:$0xff] }
  0x13   : > { %v2241_v13 = vpack.c.bf16 %v2110_v10, %v2109_v8  ;;  %v505_v14 = vpack.c.bf16 %v375_v12, %v374_v11  ;;  %v2111_v16 = vld [vmem:[%s6595_s25 + $0x31] sm:$0xff]  ;;  %v2112_v17 = vld [vmem:[%s6595_s25 + $0x39] sm:$0xff]  ;;  %v2113_v18 = vld [vmem:[%s6595_s25 + $0x41] sm:$0xff] }
  0x14   : > { %5586 = vmatprep.mubr.msk.bf16.mxu1 %vm578_vm1, %v504_v9  ;;  %v2242_v19 = vpack.c.bf16 %v2112_v17, %v2111_v16  ;;  %v2114_v21 = vld [vmem:[%s6595_s25 + $0x49] sm:$0xff]  ;;  %v2115_v23 = vld [vmem:[%s6595_s25 + $0x51] sm:$0xff]  ;;  %v2116_v24 = vld [vmem:[%s6595_s25 + $0x59] sm:$0xff] }
  0x15   : > { %5854 = vmatprep.mubr.msk.bf16.mxu0 %vm578_vm1, %v2241_v13  ;;  %5587 = vmatmul.mubr.msk.bf16.vlgmr.msra.gmra.mrb[0].mxu1 %vm578_vm1, %v505_v14  ;;  %v2243_v22 = vpack.c.bf16 %v2114_v21, %v2113_v18  ;;  %v2117_v25 = vld [vmem:[%s6595_s25 + $0x61] sm:$0xff]  ;;  %v2118_v26 = vld [vmem:[%s6595_s25 + $0x69] sm:$0xff]  ;;  %v2244_v27 = vpack.c.bf16 %v2116_v24, %v2115_v23  ;;  %v2119_v29 = vld [vmem:[%s6595_s25 + $0x71] sm:$0xff] }
  0x16   : > { %5719 = vmatpush3.bf16.msra.mxu1 %v1546_v15  ;;  %5855 = vmatmul.mubr.msk.bf16.vlgmr.msra.gmra.mrb[0].mxu0 %vm578_vm1, %v2242_v19  ;;  %v2245_v28 = vpack.c.bf16 %v2118_v26, %v2117_v25  ;;  %v2120_v30 = vld [vmem:[%s6595_s25 + $0x79] sm:$0xff]  ;;  %v2121_v31 = vld [vmem:[%s6595_s25 + $0x81] sm:$0xff]  ;;  %v2122_v32 = vld [vmem:[%s6595_s25 + $0x89] sm:$0xff] }
  0x17   : > { %5987 = vmatpush3.bf16.msra.mxu0 %v3614_v20  ;;  %5590 = vmatprep.mubr.msk.bf16.mxu1 %vm578_vm1, %v2241_v13  ;;  %v2246_v33 = vpack.c.bf16 %v2120_v30, %v2119_v29  ;;  %v2247_v34 = vpack.c.bf16 %v2122_v32, %v2121_v31  ;;  %v2123_v35 = vld [vmem:[%s6595_s25 + $0x91] sm:$0xff]  ;;  %v2124_v36 = vld [vmem:[%s6595_s25 + $0x99] sm:$0xff]  ;;  %v2125_v37 = vld [vmem:[%s6595_s25 + $0xa1] sm:$0xff] }
  0x18   : > { %5858 = vmatprep.mubr.msk.bf16.mxu0 %vm578_vm1, %v2243_v22  ;;  %v2126_v38 = vld [vmem:[%s6595_s25 + $0xa9] sm:$0xff]  ;;  %v2248_v39 = vpack.c.bf16 %v2124_v36, %v2123_v35  ;;  %v2127_v41 = vld [vmem:[%s6595_s25 + $0xb1] sm:$0xff]  ;;  %v2128_v42 = vld [vmem:[%s6595_s25 + $0xb9] sm:$0xff] }
  0x19   : > { %v2249_v40 = vpack.c.bf16 %v2126_v38, %v2125_v37  ;;  %v2129_v43 = vld [vmem:[%s6595_s25 + $0xc1] sm:$0xff]  ;;  %v2130_v44 = vld [vmem:[%s6595_s25 + $0xc9] sm:$0xff]  ;;  %v2250_v45 = vpack.c.bf16 %v2128_v42, %v2127_v41  ;;  %v2131_v47 = vld [vmem:[%s6595_s25 + $0xd1] sm:$0xff] }
  0x1a   : > { %v2251_v46 = vpack.c.bf16 %v2130_v44, %v2129_v43  ;;  %v2132_v48 = vld [vmem:[%s6595_s25 + $0xd9] sm:$0xff]  ;;  %v2133_v49 = vld [vmem:[%s6595_s25 + $0xe1] sm:$0xff]  ;;  %v2134_v50 = vld [vmem:[%s6595_s25 + $0xe9] sm:$0xff] }
  0x1b   : > { %v2252_v51 = vpack.c.bf16 %v2132_v48, %v2131_v47  ;;  %v2253_v52 = vpack.c.bf16 %v2134_v50, %v2133_v49  ;;  %v2135_v53 = vld [vmem:[%s6595_s25 + $0xf1] sm:$0xff]  ;;  %v2136_v54 = vld [vmem:[%s6595_s25 + $0xf9] sm:$0xff]  ;;  %v2137_v55 = vld [vmem:[%s6595_s25 + $0x101] sm:$0xff] }
  0x1c   : > { %v2138_v56 = vld [vmem:[%s6595_s25 + $0x109] sm:$0xff]  ;;  %v2254_v57 = vpack.c.bf16 %v2136_v54, %v2135_v53  ;;  %v2139_v59 = vld [vmem:[%s6595_s25 + $0x111] sm:$0xff]  ;;  %v2140_v60 = vld [vmem:[%s6595_s25 + $0x119] sm:$0xff] }
  0x1d   : > { %5591 = vmatmul.mubr.msk.bf16.gmra.mrb[4].mxu1 %vm578_vm1, %v2242_v19  ;;  %v2255_v58 = vpack.c.bf16 %v2138_v56, %v2137_v55  ;;  %v2141_v61 = vld [vmem:[%s6595_s25 + $0x121] sm:$0xff]  ;;  %v2142_v62 = vld [vmem:[%s6595_s25 + $0x129] sm:$0xff]  ;;  %v2256_v63 = vpack.c.bf16 %v2140_v60, %v2139_v59  ;;  %v2143_v1 = vld [vmem:[%s6595_s25 + $0x131] sm:$0xff] }
  0x1e   : > { %5859 = vmatmul.mubr.msk.bf16.gmra.mrb[4].mxu0 %vm578_vm1, %v2244_v27  ;;  %5594 = vmatprep.mubr.msk.bf16.mxu1 %vm578_vm1, %v2243_v22  ;;  %v2257_v0 = vpack.c.bf16 %v2142_v62, %v2141_v61  ;;  %v2144_v2 = vld [vmem:[%s6595_s25 + $0x139] sm:$0xff]  ;;  %v2145_v3 = vld [vmem:[%s6595_s25 + $0x141] sm:$0xff]  ;;  %v2146_v4 = vld [vmem:[%s6595_s25 + $0x149] sm:$0xff] }
  0x1f   : > { %5862 = vmatprep.mubr.msk.bf16.mxu0 %vm578_vm1, %v2245_v28  ;;  %v2258_v5 = vpack.c.bf16 %v2144_v2, %v2143_v1  ;;  %v2259_v6 = vpack.c.bf16 %v2146_v4, %v2145_v3  ;;  %v2147_v7 = vld [vmem:[%s6595_s25 + $0x151] sm:$0xff]  ;;  %v2148_v8 = vld [vmem:[%s6595_s25 + $0x159] sm:$0xff]  ;;  %v2149_v9 = vld [vmem:[%s6595_s25 + $0x161] sm:$0xff] }
  0x20   : > { %v2150_v10 = vld [vmem:[%s6595_s25 + $0x169] sm:$0xff]  ;;  %v2260_v11 = vpack.c.bf16 %v2148_v8, %v2147_v7  ;;  %v2151_v13 = vld [vmem:[%s6595_s25 + $0x171] sm:$0xff]  ;;  %v2152_v14 = vld [vmem:[%s6595_s25 + $0x179] sm:$0xff] }
  0x21   : > { %v2261_v12 = vpack.c.bf16 %v2150_v10, %v2149_v9  ;;  %v2153_v15 = vld [vmem:[%s6595_s25 + $0x181] sm:$0xff]  ;;  %v2154_v16 = vld [vmem:[%s6595_s25 + $0x189] sm:$0xff]  ;;  %v2262_v17 = vpack.c.bf16 %v2152_v14, %v2151_v13  ;;  %v2155_v19 = vld [vmem:[%s6595_s25 + $0x191] sm:$0xff] }
  0x22   : > { %v2263_v18 = vpack.c.bf16 %v2154_v16, %v2153_v15  ;;  %v2156_v20 = vld [vmem:[%s6595_s25 + $0x199] sm:$0xff]  ;;  %v2157_v21 = vld [vmem:[%s6595_s25 + $0x1a1] sm:$0xff]  ;;  %v2158_v22 = vld [vmem:[%s6595_s25 + $0x1a9] sm:$0xff] }
  0x23   : > { %v2264_v23 = vpack.c.bf16 %v2156_v20, %v2155_v19  ;;  %v2265_v24 = vpack.c.bf16 %v2158_v22, %v2157_v21  ;;  %v2159_v25 = vld [vmem:[%s6595_s25 + $0x1b1] sm:$0xff]  ;;  %v2160_v26 = vld [vmem:[%s6595_s25 + $0x1b9] sm:$0xff] }
  0x24   : > { %v2266_v29 = vpack.c.bf16 %v2160_v26, %v2159_v25  ;;  %v2163_v31 = vld [vmem:[%s6595_s25 + $0x1d1] sm:$0xff]  ;;  %v2164_v32 = vld [vmem:[%s6595_s25 + $0x1d9] sm:$0xff] }
  0x25   : > { %5595 = vmatmul.mubr.msk.bf16.gmra.mrb[8].mxu1 %vm578_vm1, %v2244_v27  ;;  %v2161_v27 = vld [vmem:[%s6595_s25 + $0x1c1] sm:$0xff]  ;;  %v2268_v35 = vpack.c.bf16 %v2164_v32, %v2163_v31  ;;  %v2167_v37 = vld [vmem:[%s6595_s25 + $0x1f1] sm:$0xff]  ;;  %v2168_v38 = vld [vmem:[%s6595_s25 + $0x1f9] sm:$0xff] }
  0x26   : > { %5863 = vmatmul.mubr.msk.bf16.gmra.mrb[8].mxu0 %vm578_vm1, %v2246_v33  ;;  %5598 = vmatprep.mubr.msk.bf16.mxu1 %vm578_vm1, %v2245_v28  ;;  %v2162_v28 = vld [vmem:[%s6595_s25 + $0x1c9] sm:$0xff]  ;;  %v2270_v41 = vpack.c.bf16 %v2168_v38, %v2167_v37  ;;  %v2171_v43 = vld [vmem:[%s6595_s25 + $0x211] sm:$0xff]  ;;  %v2172_v44 = vld [vmem:[%s6595_s25 + $0x219] sm:$0xff] }
  0x27   : > { %5866 = vmatprep.mubr.msk.bf16.mxu0 %vm578_vm1, %v2247_v34  ;;  %v2267_v30 = vpack.c.bf16 %v2162_v28, %v2161_v27  ;;  %v2272_v47 = vpack.c.bf16 %v2172_v44, %v2171_v43  ;;  %v2175_v49 = vld [vmem:[%s6595_s25 + $0x231] sm:$0xff]  ;;  %v2176_v50 = vld [vmem:[%s6595_s25 + $0x239] sm:$0xff] }
  0x28   : > { %v2274_v53 = vpack.c.bf16 %v2176_v50, %v2175_v49  ;;  %v2179_v55 = vld [vmem:[%s6595_s25 + $0x251] sm:$0xff]  ;;  %v2180_v56 = vld [vmem:[%s6595_s25 + $0x259] sm:$0xff] }
  0x29   : > { %v2276_v59 = vpack.c.bf16 %v2180_v56, %v2179_v55  ;;  %v2183_v61 = vld [vmem:[%s6595_s25 + $0x271] sm:$0xff]  ;;  %v2184_v62 = vld [vmem:[%s6595_s25 + $0x279] sm:$0xff] }
  0x2a   : > { %v2278_v1 = vpack.c.bf16 %v2184_v62, %v2183_v61  ;;  %v2187_v3 = vld [vmem:[%s6595_s25 + $0x291] sm:$0xff]  ;;  %v2188_v4 = vld [vmem:[%s6595_s25 + $0x299] sm:$0xff] }
  0x2b   : > { %v2280_v7 = vpack.c.bf16 %v2188_v4, %v2187_v3  ;;  %v2191_v9 = vld [vmem:[%s6595_s25 + $0x2b1] sm:$0xff]  ;;  %v2192_v10 = vld [vmem:[%s6595_s25 + $0x2b9] sm:$0xff] }
  0x2c   : > { %v2282_v13 = vpack.c.bf16 %v2192_v10, %v2191_v9  ;;  %v2195_v15 = vld [vmem:[%s6595_s25 + $0x2d1] sm:$0xff]  ;;  %v2196_v16 = vld [vmem:[%s6595_s25 + $0x2d9] sm:$0xff] }
  0x2d   : > { %5599 = vmatmul.mubr.msk.bf16.gmra.mrb[12].mxu1 %vm578_vm1, %v2246_v33  ;;  %v2165_v33 = vld [vmem:[%s6595_s25 + $0x1e1] sm:$0xff]  ;;  %v2284_v19 = vpack.c.bf16 %v2196_v16, %v2195_v15  ;;  %v2199_v21 = vld [vmem:[%s6595_s25 + $0x2f1] sm:$0xff]  ;;  %v2200_v22 = vld [vmem:[%s6595_s25 + $0x2f9] sm:$0xff] }
  0x2e   : > { %5867 = vmatmul.mubr.msk.bf16.gmra.mrb[12].mxu0 %vm578_vm1, %v2248_v39  ;;  %5602 = vmatprep.mubr.msk.bf16.mxu1 %vm578_vm1, %v2247_v34  ;;  %v2166_v34 = vld [vmem:[%s6595_s25 + $0x1e9] sm:$0xff]  ;;  %v2286_v25 = vpack.c.bf16 %v2200_v22, %v2199_v21  ;;  %v2203_v27 = vld [vmem:[%s6595_s25 + $0x311] sm:$0xff]  ;;  %v2204_v28 = vld [vmem:[%s6595_s25 + $0x319] sm:$0xff] }
  0x2f   : > { %5870 = vmatprep.mubr.msk.bf16.mxu0 %vm578_vm1, %v2249_v40  ;;  %v2269_v36 = vpack.c.bf16 %v2166_v34, %v2165_v33  ;;  %v2288_v31 = vpack.c.bf16 %v2204_v28, %v2203_v27  ;;  %v2207_v33 = vld [vmem:[%s6595_s25 + $0x331] sm:$0xff]  ;;  %v2208_v34 = vld [vmem:[%s6595_s25 + $0x339] sm:$0xff]  ;;  %v3209_v21 = vld [vmem:[%s6595_s25 + $0x22] sm:$0xff] }
  0x30   : > { %v2290_v37 = vpack.c.bf16 %v2208_v34, %v2207_v33  ;;  %v3210_v22 = vld [vmem:[%s6595_s25 + $0x2a] sm:$0xff]  ;;  %v175_v27 = vld [vmem:[%s6595_s25 + $0x18] sm:$0xff] }
  0x31   : > { %v3211_v28 = vld [vmem:[%s6595_s25 + $0x32] sm:$0xff]  ;;  %v3214_v33 = vld [vmem:[%s6595_s25 + $0x4a] sm:$0xff] }
  0x35   : > { %5603 = vmatmul.mubr.msk.bf16.gmra.mrb[16].mxu1 %vm578_vm1, %v2248_v39  ;;  %v2169_v39 = vld [vmem:[%s6595_s25 + $0x201] sm:$0xff] }
  0x36   : > { %5871 = vmatmul.mubr.msk.bf16.gmra.mrb[16].mxu0 %vm578_vm1, %v2250_v45  ;;  %5606 = vmatprep.mubr.msk.bf16.mxu1 %vm578_vm1, %v2249_v40  ;;  %v2170_v40 = vld [vmem:[%s6595_s25 + $0x209] sm:$0xff] }
  0x37   : > { %5874 = vmatprep.mubr.msk.bf16.mxu0 %vm578_vm1, %v2251_v46  ;;  %v2271_v42 = vpack.c.bf16 %v2170_v40, %v2169_v39  ;;  %v2211_v39 = vld [vmem:[%s6595_s25 + $0x351] sm:$0xff]  ;;  %v2212_v40 = vld [vmem:[%s6595_s25 + $0x359] sm:$0xff] }
  0x38   : > { %v2292_v43 = vpack.c.bf16 %v2212_v40, %v2211_v39  ;;  %v179_v39 = vld [vmem:[%s6595_s25 + $0x38] sm:$0xff] }
  0x39   : > { %v3215_v40 = vld [vmem:[%s6595_s25 + $0x52] sm:$0xff] }
  0x3d   : > { %5607 = vmatmul.mubr.msk.bf16.gmra.mrb[20].mxu1 %vm578_vm1, %v2250_v45  ;;  %v2173_v45 = vld [vmem:[%s6595_s25 + $0x221] sm:$0xff] }
  0x3e   : > { %5875 = vmatmul.mubr.msk.bf16.gmra.mrb[20].mxu0 %vm578_vm1, %v2252_v51  ;;  %5610 = vmatprep.mubr.msk.bf16.mxu1 %vm578_vm1, %v2251_v46  ;;  %v2174_v46 = vld [vmem:[%s6595_s25 + $0x229] sm:$0xff] }
  0x3f   : > { %5878 = vmatprep.mubr.msk.bf16.mxu0 %vm578_vm1, %v2253_v52  ;;  %v2273_v48 = vpack.c.bf16 %v2174_v46, %v2173_v45  ;;  %v2215_v45 = vld [vmem:[%s6595_s25 + $0x371] sm:$0xff]  ;;  %v2216_v46 = vld [vmem:[%s6595_s25 + $0x379] sm:$0xff] }
  0x40   : > { %v2294_v49 = vpack.c.bf16 %v2216_v46, %v2215_v45  ;;  %v3218_v45 = vld [vmem:[%s6595_s25 + $0x6a] sm:$0xff] }
  0x45   : > { %5611 = vmatmul.mubr.msk.bf16.gmra.mrb[24].mxu1 %vm578_vm1, %v2252_v51  ;;  %v2177_v51 = vld [vmem:[%s6595_s25 + $0x241] sm:$0xff] }
  0x46   : > { %5879 = vmatmul.mubr.msk.bf16.gmra.mrb[24].mxu0 %vm578_vm1, %v2254_v57  ;;  %5614 = vmatprep.mubr.msk.bf16.mxu1 %vm578_vm1, %v2253_v52  ;;  %v2178_v52 = vld [vmem:[%s6595_s25 + $0x249] sm:$0xff] }
  0x47   : > { %5882 = vmatprep.mubr.msk.bf16.mxu0 %vm578_vm1, %v2255_v58  ;;  %v2275_v54 = vpack.c.bf16 %v2178_v52, %v2177_v51  ;;  %v2219_v51 = vld [vmem:[%s6595_s25 + $0x391] sm:$0xff]  ;;  %v2220_v52 = vld [vmem:[%s6595_s25 + $0x399] sm:$0xff] }
  0x48   : > { %v2296_v55 = vpack.c.bf16 %v2220_v52, %v2219_v51  ;;  %v183_v51 = vld [vmem:[%s6595_s25 + $0x58] sm:$0xff] }
  0x49   : > { %v3219_v52 = vld [vmem:[%s6595_s25 + $0x72] sm:$0xff] }
  0x4d   : > { %5615 = vmatmul.mubr.msk.bf16.gmra.mrb[28].mxu1 %vm578_vm1, %v2254_v57  ;;  %v2181_v57 = vld [vmem:[%s6595_s25 + $0x261] sm:$0xff] }
  0x4e   : > { %5883 = vmatmul.mubr.msk.bf16.gmra.mrb[28].mxu0 %vm578_vm1, %v2256_v63  ;;  %5618 = vmatprep.mubr.msk.bf16.mxu1 %vm578_vm1, %v2255_v58  ;;  %v2182_v58 = vld [vmem:[%s6595_s25 + $0x269] sm:$0xff] }
  0x4f   : > { %5886 = vmatprep.mubr.msk.bf16.mxu0 %vm578_vm1, %v2257_v0  ;;  %v2277_v60 = vpack.c.bf16 %v2182_v58, %v2181_v57  ;;  %v2223_v57 = vld [vmem:[%s6595_s25 + $0x3b1] sm:$0xff]  ;;  %v2224_v58 = vld [vmem:[%s6595_s25 + $0x3b9] sm:$0xff] }
  0x50   : > { %v2298_v61 = vpack.c.bf16 %v2224_v58, %v2223_v57  ;;  %v3222_v57 = vld [vmem:[%s6595_s25 + $0x8a] sm:$0xff] }
  0x55   : > { %5619 = vmatmul.mubr.msk.bf16.gmra.mrb[32].mxu1 %vm578_vm1, %v2256_v63  ;;  %v2185_v63 = vld [vmem:[%s6595_s25 + $0x281] sm:$0xff] }
  0x56   : > { %5887 = vmatmul.mubr.msk.bf16.gmra.mrb[32].mxu0 %vm578_vm1, %v2258_v5  ;;  %5622 = vmatprep.mubr.msk.bf16.mxu1 %vm578_vm1, %v2257_v0  ;;  %v2186_v0 = vld [vmem:[%s6595_s25 + $0x289] sm:$0xff] }
  0x57   : > { %5890 = vmatprep.mubr.msk.bf16.mxu0 %vm578_vm1, %v2259_v6  ;;  %v2279_v2 = vpack.c.bf16 %v2186_v0, %v2185_v63  ;;  %v2227_v63 = vld [vmem:[%s6595_s25 + $0x3d1] sm:$0xff]  ;;  %v2228_v0 = vld [vmem:[%s6595_s25 + $0x3d9] sm:$0xff] }
  0x58   : > { %v2300_v3 = vpack.c.bf16 %v2228_v0, %v2227_v63  ;;  %v187_v63 = vld [vmem:[%s6595_s25 + $0x78] sm:$0xff] }
  0x59   : > { %v3223_v0 = vld [vmem:[%s6595_s25 + $0x92] sm:$0xff] }
  0x5d   : > { %5623 = vmatmul.mubr.msk.bf16.gmra.mrb[36].mxu1 %vm578_vm1, %v2258_v5  ;;  %v2189_v5 = vld [vmem:[%s6595_s25 + $0x2a1] sm:$0xff] }
  0x5e   : > { %5891 = vmatmul.mubr.msk.bf16.gmra.mrb[36].mxu0 %vm578_vm1, %v2260_v11  ;;  %5626 = vmatprep.mubr.msk.bf16.mxu1 %vm578_vm1, %v2259_v6  ;;  %v2190_v6 = vld [vmem:[%s6595_s25 + $0x2a9] sm:$0xff] }
  0x5f   : > { %5894 = vmatprep.mubr.msk.bf16.mxu0 %vm578_vm1, %v2261_v12  ;;  %v2281_v8 = vpack.c.bf16 %v2190_v6, %v2189_v5  ;;  %v2231_v5 = vld [vmem:[%s6595_s25 + $0x3f1] sm:$0xff]  ;;  %v2232_v6 = vld [vmem:[%s6595_s25 + $0x3f9] sm:$0xff] }
  0x60   : > { %v2302_v9 = vpack.c.bf16 %v2232_v6, %v2231_v5  ;;  %v3226_v5 = vld [vmem:[%s6595_s25 + $0xaa] sm:$0xff] }
  0x65   : > { %5627 = vmatmul.mubr.msk.bf16.gmra.mrb[40].mxu1 %vm578_vm1, %v2260_v11  ;;  %v2193_v11 = vld [vmem:[%s6595_s25 + $0x2c1] sm:$0xff] }
  0x66   : > { %5895 = vmatmul.mubr.msk.bf16.gmra.mrb[40].mxu0 %vm578_vm1, %v2262_v17  ;;  %5630 = vmatprep.mubr.msk.bf16.mxu1 %vm578_vm1, %v2261_v12  ;;  %v2194_v12 = vld [vmem:[%s6595_s25 + $0x2c9] sm:$0xff] }
  0x67   : > { %5898 = vmatprep.mubr.msk.bf16.mxu0 %vm578_vm1, %v2263_v18  ;;  %v2283_v14 = vpack.c.bf16 %v2194_v12, %v2193_v11  ;;  %v2235_v11 = vld [vmem:[%s6595_s25 + $0x411] sm:$0xff]  ;;  %v2236_v12 = vld [vmem:[%s6595_s25 + $0x419] sm:$0xff] }
  0x68   : > { %v2304_v15 = vpack.c.bf16 %v2236_v12, %v2235_v11  ;;  %v191_v11 = vld [vmem:[%s6595_s25 + $0x98] sm:$0xff] }
  0x69   : > { %v3227_v12 = vld [vmem:[%s6595_s25 + $0xb2] sm:$0xff] }
  0x6d   : > { %5631 = vmatmul.mubr.msk.bf16.gmra.mrb[44].mxu1 %vm578_vm1, %v2262_v17  ;;  %v2197_v17 = vld [vmem:[%s6595_s25 + $0x2e1] sm:$0xff] }
  0x6e   : > { %5899 = vmatmul.mubr.msk.bf16.gmra.mrb[44].mxu0 %vm578_vm1, %v2264_v23  ;;  %5634 = vmatprep.mubr.msk.bf16.mxu1 %vm578_vm1, %v2263_v18  ;;  %v2198_v18 = vld [vmem:[%s6595_s25 + $0x2e9] sm:$0xff] }
  0x6f   : > { %5902 = vmatprep.mubr.msk.bf16.mxu0 %vm578_vm1, %v2265_v24  ;;  %v2285_v20 = vpack.c.bf16 %v2198_v18, %v2197_v17  ;;  %v2239_v17 = vld [vmem:[%s6595_s25 + $0x431] sm:$0xff]  ;;  %v2240_v18 = vld [vmem:[%s6595_s25 + $0x439] sm:$0xff] }
  0x75   : > { %5635 = vmatmul.mubr.msk.bf16.gmra.mrb[48].mxu1 %vm578_vm1, %v2264_v23  ;;  %v2201_v23 = vld [vmem:[%s6595_s25 + $0x301] sm:$0xff] }
  0x76   : > { %5903 = vmatmul.mubr.msk.bf16.gmra.mrb[48].mxu0 %vm578_vm1, %v2266_v29  ;;  %5638 = vmatprep.mubr.msk.bf16.mxu1 %vm578_vm1, %v2265_v24  ;;  %v2202_v24 = vld [vmem:[%s6595_s25 + $0x309] sm:$0xff] }
  0x77   : > { %5906 = vmatprep.mubr.msk.bf16.mxu0 %vm578_vm1, %v2267_v30  ;;  %v2287_v26 = vpack.c.bf16 %v2202_v24, %v2201_v23  ;;  %v2306_v23 = vpack.c.bf16 %v2240_v18, %v2239_v17  ;;  %v3230_v17 = vld [vmem:[%s6595_s25 + $0xca] sm:$0xff] }
  0x7d   : > { %5639 = vmatmul.mubr.msk.bf16.gmra.mrb[52].mxu1 %vm578_vm1, %v2266_v29  ;;  %v2205_v29 = vld [vmem:[%s6595_s25 + $0x321] sm:$0xff] }
  0x7e   : > { %5907 = vmatmul.mubr.msk.bf16.gmra.mrb[52].mxu0 %vm578_vm1, %v2268_v35  ;;  %5642 = vmatprep.mubr.msk.bf16.mxu1 %vm578_vm1, %v2267_v30  ;;  %v2206_v30 = vld [vmem:[%s6595_s25 + $0x329] sm:$0xff] }
  0x7f   : > { %5910 = vmatprep.mubr.msk.bf16.mxu0 %vm578_vm1, %v2269_v36  ;;  %v2289_v32 = vpack.c.bf16 %v2206_v30, %v2205_v29  ;;  %v3212_v29 = vld [vmem:[%s6595_s25 + $0x3a] sm:$0xff] }
  0x80   : > { %v176_v30 = vld [vmem:[%s6595_s25 + $0x20] sm:$0xff] }
  0x85   : > { %5643 = vmatmul.mubr.msk.bf16.gmra.mrb[56].mxu1 %vm578_vm1, %v2268_v35  ;;  %v2209_v35 = vld [vmem:[%s6595_s25 + $0x341] sm:$0xff] }
  0x86   : > { %5911 = vmatmul.mubr.msk.bf16.gmra.mrb[56].mxu0 %vm578_vm1, %v2270_v41  ;;  %5646 = vmatprep.mubr.msk.bf16.mxu1 %vm578_vm1, %v2269_v36  ;;  %v2210_v36 = vld [vmem:[%s6595_s25 + $0x349] sm:$0xff] }
  0x87   : > { %5914 = vmatprep.mubr.msk.bf16.mxu0 %vm578_vm1, %v2271_v42  ;;  %v2291_v38 = vpack.c.bf16 %v2210_v36, %v2209_v35  ;;  %v3342_v35 = vpack.c.bf16 %v3212_v29, %v3211_v28  ;;  %v3233_v28 = vld [vmem:[%s6595_s25 + $0xe2] sm:$0xff]  ;;  %v3234_v29 = vld [vmem:[%s6595_s25 + $0xea] sm:$0xff] }
  0x8d   : > { %5647 = vmatmul.mubr.msk.bf16.gmra.mrb[60].mxu1 %vm578_vm1, %v2270_v41  ;;  %v2213_v41 = vld [vmem:[%s6595_s25 + $0x361] sm:$0xff] }
  0x8e   : > { %5915 = vmatmul.mubr.msk.bf16.gmra.mrb[60].mxu0 %vm578_vm1, %v2272_v47  ;;  %5650 = vmatprep.mubr.msk.bf16.mxu1 %vm578_vm1, %v2271_v42  ;;  %v2214_v42 = vld [vmem:[%s6595_s25 + $0x369] sm:$0xff] }
  0x8f   : > { %5918 = vmatprep.mubr.msk.bf16.mxu0 %vm578_vm1, %v2273_v48  ;;  %v2293_v44 = vpack.c.bf16 %v2214_v42, %v2213_v41  ;;  %v3216_v41 = vld [vmem:[%s6595_s25 + $0x5a] sm:$0xff] }
  0x90   : > { %v180_v42 = vld [vmem:[%s6595_s25 + $0x40] sm:$0xff] }
  0x95   : > { %5651 = vmatmul.mubr.msk.bf16.gmra.mrb[64].mxu1 %vm578_vm1, %v2272_v47  ;;  %v2217_v47 = vld [vmem:[%s6595_s25 + $0x381] sm:$0xff] }
  0x96   : > { %5919 = vmatmul.mubr.msk.bf16.gmra.mrb[64].mxu0 %vm578_vm1, %v2274_v53  ;;  %5654 = vmatprep.mubr.msk.bf16.mxu1 %vm578_vm1, %v2273_v48  ;;  %v2218_v48 = vld [vmem:[%s6595_s25 + $0x389] sm:$0xff] }
  0x97   : > { %5922 = vmatprep.mubr.msk.bf16.mxu0 %vm578_vm1, %v2275_v54  ;;  %v2295_v50 = vpack.c.bf16 %v2218_v48, %v2217_v47  ;;  %v3344_v47 = vpack.c.bf16 %v3216_v41, %v3215_v40  ;;  %v3237_v40 = vld [vmem:[%s6595_s25 + $0x102] sm:$0xff]  ;;  %v3238_v41 = vld [vmem:[%s6595_s25 + $0x10a] sm:$0xff] }
  0x9d   : > { %5655 = vmatmul.mubr.msk.bf16.gmra.mrb[68].mxu1 %vm578_vm1, %v2274_v53  ;;  %v2221_v53 = vld [vmem:[%s6595_s25 + $0x3a1] sm:$0xff] }
  0x9e   : > { %5923 = vmatmul.mubr.msk.bf16.gmra.mrb[68].mxu0 %vm578_vm1, %v2276_v59  ;;  %5658 = vmatprep.mubr.msk.bf16.mxu1 %vm578_vm1, %v2275_v54  ;;  %v2222_v54 = vld [vmem:[%s6595_s25 + $0x3a9] sm:$0xff] }
  0x9f   : > { %5926 = vmatprep.mubr.msk.bf16.mxu0 %vm578_vm1, %v2277_v60  ;;  %v2297_v56 = vpack.c.bf16 %v2222_v54, %v2221_v53  ;;  %v3220_v53 = vld [vmem:[%s6595_s25 + $0x7a] sm:$0xff] }
  0xa0   : > { %v184_v54 = vld [vmem:[%s6595_s25 + $0x60] sm:$0xff] }
  0xa5   : > { %5659 = vmatmul.mubr.msk.bf16.gmra.mrb[72].mxu1 %vm578_vm1, %v2276_v59  ;;  %v2225_v59 = vld [vmem:[%s6595_s25 + $0x3c1] sm:$0xff] }
  0xa6   : > { %5927 = vmatmul.mubr.msk.bf16.gmra.mrb[72].mxu0 %vm578_vm1, %v2278_v1  ;;  %5662 = vmatprep.mubr.msk.bf16.mxu1 %vm578_vm1, %v2277_v60  ;;  %v2226_v60 = vld [vmem:[%s6595_s25 + $0x3c9] sm:$0xff] }
  0xa7   : > { %5930 = vmatprep.mubr.msk.bf16.mxu0 %vm578_vm1, %v2279_v2  ;;  %v2299_v62 = vpack.c.bf16 %v2226_v60, %v2225_v59  ;;  %v3346_v59 = vpack.c.bf16 %v3220_v53, %v3219_v52  ;;  %v3241_v52 = vld [vmem:[%s6595_s25 + $0x122] sm:$0xff]  ;;  %v3242_v53 = vld [vmem:[%s6595_s25 + $0x12a] sm:$0xff] }
  0xad   : > { %5663 = vmatmul.mubr.msk.bf16.gmra.mrb[76].mxu1 %vm578_vm1, %v2278_v1  ;;  %v2229_v1 = vld [vmem:[%s6595_s25 + $0x3e1] sm:$0xff] }
  0xae   : > { %5931 = vmatmul.mubr.msk.bf16.gmra.mrb[76].mxu0 %vm578_vm1, %v2280_v7  ;;  %5666 = vmatprep.mubr.msk.bf16.mxu1 %vm578_vm1, %v2279_v2  ;;  %v2230_v2 = vld [vmem:[%s6595_s25 + $0x3e9] sm:$0xff] }
  0xaf   : > { %5934 = vmatprep.mubr.msk.bf16.mxu0 %vm578_vm1, %v2281_v8  ;;  %v2301_v4 = vpack.c.bf16 %v2230_v2, %v2229_v1  ;;  %v3224_v1 = vld [vmem:[%s6595_s25 + $0x9a] sm:$0xff] }
  0xb0   : > { %v188_v2 = vld [vmem:[%s6595_s25 + $0x80] sm:$0xff] }
  0xb5   : > { %5667 = vmatmul.mubr.msk.bf16.gmra.mrb[80].mxu1 %vm578_vm1, %v2280_v7  ;;  %v2233_v7 = vld [vmem:[%s6595_s25 + $0x401] sm:$0xff] }
  0xb6   : > { %5935 = vmatmul.mubr.msk.bf16.gmra.mrb[80].mxu0 %vm578_vm1, %v2282_v13  ;;  %5670 = vmatprep.mubr.msk.bf16.mxu1 %vm578_vm1, %v2281_v8  ;;  %v2234_v8 = vld [vmem:[%s6595_s25 + $0x409] sm:$0xff] }
  0xb7   : > { %5938 = vmatprep.mubr.msk.bf16.mxu0 %vm578_vm1, %v2283_v14  ;;  %v2303_v10 = vpack.c.bf16 %v2234_v8, %v2233_v7  ;;  %v3348_v7 = vpack.c.bf16 %v3224_v1, %v3223_v0  ;;  %v3245_v0 = vld [vmem:[%s6595_s25 + $0x142] sm:$0xff]  ;;  %v3246_v1 = vld [vmem:[%s6595_s25 + $0x14a] sm:$0xff] }
  0xbd   : > { %5671 = vmatmul.mubr.msk.bf16.gmra.mrb[84].mxu1 %vm578_vm1, %v2282_v13  ;;  %v2237_v13 = vld [vmem:[%s6595_s25 + $0x421] sm:$0xff] }
  0xbe   : > { %5939 = vmatmul.mubr.msk.bf16.gmra.mrb[84].mxu0 %vm578_vm1, %v2284_v19  ;;  %5674 = vmatprep.mubr.msk.bf16.mxu1 %vm578_vm1, %v2283_v14  ;;  %v2238_v14 = vld [vmem:[%s6595_s25 + $0x429] sm:$0xff] }
  0xbf   : > { %5942 = vmatprep.mubr.msk.bf16.mxu0 %vm578_vm1, %v2285_v20  ;;  %v2305_v16 = vpack.c.bf16 %v2238_v14, %v2237_v13  ;;  %v3228_v13 = vld [vmem:[%s6595_s25 + $0xba] sm:$0xff] }
  0xc0   : > { %v192_v14 = vld [vmem:[%s6595_s25 + $0xa0] sm:$0xff] }
  0xc5   : > { %5675 = vmatmul.mubr.msk.bf16.gmra.mrb[88].mxu1 %vm578_vm1, %v2284_v19  ;;  %v172_v19 = vld [vmem:[%s6595_s25] sm:$0xff] }
  0xc6   : > { %5943 = vmatmul.mubr.msk.bf16.gmra.mrb[88].mxu0 %vm578_vm1, %v2286_v25  ;;  %5678 = vmatprep.mubr.msk.bf16.mxu1 %vm578_vm1, %v2285_v20  ;;  %v173_v20 = vld [vmem:[%s6595_s25 + $0x8] sm:$0xff] }
  0xc7   : > { %5946 = vmatprep.mubr.msk.bf16.mxu0 %vm578_vm1, %v2287_v26  ;;  %v304_v24 = vpack.c.bf16 %v173_v20, %v172_v19  ;;  %v3350_v19 = vpack.c.bf16 %v3228_v13, %v3227_v12  ;;  %v3249_v12 = vld [vmem:[%s6595_s25 + $0x162] sm:$0xff]  ;;  %v3250_v13 = vld [vmem:[%s6595_s25 + $0x16a] sm:$0xff] }
  0xcd   : > { %5679 = vmatmul.mubr.msk.bf16.gmra.mrb[92].mxu1 %vm578_vm1, %v2286_v25  ;;  %v3341_v25 = vpack.c.bf16 %v3210_v22, %v3209_v21  ;;  %v194_v22 = vld [vmem:[%s6595_s25 + $0xb0] sm:$0xff] }
  0xce   : > { %5947 = vmatmul.mubr.msk.bf16.gmra.mrb[92].mxu0 %vm578_vm1, %v2288_v31  ;;  %5682 = vmatprep.mubr.msk.bf16.mxu1 %vm578_vm1, %v2287_v26  ;;  %v174_v26 = vld [vmem:[%s6595_s25 + $0x10] sm:$0xff] }
  0xcf   : > { %5950 = vmatprep.mubr.msk.bf16.mxu0 %vm578_vm1, %v2289_v32  ;;  %v305_v34 = vpack.c.bf16 %v175_v27, %v174_v26  ;;  %v196_v26 = vld [vmem:[%s6595_s25 + $0xc0] sm:$0xff]  ;;  %v197_v27 = vld [vmem:[%s6595_s25 + $0xc8] sm:$0xff] }
  0xd5   : > { %5683 = vmatmul.mubr.msk.bf16.gmra.mrb[96].mxu1 %vm578_vm1, %v2288_v31  ;;  %v177_v31 = vld [vmem:[%s6595_s25 + $0x28] sm:$0xff] }
  0xd6   : > { %5951 = vmatmul.mubr.msk.bf16.gmra.mrb[96].mxu0 %vm578_vm1, %v2290_v37  ;;  %5686 = vmatprep.mubr.msk.bf16.mxu1 %vm578_vm1, %v2289_v32  ;;  %v3213_v32 = vld [vmem:[%s6595_s25 + $0x42] sm:$0xff]  ;;  %v306_v36 = vpack.c.bf16 %v177_v31, %v176_v30 }
  0xd7   : > { %5954 = vmatprep.mubr.msk.bf16.mxu0 %vm578_vm1, %v2291_v38 }
  0xdd   : > { %5687 = vmatmul.mubr.msk.bf16.gmra.mrb[100].mxu1 %vm578_vm1, %v2290_v37  ;;  %v3343_v37 = vpack.c.bf16 %v3214_v33, %v3213_v32  ;;  %v316_v32 = vpack.c.bf16 %v197_v27, %v196_v26  ;;  %v3353_v33 = vpack.c.bf16 %v3234_v29, %v3233_v28 }
  0xde   : > { %5955 = vmatmul.mubr.msk.bf16.gmra.mrb[100].mxu0 %vm578_vm1, %v2292_v43  ;;  %5690 = vmatprep.mubr.msk.bf16.mxu1 %vm578_vm1, %v2291_v38  ;;  %v178_v38 = vld [vmem:[%s6595_s25 + $0x30] sm:$0xff] }
  0xdf   : > { %5958 = vmatprep.mubr.msk.bf16.mxu0 %vm578_vm1, %v2293_v44  ;;  %v307_v46 = vpack.c.bf16 %v179_v39, %v178_v38  ;;  %v200_v38 = vld [vmem:[%s6595_s25 + $0xe0] sm:$0xff]  ;;  %v201_v39 = vld [vmem:[%s6595_s25 + $0xe8] sm:$0xff] }
  0xe5   : > { %5691 = vmatmul.mubr.msk.bf16.gmra.mrb[104].mxu1 %vm578_vm1, %v2292_v43  ;;  %v181_v43 = vld [vmem:[%s6595_s25 + $0x48] sm:$0xff] }
  0xe6   : > { %5959 = vmatmul.mubr.msk.bf16.gmra.mrb[104].mxu0 %vm578_vm1, %v2294_v49  ;;  %5694 = vmatprep.mubr.msk.bf16.mxu1 %vm578_vm1, %v2293_v44  ;;  %v3217_v44 = vld [vmem:[%s6595_s25 + $0x62] sm:$0xff]  ;;  %v308_v48 = vpack.c.bf16 %v181_v43, %v180_v42 }
  0xe7   : > { %5962 = vmatprep.mubr.msk.bf16.mxu0 %vm578_vm1, %v2295_v50 }
  0xed   : > { %5695 = vmatmul.mubr.msk.bf16.gmra.mrb[108].mxu1 %vm578_vm1, %v2294_v49  ;;  %v3345_v49 = vpack.c.bf16 %v3218_v45, %v3217_v44  ;;  %v318_v44 = vpack.c.bf16 %v201_v39, %v200_v38  ;;  %v3355_v45 = vpack.c.bf16 %v3238_v41, %v3237_v40 }
  0xee   : > { %5963 = vmatmul.mubr.msk.bf16.gmra.mrb[108].mxu0 %vm578_vm1, %v2296_v55  ;;  %5698 = vmatprep.mubr.msk.bf16.mxu1 %vm578_vm1, %v2295_v50  ;;  %v182_v50 = vld [vmem:[%s6595_s25 + $0x50] sm:$0xff] }
  0xef   : > { %5966 = vmatprep.mubr.msk.bf16.mxu0 %vm578_vm1, %v2297_v56  ;;  %v309_v58 = vpack.c.bf16 %v183_v51, %v182_v50  ;;  %v204_v50 = vld [vmem:[%s6595_s25 + $0x100] sm:$0xff]  ;;  %v205_v51 = vld [vmem:[%s6595_s25 + $0x108] sm:$0xff] }
  0xf5   : > { %5699 = vmatmul.mubr.msk.bf16.gmra.mrb[112].mxu1 %vm578_vm1, %v2296_v55  ;;  %v185_v55 = vld [vmem:[%s6595_s25 + $0x68] sm:$0xff] }
  0xf6   : > { %5967 = vmatmul.mubr.msk.bf16.gmra.mrb[112].mxu0 %vm578_vm1, %v2298_v61  ;;  %5702 = vmatprep.mubr.msk.bf16.mxu1 %vm578_vm1, %v2297_v56  ;;  %v3221_v56 = vld [vmem:[%s6595_s25 + $0x82] sm:$0xff]  ;;  %v310_v60 = vpack.c.bf16 %v185_v55, %v184_v54 }
  0xf7   : > { %5970 = vmatprep.mubr.msk.bf16.mxu0 %vm578_vm1, %v2299_v62 }
  0xfd   : > { %5703 = vmatmul.mubr.msk.bf16.gmra.mrb[116].mxu1 %vm578_vm1, %v2298_v61  ;;  %v3347_v61 = vpack.c.bf16 %v3222_v57, %v3221_v56  ;;  %v320_v56 = vpack.c.bf16 %v205_v51, %v204_v50  ;;  %v3357_v57 = vpack.c.bf16 %v3242_v53, %v3241_v52 }
  0xfe   : > { %5971 = vmatmul.mubr.msk.bf16.gmra.mrb[116].mxu0 %vm578_vm1, %v2300_v3  ;;  %5706 = vmatprep.mubr.msk.bf16.mxu1 %vm578_vm1, %v2299_v62  ;;  %v186_v62 = vld [vmem:[%s6595_s25 + $0x70] sm:$0xff] }
  0xff   : > { %5974 = vmatprep.mubr.msk.bf16.mxu0 %vm578_vm1, %v2301_v4  ;;  %v311_v6 = vpack.c.bf16 %v187_v63, %v186_v62  ;;  %v208_v62 = vld [vmem:[%s6595_s25 + $0x120] sm:$0xff]  ;;  %v209_v63 = vld [vmem:[%s6595_s25 + $0x128] sm:$0xff] }
 0x105   : > { %5707 = vmatmul.mubr.msk.bf16.gmra.mrb[120].mxu1 %vm578_vm1, %v2300_v3  ;;  %v189_v3 = vld [vmem:[%s6595_s25 + $0x88] sm:$0xff] }
 0x106   : > { %5975 = vmatmul.mubr.msk.bf16.gmra.mrb[120].mxu0 %vm578_vm1, %v2302_v9  ;;  %5710 = vmatprep.mubr.msk.bf16.mxu1 %vm578_vm1, %v2301_v4  ;;  %v3225_v4 = vld [vmem:[%s6595_s25 + $0xa2] sm:$0xff]  ;;  %v312_v8 = vpack.c.bf16 %v189_v3, %v188_v2 }
 0x107   : > { %5978 = vmatprep.mubr.msk.bf16.mxu0 %vm578_vm1, %v2303_v10 }
 0x10d   : > { %5711 = vmatmul.mubr.msk.bf16.gmra.mrb[124].mxu1 %vm578_vm1, %v2302_v9  ;;  %v3349_v9 = vpack.c.bf16 %v3226_v5, %v3225_v4  ;;  %v322_v4 = vpack.c.bf16 %v209_v63, %v208_v62  ;;  %v3359_v5 = vpack.c.bf16 %v3246_v1, %v3245_v0 }
 0x10e   : > { %5979 = vmatmul.mubr.msk.bf16.gmra.mrb[124].mxu0 %vm578_vm1, %v2304_v15  ;;  %5714 = vmatprep.mubr.msk.bf16.mxu1 %vm578_vm1, %v2303_v10  ;;  %v190_v10 = vld [vmem:[%s6595_s25 + $0x90] sm:$0xff] }
 0x10f   : > { %5982 = vmatprep.mubr.msk.bf16.mxu0 %vm578_vm1, %v2305_v16  ;;  %v3229_v16 = vld [vmem:[%s6595_s25 + $0xc2] sm:$0xff]  ;;  %v313_v18 = vpack.c.bf16 %v191_v11, %v190_v10 }
 0x110   : > { %v3351_v21 = vpack.c.bf16 %v3230_v17, %v3229_v16  ;;  %v212_v10 = vld [vmem:[%s6595_s25 + $0x140] sm:$0xff]  ;;  %v213_v11 = vld [vmem:[%s6595_s25 + $0x148] sm:$0xff]  ;;  %v3361_v17 = vpack.c.bf16 %v3250_v13, %v3249_v12 }
 0x111   : > { %v324_v16 = vpack.c.bf16 %v213_v11, %v212_v10 }
 0x115   : > { %5715 = vmatmul.mubr.msk.bf16.gmra.mrb[128].mxu1 %vm578_vm1, %v2304_v15  ;;  %v193_v15 = vld [vmem:[%s6595_s25 + $0xa8] sm:$0xff] }
 0x116   : > { %5983 = vmatmul.mubr.msk.bf16.gmra.mrb[128].mxu0 %vm578_vm1, %v2306_v23  ;;  %5720 = vmatprep.mubr.msk.bf16.mxu1 %vm578_vm1, %v304_v24  ;;  %v314_v20 = vpack.c.bf16 %v193_v15, %v192_v14  ;;  %v195_v23 = vld [vmem:[%s6595_s25 + $0xb8] sm:$0xff] }
 0x117   : > { %5988 = vmatprep.mubr.msk.bf16.mxu0 %vm578_vm1, %v3341_v25  ;;  %v3231_v24 = vld [vmem:[%s6595_s25 + $0xd2] sm:$0xff]  ;;  %v3232_v25 = vld [vmem:[%s6595_s25 + $0xda] sm:$0xff]  ;;  %v315_v30 = vpack.c.bf16 %v195_v23, %v194_v22  ;;  %v217_v23 = vld [vmem:[%s6595_s25 + $0x168] sm:$0xff] }
 0x118   : > { %v3352_v31 = vpack.c.bf16 %v3232_v25, %v3231_v24  ;;  %v216_v22 = vld [vmem:[%s6595_s25 + $0x160] sm:$0xff]  ;;  %v3254_v25 = vld [vmem:[%s6595_s25 + $0x18a] sm:$0xff] }
 0x119   : > { %v3253_v24 = vld [vmem:[%s6595_s25 + $0x182] sm:$0xff]  ;;  %v326_v28 = vpack.c.bf16 %v217_v23, %v216_v22 }
 0x11a   : > { %v3363_v29 = vpack.c.bf16 %v3254_v25, %v3253_v24 }
 0x11d   : > { %5721 = vmatmul.mubr.msk.bf16.vlgmr.msra.gmra.mrb[0].mxu1 %vm578_vm1, %v305_v34  ;;  %v198_v34 = vld [vmem:[%s6595_s25 + $0xd0] sm:$0xff] }
 0x11e   : > { %5989 = vmatmul.mubr.msk.bf16.vlgmr.msra.gmra.mrb[0].mxu0 %vm578_vm1, %v3342_v35  ;;  %5724 = vmatprep.mubr.msk.bf16.mxu1 %vm578_vm1, %v306_v36  ;;  %v199_v35 = vld [vmem:[%s6595_s25 + $0xd8] sm:$0xff] }
 0x11f   : > { %5992 = vmatprep.mubr.msk.bf16.mxu0 %vm578_vm1, %v3343_v37  ;;  %v3235_v36 = vld [vmem:[%s6595_s25 + $0xf2] sm:$0xff]  ;;  %v3236_v37 = vld [vmem:[%s6595_s25 + $0xfa] sm:$0xff]  ;;  %v317_v42 = vpack.c.bf16 %v199_v35, %v198_v34  ;;  %v221_v35 = vld [vmem:[%s6595_s25 + $0x188] sm:$0xff] }
 0x120   : > { %v3354_v43 = vpack.c.bf16 %v3236_v37, %v3235_v36  ;;  %v220_v34 = vld [vmem:[%s6595_s25 + $0x180] sm:$0xff]  ;;  %v3258_v37 = vld [vmem:[%s6595_s25 + $0x1aa] sm:$0xff] }
 0x121   : > { %v3257_v36 = vld [vmem:[%s6595_s25 + $0x1a2] sm:$0xff]  ;;  %v328_v40 = vpack.c.bf16 %v221_v35, %v220_v34 }
 0x122   : > { %v3365_v41 = vpack.c.bf16 %v3258_v37, %v3257_v36 }
 0x125   : > { %5725 = vmatmul.mubr.msk.bf16.gmra.mrb[4].mxu1 %vm578_vm1, %v307_v46  ;;  %v202_v46 = vld [vmem:[%s6595_s25 + $0xf0] sm:$0xff] }
 0x126   : > { %5993 = vmatmul.mubr.msk.bf16.gmra.mrb[4].mxu0 %vm578_vm1, %v3344_v47  ;;  %5728 = vmatprep.mubr.msk.bf16.mxu1 %vm578_vm1, %v308_v48  ;;  %v203_v47 = vld [vmem:[%s6595_s25 + $0xf8] sm:$0xff] }
 0x127   : > { %5996 = vmatprep.mubr.msk.bf16.mxu0 %vm578_vm1, %v3345_v49  ;;  %v3239_v48 = vld [vmem:[%s6595_s25 + $0x112] sm:$0xff]  ;;  %v3240_v49 = vld [vmem:[%s6595_s25 + $0x11a] sm:$0xff]  ;;  %v319_v54 = vpack.c.bf16 %v203_v47, %v202_v46  ;;  %v225_v47 = vld [vmem:[%s6595_s25 + $0x1a8] sm:$0xff] }
 0x128   : > { %v3356_v55 = vpack.c.bf16 %v3240_v49, %v3239_v48  ;;  %v224_v46 = vld [vmem:[%s6595_s25 + $0x1a0] sm:$0xff]  ;;  %v3262_v49 = vld [vmem:[%s6595_s25 + $0x1ca] sm:$0xff] }
 0x129   : > { %v3261_v48 = vld [vmem:[%s6595_s25 + $0x1c2] sm:$0xff]  ;;  %v330_v52 = vpack.c.bf16 %v225_v47, %v224_v46 }
 0x12a   : > { %v3367_v53 = vpack.c.bf16 %v3262_v49, %v3261_v48 }
 0x12d   : > { %5729 = vmatmul.mubr.msk.bf16.gmra.mrb[8].mxu1 %vm578_vm1, %v309_v58  ;;  %v206_v58 = vld [vmem:[%s6595_s25 + $0x110] sm:$0xff] }
 0x12e   : > { %5997 = vmatmul.mubr.msk.bf16.gmra.mrb[8].mxu0 %vm578_vm1, %v3346_v59  ;;  %5732 = vmatprep.mubr.msk.bf16.mxu1 %vm578_vm1, %v310_v60  ;;  %v207_v59 = vld [vmem:[%s6595_s25 + $0x118] sm:$0xff] }
 0x12f   : > { %6000 = vmatprep.mubr.msk.bf16.mxu0 %vm578_vm1, %v3347_v61  ;;  %v3243_v60 = vld [vmem:[%s6595_s25 + $0x132] sm:$0xff]  ;;  %v3244_v61 = vld [vmem:[%s6595_s25 + $0x13a] sm:$0xff]  ;;  %v321_v2 = vpack.c.bf16 %v207_v59, %v206_v58  ;;  %v229_v59 = vld [vmem:[%s6595_s25 + $0x1c8] sm:$0xff] }
 0x130   : > { %v3358_v3 = vpack.c.bf16 %v3244_v61, %v3243_v60  ;;  %v228_v58 = vld [vmem:[%s6595_s25 + $0x1c0] sm:$0xff]  ;;  %v3266_v61 = vld [vmem:[%s6595_s25 + $0x1ea] sm:$0xff] }
 0x131   : > { %v3265_v60 = vld [vmem:[%s6595_s25 + $0x1e2] sm:$0xff]  ;;  %v332_v0 = vpack.c.bf16 %v229_v59, %v228_v58 }
 0x132   : > { %v3369_v1 = vpack.c.bf16 %v3266_v61, %v3265_v60 }
 0x135   : > { %5733 = vmatmul.mubr.msk.bf16.gmra.mrb[12].mxu1 %vm578_vm1, %v311_v6  ;;  %v210_v6 = vld [vmem:[%s6595_s25 + $0x130] sm:$0xff] }
 0x136   : > { %6001 = vmatmul.mubr.msk.bf16.gmra.mrb[12].mxu0 %vm578_vm1, %v3348_v7  ;;  %5736 = vmatprep.mubr.msk.bf16.mxu1 %vm578_vm1, %v312_v8  ;;  %v211_v7 = vld [vmem:[%s6595_s25 + $0x138] sm:$0xff] }
 0x137   : > { %6004 = vmatprep.mubr.msk.bf16.mxu0 %vm578_vm1, %v3349_v9  ;;  %v3247_v8 = vld [vmem:[%s6595_s25 + $0x152] sm:$0xff]  ;;  %v3248_v9 = vld [vmem:[%s6595_s25 + $0x15a] sm:$0xff]  ;;  %v323_v14 = vpack.c.bf16 %v211_v7, %v210_v6  ;;  %v233_v7 = vld [vmem:[%s6595_s25 + $0x1e8] sm:$0xff] }
 0x138   : > { %v3360_v15 = vpack.c.bf16 %v3248_v9, %v3247_v8  ;;  %v232_v6 = vld [vmem:[%s6595_s25 + $0x1e0] sm:$0xff]  ;;  %v3270_v9 = vld [vmem:[%s6595_s25 + $0x20a] sm:$0xff] }
 0x139   : > { %v3269_v8 = vld [vmem:[%s6595_s25 + $0x202] sm:$0xff]  ;;  %v334_v12 = vpack.c.bf16 %v233_v7, %v232_v6 }
 0x13a   : > { %v3371_v13 = vpack.c.bf16 %v3270_v9, %v3269_v8 }
 0x13d   : > { %5737 = vmatmul.mubr.msk.bf16.gmra.mrb[16].mxu1 %vm578_vm1, %v313_v18  ;;  %v214_v18 = vld [vmem:[%s6595_s25 + $0x150] sm:$0xff] }
 0x13e   : > { %6005 = vmatmul.mubr.msk.bf16.gmra.mrb[16].mxu0 %vm578_vm1, %v3350_v19  ;;  %5740 = vmatprep.mubr.msk.bf16.mxu1 %vm578_vm1, %v314_v20  ;;  %v215_v19 = vld [vmem:[%s6595_s25 + $0x158] sm:$0xff] }
 0x13f   : > { %6008 = vmatprep.mubr.msk.bf16.mxu0 %vm578_vm1, %v3351_v21  ;;  %v3251_v20 = vld [vmem:[%s6595_s25 + $0x172] sm:$0xff]  ;;  %v3252_v21 = vld [vmem:[%s6595_s25 + $0x17a] sm:$0xff]  ;;  %v325_v26 = vpack.c.bf16 %v215_v19, %v214_v18  ;;  %v237_v19 = vld [vmem:[%s6595_s25 + $0x208] sm:$0xff] }
 0x140   : > { %v3362_v27 = vpack.c.bf16 %v3252_v21, %v3251_v20  ;;  %v236_v18 = vld [vmem:[%s6595_s25 + $0x200] sm:$0xff]  ;;  %v3274_v21 = vld [vmem:[%s6595_s25 + $0x22a] sm:$0xff] }
 0x141   : > { %v3273_v20 = vld [vmem:[%s6595_s25 + $0x222] sm:$0xff]  ;;  %v336_v24 = vpack.c.bf16 %v237_v19, %v236_v18 }
 0x142   : > { %v3373_v25 = vpack.c.bf16 %v3274_v21, %v3273_v20 }
 0x145   : > { %5741 = vmatmul.mubr.msk.bf16.gmra.mrb[20].mxu1 %vm578_vm1, %v315_v30  ;;  %v218_v30 = vld [vmem:[%s6595_s25 + $0x170] sm:$0xff] }
 0x146   : > { %6009 = vmatmul.mubr.msk.bf16.gmra.mrb[20].mxu0 %vm578_vm1, %v3352_v31  ;;  %5744 = vmatprep.mubr.msk.bf16.mxu1 %vm578_vm1, %v316_v32  ;;  %v219_v31 = vld [vmem:[%s6595_s25 + $0x178] sm:$0xff] }
 0x147   : > { %6012 = vmatprep.mubr.msk.bf16.mxu0 %vm578_vm1, %v3353_v33  ;;  %v3255_v32 = vld [vmem:[%s6595_s25 + $0x192] sm:$0xff]  ;;  %v3256_v33 = vld [vmem:[%s6595_s25 + $0x19a] sm:$0xff]  ;;  %v327_v38 = vpack.c.bf16 %v219_v31, %v218_v30  ;;  %v241_v31 = vld [vmem:[%s6595_s25 + $0x228] sm:$0xff] }
 0x148   : > { %v3364_v39 = vpack.c.bf16 %v3256_v33, %v3255_v32  ;;  %v240_v30 = vld [vmem:[%s6595_s25 + $0x220] sm:$0xff]  ;;  %v3278_v33 = vld [vmem:[%s6595_s25 + $0x24a] sm:$0xff] }
 0x149   : > { %v3277_v32 = vld [vmem:[%s6595_s25 + $0x242] sm:$0xff]  ;;  %v338_v36 = vpack.c.bf16 %v241_v31, %v240_v30 }
 0x14a   : > { %v3375_v37 = vpack.c.bf16 %v3278_v33, %v3277_v32 }
 0x14d   : > { %5745 = vmatmul.mubr.msk.bf16.gmra.mrb[24].mxu1 %vm578_vm1, %v317_v42  ;;  %v222_v42 = vld [vmem:[%s6595_s25 + $0x190] sm:$0xff] }
 0x14e   : > { %6013 = vmatmul.mubr.msk.bf16.gmra.mrb[24].mxu0 %vm578_vm1, %v3354_v43  ;;  %5748 = vmatprep.mubr.msk.bf16.mxu1 %vm578_vm1, %v318_v44  ;;  %v223_v43 = vld [vmem:[%s6595_s25 + $0x198] sm:$0xff] }
 0x14f   : > { %6016 = vmatprep.mubr.msk.bf16.mxu0 %vm578_vm1, %v3355_v45  ;;  %v3259_v44 = vld [vmem:[%s6595_s25 + $0x1b2] sm:$0xff]  ;;  %v3260_v45 = vld [vmem:[%s6595_s25 + $0x1ba] sm:$0xff]  ;;  %v329_v50 = vpack.c.bf16 %v223_v43, %v222_v42  ;;  %v245_v43 = vld [vmem:[%s6595_s25 + $0x248] sm:$0xff] }
 0x150   : > { %v3366_v51 = vpack.c.bf16 %v3260_v45, %v3259_v44  ;;  %v244_v42 = vld [vmem:[%s6595_s25 + $0x240] sm:$0xff]  ;;  %v3282_v45 = vld [vmem:[%s6595_s25 + $0x26a] sm:$0xff] }
 0x151   : > { %v3281_v44 = vld [vmem:[%s6595_s25 + $0x262] sm:$0xff]  ;;  %v340_v48 = vpack.c.bf16 %v245_v43, %v244_v42 }
 0x152   : > { %v3377_v49 = vpack.c.bf16 %v3282_v45, %v3281_v44 }
 0x155   : > { %5749 = vmatmul.mubr.msk.bf16.gmra.mrb[28].mxu1 %vm578_vm1, %v319_v54  ;;  %v226_v54 = vld [vmem:[%s6595_s25 + $0x1b0] sm:$0xff] }
 0x156   : > { %6017 = vmatmul.mubr.msk.bf16.gmra.mrb[28].mxu0 %vm578_vm1, %v3356_v55  ;;  %5752 = vmatprep.mubr.msk.bf16.mxu1 %vm578_vm1, %v320_v56  ;;  %v227_v55 = vld [vmem:[%s6595_s25 + $0x1b8] sm:$0xff] }
 0x157   : > { %6020 = vmatprep.mubr.msk.bf16.mxu0 %vm578_vm1, %v3357_v57  ;;  %v3263_v56 = vld [vmem:[%s6595_s25 + $0x1d2] sm:$0xff]  ;;  %v3264_v57 = vld [vmem:[%s6595_s25 + $0x1da] sm:$0xff]  ;;  %v331_v62 = vpack.c.bf16 %v227_v55, %v226_v54  ;;  %v249_v55 = vld [vmem:[%s6595_s25 + $0x268] sm:$0xff] }
 0x158   : > { %v3368_v63 = vpack.c.bf16 %v3264_v57, %v3263_v56  ;;  %v248_v54 = vld [vmem:[%s6595_s25 + $0x260] sm:$0xff]  ;;  %v3286_v57 = vld [vmem:[%s6595_s25 + $0x28a] sm:$0xff] }
 0x159   : > { %v3285_v56 = vld [vmem:[%s6595_s25 + $0x282] sm:$0xff]  ;;  %v342_v60 = vpack.c.bf16 %v249_v55, %v248_v54 }
 0x15a   : > { %v3379_v61 = vpack.c.bf16 %v3286_v57, %v3285_v56 }
 0x15d   : > { %5753 = vmatmul.mubr.msk.bf16.gmra.mrb[32].mxu1 %vm578_vm1, %v321_v2  ;;  %v230_v2 = vld [vmem:[%s6595_s25 + $0x1d0] sm:$0xff] }
 0x15e   : > { %6021 = vmatmul.mubr.msk.bf16.gmra.mrb[32].mxu0 %vm578_vm1, %v3358_v3  ;;  %5756 = vmatprep.mubr.msk.bf16.mxu1 %vm578_vm1, %v322_v4  ;;  %v231_v3 = vld [vmem:[%s6595_s25 + $0x1d8] sm:$0xff] }
 0x15f   : > { %6024 = vmatprep.mubr.msk.bf16.mxu0 %vm578_vm1, %v3359_v5  ;;  %v3267_v4 = vld [vmem:[%s6595_s25 + $0x1f2] sm:$0xff]  ;;  %v3268_v5 = vld [vmem:[%s6595_s25 + $0x1fa] sm:$0xff]  ;;  %v333_v10 = vpack.c.bf16 %v231_v3, %v230_v2  ;;  %v253_v3 = vld [vmem:[%s6595_s25 + $0x288] sm:$0xff] }
 0x160   : > { %v3370_v11 = vpack.c.bf16 %v3268_v5, %v3267_v4  ;;  %v252_v2 = vld [vmem:[%s6595_s25 + $0x280] sm:$0xff]  ;;  %v3290_v5 = vld [vmem:[%s6595_s25 + $0x2aa] sm:$0xff] }
 0x161   : > { %v3289_v4 = vld [vmem:[%s6595_s25 + $0x2a2] sm:$0xff]  ;;  %v344_v8 = vpack.c.bf16 %v253_v3, %v252_v2 }
 0x162   : > { %v3381_v9 = vpack.c.bf16 %v3290_v5, %v3289_v4 }
 0x165   : > { %5757 = vmatmul.mubr.msk.bf16.gmra.mrb[36].mxu1 %vm578_vm1, %v323_v14  ;;  %v234_v14 = vld [vmem:[%s6595_s25 + $0x1f0] sm:$0xff] }
 0x166   : > { %6025 = vmatmul.mubr.msk.bf16.gmra.mrb[36].mxu0 %vm578_vm1, %v3360_v15  ;;  %5760 = vmatprep.mubr.msk.bf16.mxu1 %vm578_vm1, %v324_v16  ;;  %v235_v15 = vld [vmem:[%s6595_s25 + $0x1f8] sm:$0xff] }
 0x167   : > { %6028 = vmatprep.mubr.msk.bf16.mxu0 %vm578_vm1, %v3361_v17  ;;  %v3271_v16 = vld [vmem:[%s6595_s25 + $0x212] sm:$0xff]  ;;  %v3272_v17 = vld [vmem:[%s6595_s25 + $0x21a] sm:$0xff]  ;;  %v335_v22 = vpack.c.bf16 %v235_v15, %v234_v14  ;;  %v257_v15 = vld [vmem:[%s6595_s25 + $0x2a8] sm:$0xff] }
 0x168   : > { %v3372_v23 = vpack.c.bf16 %v3272_v17, %v3271_v16  ;;  %v256_v14 = vld [vmem:[%s6595_s25 + $0x2a0] sm:$0xff]  ;;  %v3294_v17 = vld [vmem:[%s6595_s25 + $0x2ca] sm:$0xff] }
 0x169   : > { %v3293_v16 = vld [vmem:[%s6595_s25 + $0x2c2] sm:$0xff]  ;;  %v346_v20 = vpack.c.bf16 %v257_v15, %v256_v14 }
 0x16a   : > { %v3383_v21 = vpack.c.bf16 %v3294_v17, %v3293_v16 }
 0x16d   : > { %5761 = vmatmul.mubr.msk.bf16.gmra.mrb[40].mxu1 %vm578_vm1, %v325_v26  ;;  %v238_v26 = vld [vmem:[%s6595_s25 + $0x210] sm:$0xff] }
 0x16e   : > { %6029 = vmatmul.mubr.msk.bf16.gmra.mrb[40].mxu0 %vm578_vm1, %v3362_v27  ;;  %5764 = vmatprep.mubr.msk.bf16.mxu1 %vm578_vm1, %v326_v28  ;;  %v239_v27 = vld [vmem:[%s6595_s25 + $0x218] sm:$0xff] }
 0x16f   : > { %6032 = vmatprep.mubr.msk.bf16.mxu0 %vm578_vm1, %v3363_v29  ;;  %v3275_v28 = vld [vmem:[%s6595_s25 + $0x232] sm:$0xff]  ;;  %v3276_v29 = vld [vmem:[%s6595_s25 + $0x23a] sm:$0xff]  ;;  %v337_v34 = vpack.c.bf16 %v239_v27, %v238_v26  ;;  %v261_v27 = vld [vmem:[%s6595_s25 + $0x2c8] sm:$0xff] }
 0x170   : > { %v3374_v35 = vpack.c.bf16 %v3276_v29, %v3275_v28  ;;  %v260_v26 = vld [vmem:[%s6595_s25 + $0x2c0] sm:$0xff]  ;;  %v3298_v29 = vld [vmem:[%s6595_s25 + $0x2ea] sm:$0xff] }
 0x171   : > { %v3297_v28 = vld [vmem:[%s6595_s25 + $0x2e2] sm:$0xff]  ;;  %v348_v32 = vpack.c.bf16 %v261_v27, %v260_v26 }
 0x172   : > { %v3385_v33 = vpack.c.bf16 %v3298_v29, %v3297_v28 }
 0x175   : > { %5765 = vmatmul.mubr.msk.bf16.gmra.mrb[44].mxu1 %vm578_vm1, %v327_v38  ;;  %v242_v38 = vld [vmem:[%s6595_s25 + $0x230] sm:$0xff] }
 0x176   : > { %6033 = vmatmul.mubr.msk.bf16.gmra.mrb[44].mxu0 %vm578_vm1, %v3364_v39  ;;  %5768 = vmatprep.mubr.msk.bf16.mxu1 %vm578_vm1, %v328_v40  ;;  %v243_v39 = vld [vmem:[%s6595_s25 + $0x238] sm:$0xff] }
 0x177   : > { %6036 = vmatprep.mubr.msk.bf16.mxu0 %vm578_vm1, %v3365_v41  ;;  %v3279_v40 = vld [vmem:[%s6595_s25 + $0x252] sm:$0xff]  ;;  %v3280_v41 = vld [vmem:[%s6595_s25 + $0x25a] sm:$0xff]  ;;  %v339_v46 = vpack.c.bf16 %v243_v39, %v242_v38  ;;  %v265_v39 = vld [vmem:[%s6595_s25 + $0x2e8] sm:$0xff] }
 0x178   : > { %v3376_v47 = vpack.c.bf16 %v3280_v41, %v3279_v40  ;;  %v264_v38 = vld [vmem:[%s6595_s25 + $0x2e0] sm:$0xff]  ;;  %v3302_v41 = vld [vmem:[%s6595_s25 + $0x30a] sm:$0xff] }
 0x179   : > { %v3301_v40 = vld [vmem:[%s6595_s25 + $0x302] sm:$0xff]  ;;  %v350_v44 = vpack.c.bf16 %v265_v39, %v264_v38  ;;  %v3322_v38 = vld [vmem:[%s6595_s25 + $0x3aa] sm:$0xff] }
 0x17a   : > { %v3387_v45 = vpack.c.bf16 %v3302_v41, %v3301_v40  ;;  %v7209_v40 = vld [vmem:[%s7686_s2] ss:$0 sm:$0xff] }
 0x17d   : > { %5769 = vmatmul.mubr.msk.bf16.gmra.mrb[48].mxu1 %vm578_vm1, %v329_v50  ;;  %v246_v50 = vld [vmem:[%s6595_s25 + $0x250] sm:$0xff] }
 0x17e   : > { %6037 = vmatmul.mubr.msk.bf16.gmra.mrb[48].mxu0 %vm578_vm1, %v3366_v51  ;;  %5772 = vmatprep.mubr.msk.bf16.mxu1 %vm578_vm1, %v330_v52  ;;  %v247_v51 = vld [vmem:[%s6595_s25 + $0x258] sm:$0xff] }
 0x17f   : > { %6040 = vmatprep.mubr.msk.bf16.mxu0 %vm578_vm1, %v3367_v53  ;;  %v3283_v52 = vld [vmem:[%s6595_s25 + $0x272] sm:$0xff]  ;;  %v3284_v53 = vld [vmem:[%s6595_s25 + $0x27a] sm:$0xff]  ;;  %v341_v58 = vpack.c.bf16 %v247_v51, %v246_v50  ;;  %v269_v51 = vld [vmem:[%s6595_s25 + $0x308] sm:$0xff] }
 0x180   : > { %v3378_v59 = vpack.c.bf16 %v3284_v53, %v3283_v52  ;;  %v268_v50 = vld [vmem:[%s6595_s25 + $0x300] sm:$0xff]  ;;  %v3306_v53 = vld [vmem:[%s6595_s25 + $0x32a] sm:$0xff] }
 0x181   : > { %v3305_v52 = vld [vmem:[%s6595_s25 + $0x322] sm:$0xff]  ;;  %v352_v56 = vpack.c.bf16 %v269_v51, %v268_v50 }
 0x182   : > { %v3389_v57 = vpack.c.bf16 %v3306_v53, %v3305_v52 }
 0x185   : > { %5773 = vmatmul.mubr.msk.bf16.gmra.mrb[52].mxu1 %vm578_vm1, %v331_v62  ;;  %v250_v62 = vld [vmem:[%s6595_s25 + $0x270] sm:$0xff] }
 0x186   : > { %6041 = vmatmul.mubr.msk.bf16.gmra.mrb[52].mxu0 %vm578_vm1, %v3368_v63  ;;  %5776 = vmatprep.mubr.msk.bf16.mxu1 %vm578_vm1, %v332_v0  ;;  %v251_v63 = vld [vmem:[%s6595_s25 + $0x278] sm:$0xff] }
 0x187   : > { %6044 = vmatprep.mubr.msk.bf16.mxu0 %vm578_vm1, %v3369_v1  ;;  %v3287_v0 = vld [vmem:[%s6595_s25 + $0x292] sm:$0xff]  ;;  %v3288_v1 = vld [vmem:[%s6595_s25 + $0x29a] sm:$0xff]  ;;  %v343_v6 = vpack.c.bf16 %v251_v63, %v250_v62  ;;  %v273_v63 = vld [vmem:[%s6595_s25 + $0x328] sm:$0xff] }
 0x188   : > { %v3380_v7 = vpack.c.bf16 %v3288_v1, %v3287_v0  ;;  %v272_v62 = vld [vmem:[%s6595_s25 + $0x320] sm:$0xff]  ;;  %v3310_v1 = vld [vmem:[%s6595_s25 + $0x34a] sm:$0xff] }
 0x189   : > { %v3309_v0 = vld [vmem:[%s6595_s25 + $0x342] sm:$0xff]  ;;  %v354_v4 = vpack.c.bf16 %v273_v63, %v272_v62 }
 0x18a   : > { %v3391_v5 = vpack.c.bf16 %v3310_v1, %v3309_v0  ;;  %v3324_v0 = vld [vmem:[%s6595_s25 + $0x3ba] sm:$0xff] }
 0x18b   : > { %v288_v1 = vld [vmem:[%s6595_s25 + $0x3a0] sm:$0xff] }
 0x18d   : > { %5777 = vmatmul.mubr.msk.bf16.gmra.mrb[56].mxu1 %vm578_vm1, %v333_v10  ;;  %v254_v10 = vld [vmem:[%s6595_s25 + $0x290] sm:$0xff] }
 0x18e   : > { %6045 = vmatmul.mubr.msk.bf16.gmra.mrb[56].mxu0 %vm578_vm1, %v3370_v11  ;;  %5780 = vmatprep.mubr.msk.bf16.mxu1 %vm578_vm1, %v334_v12  ;;  %v255_v11 = vld [vmem:[%s6595_s25 + $0x298] sm:$0xff] }
 0x18f   : > { %6048 = vmatprep.mubr.msk.bf16.mxu0 %vm578_vm1, %v3371_v13  ;;  %v3291_v12 = vld [vmem:[%s6595_s25 + $0x2b2] sm:$0xff]  ;;  %v3292_v13 = vld [vmem:[%s6595_s25 + $0x2ba] sm:$0xff]  ;;  %v345_v18 = vpack.c.bf16 %v255_v11, %v254_v10  ;;  %v277_v11 = vld [vmem:[%s6595_s25 + $0x348] sm:$0xff] }
 0x190   : > { %v3382_v19 = vpack.c.bf16 %v3292_v13, %v3291_v12  ;;  %v276_v10 = vld [vmem:[%s6595_s25 + $0x340] sm:$0xff]  ;;  %v3314_v13 = vld [vmem:[%s6595_s25 + $0x36a] sm:$0xff] }
 0x191   : > { %v3313_v12 = vld [vmem:[%s6595_s25 + $0x362] sm:$0xff]  ;;  %v356_v16 = vpack.c.bf16 %v277_v11, %v276_v10 }
 0x192   : > { %v3393_v17 = vpack.c.bf16 %v3314_v13, %v3313_v12 }
 0x195   : > { %5781 = vmatmul.mubr.msk.bf16.gmra.mrb[60].mxu1 %vm578_vm1, %v335_v22  ;;  %v258_v22 = vld [vmem:[%s6595_s25 + $0x2b0] sm:$0xff] }
 0x196   : > { %6049 = vmatmul.mubr.msk.bf16.gmra.mrb[60].mxu0 %vm578_vm1, %v3372_v23  ;;  %5784 = vmatprep.mubr.msk.bf16.mxu1 %vm578_vm1, %v336_v24  ;;  %v259_v23 = vld [vmem:[%s6595_s25 + $0x2b8] sm:$0xff] }
 0x197   : > { %6052 = vmatprep.mubr.msk.bf16.mxu0 %vm578_vm1, %v3373_v25  ;;  %v3295_v24 = vld [vmem:[%s6595_s25 + $0x2d2] sm:$0xff]  ;;  %v3296_v25 = vld [vmem:[%s6595_s25 + $0x2da] sm:$0xff]  ;;  %v347_v30 = vpack.c.bf16 %v259_v23, %v258_v22  ;;  %v281_v23 = vld [vmem:[%s6595_s25 + $0x368] sm:$0xff] }
 0x198   : > { %v3384_v31 = vpack.c.bf16 %v3296_v25, %v3295_v24  ;;  %v280_v22 = vld [vmem:[%s6595_s25 + $0x360] sm:$0xff]  ;;  %v3318_v25 = vld [vmem:[%s6595_s25 + $0x38a] sm:$0xff] }
 0x199   : > { %v3317_v24 = vld [vmem:[%s6595_s25 + $0x382] sm:$0xff]  ;;  %v358_v28 = vpack.c.bf16 %v281_v23, %v280_v22 }
 0x19a   : > { %v3395_v29 = vpack.c.bf16 %v3318_v25, %v3317_v24 }
 0x19d   : > { %5785 = vmatmul.mubr.msk.bf16.gmra.mrb[64].mxu1 %vm578_vm1, %v337_v34  ;;  %v262_v34 = vld [vmem:[%s6595_s25 + $0x2d0] sm:$0xff] }
 0x19e   : > { %6053 = vmatmul.mubr.msk.bf16.gmra.mrb[64].mxu0 %vm578_vm1, %v3374_v35  ;;  %5788 = vmatprep.mubr.msk.bf16.mxu1 %vm578_vm1, %v338_v36  ;;  %v263_v35 = vld [vmem:[%s6595_s25 + $0x2d8] sm:$0xff] }
 0x19f   : > { %6056 = vmatprep.mubr.msk.bf16.mxu0 %vm578_vm1, %v3375_v37  ;;  %v3299_v36 = vld [vmem:[%s6595_s25 + $0x2f2] sm:$0xff]  ;;  %v3300_v37 = vld [vmem:[%s6595_s25 + $0x2fa] sm:$0xff]  ;;  %v349_v42 = vpack.c.bf16 %v263_v35, %v262_v34  ;;  %v285_v35 = vld [vmem:[%s6595_s25 + $0x388] sm:$0xff] }
 0x1a0   : > { %v3386_v43 = vpack.c.bf16 %v3300_v37, %v3299_v36  ;;  %v284_v34 = vld [vmem:[%s6595_s25 + $0x380] sm:$0xff] }
 0x1a1   : > { %v3321_v37 = vld [vmem:[%s6595_s25 + $0x3a2] sm:$0xff] }
 0x1a2   : > { %v3397_v51 = vpack.c.bf16 %v3322_v38, %v3321_v37  ;;  %v292_v37 = vld [vmem:[%s6595_s25 + $0x3c0] sm:$0xff]  ;;  %v293_v38 = vld [vmem:[%s6595_s25 + $0x3c8] sm:$0xff] }
 0x1a5   : > { %5789 = vmatmul.mubr.msk.bf16.gmra.mrb[68].mxu1 %vm578_vm1, %v339_v46  ;;  %v266_v46 = vld [vmem:[%s6595_s25 + $0x2f0] sm:$0xff] }
 0x1a6   : > { %6057 = vmatmul.mubr.msk.bf16.gmra.mrb[68].mxu0 %vm578_vm1, %v3376_v47  ;;  %5792 = vmatprep.mubr.msk.bf16.mxu1 %vm578_vm1, %v340_v48  ;;  %v267_v47 = vld [vmem:[%s6595_s25 + $0x2f8] sm:$0xff] }
 0x1a7   : > { %6060 = vmatprep.mubr.msk.bf16.mxu0 %vm578_vm1, %v3377_v49  ;;  %v3303_v48 = vld [vmem:[%s6595_s25 + $0x312] sm:$0xff]  ;;  %v3304_v49 = vld [vmem:[%s6595_s25 + $0x31a] sm:$0xff]  ;;  %v351_v54 = vpack.c.bf16 %v267_v47, %v266_v46  ;;  %v360_v47 = vpack.c.bf16 %v285_v35, %v284_v34 }
 0x1a8   : > { %v3388_v55 = vpack.c.bf16 %v3304_v49, %v3303_v48 }
 0x1ad   : > { %5793 = vmatmul.mubr.msk.bf16.gmra.mrb[72].mxu1 %vm578_vm1, %v341_v58  ;;  %v270_v58 = vld [vmem:[%s6595_s25 + $0x310] sm:$0xff] }
 0x1ae   : > { %6061 = vmatmul.mubr.msk.bf16.gmra.mrb[72].mxu0 %vm578_vm1, %v3378_v59  ;;  %5796 = vmatprep.mubr.msk.bf16.mxu1 %vm578_vm1, %v342_v60  ;;  %v271_v59 = vld [vmem:[%s6595_s25 + $0x318] sm:$0xff] }
 0x1af   : > { %6064 = vmatprep.mubr.msk.bf16.mxu0 %vm578_vm1, %v3379_v61  ;;  %v3307_v60 = vld [vmem:[%s6595_s25 + $0x332] sm:$0xff]  ;;  %v3308_v61 = vld [vmem:[%s6595_s25 + $0x33a] sm:$0xff]  ;;  %v353_v2 = vpack.c.bf16 %v271_v59, %v270_v58 }
 0x1b0   : > { %v3390_v3 = vpack.c.bf16 %v3308_v61, %v3307_v60  ;;  %v286_v59 = vld [vmem:[%s6595_s25 + $0x390] sm:$0xff]  ;;  %v287_v60 = vld [vmem:[%s6595_s25 + $0x398] sm:$0xff] }
 0x1b1   : > { %v3323_v61 = vld [vmem:[%s6595_s25 + $0x3b2] sm:$0xff]  ;;  %v361_v12 = vpack.c.bf16 %v287_v60, %v286_v59 }
 0x1b5   : > { %5797 = vmatmul.mubr.msk.bf16.gmra.mrb[76].mxu1 %vm578_vm1, %v343_v6  ;;  %v274_v6 = vld [vmem:[%s6595_s25 + $0x330] sm:$0xff] }
 0x1b6   : > { %6065 = vmatmul.mubr.msk.bf16.gmra.mrb[76].mxu0 %vm578_vm1, %v3380_v7  ;;  %5800 = vmatprep.mubr.msk.bf16.mxu1 %vm578_vm1, %v344_v8  ;;  %v275_v7 = vld [vmem:[%s6595_s25 + $0x338] sm:$0xff] }
 0x1b7   : > { %6068 = vmatprep.mubr.msk.bf16.mxu0 %vm578_vm1, %v3381_v9  ;;  %v3311_v8 = vld [vmem:[%s6595_s25 + $0x352] sm:$0xff]  ;;  %v3312_v9 = vld [vmem:[%s6595_s25 + $0x35a] sm:$0xff]  ;;  %v355_v14 = vpack.c.bf16 %v275_v7, %v274_v6  ;;  %v3325_v6 = vld [vmem:[%s6595_s25 + $0x3c2] sm:$0xff] }
 0x1b8   : > { %v3392_v15 = vpack.c.bf16 %v3312_v9, %v3311_v8  ;;  %v3326_v7 = vld [vmem:[%s6595_s25 + $0x3ca] sm:$0xff] }
 0x1b9   : > { %v3399_v23 = vpack.c.bf16 %v3326_v7, %v3325_v6  ;;  %v3331_v6 = vld [vmem:[%s6595_s25 + $0x3f2] sm:$0xff] }
 0x1bd   : > { %5801 = vmatmul.mubr.msk.bf16.gmra.mrb[80].mxu1 %vm578_vm1, %v345_v18  ;;  %v278_v18 = vld [vmem:[%s6595_s25 + $0x350] sm:$0xff] }
 0x1be   : > { %6069 = vmatmul.mubr.msk.bf16.gmra.mrb[80].mxu0 %vm578_vm1, %v3382_v19  ;;  %5804 = vmatprep.mubr.msk.bf16.mxu1 %vm578_vm1, %v346_v20  ;;  %v279_v19 = vld [vmem:[%s6595_s25 + $0x358] sm:$0xff] }
 0x1bf   : > { %6072 = vmatprep.mubr.msk.bf16.mxu0 %vm578_vm1, %v3383_v21  ;;  %v3315_v20 = vld [vmem:[%s6595_s25 + $0x372] sm:$0xff]  ;;  %v3316_v21 = vld [vmem:[%s6595_s25 + $0x37a] sm:$0xff]  ;;  %v357_v26 = vpack.c.bf16 %v279_v19, %v278_v18 }
 0x1c0   : > { %v3394_v27 = vpack.c.bf16 %v3316_v21, %v3315_v20 }
 0x1c5   : > { %5805 = vmatmul.mubr.msk.bf16.gmra.mrb[84].mxu1 %vm578_vm1, %v347_v30  ;;  %v282_v30 = vld [vmem:[%s6595_s25 + $0x370] sm:$0xff] }
 0x1c6   : > { %6073 = vmatmul.mubr.msk.bf16.gmra.mrb[84].mxu0 %vm578_vm1, %v3384_v31  ;;  %5808 = vmatprep.mubr.msk.bf16.mxu1 %vm578_vm1, %v348_v32  ;;  %v283_v31 = vld [vmem:[%s6595_s25 + $0x378] sm:$0xff] }
 0x1c7   : > { %6076 = vmatprep.mubr.msk.bf16.mxu0 %vm578_vm1, %v3385_v33  ;;  %v3319_v32 = vld [vmem:[%s6595_s25 + $0x392] sm:$0xff]  ;;  %v3320_v33 = vld [vmem:[%s6595_s25 + $0x39a] sm:$0xff] }
 0x1c8   : > { %v3396_v46 = vpack.c.bf16 %v3320_v33, %v3319_v32  ;;  %v291_v32 = vld [vmem:[%s6595_s25 + $0x3b8] sm:$0xff] }
 0x1c9   : > { %v3327_v33 = vld [vmem:[%s6595_s25 + $0x3d2] sm:$0xff] }
 0x1cd   : > { %5809 = vmatmul.mubr.msk.bf16.gmra.mrb[88].mxu1 %vm578_vm1, %v349_v42  ;;  %v359_v42 = vpack.c.bf16 %v283_v31, %v282_v30  ;;  %v290_v31 = vld [vmem:[%s6595_s25 + $0x3b0] sm:$0xff] }
 0x1ce   : > { %6077 = vmatmul.mubr.msk.bf16.gmra.mrb[88].mxu0 %vm578_vm1, %v3386_v43  ;;  %5812 = vmatprep.mubr.msk.bf16.mxu1 %vm578_vm1, %v350_v44 }
 0x1cf   : > { %6080 = vmatprep.mubr.msk.bf16.mxu0 %vm578_vm1, %v3387_v45 }
 0x1d5   : > { %5813 = vmatmul.mubr.msk.bf16.gmra.mrb[92].mxu1 %vm578_vm1, %v351_v54 }
 0x1d6   : > { %6081 = vmatmul.mubr.msk.bf16.gmra.mrb[92].mxu0 %vm578_vm1, %v3388_v55  ;;  %5816 = vmatprep.mubr.msk.bf16.mxu1 %vm578_vm1, %v352_v56 }
 0x1d7   : > { %6084 = vmatprep.mubr.msk.bf16.mxu0 %vm578_vm1, %v3389_v57 }
 0x1dd   : > { %5817 = vmatmul.mubr.msk.bf16.gmra.mrb[96].mxu1 %vm578_vm1, %v353_v2  ;;  %v289_v2 = vld [vmem:[%s6595_s25 + $0x3a8] sm:$0xff] }
 0x1de   : > { %6085 = vmatmul.mubr.msk.bf16.gmra.mrb[96].mxu0 %vm578_vm1, %v3390_v3  ;;  %5820 = vmatprep.mubr.msk.bf16.mxu1 %vm578_vm1, %v354_v4  ;;  %v362_v18 = vpack.c.bf16 %v289_v2, %v288_v1 }
 0x1df   : > { %6088 = vmatprep.mubr.msk.bf16.mxu0 %vm578_vm1, %v3391_v5 }
 0x1e5   : > { %5821 = vmatmul.mubr.msk.bf16.gmra.mrb[100].mxu1 %vm578_vm1, %v355_v14 }
 0x1e6   : > { %6089 = vmatmul.mubr.msk.bf16.gmra.mrb[100].mxu0 %vm578_vm1, %v3392_v15  ;;  %5824 = vmatprep.mubr.msk.bf16.mxu1 %vm578_vm1, %v356_v16 }
 0x1e7   : > { %6092 = vmatprep.mubr.msk.bf16.mxu0 %vm578_vm1, %v3393_v17  ;;  %v3398_v17 = vpack.c.bf16 %v3324_v0, %v3323_v61 }
 0x1ed   : > { %5825 = vmatmul.mubr.msk.bf16.gmra.mrb[104].mxu1 %vm578_vm1, %v357_v26 }
 0x1ee   : > { %6093 = vmatmul.mubr.msk.bf16.gmra.mrb[104].mxu0 %vm578_vm1, %v3394_v27  ;;  %5828 = vmatprep.mubr.msk.bf16.mxu1 %vm578_vm1, %v358_v28 }
 0x1ef   : > { %6096 = vmatprep.mubr.msk.bf16.mxu0 %vm578_vm1, %v3395_v29 }
 0x1f0   : > { %v5722_v36 = vpop.f32.mrb[0].mxu1 }
 0x1f1   : > { %v5990_v39 = vpop.f32.mrb[0].mxu0  ;;  %v1582_v41 = vpop.f32.mrb[1].mxu1 }
 0x1f2   : > { %v6120_v43 = vadd.f32 %v5990_v39, %v5722_v36  ;;  %v3650_v44 = vpop.f32.mrb[1].mxu0  ;;  %v5723_v45 = vpop.f32.mrb[2].mxu1  ;;  %v3328_v36 = vld [vmem:[%s6595_s25 + $0x3da] sm:$0xff] }
 0x1f3   : > { %v6121_v48 = vadd.f32 %v3650_v44, %v1582_v41  ;;  %v5991_v49 = vpop.f32.mrb[2].mxu0  ;;  %v1585_v50 = vpop.f32.mrb[3].mxu1  ;;  %v3330_v44 = vld [vmem:[%s6595_s25 + $0x3ea] sm:$0xff] }
 0x1f4   : > { %v4318_v52 = vadd.f32 %v6120_v43, %v7209_v40  ;;  %v6122_v53 = vadd.f32 %v5991_v49, %v5723_v45  ;;  %v3653_v54 = vpop.f32.mrb[3].mxu0  ;;  %v3329_v43 = vld [vmem:[%s6595_s25 + $0x3e2] sm:$0xff]  ;;  %v363_v49 = vpack.c.bf16 %v291_v32, %v290_v31 }
 0x1f5   : > { %v4316_v55 = vadd.f32 %v6121_v48, %v7209_v40  ;;  %v6123_v56 = vadd.f32 %v3653_v54, %v1585_v50  ;;  %5829 = vmatmul.mubr.msk.bf16.gmra.mrb[108].mxu1 %vm578_vm1, %v359_v42  ;;  %v3400_v54 = vpack.c.bf16 %v3328_v36, %v3327_v33  ;;  %v3401_v60 = vpack.c.bf16 %v3330_v44, %v3329_v43  ;;  %v3335_v43 = vld [vmem:[%s6595_s25 + $0x412] sm:$0xff] }
 0x1f6   : > { %vm4450_vm3 = vcmp.ge.f32.partialorder %v4318_v52, 0.0  ;;  %v4582_v57 = vmul.f32 0.2, %v4318_v52  ;;  %v4319_v58 = vadd.f32 %v6122_v53, %v7209_v40  ;;  %6097 = vmatmul.mubr.msk.bf16.gmra.mrb[108].mxu0 %vm578_vm1, %v3396_v46  ;;  %5832 = vmatprep.mubr.msk.bf16.mxu1 %vm578_vm1, %v360_v47 }
 0x1f7   : > { %vm4448_vm4 = vcmp.ge.f32.partialorder %v4316_v55, 0.0  ;;  %v4580_v62 = vmul.f32 0.2, %v4316_v55  ;;  %v4317_v63 = vadd.f32 %v6123_v56, %v7209_v40  ;;  %6100 = vmatprep.mubr.msk.bf16.mxu0 %vm578_vm1, %v3397_v51 }
 0x1f8   : > { %v4714_v3 = vsel %vm4450_vm3, %v4318_v52, %v4582_v57  ;;  %vm4451_vm5 = vcmp.ge.f32.partialorder %v4319_v58, 0.0  ;;  %v4583_v4 = vmul.f32 0.2, %v4319_v58  ;;  %v5726_v5 = vpop.f32.mrb[4].mxu1 }
 0x1f9   : > { %4847 = vst.msk [vmem:[%s7218_s4 + $0x10] sm:$0xff] %vm4844_vm2, %v4714_v3  ;;  %v4712_v8 = vsel %vm4448_vm4, %v4316_v55, %v4580_v62  ;;  %vm4449_vm6 = vcmp.ge.f32.partialorder %v4317_v63, 0.0  ;;  %v4581_v9 = vmul.f32 0.2, %v4317_v63  ;;  %v5994_v10 = vpop.f32.mrb[4].mxu0  ;;  %v1598_v11 = vpop.f32.mrb[5].mxu1  ;;  %v364_v55 = vpack.c.bf16 %v293_v38, %v292_v37 }
 0x1fa   : > { %4845 = vst.msk [vmem:[%s7218_s4] sm:$0xff] %vm4844_vm2, %v4712_v8  ;;  %v4715_v13 = vsel %vm4451_vm5, %v4319_v58, %v4583_v4  ;;  %v6124_v14 = vadd.f32 %v5994_v10, %v5726_v5  ;;  %v3666_v15 = vpop.f32.mrb[5].mxu0  ;;  %v5727_v16 = vpop.f32.mrb[6].mxu1  ;;  %v294_v4 = vld [vmem:[%s6595_s25 + $0x3d0] sm:$0xff]  ;;  %v295_v5 = vld [vmem:[%s6595_s25 + $0x3d8] sm:$0xff]  ;;  %v296_v10 = vld [vmem:[%s6595_s25 + $0x3e0] sm:$0xff] }
 0x1fb   : > { %4848 = vst.msk [vmem:[%s7218_s4 + $0x18] sm:$0xff] %vm4844_vm2, %v4715_v13  ;;  %v4713_v19 = vsel %vm4449_vm6, %v4317_v63, %v4581_v9  ;;  %v6125_v20 = vadd.f32 %v3666_v15, %v1598_v11  ;;  %v5995_v21 = vpop.f32.mrb[6].mxu0  ;;  %v1601_v22 = vpop.f32.mrb[7].mxu1  ;;  %v3332_v9 = vld [vmem:[%s6595_s25 + $0x3fa] sm:$0xff]  ;;  %v297_v11 = vld [vmem:[%s6595_s25 + $0x3e8] sm:$0xff] }
 0x1fc   : > { %4846 = vst.msk [vmem:[%s7218_s4 + $0x8] sm:$0xff] %vm4844_vm2, %v4713_v19  ;;  %v4322_v24 = vadd.f32 %v6124_v14, %v7209_v40  ;;  %v6126_v25 = vadd.f32 %v5995_v21, %v5727_v16  ;;  %v3669_v26 = vpop.f32.mrb[7].mxu0  ;;  %v3333_v15 = vld [vmem:[%s6595_s25 + $0x402] sm:$0xff]  ;;  %v3334_v16 = vld [vmem:[%s6595_s25 + $0x40a] sm:$0xff]  ;;  %v365_v21 = vpack.c.bf16 %v295_v5, %v294_v4 }
 0x1fd   : > { %v4320_v27 = vadd.f32 %v6125_v20, %v7209_v40  ;;  %v6127_v28 = vadd.f32 %v3669_v26, %v1601_v22  ;;  %5833 = vmatmul.mubr.msk.bf16.gmra.mrb[112].mxu1 %vm578_vm1, %v361_v12  ;;  %v3402_v26 = vpack.c.bf16 %v3332_v9, %v3331_v6  ;;  %v3403_v32 = vpack.c.bf16 %v3334_v16, %v3333_v15 }
 0x1fe   : > { %vm4454_vm7 = vcmp.ge.f32.partialorder %v4322_v24, 0.0  ;;  %v4586_v29 = vmul.f32 0.2, %v4322_v24  ;;  %v4323_v30 = vadd.f32 %v6126_v25, %v7209_v40  ;;  %6101 = vmatmul.mubr.msk.bf16.gmra.mrb[112].mxu0 %vm578_vm1, %v3398_v17  ;;  %5836 = vmatprep.mubr.msk.bf16.mxu1 %vm578_vm1, %v362_v18 }
 0x1ff   : > { %vm4452_vm8 = vcmp.ge.f32.partialorder %v4320_v27, 0.0  ;;  %v4584_v34 = vmul.f32 0.2, %v4320_v27  ;;  %v4321_v35 = vadd.f32 %v6127_v28, %v7209_v40  ;;  %6104 = vmatprep.mubr.msk.bf16.mxu0 %vm578_vm1, %v3399_v23 }
 0x200   : > { %v4718_v39 = vsel %vm4454_vm7, %v4322_v24, %v4586_v29  ;;  %vm4455_vm9 = vcmp.ge.f32.partialorder %v4323_v30, 0.0  ;;  %v4587_v41 = vmul.f32 0.2, %v4323_v30  ;;  %v5730_v42 = vpop.f32.mrb[8].mxu1 }
 0x201   : > { %4851 = vst.msk [vmem:[%s7218_s4 + $0x30] sm:$0xff] %vm4844_vm2, %v4718_v39  ;;  %v4716_v45 = vsel %vm4452_vm8, %v4320_v27, %v4584_v34  ;;  %vm4453_vm10 = vcmp.ge.f32.partialorder %v4321_v35, 0.0  ;;  %v4585_v46 = vmul.f32 0.2, %v4321_v35  ;;  %v5998_v47 = vpop.f32.mrb[8].mxu0  ;;  %v1614_v48 = vpop.f32.mrb[9].mxu1  ;;  %v366_v27 = vpack.c.bf16 %v297_v11, %v296_v10 }
 0x202   : > { %4849 = vst.msk [vmem:[%s7218_s4 + $0x20] sm:$0xff] %vm4844_vm2, %v4716_v45  ;;  %v4719_v50 = vsel %vm4455_vm9, %v4323_v30, %v4587_v41  ;;  %v6128_v51 = vadd.f32 %v5998_v47, %v5730_v42  ;;  %v3682_v52 = vpop.f32.mrb[9].mxu0  ;;  %v5731_v53 = vpop.f32.mrb[10].mxu1  ;;  %v298_v41 = vld [vmem:[%s6595_s25 + $0x3f0] sm:$0xff]  ;;  %v299_v42 = vld [vmem:[%s6595_s25 + $0x3f8] sm:$0xff]  ;;  %v300_v47 = vld [vmem:[%s6595_s25 + $0x400] sm:$0xff] }
 0x203   : > { %4852 = vst.msk [vmem:[%s7218_s4 + $0x38] sm:$0xff] %vm4844_vm2, %v4719_v50  ;;  %v4717_v56 = vsel %vm4453_vm10, %v4321_v35, %v4585_v46  ;;  %v6129_v57 = vadd.f32 %v3682_v52, %v1614_v48  ;;  %v5999_v58 = vpop.f32.mrb[10].mxu0  ;;  %v1617_v59 = vpop.f32.mrb[11].mxu1  ;;  %v3336_v46 = vld [vmem:[%s6595_s25 + $0x41a] sm:$0xff]  ;;  %v301_v48 = vld [vmem:[%s6595_s25 + $0x408] sm:$0xff] }
 0x204   : > { %4850 = vst.msk [vmem:[%s7218_s4 + $0x28] sm:$0xff] %vm4844_vm2, %v4717_v56  ;;  %v4326_v61 = vadd.f32 %v6128_v51, %v7209_v40  ;;  %v6130_v62 = vadd.f32 %v5999_v58, %v5731_v53  ;;  %v3685_v63 = vpop.f32.mrb[11].mxu0  ;;  %v3337_v52 = vld [vmem:[%s6595_s25 + $0x422] sm:$0xff]  ;;  %v3338_v53 = vld [vmem:[%s6595_s25 + $0x42a] sm:$0xff]  ;;  %v367_v58 = vpack.c.bf16 %v299_v42, %v298_v41 }
 0x205   : > { %v4324_v0 = vadd.f32 %v6129_v57, %v7209_v40  ;;  %v6131_v1 = vadd.f32 %v3685_v63, %v1617_v59  ;;  %5837 = vmatmul.mubr.msk.bf16.gmra.mrb[116].mxu1 %vm578_vm1, %v363_v49  ;;  %v3404_v63 = vpack.c.bf16 %v3336_v46, %v3335_v43  ;;  %v3405_v5 = vpack.c.bf16 %v3338_v53, %v3337_v52 }
 0x206   : > { %vm4458_vm11 = vcmp.ge.f32.partialorder %v4326_v61, 0.0  ;;  %v4590_v2 = vmul.f32 0.2, %v4326_v61  ;;  %v4327_v3 = vadd.f32 %v6130_v62, %v7209_v40  ;;  %6105 = vmatmul.mubr.msk.bf16.gmra.mrb[116].mxu0 %vm578_vm1, %v3400_v54  ;;  %5840 = vmatprep.mubr.msk.bf16.mxu1 %vm578_vm1, %v364_v55 }
 0x207   : > { %vm4456_vm12 = vcmp.ge.f32.partialorder %v4324_v0, 0.0  ;;  %v4588_v7 = vmul.f32 0.2, %v4324_v0  ;;  %v4325_v8 = vadd.f32 %v6131_v1, %v7209_v40  ;;  %6108 = vmatprep.mubr.msk.bf16.mxu0 %vm578_vm1, %v3401_v60 }
 0x208   : > { %v4722_v12 = vsel %vm4458_vm11, %v4326_v61, %v4590_v2  ;;  %vm4459_vm13 = vcmp.ge.f32.partialorder %v4327_v3, 0.0  ;;  %v4591_v13 = vmul.f32 0.2, %v4327_v3  ;;  %v5734_v14 = vpop.f32.mrb[12].mxu1 }
 0x209   : > { %4855 = vst.msk [vmem:[%s7218_s4 + $0x50] sm:$0xff] %vm4844_vm2, %v4722_v12  ;;  %v4720_v17 = vsel %vm4456_vm12, %v4324_v0, %v4588_v7  ;;  %vm4457_vm14 = vcmp.ge.f32.partialorder %v4325_v8, 0.0  ;;  %v4589_v18 = vmul.f32 0.2, %v4325_v8  ;;  %v6002_v19 = vpop.f32.mrb[12].mxu0  ;;  %v1630_v20 = vpop.f32.mrb[13].mxu1  ;;  %v368_v0 = vpack.c.bf16 %v301_v48, %v300_v47 }
 0x20a   : > { %4853 = vst.msk [vmem:[%s7218_s4 + $0x40] sm:$0xff] %vm4844_vm2, %v4720_v17  ;;  %v4723_v22 = vsel %vm4459_vm13, %v4327_v3, %v4591_v13  ;;  %v6132_v23 = vadd.f32 %v6002_v19, %v5734_v14  ;;  %v3698_v24 = vpop.f32.mrb[13].mxu0  ;;  %v5735_v25 = vpop.f32.mrb[14].mxu1  ;;  %v302_v13 = vld [vmem:[%s6595_s25 + $0x410] sm:$0xff]  ;;  %v303_v14 = vld [vmem:[%s6595_s25 + $0x418] sm:$0xff] }
 0x20b   : > { %4856 = vst.msk [vmem:[%s7218_s4 + $0x58] sm:$0xff] %vm4844_vm2, %v4723_v22  ;;  %v4721_v28 = vsel %vm4457_vm14, %v4325_v8, %v4589_v18  ;;  %v6133_v29 = vadd.f32 %v3698_v24, %v1630_v20  ;;  %v6003_v30 = vpop.f32.mrb[14].mxu0  ;;  %v1633_v31 = vpop.f32.mrb[15].mxu1  ;;  %v3339_v17 = vld [vmem:[%s6595_s25 + $0x432] sm:$0xff]  ;;  %v3340_v18 = vld [vmem:[%s6595_s25 + $0x43a] sm:$0xff] }
 0x20c   : > { %4854 = vst.msk [vmem:[%s7218_s4 + $0x48] sm:$0xff] %vm4844_vm2, %v4721_v28  ;;  %v4330_v33 = vadd.f32 %v6132_v23, %v7209_v40  ;;  %v6134_v34 = vadd.f32 %v6003_v30, %v5735_v25  ;;  %v3701_v35 = vpop.f32.mrb[15].mxu0 }
 0x20d   : > { %v4328_v36 = vadd.f32 %v6133_v29, %v7209_v40  ;;  %v6135_v37 = vadd.f32 %v3701_v35, %v1633_v31  ;;  %5841 = vmatmul.mubr.msk.bf16.gmra.mrb[120].mxu1 %vm578_vm1, %v365_v21  ;;  %v3406_v31 = vpack.c.bf16 %v3340_v18, %v3339_v17 }
 0x20e   : > { %vm4462_vm15 = vcmp.ge.f32.partialorder %v4330_v33, 0.0  ;;  %v4594_v38 = vmul.f32 0.2, %v4330_v33  ;;  %v4331_v39 = vadd.f32 %v6134_v34, %v7209_v40  ;;  %6109 = vmatmul.mubr.msk.bf16.gmra.mrb[120].mxu0 %vm578_vm1, %v3402_v26  ;;  %5844 = vmatprep.mubr.msk.bf16.mxu1 %vm578_vm1, %v366_v27  ;;  %v369_v26 = vpack.c.bf16 %v303_v14, %v302_v13 }
 0x20f   : > { %vm4460_vm0 = vcmp.ge.f32.partialorder %v4328_v36, 0.0  ;;  %v4592_v44 = vmul.f32 0.2, %v4328_v36  ;;  %v4329_v45 = vadd.f32 %v6135_v37, %v7209_v40  ;;  %6112 = vmatprep.mubr.msk.bf16.mxu0 %vm578_vm1, %v3403_v32 }
 0x210   : > { %v4726_v49 = vsel %vm4462_vm15, %v4330_v33, %v4594_v38  ;;  %vm4463_vm3 = vcmp.ge.f32.partialorder %v4331_v39, 0.0  ;;  %v4595_v50 = vmul.f32 0.2, %v4331_v39  ;;  %v5738_v51 = vpop.f32.mrb[16].mxu1 }
 0x211   : > { %4859 = vst.msk [vmem:[%s7218_s4 + $0x70] sm:$0xff] %vm4844_vm2, %v4726_v49  ;;  %v4724_v54 = vsel %vm4460_vm0, %v4328_v36, %v4592_v44  ;;  %vm4461_vm4 = vcmp.ge.f32.partialorder %v4329_v45, 0.0  ;;  %v4593_v55 = vmul.f32 0.2, %v4329_v45  ;;  %v6006_v56 = vpop.f32.mrb[16].mxu0  ;;  %v1646_v57 = vpop.f32.mrb[17].mxu1 }
 0x212   : > { %4857 = vst.msk [vmem:[%s7218_s4 + $0x60] sm:$0xff] %vm4844_vm2, %v4724_v54  ;;  %v4727_v59 = vsel %vm4463_vm3, %v4331_v39, %v4595_v50  ;;  %v6136_v60 = vadd.f32 %v6006_v56, %v5738_v51  ;;  %v3714_v61 = vpop.f32.mrb[17].mxu0  ;;  %v5739_v62 = vpop.f32.mrb[18].mxu1 }
 0x213   : > { %4860 = vst.msk [vmem:[%s7218_s4 + $0x78] sm:$0xff] %vm4844_vm2, %v4727_v59  ;;  %v4725_v1 = vsel %vm4461_vm4, %v4329_v45, %v4593_v55  ;;  %v6137_v2 = vadd.f32 %v3714_v61, %v1646_v57  ;;  %v6007_v3 = vpop.f32.mrb[18].mxu0  ;;  %v1649_v4 = vpop.f32.mrb[19].mxu1 }
 0x214   : > { %4858 = vst.msk [vmem:[%s7218_s4 + $0x68] sm:$0xff] %vm4844_vm2, %v4725_v1  ;;  %v4334_v6 = vadd.f32 %v6136_v60, %v7209_v40  ;;  %v6138_v7 = vadd.f32 %v6007_v3, %v5739_v62  ;;  %v3717_v8 = vpop.f32.mrb[19].mxu0 }
 0x215   : > { %v4332_v9 = vadd.f32 %v6137_v2, %v7209_v40  ;;  %v6139_v10 = vadd.f32 %v3717_v8, %v1649_v4  ;;  %5845 = vmatmul.mubr.msk.bf16.gmra.mrb[124].mxu1 %vm578_vm1, %v367_v58 }
 0x216   : > { %vm4466_vm5 = vcmp.ge.f32.partialorder %v4334_v6, 0.0  ;;  %v4598_v11 = vmul.f32 0.2, %v4334_v6  ;;  %v4335_v12 = vadd.f32 %v6138_v7, %v7209_v40  ;;  %6113 = vmatmul.mubr.msk.bf16.gmra.mrb[124].mxu0 %vm578_vm1, %v3404_v63  ;;  %5848 = vmatprep.mubr.msk.bf16.mxu1 %vm578_vm1, %v368_v0 }
 0x217   : > { %vm4464_vm6 = vcmp.ge.f32.partialorder %v4332_v9, 0.0  ;;  %v4596_v15 = vmul.f32 0.2, %v4332_v9  ;;  %v4333_v16 = vadd.f32 %v6139_v10, %v7209_v40  ;;  %6116 = vmatprep.mubr.msk.bf16.mxu0 %vm578_vm1, %v3405_v5 }
 0x218   : > { %v4730_v19 = vsel %vm4466_vm5, %v4334_v6, %v4598_v11  ;;  %vm4467_vm7 = vcmp.ge.f32.partialorder %v4335_v12, 0.0  ;;  %v4599_v20 = vmul.f32 0.2, %v4335_v12  ;;  %v5742_v21 = vpop.f32.mrb[20].mxu1 }
 0x219   : > { %4863 = vst.msk [vmem:[%s7218_s4 + $0x90] sm:$0xff] %vm4844_vm2, %v4730_v19  ;;  %v4728_v22 = vsel %vm4464_vm6, %v4332_v9, %v4596_v15  ;;  %vm4465_vm8 = vcmp.ge.f32.partialorder %v4333_v16, 0.0  ;;  %v4597_v23 = vmul.f32 0.2, %v4333_v16  ;;  %v6010_v24 = vpop.f32.mrb[20].mxu0  ;;  %v1662_v25 = vpop.f32.mrb[21].mxu1 }
 0x21a   : > { %4861 = vst.msk [vmem:[%s7218_s4 + $0x80] sm:$0xff] %vm4844_vm2, %v4728_v22  ;;  %v4731_v27 = vsel %vm4467_vm7, %v4335_v12, %v4599_v20  ;;  %v6140_v28 = vadd.f32 %v6010_v24, %v5742_v21  ;;  %v3730_v29 = vpop.f32.mrb[21].mxu0  ;;  %v5743_v30 = vpop.f32.mrb[22].mxu1 }
 0x21b   : > { %4864 = vst.msk [vmem:[%s7218_s4 + $0x98] sm:$0xff] %vm4844_vm2, %v4731_v27  ;;  %v4729_v32 = vsel %vm4465_vm8, %v4333_v16, %v4597_v23  ;;  %v6141_v33 = vadd.f32 %v3730_v29, %v1662_v25  ;;  %v6011_v34 = vpop.f32.mrb[22].mxu0  ;;  %v1665_v35 = vpop.f32.mrb[23].mxu1 }
 0x21c   : > { %4862 = vst.msk [vmem:[%s7218_s4 + $0x88] sm:$0xff] %vm4844_vm2, %v4729_v32  ;;  %v4338_v36 = vadd.f32 %v6140_v28, %v7209_v40  ;;  %v6142_v37 = vadd.f32 %v6011_v34, %v5743_v30  ;;  %v3733_v38 = vpop.f32.mrb[23].mxu0 }
 0x21d   : > { %v4336_v39 = vadd.f32 %v6141_v33, %v7209_v40  ;;  %v6143_v41 = vadd.f32 %v3733_v38, %v1665_v35  ;;  %5849 = vmatmul.mubr.msk.bf16.gmra.mrb[128].mxu1 %vm578_vm1, %v369_v26 }
 0x21e   : > { %vm4470_vm9 = vcmp.ge.f32.partialorder %v4338_v36, 0.0  ;;  %v4602_v42 = vmul.f32 0.2, %v4338_v36  ;;  %v4339_v43 = vadd.f32 %v6142_v37, %v7209_v40  ;;  %6117 = vmatmul.mubr.msk.bf16.gmra.mrb[128].mxu0 %vm578_vm1, %v3406_v31 }
 0x21f   : > { %vm4468_vm10 = vcmp.ge.f32.partialorder %v4336_v39, 0.0  ;;  %v4600_v44 = vmul.f32 0.2, %v4336_v39  ;;  %v4337_v45 = vadd.f32 %v6143_v41, %v7209_v40 }
 0x220   : > { %v4734_v46 = vsel %vm4470_vm9, %v4338_v36, %v4602_v42  ;;  %vm4471_vm11 = vcmp.ge.f32.partialorder %v4339_v43, 0.0  ;;  %v4603_v47 = vmul.f32 0.2, %v4339_v43  ;;  %v5746_v48 = vpop.f32.mrb[24].mxu1 }
 0x221   : > { %4867 = vst.msk [vmem:[%s7218_s4 + $0xb0] sm:$0xff] %vm4844_vm2, %v4734_v46  ;;  %v4732_v49 = vsel %vm4468_vm10, %v4336_v39, %v4600_v44  ;;  %vm4469_vm12 = vcmp.ge.f32.partialorder %v4337_v45, 0.0  ;;  %v4601_v50 = vmul.f32 0.2, %v4337_v45  ;;  %v6014_v51 = vpop.f32.mrb[24].mxu0  ;;  %v1678_v52 = vpop.f32.mrb[25].mxu1 }
 0x222   : > { %4865 = vst.msk [vmem:[%s7218_s4 + $0xa0] sm:$0xff] %vm4844_vm2, %v4732_v49  ;;  %v4735_v53 = vsel %vm4471_vm11, %v4339_v43, %v4603_v47  ;;  %v6144_v54 = vadd.f32 %v6014_v51, %v5746_v48  ;;  %v3746_v55 = vpop.f32.mrb[25].mxu0  ;;  %v5747_v56 = vpop.f32.mrb[26].mxu1 }
 0x223   : > { %4868 = vst.msk [vmem:[%s7218_s4 + $0xb8] sm:$0xff] %vm4844_vm2, %v4735_v53  ;;  %v4733_v57 = vsel %vm4469_vm12, %v4337_v45, %v4601_v50  ;;  %v6145_v58 = vadd.f32 %v3746_v55, %v1678_v52  ;;  %v6015_v59 = vpop.f32.mrb[26].mxu0  ;;  %v1681_v60 = vpop.f32.mrb[27].mxu1 }
 0x224   : > { %4866 = vst.msk [vmem:[%s7218_s4 + $0xa8] sm:$0xff] %vm4844_vm2, %v4733_v57  ;;  %v4342_v61 = vadd.f32 %v6144_v54, %v7209_v40  ;;  %v6146_v62 = vadd.f32 %v6015_v59, %v5747_v56  ;;  %v3749_v63 = vpop.f32.mrb[27].mxu0 }
 0x225   : > { %v4340_v0 = vadd.f32 %v6145_v58, %v7209_v40  ;;  %v6147_v1 = vadd.f32 %v3749_v63, %v1681_v60 }
 0x226   : > { %vm4474_vm1 = vcmp.ge.f32.partialorder %v4342_v61, 0.0  ;;  %v4606_v2 = vmul.f32 0.2, %v4342_v61  ;;  %v4343_v3 = vadd.f32 %v6146_v62, %v7209_v40 }
 0x227   : > { %vm4472_vm13 = vcmp.ge.f32.partialorder %v4340_v0, 0.0  ;;  %v4604_v4 = vmul.f32 0.2, %v4340_v0  ;;  %v4341_v5 = vadd.f32 %v6147_v1, %v7209_v40 }
 0x228   : > { %v4738_v6 = vsel %vm4474_vm1, %v4342_v61, %v4606_v2  ;;  %vm4475_vm14 = vcmp.ge.f32.partialorder %v4343_v3, 0.0  ;;  %v4607_v7 = vmul.f32 0.2, %v4343_v3  ;;  %v5750_v8 = vpop.f32.mrb[28].mxu1 }
 0x229   : > { %4871 = vst.msk [vmem:[%s7218_s4 + $0xd0] sm:$0xff] %vm4844_vm2, %v4738_v6  ;;  %v4736_v9 = vsel %vm4472_vm13, %v4340_v0, %v4604_v4  ;;  %vm4473_vm15 = vcmp.ge.f32.partialorder %v4341_v5, 0.0  ;;  %v4605_v10 = vmul.f32 0.2, %v4341_v5  ;;  %v6018_v11 = vpop.f32.mrb[28].mxu0  ;;  %v1694_v12 = vpop.f32.mrb[29].mxu1 }
 0x22a   : > { %4869 = vst.msk [vmem:[%s7218_s4 + $0xc0] sm:$0xff] %vm4844_vm2, %v4736_v9  ;;  %v4739_v13 = vsel %vm4475_vm14, %v4343_v3, %v4607_v7  ;;  %v6148_v14 = vadd.f32 %v6018_v11, %v5750_v8  ;;  %v3762_v15 = vpop.f32.mrb[29].mxu0  ;;  %v5751_v16 = vpop.f32.mrb[30].mxu1 }
 0x22b   : > { %4872 = vst.msk [vmem:[%s7218_s4 + $0xd8] sm:$0xff] %vm4844_vm2, %v4739_v13  ;;  %v4737_v17 = vsel %vm4473_vm15, %v4341_v5, %v4605_v10  ;;  %v6149_v18 = vadd.f32 %v3762_v15, %v1694_v12  ;;  %v6019_v19 = vpop.f32.mrb[30].mxu0  ;;  %v1697_v20 = vpop.f32.mrb[31].mxu1 }
 0x22c   : > { %4870 = vst.msk [vmem:[%s7218_s4 + $0xc8] sm:$0xff] %vm4844_vm2, %v4737_v17  ;;  %v4346_v21 = vadd.f32 %v6148_v14, %v7209_v40  ;;  %v6150_v22 = vadd.f32 %v6019_v19, %v5751_v16  ;;  %v3765_v23 = vpop.f32.mrb[31].mxu0 }
 0x22d   : > { %v4344_v24 = vadd.f32 %v6149_v18, %v7209_v40  ;;  %v6151_v25 = vadd.f32 %v3765_v23, %v1697_v20 }
 0x22e   : > { %vm4478_vm0 = vcmp.ge.f32.partialorder %v4346_v21, 0.0  ;;  %v4610_v26 = vmul.f32 0.2, %v4346_v21  ;;  %v4347_v27 = vadd.f32 %v6150_v22, %v7209_v40 }
 0x22f   : > { %vm4476_vm3 = vcmp.ge.f32.partialorder %v4344_v24, 0.0  ;;  %v4608_v28 = vmul.f32 0.2, %v4344_v24  ;;  %v4345_v29 = vadd.f32 %v6151_v25, %v7209_v40 }
 0x230   : > { %v4742_v30 = vsel %vm4478_vm0, %v4346_v21, %v4610_v26  ;;  %vm4479_vm4 = vcmp.ge.f32.partialorder %v4347_v27, 0.0  ;;  %v4611_v31 = vmul.f32 0.2, %v4347_v27  ;;  %v5754_v32 = vpop.f32.mrb[32].mxu1 }
 0x231   : > { %4875 = vst.msk [vmem:[%s7218_s4 + $0xf0] sm:$0xff] %vm4844_vm2, %v4742_v30  ;;  %v4740_v33 = vsel %vm4476_vm3, %v4344_v24, %v4608_v28  ;;  %vm4477_vm5 = vcmp.ge.f32.partialorder %v4345_v29, 0.0  ;;  %v4609_v34 = vmul.f32 0.2, %v4345_v29  ;;  %v6022_v35 = vpop.f32.mrb[32].mxu0  ;;  %v1710_v36 = vpop.f32.mrb[33].mxu1 }
 0x232   : > { %4873 = vst.msk [vmem:[%s7218_s4 + $0xe0] sm:$0xff] %vm4844_vm2, %v4740_v33  ;;  %v4743_v37 = vsel %vm4479_vm4, %v4347_v27, %v4611_v31  ;;  %v6152_v38 = vadd.f32 %v6022_v35, %v5754_v32  ;;  %v3778_v39 = vpop.f32.mrb[33].mxu0  ;;  %v5755_v41 = vpop.f32.mrb[34].mxu1 }
 0x233   : > { %4876 = vst.msk [vmem:[%s7218_s4 + $0xf8] sm:$0xff] %vm4844_vm2, %v4743_v37  ;;  %v4741_v42 = vsel %vm4477_vm5, %v4345_v29, %v4609_v34  ;;  %v6153_v43 = vadd.f32 %v3778_v39, %v1710_v36  ;;  %v6023_v44 = vpop.f32.mrb[34].mxu0  ;;  %v1713_v45 = vpop.f32.mrb[35].mxu1 }
 0x234   : > { %4874 = vst.msk [vmem:[%s7218_s4 + $0xe8] sm:$0xff] %vm4844_vm2, %v4741_v42  ;;  %v4350_v46 = vadd.f32 %v6152_v38, %v7209_v40  ;;  %v6154_v47 = vadd.f32 %v6023_v44, %v5755_v41  ;;  %v3781_v48 = vpop.f32.mrb[35].mxu0 }
 0x235   : > { %v4348_v49 = vadd.f32 %v6153_v43, %v7209_v40  ;;  %v6155_v50 = vadd.f32 %v3781_v48, %v1713_v45 }
 0x236   : > { %vm4482_vm6 = vcmp.ge.f32.partialorder %v4350_v46, 0.0  ;;  %v4614_v51 = vmul.f32 0.2, %v4350_v46  ;;  %v4351_v52 = vadd.f32 %v6154_v47, %v7209_v40 }
 0x237   : > { %vm4480_vm7 = vcmp.ge.f32.partialorder %v4348_v49, 0.0  ;;  %v4612_v53 = vmul.f32 0.2, %v4348_v49  ;;  %v4349_v54 = vadd.f32 %v6155_v50, %v7209_v40 }
 0x238   : > { %v4746_v55 = vsel %vm4482_vm6, %v4350_v46, %v4614_v51  ;;  %vm4483_vm8 = vcmp.ge.f32.partialorder %v4351_v52, 0.0  ;;  %v4615_v56 = vmul.f32 0.2, %v4351_v52  ;;  %v5758_v57 = vpop.f32.mrb[36].mxu1 }
 0x239   : > { %4879 = vst.msk [vmem:[%s7218_s4 + $0x110] sm:$0xff] %vm4844_vm2, %v4746_v55  ;;  %v4744_v58 = vsel %vm4480_vm7, %v4348_v49, %v4612_v53  ;;  %vm4481_vm9 = vcmp.ge.f32.partialorder %v4349_v54, 0.0  ;;  %v4613_v59 = vmul.f32 0.2, %v4349_v54  ;;  %v6026_v60 = vpop.f32.mrb[36].mxu0  ;;  %v1726_v61 = vpop.f32.mrb[37].mxu1 }
 0x23a   : > { %4877 = vst.msk [vmem:[%s7218_s4 + $0x100] sm:$0xff] %vm4844_vm2, %v4744_v58  ;;  %v4747_v62 = vsel %vm4483_vm8, %v4351_v52, %v4615_v56  ;;  %v6156_v63 = vadd.f32 %v6026_v60, %v5758_v57  ;;  %v3794_v0 = vpop.f32.mrb[37].mxu0  ;;  %v5759_v1 = vpop.f32.mrb[38].mxu1 }
 0x23b   : > { %4880 = vst.msk [vmem:[%s7218_s4 + $0x118] sm:$0xff] %vm4844_vm2, %v4747_v62  ;;  %v4745_v2 = vsel %vm4481_vm9, %v4349_v54, %v4613_v59  ;;  %v6157_v3 = vadd.f32 %v3794_v0, %v1726_v61  ;;  %v6027_v4 = vpop.f32.mrb[38].mxu0  ;;  %v1729_v5 = vpop.f32.mrb[39].mxu1 }
 0x23c   : > { %4878 = vst.msk [vmem:[%s7218_s4 + $0x108] sm:$0xff] %vm4844_vm2, %v4745_v2  ;;  %v4354_v6 = vadd.f32 %v6156_v63, %v7209_v40  ;;  %v6158_v7 = vadd.f32 %v6027_v4, %v5759_v1  ;;  %v3797_v8 = vpop.f32.mrb[39].mxu0 }
 0x23d   : > { %v4352_v9 = vadd.f32 %v6157_v3, %v7209_v40  ;;  %v6159_v10 = vadd.f32 %v3797_v8, %v1729_v5 }
 0x23e   : > { %vm4486_vm10 = vcmp.ge.f32.partialorder %v4354_v6, 0.0  ;;  %v4618_v11 = vmul.f32 0.2, %v4354_v6  ;;  %v4355_v12 = vadd.f32 %v6158_v7, %v7209_v40 }
 0x23f   : > { %vm4484_vm11 = vcmp.ge.f32.partialorder %v4352_v9, 0.0  ;;  %v4616_v13 = vmul.f32 0.2, %v4352_v9  ;;  %v4353_v14 = vadd.f32 %v6159_v10, %v7209_v40 }
 0x240   : > { %v4750_v15 = vsel %vm4486_vm10, %v4354_v6, %v4618_v11  ;;  %vm4487_vm12 = vcmp.ge.f32.partialorder %v4355_v12, 0.0  ;;  %v4619_v16 = vmul.f32 0.2, %v4355_v12  ;;  %v5762_v17 = vpop.f32.mrb[40].mxu1 }
 0x241   : > { %4883 = vst.msk [vmem:[%s7218_s4 + $0x130] sm:$0xff] %vm4844_vm2, %v4750_v15  ;;  %v4748_v18 = vsel %vm4484_vm11, %v4352_v9, %v4616_v13  ;;  %vm4485_vm1 = vcmp.ge.f32.partialorder %v4353_v14, 0.0  ;;  %v4617_v19 = vmul.f32 0.2, %v4353_v14  ;;  %v6030_v20 = vpop.f32.mrb[40].mxu0  ;;  %v1742_v21 = vpop.f32.mrb[41].mxu1 }
 0x242   : > { %4881 = vst.msk [vmem:[%s7218_s4 + $0x120] sm:$0xff] %vm4844_vm2, %v4748_v18  ;;  %v4751_v22 = vsel %vm4487_vm12, %v4355_v12, %v4619_v16  ;;  %v6160_v23 = vadd.f32 %v6030_v20, %v5762_v17  ;;  %v3810_v24 = vpop.f32.mrb[41].mxu0  ;;  %v5763_v25 = vpop.f32.mrb[42].mxu1 }
 0x243   : > { %4884 = vst.msk [vmem:[%s7218_s4 + $0x138] sm:$0xff] %vm4844_vm2, %v4751_v22  ;;  %v4749_v26 = vsel %vm4485_vm1, %v4353_v14, %v4617_v19  ;;  %v6161_v27 = vadd.f32 %v3810_v24, %v1742_v21  ;;  %v6031_v28 = vpop.f32.mrb[42].mxu0  ;;  %v1745_v29 = vpop.f32.mrb[43].mxu1 }
 0x244   : > { %4882 = vst.msk [vmem:[%s7218_s4 + $0x128] sm:$0xff] %vm4844_vm2, %v4749_v26  ;;  %v4358_v30 = vadd.f32 %v6160_v23, %v7209_v40  ;;  %v6162_v31 = vadd.f32 %v6031_v28, %v5763_v25  ;;  %v3813_v32 = vpop.f32.mrb[43].mxu0 }
 0x245   : > { %v4356_v33 = vadd.f32 %v6161_v27, %v7209_v40  ;;  %v6163_v34 = vadd.f32 %v3813_v32, %v1745_v29 }
 0x246   : > { %vm4490_vm13 = vcmp.ge.f32.partialorder %v4358_v30, 0.0  ;;  %v4622_v35 = vmul.f32 0.2, %v4358_v30  ;;  %v4359_v36 = vadd.f32 %v6162_v31, %v7209_v40 }
 0x247   : > { %vm4488_vm14 = vcmp.ge.f32.partialorder %v4356_v33, 0.0  ;;  %v4620_v37 = vmul.f32 0.2, %v4356_v33  ;;  %v4357_v38 = vadd.f32 %v6163_v34, %v7209_v40 }
 0x248   : > { %v4754_v39 = vsel %vm4490_vm13, %v4358_v30, %v4622_v35  ;;  %vm4491_vm15 = vcmp.ge.f32.partialorder %v4359_v36, 0.0  ;;  %v4623_v41 = vmul.f32 0.2, %v4359_v36  ;;  %v5766_v42 = vpop.f32.mrb[44].mxu1 }
 0x249   : > { %4887 = vst.msk [vmem:[%s7218_s4 + $0x150] sm:$0xff] %vm4844_vm2, %v4754_v39  ;;  %v4752_v43 = vsel %vm4488_vm14, %v4356_v33, %v4620_v37  ;;  %vm4489_vm0 = vcmp.ge.f32.partialorder %v4357_v38, 0.0  ;;  %v4621_v44 = vmul.f32 0.2, %v4357_v38  ;;  %v6034_v45 = vpop.f32.mrb[44].mxu0  ;;  %v1758_v46 = vpop.f32.mrb[45].mxu1 }
 0x24a   : > { %4885 = vst.msk [vmem:[%s7218_s4 + $0x140] sm:$0xff] %vm4844_vm2, %v4752_v43  ;;  %v4755_v47 = vsel %vm4491_vm15, %v4359_v36, %v4623_v41  ;;  %v6164_v48 = vadd.f32 %v6034_v45, %v5766_v42  ;;  %v3826_v49 = vpop.f32.mrb[45].mxu0  ;;  %v5767_v50 = vpop.f32.mrb[46].mxu1 }
 0x24b   : > { %4888 = vst.msk [vmem:[%s7218_s4 + $0x158] sm:$0xff] %vm4844_vm2, %v4755_v47  ;;  %v4753_v51 = vsel %vm4489_vm0, %v4357_v38, %v4621_v44  ;;  %v6165_v52 = vadd.f32 %v3826_v49, %v1758_v46  ;;  %v6035_v53 = vpop.f32.mrb[46].mxu0  ;;  %v1761_v54 = vpop.f32.mrb[47].mxu1  ;;  %v7436_v46 = vld [vmem:[%s7686_s2] ss:$0 sm:$0xff] }
 0x24c   : > { %4886 = vst.msk [vmem:[%s7218_s4 + $0x148] sm:$0xff] %vm4844_vm2, %v4753_v51  ;;  %v4362_v55 = vadd.f32 %v6164_v48, %v7209_v40  ;;  %v6166_v56 = vadd.f32 %v6035_v53, %v5767_v50  ;;  %v3829_v57 = vpop.f32.mrb[47].mxu0 }
 0x24d   : > { %v4360_v58 = vadd.f32 %v6165_v52, %v7209_v40  ;;  %v6167_v59 = vadd.f32 %v3829_v57, %v1761_v54 }
 0x24e   : > { %vm4494_vm3 = vcmp.ge.f32.partialorder %v4362_v55, 0.0  ;;  %v4626_v60 = vmul.f32 0.2, %v4362_v55  ;;  %v4363_v61 = vadd.f32 %v6166_v56, %v7209_v40 }
 0x24f   : > { %vm4492_vm4 = vcmp.ge.f32.partialorder %v4360_v58, 0.0  ;;  %v4624_v62 = vmul.f32 0.2, %v4360_v58  ;;  %v4361_v63 = vadd.f32 %v6167_v59, %v7209_v40 }
 0x250   : > { %v4758_v0 = vsel %vm4494_vm3, %v4362_v55, %v4626_v60  ;;  %vm4495_vm5 = vcmp.ge.f32.partialorder %v4363_v61, 0.0  ;;  %v4627_v1 = vmul.f32 0.2, %v4363_v61  ;;  %v5770_v2 = vpop.f32.mrb[48].mxu1 }
 0x251   : > { %4891 = vst.msk [vmem:[%s7218_s4 + $0x170] sm:$0xff] %vm4844_vm2, %v4758_v0  ;;  %v4756_v3 = vsel %vm4492_vm4, %v4360_v58, %v4624_v62  ;;  %vm4493_vm6 = vcmp.ge.f32.partialorder %v4361_v63, 0.0  ;;  %v4625_v4 = vmul.f32 0.2, %v4361_v63  ;;  %v6038_v5 = vpop.f32.mrb[48].mxu0  ;;  %v1774_v6 = vpop.f32.mrb[49].mxu1 }
 0x252   : > { %4889 = vst.msk [vmem:[%s7218_s4 + $0x160] sm:$0xff] %vm4844_vm2, %v4756_v3  ;;  %v4759_v7 = vsel %vm4495_vm5, %v4363_v61, %v4627_v1  ;;  %v6168_v8 = vadd.f32 %v6038_v5, %v5770_v2  ;;  %v3842_v9 = vpop.f32.mrb[49].mxu0  ;;  %v5771_v10 = vpop.f32.mrb[50].mxu1 }
 0x253   : > { %4892 = vst.msk [vmem:[%s7218_s4 + $0x178] sm:$0xff] %vm4844_vm2, %v4759_v7  ;;  %v4757_v11 = vsel %vm4493_vm6, %v4361_v63, %v4625_v4  ;;  %v6169_v12 = vadd.f32 %v3842_v9, %v1774_v6  ;;  %v6039_v13 = vpop.f32.mrb[50].mxu0  ;;  %v1777_v14 = vpop.f32.mrb[51].mxu1 }
 0x254   : > { %4890 = vst.msk [vmem:[%s7218_s4 + $0x168] sm:$0xff] %vm4844_vm2, %v4757_v11  ;;  %v4366_v15 = vadd.f32 %v6168_v8, %v7209_v40  ;;  %v6170_v16 = vadd.f32 %v6039_v13, %v5771_v10  ;;  %v3845_v17 = vpop.f32.mrb[51].mxu0 }
 0x255   : > { %v4364_v18 = vadd.f32 %v6169_v12, %v7209_v40  ;;  %v6171_v19 = vadd.f32 %v3845_v17, %v1777_v14 }
 0x256   : > { %vm4498_vm7 = vcmp.ge.f32.partialorder %v4366_v15, 0.0  ;;  %v4630_v20 = vmul.f32 0.2, %v4366_v15  ;;  %v4367_v21 = vadd.f32 %v6170_v16, %v7209_v40 }
 0x257   : > { %vm4496_vm8 = vcmp.ge.f32.partialorder %v4364_v18, 0.0  ;;  %v4628_v22 = vmul.f32 0.2, %v4364_v18  ;;  %v4365_v23 = vadd.f32 %v6171_v19, %v7209_v40 }
 0x258   : > { %v4762_v24 = vsel %vm4498_vm7, %v4366_v15, %v4630_v20  ;;  %vm4499_vm9 = vcmp.ge.f32.partialorder %v4367_v21, 0.0  ;;  %v4631_v25 = vmul.f32 0.2, %v4367_v21  ;;  %v5774_v26 = vpop.f32.mrb[52].mxu1 }
 0x259   : > { %4895 = vst.msk [vmem:[%s7218_s4 + $0x190] sm:$0xff] %vm4844_vm2, %v4762_v24  ;;  %v4760_v27 = vsel %vm4496_vm8, %v4364_v18, %v4628_v22  ;;  %vm4497_vm10 = vcmp.ge.f32.partialorder %v4365_v23, 0.0  ;;  %v4629_v28 = vmul.f32 0.2, %v4365_v23  ;;  %v6042_v29 = vpop.f32.mrb[52].mxu0  ;;  %v1790_v30 = vpop.f32.mrb[53].mxu1 }
 0x25a   : > { %4893 = vst.msk [vmem:[%s7218_s4 + $0x180] sm:$0xff] %vm4844_vm2, %v4760_v27  ;;  %v4763_v31 = vsel %vm4499_vm9, %v4367_v21, %v4631_v25  ;;  %v6172_v32 = vadd.f32 %v6042_v29, %v5774_v26  ;;  %v3858_v33 = vpop.f32.mrb[53].mxu0  ;;  %v5775_v34 = vpop.f32.mrb[54].mxu1 }
 0x25b   : > { %4896 = vst.msk [vmem:[%s7218_s4 + $0x198] sm:$0xff] %vm4844_vm2, %v4763_v31  ;;  %v4761_v35 = vsel %vm4497_vm10, %v4365_v23, %v4629_v28  ;;  %v6173_v36 = vadd.f32 %v3858_v33, %v1790_v30  ;;  %v6043_v37 = vpop.f32.mrb[54].mxu0  ;;  %v1793_v38 = vpop.f32.mrb[55].mxu1 }
 0x25c   : > { %4894 = vst.msk [vmem:[%s7218_s4 + $0x188] sm:$0xff] %vm4844_vm2, %v4761_v35  ;;  %v4370_v39 = vadd.f32 %v6172_v32, %v7209_v40  ;;  %v6174_v41 = vadd.f32 %v6043_v37, %v5775_v34  ;;  %v3861_v42 = vpop.f32.mrb[55].mxu0 }
 0x25d   : > { %v4368_v43 = vadd.f32 %v6173_v36, %v7209_v40  ;;  %v6175_v44 = vadd.f32 %v3861_v42, %v1793_v38 }
 0x25e   : > { %vm4502_vm11 = vcmp.ge.f32.partialorder %v4370_v39, 0.0  ;;  %v4634_v45 = vmul.f32 0.2, %v4370_v39  ;;  %v4371_v47 = vadd.f32 %v7436_v46, %v6174_v41 }
 0x25f   : > { %vm4500_vm12 = vcmp.ge.f32.partialorder %v4368_v43, 0.0  ;;  %v4632_v48 = vmul.f32 0.2, %v4368_v43  ;;  %v4369_v49 = vadd.f32 %v7436_v46, %v6175_v44 }
 0x260   : > { %v4766_v50 = vsel %vm4502_vm11, %v4370_v39, %v4634_v45  ;;  %vm4503_vm1 = vcmp.ge.f32.partialorder %v4371_v47, 0.0  ;;  %v4635_v51 = vmul.f32 0.2, %v4371_v47  ;;  %v5778_v40 = vpop.f32.mrb[56].mxu1 }
 0x261   : > { %4899 = vst.msk [vmem:[%s7218_s4 + $0x1b0] sm:$0xff] %vm4844_vm2, %v4766_v50  ;;  %v4764_v52 = vsel %vm4500_vm12, %v4368_v43, %v4632_v48  ;;  %vm4501_vm13 = vcmp.ge.f32.partialorder %v4369_v49, 0.0  ;;  %v4633_v53 = vmul.f32 0.2, %v4369_v49  ;;  %v6046_v54 = vpop.f32.mrb[56].mxu0  ;;  %v1806_v55 = vpop.f32.mrb[57].mxu1 }
 0x262   : > { %4897 = vst.msk [vmem:[%s7218_s4 + $0x1a0] sm:$0xff] %vm4844_vm2, %v4764_v52  ;;  %v4767_v56 = vsel %vm4503_vm1, %v4371_v47, %v4635_v51  ;;  %v6176_v57 = vadd.f32 %v6046_v54, %v5778_v40  ;;  %v3874_v58 = vpop.f32.mrb[57].mxu0  ;;  %v5779_v59 = vpop.f32.mrb[58].mxu1 }
 0x263   : > { %4900 = vst.msk [vmem:[%s7218_s4 + $0x1b8] sm:$0xff] %vm4844_vm2, %v4767_v56  ;;  %v4765_v60 = vsel %vm4501_vm13, %v4369_v49, %v4633_v53  ;;  %v6177_v61 = vadd.f32 %v3874_v58, %v1806_v55  ;;  %v6047_v62 = vpop.f32.mrb[58].mxu0  ;;  %v1809_v63 = vpop.f32.mrb[59].mxu1 }
 0x264   : > { %4898 = vst.msk [vmem:[%s7218_s4 + $0x1a8] sm:$0xff] %vm4844_vm2, %v4765_v60  ;;  %v4374_v0 = vadd.f32 %v7436_v46, %v6176_v57  ;;  %v6178_v1 = vadd.f32 %v6047_v62, %v5779_v59  ;;  %v3877_v2 = vpop.f32.mrb[59].mxu0 }
 0x265   : > { %v4372_v3 = vadd.f32 %v7436_v46, %v6177_v61  ;;  %v6179_v4 = vadd.f32 %v3877_v2, %v1809_v63 }
 0x266   : > { %vm4506_vm14 = vcmp.ge.f32.partialorder %v4374_v0, 0.0  ;;  %v4638_v5 = vmul.f32 0.2, %v4374_v0  ;;  %v4375_v6 = vadd.f32 %v7436_v46, %v6178_v1 }
 0x267   : > { %vm4504_vm15 = vcmp.ge.f32.partialorder %v4372_v3, 0.0  ;;  %v4636_v7 = vmul.f32 0.2, %v4372_v3  ;;  %v4373_v8 = vadd.f32 %v7436_v46, %v6179_v4 }
 0x268   : > { %v4770_v9 = vsel %vm4506_vm14, %v4374_v0, %v4638_v5  ;;  %vm4507_vm0 = vcmp.ge.f32.partialorder %v4375_v6, 0.0  ;;  %v4639_v10 = vmul.f32 0.2, %v4375_v6  ;;  %v5782_v11 = vpop.f32.mrb[60].mxu1 }
 0x269   : > { %4903 = vst.msk [vmem:[%s7218_s4 + $0x1d0] sm:$0xff] %vm4844_vm2, %v4770_v9  ;;  %v4768_v12 = vsel %vm4504_vm15, %v4372_v3, %v4636_v7  ;;  %vm4505_vm3 = vcmp.ge.f32.partialorder %v4373_v8, 0.0  ;;  %v4637_v13 = vmul.f32 0.2, %v4373_v8  ;;  %v6050_v14 = vpop.f32.mrb[60].mxu0  ;;  %v1822_v15 = vpop.f32.mrb[61].mxu1 }
 0x26a   : > { %4901 = vst.msk [vmem:[%s7218_s4 + $0x1c0] sm:$0xff] %vm4844_vm2, %v4768_v12  ;;  %v4771_v16 = vsel %vm4507_vm0, %v4375_v6, %v4639_v10  ;;  %v6180_v17 = vadd.f32 %v6050_v14, %v5782_v11  ;;  %v3890_v18 = vpop.f32.mrb[61].mxu0  ;;  %v5783_v19 = vpop.f32.mrb[62].mxu1 }
 0x26b   : > { %4904 = vst.msk [vmem:[%s7218_s4 + $0x1d8] sm:$0xff] %vm4844_vm2, %v4771_v16  ;;  %v4769_v20 = vsel %vm4505_vm3, %v4373_v8, %v4637_v13  ;;  %v6181_v21 = vadd.f32 %v3890_v18, %v1822_v15  ;;  %v6051_v22 = vpop.f32.mrb[62].mxu0  ;;  %v1825_v23 = vpop.f32.mrb[63].mxu1 }
 0x26c   : > { %4902 = vst.msk [vmem:[%s7218_s4 + $0x1c8] sm:$0xff] %vm4844_vm2, %v4769_v20  ;;  %v4378_v24 = vadd.f32 %v7436_v46, %v6180_v17  ;;  %v6182_v25 = vadd.f32 %v6051_v22, %v5783_v19  ;;  %v3893_v26 = vpop.f32.mrb[63].mxu0 }
 0x26d   : > { %v4376_v27 = vadd.f32 %v7436_v46, %v6181_v21  ;;  %v6183_v28 = vadd.f32 %v3893_v26, %v1825_v23 }
 0x26e   : > { %vm4510_vm4 = vcmp.ge.f32.partialorder %v4378_v24, 0.0  ;;  %v4642_v29 = vmul.f32 0.2, %v4378_v24  ;;  %v4379_v30 = vadd.f32 %v7436_v46, %v6182_v25 }
 0x26f   : > { %vm4508_vm5 = vcmp.ge.f32.partialorder %v4376_v27, 0.0  ;;  %v4640_v31 = vmul.f32 0.2, %v4376_v27  ;;  %v4377_v32 = vadd.f32 %v7436_v46, %v6183_v28 }
 0x270   : > { %v4774_v33 = vsel %vm4510_vm4, %v4378_v24, %v4642_v29  ;;  %vm4511_vm6 = vcmp.ge.f32.partialorder %v4379_v30, 0.0  ;;  %v4643_v34 = vmul.f32 0.2, %v4379_v30  ;;  %v5786_v35 = vpop.f32.mrb[64].mxu1 }
 0x271   : > { %4907 = vst.msk [vmem:[%s7218_s4 + $0x1f0] sm:$0xff] %vm4844_vm2, %v4774_v33  ;;  %v4772_v36 = vsel %vm4508_vm5, %v4376_v27, %v4640_v31  ;;  %vm4509_vm7 = vcmp.ge.f32.partialorder %v4377_v32, 0.0  ;;  %v4641_v37 = vmul.f32 0.2, %v4377_v32  ;;  %v6054_v38 = vpop.f32.mrb[64].mxu0  ;;  %v1838_v39 = vpop.f32.mrb[65].mxu1 }
 0x272   : > { %4905 = vst.msk [vmem:[%s7218_s4 + $0x1e0] sm:$0xff] %vm4844_vm2, %v4772_v36  ;;  %v4775_v41 = vsel %vm4511_vm6, %v4379_v30, %v4643_v34  ;;  %v6184_v42 = vadd.f32 %v6054_v38, %v5786_v35  ;;  %v3906_v43 = vpop.f32.mrb[65].mxu0  ;;  %v5787_v44 = vpop.f32.mrb[66].mxu1 }
 0x273   : > { %4908 = vst.msk [vmem:[%s7218_s4 + $0x1f8] sm:$0xff] %vm4844_vm2, %v4775_v41  ;;  %v4773_v45 = vsel %vm4509_vm7, %v4377_v32, %v4641_v37  ;;  %v6185_v47 = vadd.f32 %v3906_v43, %v1838_v39  ;;  %v6055_v48 = vpop.f32.mrb[66].mxu0  ;;  %v1841_v49 = vpop.f32.mrb[67].mxu1 }
 0x274   : > { %4906 = vst.msk [vmem:[%s7218_s4 + $0x1e8] sm:$0xff] %vm4844_vm2, %v4773_v45  ;;  %v4382_v50 = vadd.f32 %v7436_v46, %v6184_v42  ;;  %v6186_v51 = vadd.f32 %v6055_v48, %v5787_v44  ;;  %v3909_v40 = vpop.f32.mrb[67].mxu0 }
 0x275   : > { %v4380_v52 = vadd.f32 %v7436_v46, %v6185_v47  ;;  %v6187_v53 = vadd.f32 %v3909_v40, %v1841_v49 }
 0x276   : > { %vm4514_vm8 = vcmp.ge.f32.partialorder %v4382_v50, 0.0  ;;  %v4646_v54 = vmul.f32 0.2, %v4382_v50  ;;  %v4383_v55 = vadd.f32 %v7436_v46, %v6186_v51 }
 0x277   : > { %vm4512_vm9 = vcmp.ge.f32.partialorder %v4380_v52, 0.0  ;;  %v4644_v56 = vmul.f32 0.2, %v4380_v52  ;;  %v4381_v57 = vadd.f32 %v7436_v46, %v6187_v53 }
 0x278   : > { %v4778_v58 = vsel %vm4514_vm8, %v4382_v50, %v4646_v54  ;;  %vm4515_vm10 = vcmp.ge.f32.partialorder %v4383_v55, 0.0  ;;  %v4647_v59 = vmul.f32 0.2, %v4383_v55  ;;  %v5790_v60 = vpop.f32.mrb[68].mxu1 }
 0x279   : > { %4911 = vst.msk [vmem:[%s7218_s4 + $0x210] sm:$0xff] %vm4844_vm2, %v4778_v58  ;;  %v4776_v61 = vsel %vm4512_vm9, %v4380_v52, %v4644_v56  ;;  %vm4513_vm11 = vcmp.ge.f32.partialorder %v4381_v57, 0.0  ;;  %v4645_v62 = vmul.f32 0.2, %v4381_v57  ;;  %v6058_v63 = vpop.f32.mrb[68].mxu0  ;;  %v1854_v0 = vpop.f32.mrb[69].mxu1 }
 0x27a   : > { %4909 = vst.msk [vmem:[%s7218_s4 + $0x200] sm:$0xff] %vm4844_vm2, %v4776_v61  ;;  %v4779_v1 = vsel %vm4515_vm10, %v4383_v55, %v4647_v59  ;;  %v6188_v2 = vadd.f32 %v6058_v63, %v5790_v60  ;;  %v3922_v3 = vpop.f32.mrb[69].mxu0  ;;  %v5791_v4 = vpop.f32.mrb[70].mxu1 }
 0x27b   : > { %4912 = vst.msk [vmem:[%s7218_s4 + $0x218] sm:$0xff] %vm4844_vm2, %v4779_v1  ;;  %v4777_v5 = vsel %vm4513_vm11, %v4381_v57, %v4645_v62  ;;  %v6189_v6 = vadd.f32 %v3922_v3, %v1854_v0  ;;  %v6059_v7 = vpop.f32.mrb[70].mxu0  ;;  %v1857_v8 = vpop.f32.mrb[71].mxu1 }
 0x27c   : > { %4910 = vst.msk [vmem:[%s7218_s4 + $0x208] sm:$0xff] %vm4844_vm2, %v4777_v5  ;;  %v4386_v9 = vadd.f32 %v7436_v46, %v6188_v2  ;;  %v6190_v10 = vadd.f32 %v6059_v7, %v5791_v4  ;;  %v3925_v11 = vpop.f32.mrb[71].mxu0 }
 0x27d   : > { %v4384_v12 = vadd.f32 %v7436_v46, %v6189_v6  ;;  %v6191_v13 = vadd.f32 %v3925_v11, %v1857_v8 }
 0x27e   : > { %vm4518_vm12 = vcmp.ge.f32.partialorder %v4386_v9, 0.0  ;;  %v4650_v14 = vmul.f32 0.2, %v4386_v9  ;;  %v4387_v15 = vadd.f32 %v7436_v46, %v6190_v10 }
 0x27f   : > { %vm4516_vm1 = vcmp.ge.f32.partialorder %v4384_v12, 0.0  ;;  %v4648_v16 = vmul.f32 0.2, %v4384_v12  ;;  %v4385_v17 = vadd.f32 %v7436_v46, %v6191_v13 }
 0x280   : > { %v4782_v18 = vsel %vm4518_vm12, %v4386_v9, %v4650_v14  ;;  %vm4519_vm13 = vcmp.ge.f32.partialorder %v4387_v15, 0.0  ;;  %v4651_v19 = vmul.f32 0.2, %v4387_v15  ;;  %v5794_v20 = vpop.f32.mrb[72].mxu1 }
 0x281   : > { %4915 = vst.msk [vmem:[%s7218_s4 + $0x230] sm:$0xff] %vm4844_vm2, %v4782_v18  ;;  %v4780_v21 = vsel %vm4516_vm1, %v4384_v12, %v4648_v16  ;;  %vm4517_vm14 = vcmp.ge.f32.partialorder %v4385_v17, 0.0  ;;  %v4649_v22 = vmul.f32 0.2, %v4385_v17  ;;  %v6062_v23 = vpop.f32.mrb[72].mxu0  ;;  %v1870_v24 = vpop.f32.mrb[73].mxu1 }
 0x282   : > { %4913 = vst.msk [vmem:[%s7218_s4 + $0x220] sm:$0xff] %vm4844_vm2, %v4780_v21  ;;  %v4783_v25 = vsel %vm4519_vm13, %v4387_v15, %v4651_v19  ;;  %v6192_v26 = vadd.f32 %v6062_v23, %v5794_v20  ;;  %v3938_v27 = vpop.f32.mrb[73].mxu0  ;;  %v5795_v28 = vpop.f32.mrb[74].mxu1 }
 0x283   : > { %4916 = vst.msk [vmem:[%s7218_s4 + $0x238] sm:$0xff] %vm4844_vm2, %v4783_v25  ;;  %v4781_v29 = vsel %vm4517_vm14, %v4385_v17, %v4649_v22  ;;  %v6193_v30 = vadd.f32 %v3938_v27, %v1870_v24  ;;  %v6063_v31 = vpop.f32.mrb[74].mxu0  ;;  %v1873_v32 = vpop.f32.mrb[75].mxu1 }
 0x284   : > { %4914 = vst.msk [vmem:[%s7218_s4 + $0x228] sm:$0xff] %vm4844_vm2, %v4781_v29  ;;  %v4390_v33 = vadd.f32 %v7436_v46, %v6192_v26  ;;  %v6194_v34 = vadd.f32 %v6063_v31, %v5795_v28  ;;  %v3941_v35 = vpop.f32.mrb[75].mxu0 }
 0x285   : > { %v4388_v36 = vadd.f32 %v7436_v46, %v6193_v30  ;;  %v6195_v37 = vadd.f32 %v3941_v35, %v1873_v32 }
 0x286   : > { %vm4522_vm15 = vcmp.ge.f32.partialorder %v4390_v33, 0.0  ;;  %v4654_v38 = vmul.f32 0.2, %v4390_v33  ;;  %v4391_v39 = vadd.f32 %v7436_v46, %v6194_v34 }
 0x287   : > { %vm4520_vm0 = vcmp.ge.f32.partialorder %v4388_v36, 0.0  ;;  %v4652_v41 = vmul.f32 0.2, %v4388_v36  ;;  %v4389_v42 = vadd.f32 %v7436_v46, %v6195_v37 }
 0x288   : > { %v4786_v43 = vsel %vm4522_vm15, %v4390_v33, %v4654_v38  ;;  %vm4523_vm3 = vcmp.ge.f32.partialorder %v4391_v39, 0.0  ;;  %v4655_v44 = vmul.f32 0.2, %v4391_v39  ;;  %v5798_v45 = vpop.f32.mrb[76].mxu1 }
 0x289   : > { %4919 = vst.msk [vmem:[%s7218_s4 + $0x250] sm:$0xff] %vm4844_vm2, %v4786_v43  ;;  %v4784_v47 = vsel %vm4520_vm0, %v4388_v36, %v4652_v41  ;;  %vm4521_vm4 = vcmp.ge.f32.partialorder %v4389_v42, 0.0  ;;  %v4653_v48 = vmul.f32 0.2, %v4389_v42  ;;  %v6066_v49 = vpop.f32.mrb[76].mxu0  ;;  %v1886_v50 = vpop.f32.mrb[77].mxu1 }
 0x28a   : > { %4917 = vst.msk [vmem:[%s7218_s4 + $0x240] sm:$0xff] %vm4844_vm2, %v4784_v47  ;;  %v4787_v51 = vsel %vm4523_vm3, %v4391_v39, %v4655_v44  ;;  %v6196_v40 = vadd.f32 %v6066_v49, %v5798_v45  ;;  %v3954_v52 = vpop.f32.mrb[77].mxu0  ;;  %v5799_v53 = vpop.f32.mrb[78].mxu1 }
 0x28b   : > { %4920 = vst.msk [vmem:[%s7218_s4 + $0x258] sm:$0xff] %vm4844_vm2, %v4787_v51  ;;  %v4785_v54 = vsel %vm4521_vm4, %v4389_v42, %v4653_v48  ;;  %v6197_v55 = vadd.f32 %v3954_v52, %v1886_v50  ;;  %v6067_v56 = vpop.f32.mrb[78].mxu0  ;;  %v1889_v57 = vpop.f32.mrb[79].mxu1 }
 0x28c   : > { %4918 = vst.msk [vmem:[%s7218_s4 + $0x248] sm:$0xff] %vm4844_vm2, %v4785_v54  ;;  %v4394_v58 = vadd.f32 %v7436_v46, %v6196_v40  ;;  %v6198_v59 = vadd.f32 %v6067_v56, %v5799_v53  ;;  %v3957_v60 = vpop.f32.mrb[79].mxu0 }
 0x28d   : > { %v4392_v61 = vadd.f32 %v7436_v46, %v6197_v55  ;;  %v6199_v62 = vadd.f32 %v3957_v60, %v1889_v57 }
 0x28e   : > { %vm4526_vm5 = vcmp.ge.f32.partialorder %v4394_v58, 0.0  ;;  %v4658_v63 = vmul.f32 0.2, %v4394_v58  ;;  %v4395_v0 = vadd.f32 %v7436_v46, %v6198_v59 }
 0x28f   : > { %vm4524_vm6 = vcmp.ge.f32.partialorder %v4392_v61, 0.0  ;;  %v4656_v1 = vmul.f32 0.2, %v4392_v61  ;;  %v4393_v2 = vadd.f32 %v7436_v46, %v6199_v62 }
 0x290   : > { %v4790_v3 = vsel %vm4526_vm5, %v4394_v58, %v4658_v63  ;;  %vm4527_vm7 = vcmp.ge.f32.partialorder %v4395_v0, 0.0  ;;  %v4659_v4 = vmul.f32 0.2, %v4395_v0  ;;  %v5802_v5 = vpop.f32.mrb[80].mxu1 }
 0x291   : > { %4923 = vst.msk [vmem:[%s7218_s4 + $0x270] sm:$0xff] %vm4844_vm2, %v4790_v3  ;;  %v4788_v6 = vsel %vm4524_vm6, %v4392_v61, %v4656_v1  ;;  %vm4525_vm8 = vcmp.ge.f32.partialorder %v4393_v2, 0.0  ;;  %v4657_v7 = vmul.f32 0.2, %v4393_v2  ;;  %v6070_v8 = vpop.f32.mrb[80].mxu0  ;;  %v1902_v9 = vpop.f32.mrb[81].mxu1 }
 0x292   : > { %4921 = vst.msk [vmem:[%s7218_s4 + $0x260] sm:$0xff] %vm4844_vm2, %v4788_v6  ;;  %v4791_v10 = vsel %vm4527_vm7, %v4395_v0, %v4659_v4  ;;  %v6200_v11 = vadd.f32 %v6070_v8, %v5802_v5  ;;  %v3970_v12 = vpop.f32.mrb[81].mxu0  ;;  %v5803_v13 = vpop.f32.mrb[82].mxu1 }
 0x293   : > { %4924 = vst.msk [vmem:[%s7218_s4 + $0x278] sm:$0xff] %vm4844_vm2, %v4791_v10  ;;  %v4789_v14 = vsel %vm4525_vm8, %v4393_v2, %v4657_v7  ;;  %v6201_v15 = vadd.f32 %v3970_v12, %v1902_v9  ;;  %v6071_v16 = vpop.f32.mrb[82].mxu0  ;;  %v1905_v17 = vpop.f32.mrb[83].mxu1 }
 0x294   : > { %4922 = vst.msk [vmem:[%s7218_s4 + $0x268] sm:$0xff] %vm4844_vm2, %v4789_v14  ;;  %v4398_v18 = vadd.f32 %v7436_v46, %v6200_v11  ;;  %v6202_v19 = vadd.f32 %v6071_v16, %v5803_v13  ;;  %v3973_v20 = vpop.f32.mrb[83].mxu0 }
 0x295   : > { %v4396_v21 = vadd.f32 %v7436_v46, %v6201_v15  ;;  %v6203_v22 = vadd.f32 %v3973_v20, %v1905_v17 }
 0x296   : > { %vm4530_vm9 = vcmp.ge.f32.partialorder %v4398_v18, 0.0  ;;  %v4662_v23 = vmul.f32 0.2, %v4398_v18  ;;  %v4399_v24 = vadd.f32 %v7436_v46, %v6202_v19 }
 0x297   : > { %vm4528_vm10 = vcmp.ge.f32.partialorder %v4396_v21, 0.0  ;;  %v4660_v25 = vmul.f32 0.2, %v4396_v21  ;;  %v4397_v26 = vadd.f32 %v7436_v46, %v6203_v22 }
 0x298   : > { %v4794_v27 = vsel %vm4530_vm9, %v4398_v18, %v4662_v23  ;;  %vm4531_vm11 = vcmp.ge.f32.partialorder %v4399_v24, 0.0  ;;  %v4663_v28 = vmul.f32 0.2, %v4399_v24  ;;  %v5806_v29 = vpop.f32.mrb[84].mxu1 }
 0x299   : > { %4927 = vst.msk [vmem:[%s7218_s4 + $0x290] sm:$0xff] %vm4844_vm2, %v4794_v27  ;;  %v4792_v30 = vsel %vm4528_vm10, %v4396_v21, %v4660_v25  ;;  %vm4529_vm12 = vcmp.ge.f32.partialorder %v4397_v26, 0.0  ;;  %v4661_v31 = vmul.f32 0.2, %v4397_v26  ;;  %v6074_v32 = vpop.f32.mrb[84].mxu0  ;;  %v1918_v33 = vpop.f32.mrb[85].mxu1 }
 0x29a   : > { %4925 = vst.msk [vmem:[%s7218_s4 + $0x280] sm:$0xff] %vm4844_vm2, %v4792_v30  ;;  %v4795_v34 = vsel %vm4531_vm11, %v4399_v24, %v4663_v28  ;;  %v6204_v35 = vadd.f32 %v6074_v32, %v5806_v29  ;;  %v3986_v36 = vpop.f32.mrb[85].mxu0  ;;  %v5807_v37 = vpop.f32.mrb[86].mxu1 }
 0x29b   : > { %4928 = vst.msk [vmem:[%s7218_s4 + $0x298] sm:$0xff] %vm4844_vm2, %v4795_v34  ;;  %v4793_v38 = vsel %vm4529_vm12, %v4397_v26, %v4661_v31  ;;  %v6205_v39 = vadd.f32 %v3986_v36, %v1918_v33  ;;  %v6075_v41 = vpop.f32.mrb[86].mxu0  ;;  %v1921_v42 = vpop.f32.mrb[87].mxu1 }
 0x29c   : > { %4926 = vst.msk [vmem:[%s7218_s4 + $0x288] sm:$0xff] %vm4844_vm2, %v4793_v38  ;;  %v4402_v43 = vadd.f32 %v7436_v46, %v6204_v35  ;;  %v6206_v44 = vadd.f32 %v6075_v41, %v5807_v37  ;;  %v3989_v45 = vpop.f32.mrb[87].mxu0 }
 0x29d   : > { %v4400_v47 = vadd.f32 %v7436_v46, %v6205_v39  ;;  %v6207_v48 = vadd.f32 %v3989_v45, %v1921_v42 }
 0x29e   : > { %vm4534_vm1 = vcmp.ge.f32.partialorder %v4402_v43, 0.0  ;;  %v4666_v49 = vmul.f32 0.2, %v4402_v43  ;;  %v4403_v50 = vadd.f32 %v7436_v46, %v6206_v44 }
 0x29f   : > { %vm4532_vm13 = vcmp.ge.f32.partialorder %v4400_v47, 0.0  ;;  %v4664_v51 = vmul.f32 0.2, %v4400_v47  ;;  %v4401_v40 = vadd.f32 %v7436_v46, %v6207_v48 }
 0x2a0   : > { %v4798_v52 = vsel %vm4534_vm1, %v4402_v43, %v4666_v49  ;;  %vm4535_vm14 = vcmp.ge.f32.partialorder %v4403_v50, 0.0  ;;  %v4667_v53 = vmul.f32 0.2, %v4403_v50  ;;  %v5810_v54 = vpop.f32.mrb[88].mxu1 }
 0x2a1   : > { %4931 = vst.msk [vmem:[%s7218_s4 + $0x2b0] sm:$0xff] %vm4844_vm2, %v4798_v52  ;;  %v4796_v55 = vsel %vm4532_vm13, %v4400_v47, %v4664_v51  ;;  %vm4533_vm15 = vcmp.ge.f32.partialorder %v4401_v40, 0.0  ;;  %v4665_v56 = vmul.f32 0.2, %v4401_v40  ;;  %v6078_v57 = vpop.f32.mrb[88].mxu0  ;;  %v1934_v58 = vpop.f32.mrb[89].mxu1 }
 0x2a2   : > { %4929 = vst.msk [vmem:[%s7218_s4 + $0x2a0] sm:$0xff] %vm4844_vm2, %v4796_v55  ;;  %v4799_v59 = vsel %vm4535_vm14, %v4403_v50, %v4667_v53  ;;  %v6208_v60 = vadd.f32 %v6078_v57, %v5810_v54  ;;  %v4002_v61 = vpop.f32.mrb[89].mxu0  ;;  %v5811_v62 = vpop.f32.mrb[90].mxu1 }
 0x2a3   : > { %4932 = vst.msk [vmem:[%s7218_s4 + $0x2b8] sm:$0xff] %vm4844_vm2, %v4799_v59  ;;  %v4797_v63 = vsel %vm4533_vm15, %v4401_v40, %v4665_v56  ;;  %v6209_v0 = vadd.f32 %v4002_v61, %v1934_v58  ;;  %v6079_v1 = vpop.f32.mrb[90].mxu0  ;;  %v1937_v2 = vpop.f32.mrb[91].mxu1 }
 0x2a4   : > { %4930 = vst.msk [vmem:[%s7218_s4 + $0x2a8] sm:$0xff] %vm4844_vm2, %v4797_v63  ;;  %v4406_v3 = vadd.f32 %v7436_v46, %v6208_v60  ;;  %v6210_v4 = vadd.f32 %v6079_v1, %v5811_v62  ;;  %v4005_v5 = vpop.f32.mrb[91].mxu0 }
 0x2a5   : > { %v4404_v6 = vadd.f32 %v7436_v46, %v6209_v0  ;;  %v6211_v7 = vadd.f32 %v4005_v5, %v1937_v2 }
 0x2a6   : > { %vm4538_vm0 = vcmp.ge.f32.partialorder %v4406_v3, 0.0  ;;  %v4670_v8 = vmul.f32 0.2, %v4406_v3  ;;  %v4407_v9 = vadd.f32 %v7436_v46, %v6210_v4 }
 0x2a7   : > { %vm4536_vm3 = vcmp.ge.f32.partialorder %v4404_v6, 0.0  ;;  %v4668_v10 = vmul.f32 0.2, %v4404_v6  ;;  %v4405_v11 = vadd.f32 %v7436_v46, %v6211_v7 }
 0x2a8   : > { %v4802_v12 = vsel %vm4538_vm0, %v4406_v3, %v4670_v8  ;;  %vm4539_vm4 = vcmp.ge.f32.partialorder %v4407_v9, 0.0  ;;  %v4671_v13 = vmul.f32 0.2, %v4407_v9  ;;  %v5814_v14 = vpop.f32.mrb[92].mxu1 }
 0x2a9   : > { %4935 = vst.msk [vmem:[%s7218_s4 + $0x2d0] sm:$0xff] %vm4844_vm2, %v4802_v12  ;;  %v4800_v15 = vsel %vm4536_vm3, %v4404_v6, %v4668_v10  ;;  %vm4537_vm5 = vcmp.ge.f32.partialorder %v4405_v11, 0.0  ;;  %v4669_v16 = vmul.f32 0.2, %v4405_v11  ;;  %v6082_v17 = vpop.f32.mrb[92].mxu0  ;;  %v1950_v18 = vpop.f32.mrb[93].mxu1 }
 0x2aa   : > { %4933 = vst.msk [vmem:[%s7218_s4 + $0x2c0] sm:$0xff] %vm4844_vm2, %v4800_v15  ;;  %v4803_v19 = vsel %vm4539_vm4, %v4407_v9, %v4671_v13  ;;  %v6212_v20 = vadd.f32 %v6082_v17, %v5814_v14  ;;  %v4018_v21 = vpop.f32.mrb[93].mxu0  ;;  %v5815_v22 = vpop.f32.mrb[94].mxu1 }
 0x2ab   : > { %4936 = vst.msk [vmem:[%s7218_s4 + $0x2d8] sm:$0xff] %vm4844_vm2, %v4803_v19  ;;  %v4801_v23 = vsel %vm4537_vm5, %v4405_v11, %v4669_v16  ;;  %v6213_v24 = vadd.f32 %v4018_v21, %v1950_v18  ;;  %v6083_v25 = vpop.f32.mrb[94].mxu0  ;;  %v1953_v26 = vpop.f32.mrb[95].mxu1 }
 0x2ac   : > { %4934 = vst.msk [vmem:[%s7218_s4 + $0x2c8] sm:$0xff] %vm4844_vm2, %v4801_v23  ;;  %v4410_v27 = vadd.f32 %v7436_v46, %v6212_v20  ;;  %v6214_v28 = vadd.f32 %v6083_v25, %v5815_v22  ;;  %v4021_v29 = vpop.f32.mrb[95].mxu0 }
 0x2ad   : > { %v4408_v30 = vadd.f32 %v7436_v46, %v6213_v24  ;;  %v6215_v31 = vadd.f32 %v4021_v29, %v1953_v26 }
 0x2ae   : > { %vm4542_vm6 = vcmp.ge.f32.partialorder %v4410_v27, 0.0  ;;  %v4674_v32 = vmul.f32 0.2, %v4410_v27  ;;  %v4411_v33 = vadd.f32 %v7436_v46, %v6214_v28 }
 0x2af   : > { %vm4540_vm7 = vcmp.ge.f32.partialorder %v4408_v30, 0.0  ;;  %v4672_v34 = vmul.f32 0.2, %v4408_v30  ;;  %v4409_v35 = vadd.f32 %v7436_v46, %v6215_v31 }
 0x2b0   : > { %v4806_v36 = vsel %vm4542_vm6, %v4410_v27, %v4674_v32  ;;  %vm4543_vm8 = vcmp.ge.f32.partialorder %v4411_v33, 0.0  ;;  %v4675_v37 = vmul.f32 0.2, %v4411_v33  ;;  %v5818_v38 = vpop.f32.mrb[96].mxu1 }
 0x2b1   : > { %4939 = vst.msk [vmem:[%s7218_s4 + $0x2f0] sm:$0xff] %vm4844_vm2, %v4806_v36  ;;  %v4804_v39 = vsel %vm4540_vm7, %v4408_v30, %v4672_v34  ;;  %vm4541_vm9 = vcmp.ge.f32.partialorder %v4409_v35, 0.0  ;;  %v4673_v41 = vmul.f32 0.2, %v4409_v35  ;;  %v6086_v42 = vpop.f32.mrb[96].mxu0  ;;  %v1966_v43 = vpop.f32.mrb[97].mxu1 }
 0x2b2   : > { %4937 = vst.msk [vmem:[%s7218_s4 + $0x2e0] sm:$0xff] %vm4844_vm2, %v4804_v39  ;;  %v4807_v44 = vsel %vm4543_vm8, %v4411_v33, %v4675_v37  ;;  %v6216_v45 = vadd.f32 %v6086_v42, %v5818_v38  ;;  %v4034_v47 = vpop.f32.mrb[97].mxu0  ;;  %v5819_v48 = vpop.f32.mrb[98].mxu1 }
 0x2b3   : > { %4940 = vst.msk [vmem:[%s7218_s4 + $0x2f8] sm:$0xff] %vm4844_vm2, %v4807_v44  ;;  %v4805_v49 = vsel %vm4541_vm9, %v4409_v35, %v4673_v41  ;;  %v6217_v50 = vadd.f32 %v4034_v47, %v1966_v43  ;;  %v6087_v51 = vpop.f32.mrb[98].mxu0  ;;  %v1969_v40 = vpop.f32.mrb[99].mxu1 }
 0x2b4   : > { %4938 = vst.msk [vmem:[%s7218_s4 + $0x2e8] sm:$0xff] %vm4844_vm2, %v4805_v49  ;;  %v4414_v52 = vadd.f32 %v7436_v46, %v6216_v45  ;;  %v6218_v53 = vadd.f32 %v6087_v51, %v5819_v48  ;;  %v4037_v54 = vpop.f32.mrb[99].mxu0 }
 0x2b5   : > { %v4412_v55 = vadd.f32 %v7436_v46, %v6217_v50  ;;  %v6219_v56 = vadd.f32 %v4037_v54, %v1969_v40 }
 0x2b6   : > { %vm4546_vm10 = vcmp.ge.f32.partialorder %v4414_v52, 0.0  ;;  %v4678_v57 = vmul.f32 0.2, %v4414_v52  ;;  %v4415_v58 = vadd.f32 %v7436_v46, %v6218_v53 }
 0x2b7   : > { %vm4544_vm11 = vcmp.ge.f32.partialorder %v4412_v55, 0.0  ;;  %v4676_v59 = vmul.f32 0.2, %v4412_v55  ;;  %v4413_v60 = vadd.f32 %v7436_v46, %v6219_v56 }
 0x2b8   : > { %v4810_v61 = vsel %vm4546_vm10, %v4414_v52, %v4678_v57  ;;  %vm4547_vm12 = vcmp.ge.f32.partialorder %v4415_v58, 0.0  ;;  %v4679_v62 = vmul.f32 0.2, %v4415_v58  ;;  %v5822_v63 = vpop.f32.mrb[100].mxu1 }
 0x2b9   : > { %4943 = vst.msk [vmem:[%s7218_s4 + $0x310] sm:$0xff] %vm4844_vm2, %v4810_v61  ;;  %v4808_v0 = vsel %vm4544_vm11, %v4412_v55, %v4676_v59  ;;  %vm4545_vm1 = vcmp.ge.f32.partialorder %v4413_v60, 0.0  ;;  %v4677_v1 = vmul.f32 0.2, %v4413_v60  ;;  %v6090_v2 = vpop.f32.mrb[100].mxu0  ;;  %v1982_v3 = vpop.f32.mrb[101].mxu1 }
 0x2ba   : > { %4941 = vst.msk [vmem:[%s7218_s4 + $0x300] sm:$0xff] %vm4844_vm2, %v4808_v0  ;;  %v4811_v4 = vsel %vm4547_vm12, %v4415_v58, %v4679_v62  ;;  %v6220_v5 = vadd.f32 %v6090_v2, %v5822_v63  ;;  %v4050_v6 = vpop.f32.mrb[101].mxu0  ;;  %v5823_v7 = vpop.f32.mrb[102].mxu1 }
 0x2bb   : > { %4944 = vst.msk [vmem:[%s7218_s4 + $0x318] sm:$0xff] %vm4844_vm2, %v4811_v4  ;;  %v4809_v8 = vsel %vm4545_vm1, %v4413_v60, %v4677_v1  ;;  %v6221_v9 = vadd.f32 %v4050_v6, %v1982_v3  ;;  %v6091_v10 = vpop.f32.mrb[102].mxu0  ;;  %v1985_v11 = vpop.f32.mrb[103].mxu1 }
 0x2bc   : > { %4942 = vst.msk [vmem:[%s7218_s4 + $0x308] sm:$0xff] %vm4844_vm2, %v4809_v8  ;;  %v4418_v12 = vadd.f32 %v7436_v46, %v6220_v5  ;;  %v6222_v13 = vadd.f32 %v6091_v10, %v5823_v7  ;;  %v4053_v14 = vpop.f32.mrb[103].mxu0 }
 0x2bd   : > { %v4416_v15 = vadd.f32 %v7436_v46, %v6221_v9  ;;  %v6223_v16 = vadd.f32 %v4053_v14, %v1985_v11 }
 0x2be   : > { %vm4550_vm13 = vcmp.ge.f32.partialorder %v4418_v12, 0.0  ;;  %v4682_v17 = vmul.f32 0.2, %v4418_v12  ;;  %v4419_v18 = vadd.f32 %v7436_v46, %v6222_v13 }
 0x2bf   : > { %vm4548_vm14 = vcmp.ge.f32.partialorder %v4416_v15, 0.0  ;;  %v4680_v19 = vmul.f32 0.2, %v4416_v15  ;;  %v4417_v20 = vadd.f32 %v7436_v46, %v6223_v16 }
 0x2c0   : > { %v4814_v21 = vsel %vm4550_vm13, %v4418_v12, %v4682_v17  ;;  %vm4551_vm15 = vcmp.ge.f32.partialorder %v4419_v18, 0.0  ;;  %v4683_v22 = vmul.f32 0.2, %v4419_v18  ;;  %v5826_v23 = vpop.f32.mrb[104].mxu1 }
 0x2c1   : > { %4947 = vst.msk [vmem:[%s7218_s4 + $0x330] sm:$0xff] %vm4844_vm2, %v4814_v21  ;;  %v4812_v24 = vsel %vm4548_vm14, %v4416_v15, %v4680_v19  ;;  %vm4549_vm0 = vcmp.ge.f32.partialorder %v4417_v20, 0.0  ;;  %v4681_v25 = vmul.f32 0.2, %v4417_v20  ;;  %v6094_v26 = vpop.f32.mrb[104].mxu0  ;;  %v1998_v27 = vpop.f32.mrb[105].mxu1 }
 0x2c2   : > { %4945 = vst.msk [vmem:[%s7218_s4 + $0x320] sm:$0xff] %vm4844_vm2, %v4812_v24  ;;  %v4815_v28 = vsel %vm4551_vm15, %v4419_v18, %v4683_v22  ;;  %v6224_v29 = vadd.f32 %v6094_v26, %v5826_v23  ;;  %v4066_v30 = vpop.f32.mrb[105].mxu0  ;;  %v5827_v31 = vpop.f32.mrb[106].mxu1 }
 0x2c3   : > { %4948 = vst.msk [vmem:[%s7218_s4 + $0x338] sm:$0xff] %vm4844_vm2, %v4815_v28  ;;  %v4813_v32 = vsel %vm4549_vm0, %v4417_v20, %v4681_v25  ;;  %v6225_v33 = vadd.f32 %v4066_v30, %v1998_v27  ;;  %v6095_v34 = vpop.f32.mrb[106].mxu0  ;;  %v2001_v35 = vpop.f32.mrb[107].mxu1 }
 0x2c4   : > { %4946 = vst.msk [vmem:[%s7218_s4 + $0x328] sm:$0xff] %vm4844_vm2, %v4813_v32  ;;  %v4422_v36 = vadd.f32 %v7436_v46, %v6224_v29  ;;  %v6226_v37 = vadd.f32 %v6095_v34, %v5827_v31  ;;  %v4069_v38 = vpop.f32.mrb[107].mxu0 }
 0x2c5   : > { %v4420_v39 = vadd.f32 %v7436_v46, %v6225_v33  ;;  %v6227_v41 = vadd.f32 %v4069_v38, %v2001_v35 }
 0x2c6   : > { %vm4554_vm3 = vcmp.ge.f32.partialorder %v4422_v36, 0.0  ;;  %v4686_v42 = vmul.f32 0.2, %v4422_v36  ;;  %v4423_v43 = vadd.f32 %v7436_v46, %v6226_v37 }
 0x2c7   : > { %vm4552_vm4 = vcmp.ge.f32.partialorder %v4420_v39, 0.0  ;;  %v4684_v44 = vmul.f32 0.2, %v4420_v39  ;;  %v4421_v45 = vadd.f32 %v7436_v46, %v6227_v41 }
 0x2c8   : > { %v4818_v47 = vsel %vm4554_vm3, %v4422_v36, %v4686_v42  ;;  %vm4555_vm5 = vcmp.ge.f32.partialorder %v4423_v43, 0.0  ;;  %v4687_v48 = vmul.f32 0.2, %v4423_v43  ;;  %v5830_v49 = vpop.f32.mrb[108].mxu1 }
 0x2c9   : > { %4951 = vst.msk [vmem:[%s7218_s4 + $0x350] sm:$0xff] %vm4844_vm2, %v4818_v47  ;;  %v4816_v50 = vsel %vm4552_vm4, %v4420_v39, %v4684_v44  ;;  %vm4553_vm6 = vcmp.ge.f32.partialorder %v4421_v45, 0.0  ;;  %v4685_v51 = vmul.f32 0.2, %v4421_v45  ;;  %v6098_v40 = vpop.f32.mrb[108].mxu0  ;;  %v2014_v52 = vpop.f32.mrb[109].mxu1 }
 0x2ca   : > { %4949 = vst.msk [vmem:[%s7218_s4 + $0x340] sm:$0xff] %vm4844_vm2, %v4816_v50  ;;  %v4819_v53 = vsel %vm4555_vm5, %v4423_v43, %v4687_v48  ;;  %v6228_v54 = vadd.f32 %v6098_v40, %v5830_v49  ;;  %v4082_v55 = vpop.f32.mrb[109].mxu0  ;;  %v5831_v56 = vpop.f32.mrb[110].mxu1 }
 0x2cb   : > { %4952 = vst.msk [vmem:[%s7218_s4 + $0x358] sm:$0xff] %vm4844_vm2, %v4819_v53  ;;  %v4817_v57 = vsel %vm4553_vm6, %v4421_v45, %v4685_v51  ;;  %v6229_v58 = vadd.f32 %v4082_v55, %v2014_v52  ;;  %v6099_v59 = vpop.f32.mrb[110].mxu0  ;;  %v2017_v60 = vpop.f32.mrb[111].mxu1  ;;  %v7633_v52 = vld [vmem:[%s7686_s2] ss:$0 sm:$0xff] }
 0x2cc   : > { %4950 = vst.msk [vmem:[%s7218_s4 + $0x348] sm:$0xff] %vm4844_vm2, %v4817_v57  ;;  %v4426_v61 = vadd.f32 %v7436_v46, %v6228_v54  ;;  %v6230_v62 = vadd.f32 %v6099_v59, %v5831_v56  ;;  %v4085_v63 = vpop.f32.mrb[111].mxu0 }
 0x2cd   : > { %v4424_v0 = vadd.f32 %v7436_v46, %v6229_v58  ;;  %v6231_v1 = vadd.f32 %v4085_v63, %v2017_v60 }
 0x2ce   : > { %vm4558_vm7 = vcmp.ge.f32.partialorder %v4426_v61, 0.0  ;;  %v4690_v2 = vmul.f32 0.2, %v4426_v61  ;;  %v4427_v3 = vadd.f32 %v7436_v46, %v6230_v62 }
 0x2cf   : > { %vm4556_vm8 = vcmp.ge.f32.partialorder %v4424_v0, 0.0  ;;  %v4688_v4 = vmul.f32 0.2, %v4424_v0  ;;  %v4425_v5 = vadd.f32 %v7436_v46, %v6231_v1 }
 0x2d0   : > { %v4822_v6 = vsel %vm4558_vm7, %v4426_v61, %v4690_v2  ;;  %vm4559_vm9 = vcmp.ge.f32.partialorder %v4427_v3, 0.0  ;;  %v4691_v7 = vmul.f32 0.2, %v4427_v3  ;;  %v5834_v8 = vpop.f32.mrb[112].mxu1 }
 0x2d1   : > { %4955 = vst.msk [vmem:[%s7218_s4 + $0x370] sm:$0xff] %vm4844_vm2, %v4822_v6  ;;  %v4820_v9 = vsel %vm4556_vm8, %v4424_v0, %v4688_v4  ;;  %vm4557_vm10 = vcmp.ge.f32.partialorder %v4425_v5, 0.0  ;;  %v4689_v10 = vmul.f32 0.2, %v4425_v5  ;;  %v6102_v11 = vpop.f32.mrb[112].mxu0  ;;  %v2030_v12 = vpop.f32.mrb[113].mxu1 }
 0x2d2   : > { %4953 = vst.msk [vmem:[%s7218_s4 + $0x360] sm:$0xff] %vm4844_vm2, %v4820_v9  ;;  %v4823_v13 = vsel %vm4559_vm9, %v4427_v3, %v4691_v7  ;;  %v6232_v14 = vadd.f32 %v6102_v11, %v5834_v8  ;;  %v4098_v15 = vpop.f32.mrb[113].mxu0  ;;  %v5835_v16 = vpop.f32.mrb[114].mxu1 }
 0x2d3   : > { %4956 = vst.msk [vmem:[%s7218_s4 + $0x378] sm:$0xff] %vm4844_vm2, %v4823_v13  ;;  %v4821_v17 = vsel %vm4557_vm10, %v4425_v5, %v4689_v10  ;;  %v6233_v18 = vadd.f32 %v4098_v15, %v2030_v12  ;;  %v6103_v19 = vpop.f32.mrb[114].mxu0  ;;  %v2033_v20 = vpop.f32.mrb[115].mxu1 }
 0x2d4   : > { %4954 = vst.msk [vmem:[%s7218_s4 + $0x368] sm:$0xff] %vm4844_vm2, %v4821_v17  ;;  %v4430_v21 = vadd.f32 %v7436_v46, %v6232_v14  ;;  %v6234_v22 = vadd.f32 %v6103_v19, %v5835_v16  ;;  %v4101_v23 = vpop.f32.mrb[115].mxu0 }
 0x2d5   : > { %v4428_v24 = vadd.f32 %v7436_v46, %v6233_v18  ;;  %v6235_v25 = vadd.f32 %v4101_v23, %v2033_v20 }
 0x2d6   : > { %vm4562_vm11 = vcmp.ge.f32.partialorder %v4430_v21, 0.0  ;;  %v4694_v26 = vmul.f32 0.2, %v4430_v21  ;;  %v4431_v27 = vadd.f32 %v7436_v46, %v6234_v22 }
 0x2d7   : > { %vm4560_vm12 = vcmp.ge.f32.partialorder %v4428_v24, 0.0  ;;  %v4692_v28 = vmul.f32 0.2, %v4428_v24  ;;  %v4429_v29 = vadd.f32 %v7436_v46, %v6235_v25 }
 0x2d8   : > { %v4826_v30 = vsel %vm4562_vm11, %v4430_v21, %v4694_v26  ;;  %vm4563_vm1 = vcmp.ge.f32.partialorder %v4431_v27, 0.0  ;;  %v4695_v31 = vmul.f32 0.2, %v4431_v27  ;;  %v5838_v32 = vpop.f32.mrb[116].mxu1 }
 0x2d9   : > { %4959 = vst.msk [vmem:[%s7218_s4 + $0x390] sm:$0xff] %vm4844_vm2, %v4826_v30  ;;  %v4824_v33 = vsel %vm4560_vm12, %v4428_v24, %v4692_v28  ;;  %vm4561_vm13 = vcmp.ge.f32.partialorder %v4429_v29, 0.0  ;;  %v4693_v34 = vmul.f32 0.2, %v4429_v29  ;;  %v6106_v35 = vpop.f32.mrb[116].mxu0  ;;  %v2046_v36 = vpop.f32.mrb[117].mxu1 }
 0x2da   : > { %4957 = vst.msk [vmem:[%s7218_s4 + $0x380] sm:$0xff] %vm4844_vm2, %v4824_v33  ;;  %v4827_v37 = vsel %vm4563_vm1, %v4431_v27, %v4695_v31  ;;  %v6236_v38 = vadd.f32 %v6106_v35, %v5838_v32  ;;  %v4114_v39 = vpop.f32.mrb[117].mxu0  ;;  %v5839_v41 = vpop.f32.mrb[118].mxu1 }
 0x2db   : > { %4960 = vst.msk [vmem:[%s7218_s4 + $0x398] sm:$0xff] %vm4844_vm2, %v4827_v37  ;;  %v4825_v42 = vsel %vm4561_vm13, %v4429_v29, %v4693_v34  ;;  %v6237_v43 = vadd.f32 %v4114_v39, %v2046_v36  ;;  %v6107_v44 = vpop.f32.mrb[118].mxu0  ;;  %v2049_v45 = vpop.f32.mrb[119].mxu1 }
 0x2dc   : > { %4958 = vst.msk [vmem:[%s7218_s4 + $0x388] sm:$0xff] %vm4844_vm2, %v4825_v42  ;;  %v4434_v47 = vadd.f32 %v7436_v46, %v6236_v38  ;;  %v6238_v48 = vadd.f32 %v6107_v44, %v5839_v41  ;;  %v4117_v49 = vpop.f32.mrb[119].mxu0 }
 0x2dd   : > { %v4432_v50 = vadd.f32 %v7436_v46, %v6237_v43  ;;  %v6239_v51 = vadd.f32 %v4117_v49, %v2049_v45 }
 0x2de   : > { %vm4566_vm14 = vcmp.ge.f32.partialorder %v4434_v47, 0.0  ;;  %v4698_v40 = vmul.f32 0.2, %v4434_v47  ;;  %v4435_v53 = vadd.f32 %v7633_v52, %v6238_v48 }
 0x2df   : > { %vm4564_vm15 = vcmp.ge.f32.partialorder %v4432_v50, 0.0  ;;  %v4696_v54 = vmul.f32 0.2, %v4432_v50  ;;  %v4433_v55 = vadd.f32 %v7633_v52, %v6239_v51 }
 0x2e0   : > { %v4830_v56 = vsel %vm4566_vm14, %v4434_v47, %v4698_v40  ;;  %vm4567_vm0 = vcmp.ge.f32.partialorder %v4435_v53, 0.0  ;;  %v4699_v57 = vmul.f32 0.2, %v4435_v53  ;;  %v5842_v46 = vpop.f32.mrb[120].mxu1 }
 0x2e1   : > { %4963 = vst.msk [vmem:[%s7218_s4 + $0x3b0] sm:$0xff] %vm4844_vm2, %v4830_v56  ;;  %v4828_v58 = vsel %vm4564_vm15, %v4432_v50, %v4696_v54  ;;  %vm4565_vm3 = vcmp.ge.f32.partialorder %v4433_v55, 0.0  ;;  %v4697_v59 = vmul.f32 0.2, %v4433_v55  ;;  %v6110_v60 = vpop.f32.mrb[120].mxu0  ;;  %v2062_v61 = vpop.f32.mrb[121].mxu1 }
 0x2e2   : > { %4961 = vst.msk [vmem:[%s7218_s4 + $0x3a0] sm:$0xff] %vm4844_vm2, %v4828_v58  ;;  %v4831_v62 = vsel %vm4567_vm0, %v4435_v53, %v4699_v57  ;;  %v6240_v63 = vadd.f32 %v6110_v60, %v5842_v46  ;;  %v4130_v0 = vpop.f32.mrb[121].mxu0  ;;  %v5843_v1 = vpop.f32.mrb[122].mxu1 }
 0x2e3   : > { %4964 = vst.msk [vmem:[%s7218_s4 + $0x3b8] sm:$0xff] %vm4844_vm2, %v4831_v62  ;;  %v4829_v2 = vsel %vm4565_vm3, %v4433_v55, %v4697_v59  ;;  %v6241_v3 = vadd.f32 %v4130_v0, %v2062_v61  ;;  %v6111_v4 = vpop.f32.mrb[122].mxu0  ;;  %v2065_v5 = vpop.f32.mrb[123].mxu1 }
 0x2e4   : > { %4962 = vst.msk [vmem:[%s7218_s4 + $0x3a8] sm:$0xff] %vm4844_vm2, %v4829_v2  ;;  %v4438_v6 = vadd.f32 %v7633_v52, %v6240_v63  ;;  %v6242_v7 = vadd.f32 %v6111_v4, %v5843_v1  ;;  %v4133_v8 = vpop.f32.mrb[123].mxu0 }
 0x2e5   : > { %v4436_v9 = vadd.f32 %v7633_v52, %v6241_v3  ;;  %v6243_v10 = vadd.f32 %v4133_v8, %v2065_v5 }
 0x2e6   : > { %vm4570_vm4 = vcmp.ge.f32.partialorder %v4438_v6, 0.0  ;;  %v4702_v11 = vmul.f32 0.2, %v4438_v6  ;;  %v4439_v12 = vadd.f32 %v7633_v52, %v6242_v7 }
 0x2e7   : > { %vm4568_vm5 = vcmp.ge.f32.partialorder %v4436_v9, 0.0  ;;  %v4700_v13 = vmul.f32 0.2, %v4436_v9  ;;  %v4437_v14 = vadd.f32 %v7633_v52, %v6243_v10 }
 0x2e8   : > { %v4834_v15 = vsel %vm4570_vm4, %v4438_v6, %v4702_v11  ;;  %vm4571_vm6 = vcmp.ge.f32.partialorder %v4439_v12, 0.0  ;;  %v4703_v16 = vmul.f32 0.2, %v4439_v12  ;;  %v5846_v17 = vpop.f32.mrb[124].mxu1 }
 0x2e9   : > { %4967 = vst.msk [vmem:[%s7218_s4 + $0x3d0] sm:$0xff] %vm4844_vm2, %v4834_v15  ;;  %v4832_v18 = vsel %vm4568_vm5, %v4436_v9, %v4700_v13  ;;  %vm4569_vm7 = vcmp.ge.f32.partialorder %v4437_v14, 0.0  ;;  %v4701_v19 = vmul.f32 0.2, %v4437_v14  ;;  %v6114_v20 = vpop.f32.mrb[124].mxu0  ;;  %v2078_v21 = vpop.f32.mrb[125].mxu1 }
 0x2ea   : > { %4965 = vst.msk [vmem:[%s7218_s4 + $0x3c0] sm:$0xff] %vm4844_vm2, %v4832_v18  ;;  %v4835_v22 = vsel %vm4571_vm6, %v4439_v12, %v4703_v16  ;;  %v6244_v23 = vadd.f32 %v6114_v20, %v5846_v17  ;;  %v4146_v24 = vpop.f32.mrb[125].mxu0  ;;  %v5847_v25 = vpop.f32.mrb[126].mxu1 }
 0x2eb   : > { %4968 = vst.msk [vmem:[%s7218_s4 + $0x3d8] sm:$0xff] %vm4844_vm2, %v4835_v22  ;;  %v4833_v26 = vsel %vm4569_vm7, %v4437_v14, %v4701_v19  ;;  %v6245_v27 = vadd.f32 %v4146_v24, %v2078_v21  ;;  %v6115_v28 = vpop.f32.mrb[126].mxu0  ;;  %v2081_v29 = vpop.f32.mrb[127].mxu1 }
 0x2ec   : > { %4966 = vst.msk [vmem:[%s7218_s4 + $0x3c8] sm:$0xff] %vm4844_vm2, %v4833_v26  ;;  %v4442_v30 = vadd.f32 %v7633_v52, %v6244_v23  ;;  %v6246_v31 = vadd.f32 %v6115_v28, %v5847_v25  ;;  %v4149_v32 = vpop.f32.mrb[127].mxu0 }
 0x2ed   : > { %v4440_v33 = vadd.f32 %v7633_v52, %v6245_v27  ;;  %v6247_v34 = vadd.f32 %v4149_v32, %v2081_v29 }
 0x2ee   : > { %vm4574_vm8 = vcmp.ge.f32.partialorder %v4442_v30, 0.0  ;;  %v4706_v35 = vmul.f32 0.2, %v4442_v30  ;;  %v4443_v36 = vadd.f32 %v7633_v52, %v6246_v31 }
 0x2ef   : > { %vm4572_vm9 = vcmp.ge.f32.partialorder %v4440_v33, 0.0  ;;  %v4704_v37 = vmul.f32 0.2, %v4440_v33  ;;  %v4441_v38 = vadd.f32 %v7633_v52, %v6247_v34 }
 0x2f0   : > { %v4838_v39 = vsel %vm4574_vm8, %v4442_v30, %v4706_v35  ;;  %vm4575_vm10 = vcmp.ge.f32.partialorder %v4443_v36, 0.0  ;;  %v4707_v41 = vmul.f32 0.2, %v4443_v36  ;;  %v5850_v42 = vpop.f32.mrb[128].mxu1 }
 0x2f1   : > { %4971 = vst.msk [vmem:[%s7218_s4 + $0x3f0] sm:$0xff] %vm4844_vm2, %v4838_v39  ;;  %v4836_v43 = vsel %vm4572_vm9, %v4440_v33, %v4704_v37  ;;  %vm4573_vm11 = vcmp.ge.f32.partialorder %v4441_v38, 0.0  ;;  %v4705_v44 = vmul.f32 0.2, %v4441_v38  ;;  %v6118_v45 = vpop.f32.mrb[128].mxu0  ;;  %v2094_v47 = vpop.f32.mrb[129].mxu1 }
 0x2f2   : > { %4969 = vst.msk [vmem:[%s7218_s4 + $0x3e0] sm:$0xff] %vm4844_vm2, %v4836_v43  ;;  %v4839_v48 = vsel %vm4575_vm10, %v4443_v36, %v4707_v41  ;;  %v6248_v49 = vadd.f32 %v6118_v45, %v5850_v42  ;;  %v4162_v50 = vpop.f32.mrb[129].mxu0  ;;  %v5851_v51 = vpop.f32.mrb[130].mxu1 }
 0x2f3   : > { %4972 = vst.msk [vmem:[%s7218_s4 + $0x3f8] sm:$0xff] %vm4844_vm2, %v4839_v48  ;;  %v4837_v40 = vsel %vm4573_vm11, %v4441_v38, %v4705_v44  ;;  %v6249_v53 = vadd.f32 %v4162_v50, %v2094_v47  ;;  %v6119_v54 = vpop.f32.mrb[130].mxu0  ;;  %v2097_v55 = vpop.f32.mrb[131].mxu1 }
 0x2f4   : > { %4970 = vst.msk [vmem:[%s7218_s4 + $0x3e8] sm:$0xff] %vm4844_vm2, %v4837_v40  ;;  %v4446_v56 = vadd.f32 %v7633_v52, %v6248_v49  ;;  %v6250_v57 = vadd.f32 %v6119_v54, %v5851_v51  ;;  %v4165_v46 = vpop.f32.mrb[131].mxu0 }
 0x2f5   : > { %v4444_v58 = vadd.f32 %v7633_v52, %v6249_v53  ;;  %v6251_v59 = vadd.f32 %v4165_v46, %v2097_v55 }
 0x2f6   : > { %vm4578_vm12 = vcmp.ge.f32.partialorder %v4446_v56, 0.0  ;;  %v4710_v60 = vmul.f32 0.2, %v4446_v56  ;;  %v4447_v61 = vadd.f32 %v7633_v52, %v6250_v57 }
 0x2f7   : > { %vm4576_vm1 = vcmp.ge.f32.partialorder %v4444_v58, 0.0  ;;  %v4708_v62 = vmul.f32 0.2, %v4444_v58  ;;  %v4445_v63 = vadd.f32 %v7633_v52, %v6251_v59 }
 0x2f8   : > { %v4842_v0 = vsel %vm4578_vm12, %v4446_v56, %v4710_v60  ;;  %vm4579_vm13 = vcmp.ge.f32.partialorder %v4447_v61, 0.0  ;;  %v4711_v1 = vmul.f32 0.2, %v4447_v61 }
 0x2f9   : > { %4975 = vst.msk [vmem:[%s7218_s4 + $0x410] sm:$0xff] %vm4844_vm2, %v4842_v0  ;;  %v4840_v2 = vsel %vm4576_vm1, %v4444_v58, %v4708_v62  ;;  %vm4577_vm14 = vcmp.ge.f32.partialorder %v4445_v63, 0.0  ;;  %v4709_v3 = vmul.f32 0.2, %v4445_v63 }
 0x2fa   : > { %4973 = vst.msk [vmem:[%s7218_s4 + $0x400] sm:$0xff] %vm4844_vm2, %v4840_v2  ;;  %v4843_v4 = vsel %vm4579_vm13, %v4447_v61, %v4711_v1 }
 0x2fb   : > { %4976 = vst.msk [vmem:[%s7218_s4 + $0x418] sm:$0xff] %vm4844_vm2, %v4843_v4  ;;  %v4841_v5 = vsel %vm4577_vm14, %v4445_v63, %v4709_v3 }
 0x2fc   : > { %4974 = vst.msk [vmem:[%s7218_s4 + $0x408] sm:$0xff] %vm4844_vm2, %v4841_v5 }
 0x2fd PF: > { %s13_s12 = sadd.s32 1, %s6542_s12  }
 0x2fe   : > { %p10_p4 = scmp.ge.s32.totalorder %s13_s12, 4  }
 0x300   :  { %12 = sbr.rel (!%p10_p4) target bundleno = 1 (0x1), region = 65 }

// kernel: msdisc_forward.7
= control target key start
LH: loop header
LB: loop body
LE: loop exit
PB: predicated region body
PF: predicated region fallthrough
CT: control target
= control target key end

     0   :  { %s3254_s12 = smov 0   ;;  %s5662_s0 = inlined_call_operand.vmem [shape: f32[2,290,16], index: 0, kind: input, shape index: {}]   ;;  %s5663_s1 = inlined_call_operand.vmem [shape: bf16[4,16,8], index: 1, kind: input, shape index: {}]   ;;  %s5664_s2 = inlined_call_operand.vmem [shape: f32[1,8], index: 2, kind: input, shape index: {}]   ;;  %s5665_s3 = inlined_call_operand.vmem [shape: f32[2,272,8], index: 3, kind: output, shape index: {}]  }
   0x1 LB: > { %s2663_s13 = sadd.s32 4294967295, %s3230_s12   ;;  %p2667_p0 = scmp.ge.s32.totalorder %s3230_s12, 1  ;;  %s3230_s12 = sphi %s3254_s12, %s13_s12  }
   0x2   : > { %p137_p1 = scmp.lt.s32.totalorder %s3230_s12, 3 }
   0x4   : > { %p138_p2 = pnand %p2667_p0, %p137_p1 }
   0x6   : > { %141 = sbr.rel (%p138_p2) target bundleno = 669 (0x29d), region = 32 }
   0xd   : > { %v3217_v0 = vld [vmem:[%s5663_s1 + $0x8] sm:$0xff]   ;;  %v5666_v1 = vmov 0.0   ;;  %v3218_v2 = vld [vmem:[%s5663_s1] sm:$0xff]   ;;  %vm3233_vm0 = vmmov 0   ;;  %p161_p3 = scmp.lt.s32.totalorder %s2663_s13, 1  ;;  %v3219_v3 = vld [vmem:[%s5663_s1 + $0x10] sm:$0xff]  }
   0xe   : > { %2857 = vmatprep.subr.bf16.mxu0 %v5666_v1  ;;  %2927 = vmatprep.subr.bf16.mxu1 %v5666_v1  ;;  %vm285_vm1 = vcmask 130048   ;;  %v3220_v9 = vld [vmem:[%s5663_s1 + $0x18] sm:$0xff]  }
   0xf   : > { %2858 = vmatpush3.bf16.msra.mxu0 %v3217_v0  ;;  %2859 = vmatprep.mubr.msk.bf16.mxu0 %vm3233_vm0, %v5666_v1  ;;  %s5920_s13 = smov (!%p161_p3, %s2663_s13), 1 }
  0x10   : > { %2928 = vmatpush3.bf16.msra.mxu1 %v3218_v2  ;;  %2929 = vmatprep.mubr.msk.bf16.mxu1 %vm3233_vm0, %v5666_v1  ;;  %s3137_s18 = smul.u32 296, %s5920_s13 }
  0x11   : > { %2997 = vmatprep.subr.bf16.mxu0 %v5666_v1  ;;  %3067 = vmatprep.subr.bf16.mxu1 %v5666_v1  ;;  %s3138_s30 = smul.u32 272, %s5920_s13 }
  0x12   : > { %s3282_s21 = scalar_lea.vmem %s5662_s0, %s3137_s18 }
  0x13   : > { %v225_v4 = vld [vmem:[%s3282_s21 + $0x1] sm:$0xff]  ;;  %v226_v5 = vld [vmem:[%s3282_s21 + $0x9] sm:$0xff]  ;;  %v227_v11 = vld [vmem:[%s3282_s21 + $0x11] sm:$0xff]  ;;  %s5428_s6 = scalar_lea.vmem %s5665_s3, %s3138_s30 }
  0x14   : > { %v172_v6 = vld [vmem:[%s3282_s21] sm:$0xff]  ;;  %v259_v7 = vpack.c.bf16 %v226_v5, %v225_v4  ;;  %v173_v8 = vld [vmem:[%s3282_s21 + $0x8] sm:$0xff]  ;;  %v174_v13 = vld [vmem:[%s3282_s21 + $0x10] sm:$0xff] }
  0x15   : > { %v206_v10 = vpack.c.bf16 %v173_v8, %v172_v6  ;;  %v228_v12 = vld [vmem:[%s3282_s21 + $0x19] sm:$0xff]  ;;  %v229_v17 = vld [vmem:[%s3282_s21 + $0x21] sm:$0xff]  ;;  %v230_v18 = vld [vmem:[%s3282_s21 + $0x29] sm:$0xff] }
  0x16   : > { %2860 = vmatmul.mubr.msk.bf16.vlgmr.msra.gmra.mrb[0].mxu0 %vm285_vm1, %v259_v7  ;;  %v175_v14 = vld [vmem:[%s3282_s21 + $0x18] sm:$0xff]  ;;  %v3304_v15 = vpack.c.bf16 %v228_v12, %v227_v11  ;;  %v176_v19 = vld [vmem:[%s3282_s21 + $0x20] sm:$0xff]  ;;  %v177_v20 = vld [vmem:[%s3282_s21 + $0x28] sm:$0xff]  ;;  %v3317_v21 = vpack.c.bf16 %v230_v18, %v229_v17 }
  0x17   : > { %2930 = vmatmul.mubr.msk.bf16.vlgmr.msra.gmra.mrb[0].mxu1 %vm285_vm1, %v206_v10  ;;  %2998 = vmatpush3.bf16.msra.mxu0 %v3219_v3  ;;  %v207_v16 = vpack.c.bf16 %v175_v14, %v174_v13  ;;  %v208_v22 = vpack.c.bf16 %v177_v20, %v176_v19  ;;  %v231_v23 = vld [vmem:[%s3282_s21 + $0x31] sm:$0xff]  ;;  %v232_v24 = vld [vmem:[%s3282_s21 + $0x39] sm:$0xff]  ;;  %v233_v29 = vld [vmem:[%s3282_s21 + $0x41] sm:$0xff] }
  0x18   : > { %3068 = vmatpush3.bf16.msra.mxu1 %v3220_v9  ;;  %2863 = vmatprep.mubr.msk.bf16.mxu0 %vm3233_vm0, %v5666_v1  ;;  %v178_v25 = vld [vmem:[%s3282_s21 + $0x30] sm:$0xff]  ;;  %v179_v26 = vld [vmem:[%s3282_s21 + $0x38] sm:$0xff]  ;;  %v3330_v27 = vpack.c.bf16 %v232_v24, %v231_v23  ;;  %v180_v31 = vld [vmem:[%s3282_s21 + $0x40] sm:$0xff] }
  0x19   : > { %2933 = vmatprep.mubr.msk.bf16.mxu1 %vm3233_vm0, %v5666_v1  ;;  %v209_v28 = vpack.c.bf16 %v179_v26, %v178_v25  ;;  %v234_v30 = vld [vmem:[%s3282_s21 + $0x49] sm:$0xff]  ;;  %v235_v35 = vld [vmem:[%s3282_s21 + $0x51] sm:$0xff]  ;;  %v236_v36 = vld [vmem:[%s3282_s21 + $0x59] sm:$0xff] }
  0x1a   : > { %v181_v32 = vld [vmem:[%s3282_s21 + $0x48] sm:$0xff]  ;;  %v3343_v33 = vpack.c.bf16 %v234_v30, %v233_v29  ;;  %v182_v37 = vld [vmem:[%s3282_s21 + $0x50] sm:$0xff]  ;;  %v183_v38 = vld [vmem:[%s3282_s21 + $0x58] sm:$0xff]  ;;  %v3356_v39 = vpack.c.bf16 %v236_v36, %v235_v35 }
  0x1b   : > { %v210_v34 = vpack.c.bf16 %v181_v32, %v180_v31  ;;  %v211_v40 = vpack.c.bf16 %v183_v38, %v182_v37  ;;  %v237_v41 = vld [vmem:[%s3282_s21 + $0x61] sm:$0xff]  ;;  %v238_v42 = vld [vmem:[%s3282_s21 + $0x69] sm:$0xff]  ;;  %v239_v47 = vld [vmem:[%s3282_s21 + $0x71] sm:$0xff] }
  0x1c   : > { %v184_v43 = vld [vmem:[%s3282_s21 + $0x60] sm:$0xff]  ;;  %v185_v44 = vld [vmem:[%s3282_s21 + $0x68] sm:$0xff]  ;;  %v3369_v45 = vpack.c.bf16 %v238_v42, %v237_v41  ;;  %v186_v49 = vld [vmem:[%s3282_s21 + $0x70] sm:$0xff] }
  0x1d   : > { %v212_v46 = vpack.c.bf16 %v185_v44, %v184_v43  ;;  %v240_v48 = vld [vmem:[%s3282_s21 + $0x79] sm:$0xff]  ;;  %v241_v53 = vld [vmem:[%s3282_s21 + $0x81] sm:$0xff]  ;;  %v242_v54 = vld [vmem:[%s3282_s21 + $0x89] sm:$0xff] }
  0x1e   : > { %2864 = vmatmul.mubr.msk.bf16.gmra.mrb[4].mxu0 %vm285_vm1, %v3304_v15  ;;  %v187_v50 = vld [vmem:[%s3282_s21 + $0x78] sm:$0xff]  ;;  %v3382_v51 = vpack.c.bf16 %v240_v48, %v239_v47  ;;  %v188_v55 = vld [vmem:[%s3282_s21 + $0x80] sm:$0xff]  ;;  %v189_v56 = vld [vmem:[%s3282_s21 + $0x88] sm:$0xff]  ;;  %v3395_v57 = vpack.c.bf16 %v242_v54, %v241_v53 }
  0x1f   : > { %2934 = vmatmul.mubr.msk.bf16.gmra.mrb[4].mxu1 %vm285_vm1, %v207_v16  ;;  %2867 = vmatprep.mubr.msk.bf16.mxu0 %vm3233_vm0, %v5666_v1  ;;  %v213_v52 = vpack.c.bf16 %v187_v50, %v186_v49  ;;  %v214_v58 = vpack.c.bf16 %v189_v56, %v188_v55  ;;  %v243_v59 = vld [vmem:[%s3282_s21 + $0x91] sm:$0xff]  ;;  %v244_v60 = vld [vmem:[%s3282_s21 + $0x99] sm:$0xff]  ;;  %v245_v2 = vld [vmem:[%s3282_s21 + $0xa1] sm:$0xff] }
  0x20   : > { %2937 = vmatprep.mubr.msk.bf16.mxu1 %vm3233_vm0, %v5666_v1  ;;  %v190_v61 = vld [vmem:[%s3282_s21 + $0x90] sm:$0xff]  ;;  %v191_v62 = vld [vmem:[%s3282_s21 + $0x98] sm:$0xff]  ;;  %v3408_v63 = vpack.c.bf16 %v244_v60, %v243_v59  ;;  %v192_v4 = vld [vmem:[%s3282_s21 + $0xa0] sm:$0xff] }
  0x21   : > { %v215_v0 = vpack.c.bf16 %v191_v62, %v190_v61  ;;  %v246_v3 = vld [vmem:[%s3282_s21 + $0xa9] sm:$0xff]  ;;  %v247_v8 = vld [vmem:[%s3282_s21 + $0xb1] sm:$0xff]  ;;  %v248_v9 = vld [vmem:[%s3282_s21 + $0xb9] sm:$0xff] }
  0x22   : > { %v193_v5 = vld [vmem:[%s3282_s21 + $0xa8] sm:$0xff]  ;;  %v3421_v6 = vpack.c.bf16 %v246_v3, %v245_v2  ;;  %v194_v10 = vld [vmem:[%s3282_s21 + $0xb0] sm:$0xff]  ;;  %v195_v11 = vld [vmem:[%s3282_s21 + $0xb8] sm:$0xff]  ;;  %v3434_v12 = vpack.c.bf16 %v248_v9, %v247_v8 }
  0x23   : > { %v216_v7 = vpack.c.bf16 %v193_v5, %v192_v4  ;;  %v217_v13 = vpack.c.bf16 %v195_v11, %v194_v10  ;;  %v249_v14 = vld [vmem:[%s3282_s21 + $0xc1] sm:$0xff]  ;;  %v250_v16 = vld [vmem:[%s3282_s21 + $0xc9] sm:$0xff]  ;;  %v252_v23 = vld [vmem:[%s3282_s21 + $0xd9] sm:$0xff] }
  0x24   : > { %v196_v17 = vld [vmem:[%s3282_s21 + $0xc0] sm:$0xff]  ;;  %v197_v18 = vld [vmem:[%s3282_s21 + $0xc8] sm:$0xff]  ;;  %v3447_v19 = vpack.c.bf16 %v250_v16, %v249_v14  ;;  %v198_v24 = vld [vmem:[%s3282_s21 + $0xd0] sm:$0xff] }
  0x25   : > { %v218_v20 = vpack.c.bf16 %v197_v18, %v196_v17  ;;  %v199_v25 = vld [vmem:[%s3282_s21 + $0xd8] sm:$0xff]  ;;  %v253_v29 = vld [vmem:[%s3282_s21 + $0xe1] sm:$0xff]  ;;  %v254_v30 = vld [vmem:[%s3282_s21 + $0xe9] sm:$0xff] }
  0x26   : > { %2868 = vmatmul.mubr.msk.bf16.gmra.mrb[8].mxu0 %vm285_vm1, %v3317_v21  ;;  %v200_v31 = vld [vmem:[%s3282_s21 + $0xe0] sm:$0xff]  ;;  %v201_v32 = vld [vmem:[%s3282_s21 + $0xe8] sm:$0xff]  ;;  %v255_v36 = vld [vmem:[%s3282_s21 + $0xf1] sm:$0xff] }
  0x27   : > { %2938 = vmatmul.mubr.msk.bf16.gmra.mrb[8].mxu1 %vm285_vm1, %v208_v22  ;;  %2871 = vmatprep.mubr.msk.bf16.mxu0 %vm3233_vm0, %v5666_v1  ;;  %v251_v22 = vld [vmem:[%s3282_s21 + $0xd1] sm:$0xff]  ;;  %v220_v35 = vpack.c.bf16 %v201_v32, %v200_v31  ;;  %v256_v37 = vld [vmem:[%s3282_s21 + $0xf9] sm:$0xff]  ;;  %v257_v43 = vld [vmem:[%s3282_s21 + $0x101] sm:$0xff] }
  0x28   : > { %2941 = vmatprep.mubr.msk.bf16.mxu1 %vm3233_vm0, %v5666_v1  ;;  %v3460_v26 = vpack.c.bf16 %v252_v23, %v251_v22  ;;  %v202_v38 = vld [vmem:[%s3282_s21 + $0xf0] sm:$0xff]  ;;  %v3486_v41 = vpack.c.bf16 %v256_v37, %v255_v36  ;;  %v205_v47 = vld [vmem:[%s3282_s21 + $0x108] sm:$0xff]  ;;  %v1055_v62 = vld [vmem:[%s3282_s21 + $0x5a] sm:$0xff] }
  0x29   : > { %v258_v44 = vld [vmem:[%s3282_s21 + $0x109] sm:$0xff]  ;;  %v1046_v50 = vld [vmem:[%s3282_s21 + $0x12] sm:$0xff]  ;;  %v1059_v4 = vld [vmem:[%s3282_s21 + $0x7a] sm:$0xff] }
  0x2a   : > { %v3499_v48 = vpack.c.bf16 %v258_v44, %v257_v43  ;;  %v1048_v54 = vld [vmem:[%s3282_s21 + $0x22] sm:$0xff]  ;;  %v1049_v55 = vld [vmem:[%s3282_s21 + $0x2a] sm:$0xff]  ;;  %v1063_v9 = vld [vmem:[%s3282_s21 + $0x9a] sm:$0xff] }
  0x2b   : > { %v1081_v56 = vpack.c.bf16 %v1049_v55, %v1048_v54  ;;  %v1053_v60 = vld [vmem:[%s3282_s21 + $0x4a] sm:$0xff]  ;;  %v1067_v14 = vld [vmem:[%s3282_s21 + $0xba] sm:$0xff] }
  0x2c   : > { %v1057_v2 = vld [vmem:[%s3282_s21 + $0x6a] sm:$0xff] }
  0x2d   : > { %v1065_v11 = vld [vmem:[%s3282_s21 + $0xaa] sm:$0xff] }
  0x2e   : > { %2872 = vmatmul.mubr.msk.bf16.gmra.mrb[12].mxu0 %vm285_vm1, %v3330_v27  ;;  %v1069_v31 = vld [vmem:[%s3282_s21 + $0xca] sm:$0xff] }
  0x2f   : > { %2942 = vmatmul.mubr.msk.bf16.gmra.mrb[12].mxu1 %vm285_vm1, %v209_v28  ;;  %2875 = vmatprep.mubr.msk.bf16.mxu0 %vm3233_vm0, %v5666_v1  ;;  %v219_v28 = vpack.c.bf16 %v199_v25, %v198_v24 }
  0x30   : > { %2945 = vmatprep.mubr.msk.bf16.mxu1 %vm3233_vm0, %v5666_v1 }
  0x36   : > { %2876 = vmatmul.mubr.msk.bf16.gmra.mrb[16].mxu0 %vm285_vm1, %v3343_v33 }
  0x37   : > { %2946 = vmatmul.mubr.msk.bf16.gmra.mrb[16].mxu1 %vm285_vm1, %v210_v34  ;;  %2879 = vmatprep.mubr.msk.bf16.mxu0 %vm3233_vm0, %v5666_v1  ;;  %v3473_v34 = vpack.c.bf16 %v254_v30, %v253_v29  ;;  %v1068_v30 = vld [vmem:[%s3282_s21 + $0xc2] sm:$0xff] }
  0x38   : > { %2949 = vmatprep.mubr.msk.bf16.mxu1 %vm3233_vm0, %v5666_v1 }
  0x3e   : > { %2880 = vmatmul.mubr.msk.bf16.gmra.mrb[20].mxu0 %vm285_vm1, %v3356_v39 }
  0x3f   : > { %2950 = vmatmul.mubr.msk.bf16.gmra.mrb[20].mxu1 %vm285_vm1, %v211_v40  ;;  %2883 = vmatprep.mubr.msk.bf16.mxu0 %vm3233_vm0, %v5666_v1  ;;  %v203_v40 = vld [vmem:[%s3282_s21 + $0xf8] sm:$0xff] }
  0x40   : > { %2953 = vmatprep.mubr.msk.bf16.mxu1 %vm3233_vm0, %v5666_v1  ;;  %v221_v42 = vpack.c.bf16 %v203_v40, %v202_v38 }
  0x46   : > { %2884 = vmatmul.mubr.msk.bf16.gmra.mrb[24].mxu0 %vm285_vm1, %v3369_v45 }
  0x47   : > { %2954 = vmatmul.mubr.msk.bf16.gmra.mrb[24].mxu1 %vm285_vm1, %v212_v46  ;;  %2887 = vmatprep.mubr.msk.bf16.mxu0 %vm3233_vm0, %v5666_v1  ;;  %v204_v46 = vld [vmem:[%s3282_s21 + $0x100] sm:$0xff] }
  0x48   : > { %2957 = vmatprep.mubr.msk.bf16.mxu1 %vm3233_vm0, %v5666_v1  ;;  %v222_v49 = vpack.c.bf16 %v205_v47, %v204_v46  ;;  %v1070_v47 = vld [vmem:[%s3282_s21 + $0xd2] sm:$0xff] }
  0x4e   : > { %2888 = vmatmul.mubr.msk.bf16.gmra.mrb[28].mxu0 %vm285_vm1, %v3382_v51 }
  0x4f   : > { %2958 = vmatmul.mubr.msk.bf16.gmra.mrb[28].mxu1 %vm285_vm1, %v213_v52  ;;  %2891 = vmatprep.mubr.msk.bf16.mxu0 %vm3233_vm0, %v5666_v1  ;;  %v1047_v52 = vld [vmem:[%s3282_s21 + $0x1a] sm:$0xff] }
  0x50   : > { %2961 = vmatprep.mubr.msk.bf16.mxu1 %vm3233_vm0, %v5666_v1  ;;  %v1080_v53 = vpack.c.bf16 %v1047_v52, %v1046_v50 }
  0x56   : > { %2892 = vmatmul.mubr.msk.bf16.gmra.mrb[32].mxu0 %vm285_vm1, %v3395_v57 }
  0x57   : > { %2962 = vmatmul.mubr.msk.bf16.gmra.mrb[32].mxu1 %vm285_vm1, %v214_v58  ;;  %2895 = vmatprep.mubr.msk.bf16.mxu0 %vm3233_vm0, %v5666_v1  ;;  %v1051_v58 = vld [vmem:[%s3282_s21 + $0x3a] sm:$0xff] }
  0x58   : > { %2965 = vmatprep.mubr.msk.bf16.mxu1 %vm3233_vm0, %v5666_v1 }
  0x5e   : > { %2896 = vmatmul.mubr.msk.bf16.gmra.mrb[36].mxu0 %vm285_vm1, %v3408_v63 }
  0x5f   : > { %2966 = vmatmul.mubr.msk.bf16.gmra.mrb[36].mxu1 %vm285_vm1, %v215_v0  ;;  %2899 = vmatprep.mubr.msk.bf16.mxu0 %vm3233_vm0, %v5666_v1 }
  0x60   : > { %2969 = vmatprep.mubr.msk.bf16.mxu1 %vm3233_vm0, %v5666_v1 }
  0x66   : > { %2900 = vmatmul.mubr.msk.bf16.gmra.mrb[40].mxu0 %vm285_vm1, %v3421_v6 }
  0x67   : > { %2970 = vmatmul.mubr.msk.bf16.gmra.mrb[40].mxu1 %vm285_vm1, %v216_v7  ;;  %2903 = vmatprep.mubr.msk.bf16.mxu0 %vm3233_vm0, %v5666_v1  ;;  %v1061_v7 = vld [vmem:[%s3282_s21 + $0x8a] sm:$0xff] }
  0x68   : > { %2973 = vmatprep.mubr.msk.bf16.mxu1 %vm3233_vm0, %v5666_v1 }
  0x6e   : > { %2904 = vmatmul.mubr.msk.bf16.gmra.mrb[44].mxu0 %vm285_vm1, %v3434_v12 }
  0x6f   : > { %2974 = vmatmul.mubr.msk.bf16.gmra.mrb[44].mxu1 %vm285_vm1, %v217_v13  ;;  %2907 = vmatprep.mubr.msk.bf16.mxu0 %vm3233_vm0, %v5666_v1 }
  0x70   : > { %2977 = vmatprep.mubr.msk.bf16.mxu1 %vm3233_vm0, %v5666_v1 }
  0x76   : > { %2908 = vmatmul.mubr.msk.bf16.gmra.mrb[48].mxu0 %vm285_vm1, %v3447_v19 }
  0x77   : > { %2978 = vmatmul.mubr.msk.bf16.gmra.mrb[48].mxu1 %vm285_vm1, %v218_v20  ;;  %2911 = vmatprep.mubr.msk.bf16.mxu0 %vm3233_vm0, %v5666_v1 }
  0x78   : > { %2981 = vmatprep.mubr.msk.bf16.mxu1 %vm3233_vm0, %v5666_v1 }
  0x7e   : > { %2912 = vmatmul.mubr.msk.bf16.gmra.mrb[52].mxu0 %vm285_vm1, %v3460_v26 }
  0x7f   : > { %2982 = vmatmul.mubr.msk.bf16.gmra.mrb[52].mxu1 %vm285_vm1, %v219_v28  ;;  %2915 = vmatprep.mubr.msk.bf16.mxu0 %vm3233_vm0, %v5666_v1 }
  0x80   : > { %2985 = vmatprep.mubr.msk.bf16.mxu1 %vm3233_vm0, %v5666_v1 }
  0x86   : > { %2916 = vmatmul.mubr.msk.bf16.gmra.mrb[56].mxu0 %vm285_vm1, %v3473_v34 }
  0x87   : > { %2986 = vmatmul.mubr.msk.bf16.gmra.mrb[56].mxu1 %vm285_vm1, %v220_v35  ;;  %2919 = vmatprep.mubr.msk.bf16.mxu0 %vm3233_vm0, %v5666_v1 }
  0x88   : > { %2989 = vmatprep.mubr.msk.bf16.mxu1 %vm3233_vm0, %v5666_v1 }
  0x8e   : > { %2920 = vmatmul.mubr.msk.bf16.gmra.mrb[60].mxu0 %vm285_vm1, %v3486_v41 }
  0x8f   : > { %2990 = vmatmul.mubr.msk.bf16.gmra.mrb[60].mxu1 %vm285_vm1, %v221_v42  ;;  %2923 = vmatprep.mubr.msk.bf16.mxu0 %vm3233_vm0, %v5666_v1 }
  0x90   : > { %2993 = vmatprep.mubr.msk.bf16.mxu1 %vm3233_vm0, %v5666_v1 }
  0x96   : > { %2924 = vmatmul.mubr.msk.bf16.gmra.mrb[64].mxu0 %vm285_vm1, %v3499_v48 }
  0x97   : > { %2994 = vmatmul.mubr.msk.bf16.gmra.mrb[64].mxu1 %vm285_vm1, %v222_v49  ;;  %2999 = vmatprep.mubr.msk.bf16.mxu0 %vm3233_vm0, %v5666_v1  ;;  %v1071_v49 = vld [vmem:[%s3282_s21 + $0xda] sm:$0xff] }
  0x98   : > { %3069 = vmatprep.mubr.msk.bf16.mxu1 %vm3233_vm0, %v5666_v1 }
  0x9e   : > { %3000 = vmatmul.mubr.msk.bf16.vlgmr.msra.gmra.mrb[68].mxu0 %vm285_vm1, %v3304_v15  ;;  %v1050_v15 = vld [vmem:[%s3282_s21 + $0x32] sm:$0xff] }
  0x9f   : > { %3070 = vmatmul.mubr.msk.bf16.vlgmr.msra.gmra.mrb[68].mxu1 %vm285_vm1, %v1080_v53  ;;  %3003 = vmatprep.mubr.msk.bf16.mxu0 %vm3233_vm0, %v5666_v1  ;;  %v1082_v59 = vpack.c.bf16 %v1051_v58, %v1050_v15 }
  0xa0   : > { %3073 = vmatprep.mubr.msk.bf16.mxu1 %vm3233_vm0, %v5666_v1 }
  0xa6   : > { %3004 = vmatmul.mubr.msk.bf16.gmra.mrb[72].mxu0 %vm285_vm1, %v3317_v21  ;;  %v1052_v21 = vld [vmem:[%s3282_s21 + $0x42] sm:$0xff] }
  0xa7   : > { %3074 = vmatmul.mubr.msk.bf16.gmra.mrb[72].mxu1 %vm285_vm1, %v1081_v56  ;;  %3007 = vmatprep.mubr.msk.bf16.mxu0 %vm3233_vm0, %v5666_v1  ;;  %v1083_v61 = vpack.c.bf16 %v1053_v60, %v1052_v21  ;;  %v1072_v60 = vld [vmem:[%s3282_s21 + $0xe2] sm:$0xff] }
  0xa8   : > { %3077 = vmatprep.mubr.msk.bf16.mxu1 %vm3233_vm0, %v5666_v1 }
  0xae   : > { %3008 = vmatmul.mubr.msk.bf16.gmra.mrb[76].mxu0 %vm285_vm1, %v3330_v27  ;;  %v1054_v27 = vld [vmem:[%s3282_s21 + $0x52] sm:$0xff] }
  0xaf   : > { %3078 = vmatmul.mubr.msk.bf16.gmra.mrb[76].mxu1 %vm285_vm1, %v1082_v59  ;;  %3011 = vmatprep.mubr.msk.bf16.mxu0 %vm3233_vm0, %v5666_v1  ;;  %v1084_v0 = vpack.c.bf16 %v1055_v62, %v1054_v27 }
  0xb0   : > { %3081 = vmatprep.mubr.msk.bf16.mxu1 %vm3233_vm0, %v5666_v1 }
  0xb6   : > { %3012 = vmatmul.mubr.msk.bf16.gmra.mrb[80].mxu0 %vm285_vm1, %v3343_v33  ;;  %v1056_v33 = vld [vmem:[%s3282_s21 + $0x62] sm:$0xff] }
  0xb7   : > { %3082 = vmatmul.mubr.msk.bf16.gmra.mrb[80].mxu1 %vm285_vm1, %v1083_v61  ;;  %3015 = vmatprep.mubr.msk.bf16.mxu0 %vm3233_vm0, %v5666_v1  ;;  %v1085_v3 = vpack.c.bf16 %v1057_v2, %v1056_v33  ;;  %v1073_v61 = vld [vmem:[%s3282_s21 + $0xea] sm:$0xff] }
  0xb8   : > { %3085 = vmatprep.mubr.msk.bf16.mxu1 %vm3233_vm0, %v5666_v1 }
  0xbe   : > { %3016 = vmatmul.mubr.msk.bf16.gmra.mrb[84].mxu0 %vm285_vm1, %v3356_v39  ;;  %v1058_v39 = vld [vmem:[%s3282_s21 + $0x72] sm:$0xff] }
  0xbf   : > { %3086 = vmatmul.mubr.msk.bf16.gmra.mrb[84].mxu1 %vm285_vm1, %v1084_v0  ;;  %3019 = vmatprep.mubr.msk.bf16.mxu0 %vm3233_vm0, %v5666_v1  ;;  %v1086_v5 = vpack.c.bf16 %v1059_v4, %v1058_v39 }
  0xc0   : > { %3089 = vmatprep.mubr.msk.bf16.mxu1 %vm3233_vm0, %v5666_v1 }
  0xc6   : > { %3020 = vmatmul.mubr.msk.bf16.gmra.mrb[88].mxu0 %vm285_vm1, %v3369_v45  ;;  %v1060_v45 = vld [vmem:[%s3282_s21 + $0x82] sm:$0xff] }
  0xc7   : > { %3090 = vmatmul.mubr.msk.bf16.gmra.mrb[88].mxu1 %vm285_vm1, %v1085_v3  ;;  %3023 = vmatprep.mubr.msk.bf16.mxu0 %vm3233_vm0, %v5666_v1  ;;  %v1087_v8 = vpack.c.bf16 %v1061_v7, %v1060_v45  ;;  %v1074_v7 = vld [vmem:[%s3282_s21 + $0xf2] sm:$0xff] }
  0xc8   : > { %3093 = vmatprep.mubr.msk.bf16.mxu1 %vm3233_vm0, %v5666_v1 }
  0xce   : > { %3024 = vmatmul.mubr.msk.bf16.gmra.mrb[92].mxu0 %vm285_vm1, %v3382_v51  ;;  %v1062_v51 = vld [vmem:[%s3282_s21 + $0x92] sm:$0xff] }
  0xcf   : > { %3094 = vmatmul.mubr.msk.bf16.gmra.mrb[92].mxu1 %vm285_vm1, %v1086_v5  ;;  %3027 = vmatprep.mubr.msk.bf16.mxu0 %vm3233_vm0, %v5666_v1  ;;  %v1088_v10 = vpack.c.bf16 %v1063_v9, %v1062_v51 }
  0xd0   : > { %3097 = vmatprep.mubr.msk.bf16.mxu1 %vm3233_vm0, %v5666_v1 }
  0xd6   : > { %3028 = vmatmul.mubr.msk.bf16.gmra.mrb[96].mxu0 %vm285_vm1, %v3395_v57  ;;  %v1064_v57 = vld [vmem:[%s3282_s21 + $0xa2] sm:$0xff] }
  0xd7   : > { %3098 = vmatmul.mubr.msk.bf16.gmra.mrb[96].mxu1 %vm285_vm1, %v1087_v8  ;;  %3031 = vmatprep.mubr.msk.bf16.mxu0 %vm3233_vm0, %v5666_v1  ;;  %v1089_v13 = vpack.c.bf16 %v1065_v11, %v1064_v57  ;;  %v1075_v8 = vld [vmem:[%s3282_s21 + $0xfa] sm:$0xff] }
  0xd8   : > { %3101 = vmatprep.mubr.msk.bf16.mxu1 %vm3233_vm0, %v5666_v1 }
  0xde   : > { %3032 = vmatmul.mubr.msk.bf16.gmra.mrb[100].mxu0 %vm285_vm1, %v3408_v63  ;;  %v1066_v63 = vld [vmem:[%s3282_s21 + $0xb2] sm:$0xff] }
  0xdf   : > { %3102 = vmatmul.mubr.msk.bf16.gmra.mrb[100].mxu1 %vm285_vm1, %v1088_v10  ;;  %3035 = vmatprep.mubr.msk.bf16.mxu0 %vm3233_vm0, %v5666_v1 }
  0xe0   : > { %3105 = vmatprep.mubr.msk.bf16.mxu1 %vm3233_vm0, %v5666_v1 }
  0xe6   : > { %3036 = vmatmul.mubr.msk.bf16.gmra.mrb[104].mxu0 %vm285_vm1, %v3421_v6  ;;  %v1090_v6 = vpack.c.bf16 %v1067_v14, %v1066_v63 }
  0xe7   : > { %3106 = vmatmul.mubr.msk.bf16.gmra.mrb[104].mxu1 %vm285_vm1, %v1089_v13  ;;  %3039 = vmatprep.mubr.msk.bf16.mxu0 %vm3233_vm0, %v5666_v1 }
  0xe8   : > { %3109 = vmatprep.mubr.msk.bf16.mxu1 %vm3233_vm0, %v5666_v1 }
  0xe9   : > { %v371_v16 = vpop.f32.mrb[0].mxu0 }
  0xea   : > { %v597_v17 = vpop.f32.mrb[0].mxu1  ;;  %v2861_v18 = vpop.f32.mrb[1].mxu0 }
  0xeb   : > { %v3600_v20 = vadd.f32 %v597_v17, %v371_v16  ;;  %v2931_v22 = vpop.f32.mrb[1].mxu1  ;;  %v374_v23 = vpop.f32.mrb[2].mxu0  ;;  %v1076_v18 = vld [vmem:[%s3282_s21 + $0x102] sm:$0xff] }
  0xec   : > { %v600_v24 = vpop.f32.mrb[2].mxu1  ;;  %v2862_v25 = vpop.f32.mrb[3].mxu0  ;;  %v1077_v22 = vld [vmem:[%s3282_s21 + $0x10a] sm:$0xff] }
  0xed   : > { %v3602_v28 = vadd.f32 %v600_v24, %v374_v23  ;;  %v2932_v29 = vpop.f32.mrb[3].mxu1 }
  0xee   : > { %3040 = vmatmul.mubr.msk.bf16.gmra.mrb[108].mxu0 %vm285_vm1, %v3434_v12  ;;  %v1091_v12 = vpack.c.bf16 %v1069_v31, %v1068_v30  ;;  %v1095_v30 = vpack.c.bf16 %v1077_v22, %v1076_v18 }
  0xef   : > { %3110 = vmatmul.mubr.msk.bf16.gmra.mrb[108].mxu1 %vm285_vm1, %v1090_v6  ;;  %3043 = vmatprep.mubr.msk.bf16.mxu0 %vm3233_vm0, %v5666_v1 }
  0xf0   : > { %3113 = vmatprep.mubr.msk.bf16.mxu1 %vm3233_vm0, %v5666_v1 }
  0xf1   : > { %v379_v32 = vpop.f32.mrb[4].mxu0 }
  0xf2   : > { %v605_v35 = vpop.f32.mrb[4].mxu1  ;;  %v2865_v36 = vpop.f32.mrb[5].mxu0 }
  0xf3   : > { %v3613_v37 = vadd.f32 %v605_v35, %v379_v32  ;;  %v2935_v38 = vpop.f32.mrb[5].mxu1  ;;  %v382_v40 = vpop.f32.mrb[6].mxu0 }
  0xf4   : > { %v608_v42 = vpop.f32.mrb[6].mxu1  ;;  %v2866_v43 = vpop.f32.mrb[7].mxu0  ;;  %v764_v38 = vld [vmem:[%s3282_s21 + $0x111] sm:$0xff] }
  0xf5   : > { %v3615_v44 = vadd.f32 %v608_v42, %v382_v40  ;;  %v2936_v46 = vpop.f32.mrb[7].mxu1  ;;  %v765_v40 = vld [vmem:[%s3282_s21 + $0x119] sm:$0xff] }
  0xf6   : > { %3044 = vmatmul.mubr.msk.bf16.gmra.mrb[112].mxu0 %vm285_vm1, %v3447_v19  ;;  %v1092_v19 = vpack.c.bf16 %v1071_v49, %v1070_v47  ;;  %v1079_v42 = vld [vmem:[%s3282_s21 + $0x11a] sm:$0xff]  ;;  %v782_v49 = vpack.c.bf16 %v765_v40, %v764_v38 }
  0xf7   : > { %3114 = vmatmul.mubr.msk.bf16.gmra.mrb[112].mxu1 %vm285_vm1, %v1091_v12  ;;  %3047 = vmatprep.mubr.msk.bf16.mxu0 %vm3233_vm0, %v5666_v1  ;;  %v1078_v12 = vld [vmem:[%s3282_s21 + $0x112] sm:$0xff] }
  0xf8   : > { %3117 = vmatprep.mubr.msk.bf16.mxu1 %vm3233_vm0, %v5666_v1 }
  0xf9   : > { %v387_v50 = vpop.f32.mrb[8].mxu0 }
  0xfa   : > { %v613_v52 = vpop.f32.mrb[8].mxu1  ;;  %v2869_v53 = vpop.f32.mrb[9].mxu0 }
  0xfb   : > { %v3626_v54 = vadd.f32 %v613_v52, %v387_v50  ;;  %v2939_v55 = vpop.f32.mrb[9].mxu1  ;;  %v390_v56 = vpop.f32.mrb[10].mxu0  ;;  %v1096_v53 = vpack.c.bf16 %v1079_v42, %v1078_v12 }
  0xfc   : > { %v616_v15 = vpop.f32.mrb[10].mxu1  ;;  %v2870_v58 = vpop.f32.mrb[11].mxu0 }
  0xfd   : > { %v3628_v59 = vadd.f32 %v616_v15, %v390_v56  ;;  %v2940_v21 = vpop.f32.mrb[11].mxu1 }
  0xfe   : > { %3048 = vmatmul.mubr.msk.bf16.gmra.mrb[116].mxu0 %vm285_vm1, %v3460_v26  ;;  %v1093_v26 = vpack.c.bf16 %v1073_v61, %v1072_v60 }
  0xff   : > { %3118 = vmatmul.mubr.msk.bf16.gmra.mrb[116].mxu1 %vm285_vm1, %v1092_v19  ;;  %3051 = vmatprep.mubr.msk.bf16.mxu0 %vm3233_vm0, %v5666_v1 }
 0x100   : > { %3121 = vmatprep.mubr.msk.bf16.mxu1 %vm3233_vm0, %v5666_v1 }
 0x101   : > { %v395_v27 = vpop.f32.mrb[12].mxu0 }
 0x102   : > { %v621_v62 = vpop.f32.mrb[12].mxu1  ;;  %v2873_v0 = vpop.f32.mrb[13].mxu0 }
 0x103   : > { %v3639_v33 = vadd.f32 %v621_v62, %v395_v27  ;;  %v2943_v2 = vpop.f32.mrb[13].mxu1  ;;  %v398_v3 = vpop.f32.mrb[14].mxu0 }
 0x104   : > { %v624_v39 = vpop.f32.mrb[14].mxu1  ;;  %v2874_v4 = vpop.f32.mrb[15].mxu0 }
 0x105   : > { %v3641_v5 = vadd.f32 %v624_v39, %v398_v3  ;;  %v2944_v45 = vpop.f32.mrb[15].mxu1 }
 0x106   : > { %3052 = vmatmul.mubr.msk.bf16.gmra.mrb[120].mxu0 %vm285_vm1, %v3473_v34  ;;  %v1094_v34 = vpack.c.bf16 %v1075_v8, %v1074_v7 }
 0x107   : > { %3122 = vmatmul.mubr.msk.bf16.gmra.mrb[120].mxu1 %vm285_vm1, %v1093_v26  ;;  %3055 = vmatprep.mubr.msk.bf16.mxu0 %vm3233_vm0, %v5666_v1 }
 0x108   : > { %3125 = vmatprep.mubr.msk.bf16.mxu1 %vm3233_vm0, %v5666_v1 }
 0x109   : > { %v403_v51 = vpop.f32.mrb[16].mxu0 }
 0x10a   : > { %v629_v9 = vpop.f32.mrb[16].mxu1  ;;  %v2877_v10 = vpop.f32.mrb[17].mxu0 }
 0x10b   : > { %v3652_v57 = vadd.f32 %v629_v9, %v403_v51  ;;  %v2947_v11 = vpop.f32.mrb[17].mxu1  ;;  %v406_v13 = vpop.f32.mrb[18].mxu0 }
 0x10c   : > { %v632_v63 = vpop.f32.mrb[18].mxu1  ;;  %v2878_v14 = vpop.f32.mrb[19].mxu0 }
 0x10d   : > { %v3654_v16 = vadd.f32 %v632_v63, %v406_v13  ;;  %v2948_v17 = vpop.f32.mrb[19].mxu1 }
 0x10e   : > { %3056 = vmatmul.mubr.msk.bf16.gmra.mrb[124].mxu0 %vm285_vm1, %v3486_v41 }
 0x10f   : > { %3126 = vmatmul.mubr.msk.bf16.gmra.mrb[124].mxu1 %vm285_vm1, %v1094_v34  ;;  %3059 = vmatprep.mubr.msk.bf16.mxu0 %vm3233_vm0, %v5666_v1 }
 0x110   : > { %3129 = vmatprep.mubr.msk.bf16.mxu1 %vm3233_vm0, %v5666_v1 }
 0x111   : > { %v411_v23 = vpop.f32.mrb[20].mxu0 }
 0x112   : > { %v637_v6 = vpop.f32.mrb[20].mxu1  ;;  %v2881_v24 = vpop.f32.mrb[21].mxu0 }
 0x113   : > { %v3665_v25 = vadd.f32 %v637_v6, %v411_v23  ;;  %v2951_v41 = vpop.f32.mrb[21].mxu1  ;;  %v414_v29 = vpop.f32.mrb[22].mxu0 }
 0x114   : > { %v640_v31 = vpop.f32.mrb[22].mxu1  ;;  %v2882_v32 = vpop.f32.mrb[23].mxu0 }
 0x115   : > { %v3667_v35 = vadd.f32 %v640_v31, %v414_v29  ;;  %v2952_v36 = vpop.f32.mrb[23].mxu1 }
 0x116   : > { %3060 = vmatmul.mubr.msk.bf16.gmra.mrb[128].mxu0 %vm285_vm1, %v3499_v48 }
 0x117   : > { %3130 = vmatmul.mubr.msk.bf16.gmra.mrb[128].mxu1 %vm285_vm1, %v1095_v30  ;;  %3063 = vmatprep.mubr.msk.bf16.mxu0 %vm3233_vm0, %v5666_v1 }
 0x118   : > { %3133 = vmatprep.mubr.msk.bf16.mxu1 %vm3233_vm0, %v5666_v1 }
 0x119   : > { %v419_v43 = vpop.f32.mrb[24].mxu0 }
 0x11a   : > { %v645_v46 = vpop.f32.mrb[24].mxu1  ;;  %v2885_v47 = vpop.f32.mrb[25].mxu0 }
 0x11b   : > { %v3680_v50 = vadd.f32 %v645_v46, %v419_v43  ;;  %v2955_v52 = vpop.f32.mrb[25].mxu1  ;;  %v422_v48 = vpop.f32.mrb[26].mxu0  ;;  %v1401_v46 = vlaneseq }
 0x11c   : > { %v648_v55 = vpop.f32.mrb[26].mxu1  ;;  %v2886_v56 = vpop.f32.mrb[27].mxu0 }
 0x11d   : > { %v3682_v19 = vadd.f32 %v648_v55, %v422_v48  ;;  %v2956_v15 = vpop.f32.mrb[27].mxu1  ;;  %v3702_v48 = vshrl.u32 %v1401_v46, 7 }
 0x11e   : > { %3064 = vmatmul.mubr.msk.bf16.gmra.mrb[132].mxu0 %vm285_vm1, %v782_v49 }
 0x11f   : > { %3134 = vmatmul.mubr.msk.bf16.gmra.mrb[132].mxu1 %vm285_vm1, %v1096_v53 }
 0x121   : > { %v427_v58 = vpop.f32.mrb[28].mxu0 }
 0x122   : > { %v653_v21 = vpop.f32.mrb[28].mxu1  ;;  %v2889_v60 = vpop.f32.mrb[29].mxu0 }
 0x123   : > { %v3686_v61 = vadd.f32 %v653_v21, %v427_v58  ;;  %v2959_v27 = vpop.f32.mrb[29].mxu1  ;;  %v430_v62 = vpop.f32.mrb[30].mxu0 }
 0x124   : > { %v656_v0 = vpop.f32.mrb[30].mxu1  ;;  %v2890_v2 = vpop.f32.mrb[31].mxu0 }
 0x125   : > { %v3688_v3 = vadd.f32 %v656_v0, %v430_v62  ;;  %v2960_v26 = vpop.f32.mrb[31].mxu1  ;;  %v3709_v27 = vmul.u32.u64.low 4042322161, %v3702_v48  ;;  %v3710_v62 = vmul.u32.u64.high 4042322161, %v3702_v48, %v3709_v27  ;;  %v1403_v0 = vadd.s32 8, %v3702_v48 }
 0x129   : > { %v435_v39 = vpop.f32.mrb[32].mxu0 }
 0x12a   : > { %v661_v4 = vpop.f32.mrb[32].mxu1  ;;  %v2893_v45 = vpop.f32.mrb[33].mxu0 }
 0x12b   : > { %v3690_v7 = vadd.f32 %v661_v4, %v435_v39  ;;  %v2963_v8 = vpop.f32.mrb[33].mxu1  ;;  %v438_v51 = vpop.f32.mrb[34].mxu0  ;;  %v3713_v4 = vmul.u32.u64.low 4042322161, %v1403_v0  ;;  %v3714_v45 = vmul.u32.u64.high 4042322161, %v1403_v0, %v3713_v4 }
 0x12c   : > { %v664_v9 = vpop.f32.mrb[34].mxu1  ;;  %v2894_v10 = vpop.f32.mrb[35].mxu0 }
 0x12d   : > { %v3692_v11 = vadd.f32 %v664_v9, %v438_v51  ;;  %v2964_v13 = vpop.f32.mrb[35].mxu1 }
 0x131   : > { %v443_v34 = vpop.f32.mrb[36].mxu0 }
 0x132   : > { %v669_v63 = vpop.f32.mrb[36].mxu1  ;;  %v2897_v14 = vpop.f32.mrb[37].mxu0 }
 0x133   : > { %v3694_v17 = vadd.f32 %v669_v63, %v443_v34  ;;  %v2967_v18 = vpop.f32.mrb[37].mxu1  ;;  %v446_v22 = vpop.f32.mrb[38].mxu0  ;;  %v1404_v34 = vadd.s32 16, %v3702_v48 }
 0x134   : > { %v672_v23 = vpop.f32.mrb[38].mxu1  ;;  %v2898_v6 = vpop.f32.mrb[39].mxu0  ;;  %v1442_v18 = vshrl.u32 %v3710_v62, 4 }
 0x135   : > { %5692 = vst [vmem:[#allocation2_spill] sm:$0xff] %v3694_v17  ;;  %v3696_v24 = vadd.f32 %v672_v23, %v446_v22  ;;  %v2968_v41 = vpop.f32.mrb[39].mxu1  ;;  %v3722_v22 = vmul.u32.u64.low 4042322161, %v1404_v34  ;;  %v3723_v23 = vmul.u32.u64.high 4042322161, %v1404_v34, %v3722_v22  ;;  %v3726_v6 = vadd.s32 24, %v3702_v48 }
 0x137   : > { %5693 = vst [vmem:[#allocation3_spill] sm:$0xff] %v3696_v24 }
 0x139   : > { %v451_v29 = vpop.f32.mrb[40].mxu0 }
 0x13a   : > { %v677_v30 = vpop.f32.mrb[40].mxu1  ;;  %v2901_v31 = vpop.f32.mrb[41].mxu0 }
 0x13b   : > { %v3698_v32 = vadd.f32 %v677_v30, %v451_v29  ;;  %v2971_v36 = vpop.f32.mrb[41].mxu1  ;;  %v454_v38 = vpop.f32.mrb[42].mxu0  ;;  %v3729_v29 = vadd.s32 32, %v3702_v48 }
 0x13c   : > { %v680_v40 = vpop.f32.mrb[42].mxu1  ;;  %v2902_v12 = vpop.f32.mrb[43].mxu0  ;;  %v1443_v36 = vmul.u32 17, %v1442_v18 }
 0x13d   : > { %5694 = vst [vmem:[#allocation4_spill] sm:$0xff] %v3698_v32  ;;  %v3700_v42 = vadd.f32 %v680_v40, %v454_v38  ;;  %v2972_v43 = vpop.f32.mrb[43].mxu1  ;;  %v1453_v38 = vshrl.u32 %v3714_v45, 4 }
 0x13e   : > { %v1444_v27 = vsub.s32 %v3702_v48, %v1443_v36 }
 0x13f   : > { %5695 = vst [vmem:[#allocation5_spill] sm:$0xff] %v3700_v42  ;;  %v1454_v62 = vmul.u32 17, %v1453_v38 }
 0x140   : > { %vm1810_vm2 = vcmp.ne.s32.totalorder %v1444_v27, 0  ;;  %vm1844_vm3 = vcmp.lt.s32.totalorder %v1444_v27, 0  ;;  %v1912_v36 = vadd.s32 17, %v1444_v27 }
 0x141   : > { %v459_v47 = vpop.f32.mrb[44].mxu0  ;;  %vm3774_vm4 = vmand %vm1844_vm3, %vm1810_vm2 }
 0x142   : > { %v685_v49 = vpop.f32.mrb[44].mxu1  ;;  %v2905_v52 = vpop.f32.mrb[45].mxu0 }
 0x143   : > { %v3704_v53 = vadd.f32 %v685_v49, %v459_v47  ;;  %v2975_v55 = vpop.f32.mrb[45].mxu1  ;;  %v462_v56 = vpop.f32.mrb[46].mxu0  ;;  %v3735_v49 = vmul.u32.u64.low 4042322161, %v3726_v6  ;;  %v3736_v52 = vmul.u32.u64.high 4042322161, %v3726_v6, %v3735_v49 }
 0x144   : > { %v688_v15 = vpop.f32.mrb[46].mxu1  ;;  %v2906_v58 = vpop.f32.mrb[47].mxu0 }
 0x145   : > { %5696 = vst [vmem:[#allocation6_spill] sm:$0xff] %v3704_v53  ;;  %v3706_v21 = vadd.f32 %v688_v15, %v462_v56  ;;  %v2976_v60 = vpop.f32.mrb[47].mxu1  ;;  %v3741_v15 = vmul.u32.u64.low 4042322161, %v3729_v29  ;;  %v3742_v58 = vmul.u32.u64.high 4042322161, %v3729_v29, %v3741_v15 }
 0x146   : > { %v3745_v60 = vadd.s32 40, %v3702_v48 }
 0x147   : > { %5697 = vst [vmem:[#allocation7_spill] sm:$0xff] %v3706_v21 }
 0x148   : > { %v3753_v4 = vmul.u32.u64.low 4042322161, %v3745_v60  ;;  %v3754_v45 = vmul.u32.u64.high 4042322161, %v3745_v60, %v3753_v4 }
 0x149   : > { %v467_v2 = vpop.f32.mrb[48].mxu0 }
 0x14a   : > { %v693_v26 = vpop.f32.mrb[48].mxu1  ;;  %v2909_v39 = vpop.f32.mrb[49].mxu0 }
 0x14b   : > { %v3716_v8 = vadd.f32 %v693_v26, %v467_v2  ;;  %v2979_v51 = vpop.f32.mrb[49].mxu1  ;;  %v470_v9 = vpop.f32.mrb[50].mxu0  ;;  %v3749_v2 = vadd.s32 48, %v3702_v48  ;;  %v1464_v26 = vshrl.u32 %v3723_v23, 4 }
 0x14c   : > { %v696_v10 = vpop.f32.mrb[50].mxu1  ;;  %v2910_v13 = vpop.f32.mrb[51].mxu0  ;;  %v3757_v51 = vadd.s32 56, %v3702_v48 }
 0x14d   : > { %5698 = vst [vmem:[#allocation8_spill] sm:$0xff] %v3716_v8  ;;  %v3719_v63 = vadd.f32 %v696_v10, %v470_v9  ;;  %v2980_v14 = vpop.f32.mrb[51].mxu1  ;;  %v1455_v13 = vsub.s32 %v1403_v0, %v1454_v62  ;;  %v1465_v38 = vmul.u32 17, %v1464_v26  ;;  %v1486_v0 = vshrl.u32 %v3742_v58, 4 }
 0x14e   : > { %v3826_v58 = vadd.s32 88, %v3702_v48 }
 0x14f   : > { %5699 = vst [vmem:[#allocation9_spill] sm:$0xff] %v3719_v63  ;;  %vm1811_vm5 = vcmp.ne.s32.totalorder %v1455_v13, 0  ;;  %vm1845_vm6 = vcmp.lt.s32.totalorder %v1455_v13, 0  ;;  %v1913_v15 = vadd.s32 17, %v1455_v13  ;;  %v3778_v62 = vsub.s32 %v1404_v34, %v1465_v38 }
 0x150   : > { %vm3782_vm7 = vmand %vm1845_vm6, %vm1811_vm5  ;;  %v1487_v4 = vmul.u32 17, %v1486_v0 }
 0x151   : > { %v475_v41 = vpop.f32.mrb[52].mxu0  ;;  %vm1812_vm9 = vcmp.ne.s32.totalorder %v3778_v62, 0  ;;  %vm1846_vm10 = vcmp.lt.s32.totalorder %v3778_v62, 0 }
 0x152   : > { %v701_v30 = vpop.f32.mrb[52].mxu1  ;;  %v2913_v31 = vpop.f32.mrb[53].mxu0  ;;  %vm3838_vm13 = vmand %vm1846_vm10, %vm1812_vm9 }
 0x153   : > { %v3732_v40 = vadd.f32 %v701_v30, %v475_v41  ;;  %v2983_v12 = vpop.f32.mrb[53].mxu1  ;;  %v478_v43 = vpop.f32.mrb[54].mxu0  ;;  %v3762_v41 = vmul.u32.u64.low 4042322161, %v3749_v2  ;;  %v3763_v23 = vmul.u32.u64.high 4042322161, %v3749_v2, %v3762_v41 }
 0x154   : > { %v704_v46 = vpop.f32.mrb[54].mxu1  ;;  %v2914_v47 = vpop.f32.mrb[55].mxu0  ;;  %v1475_v12 = vshrl.u32 %v3736_v52, 4 }
 0x155   : > { %5700 = vst [vmem:[#allocation10_spill] sm:$0xff] %v3732_v40  ;;  %v3738_v55 = vadd.f32 %v704_v46, %v478_v43  ;;  %v2984_v56 = vpop.f32.mrb[55].mxu1  ;;  %v3770_v47 = vmul.u32.u64.low 4042322161, %v3757_v51  ;;  %v3771_v49 = vmul.u32.u64.high 4042322161, %v3757_v51, %v3770_v47 }
 0x156   : > { %v1476_v52 = vmul.u32 17, %v1475_v12  ;;  %v3809_v47 = vsub.s32 %v3729_v29, %v1487_v4 }
 0x157   : > { %5701 = vst [vmem:[#allocation11_spill] sm:$0xff] %v3738_v55 }
 0x158   : > { %v3801_v12 = vsub.s32 %v3726_v6, %v1476_v52  ;;  %v3818_v6 = vadd.s32 80, %v3702_v48  ;;  %vm1814_vm15 = vcmp.ne.s32.totalorder %v3809_v47, 0  ;;  %vm1848_vm0 = vcmp.lt.s32.totalorder %v3809_v47, 0 }
 0x159   : > { %v483_v39 = vpop.f32.mrb[56].mxu0  ;;  %vm3891_vm3 = vmand %vm1848_vm0, %vm1814_vm15 }
 0x15a   : > { %v709_v9 = vpop.f32.mrb[56].mxu1  ;;  %v2917_v10 = vpop.f32.mrb[57].mxu0  ;;  %vm1813_vm12 = vcmp.ne.s32.totalorder %v3801_v12, 0  ;;  %vm1847_vm14 = vcmp.lt.s32.totalorder %v3801_v12, 0 }
 0x15b   : > { %v3759_v14 = vadd.f32 %v709_v9, %v483_v39  ;;  %v2987_v18 = vpop.f32.mrb[57].mxu1  ;;  %v486_v22 = vpop.f32.mrb[58].mxu0  ;;  %v1946_v39 = vsel %vm3774_vm4, %v1912_v36, %v1444_v27  ;;  %v1497_v9 = vshrl.u32 %v3754_v45, 4  ;;  %v1947_v45 = vsel %vm3782_vm7, %v1913_v15, %v1455_v13  ;;  %vm3878_vm1 = vmand %vm1847_vm14, %vm1813_vm12 }
 0x15c   : > { %v712_v30 = vpop.f32.mrb[58].mxu1  ;;  %v2918_v31 = vpop.f32.mrb[59].mxu0  ;;  %vm3793_vm8 = vcmp.lt.s32.totalorder %v1946_v39, 16  ;;  %vm3820_vm11 = vcmp.lt.s32.totalorder %v1947_v45, 16  ;;  %v1914_v39 = vadd.s32 17, %v3778_v62 }
 0x15d   : > { %5702 = vst [vmem:[#allocation12_spill] sm:$0xff] %v3759_v14  ;;  %v3766_v43 = vadd.f32 %v712_v30, %v486_v22  ;;  %v2988_v46 = vpop.f32.mrb[59].mxu1  ;;  %v3788_v22 = vadd.s32 64, %v3702_v48  ;;  %v1508_v31 = vshrl.u32 %v3763_v23, 4  ;;  %v1498_v56 = vmul.u32 17, %v1497_v9 }
 0x15e   : > { %v3804_v46 = vadd.s32 72, %v3702_v48  ;;  %v3834_v9 = vadd.s32 96, %v3702_v48 }
 0x15f   : > { %5703 = vst [vmem:[#allocation13_spill] sm:$0xff] %v3766_v43  ;;  %v3814_v13 = vmul.u32.u64.low 4042322161, %v3788_v22  ;;  %v3815_v15 = vmul.u32.u64.high 4042322161, %v3788_v22, %v3814_v13  ;;  %v1509_v29 = vmul.u32 17, %v1508_v31 }
 0x161   : > { %v491_v26 = vpop.f32.mrb[60].mxu0 }
 0x162   : > { %v717_v10 = vpop.f32.mrb[60].mxu1  ;;  %v2921_v18 = vpop.f32.mrb[61].mxu0 }
 0x163   : > { %v3790_v41 = vadd.f32 %v717_v10, %v491_v26  ;;  %v2991_v34 = vpop.f32.mrb[61].mxu1  ;;  %v494_v30 = vpop.f32.mrb[62].mxu0  ;;  %v1519_v26 = vshrl.u32 %v3771_v49, 4  ;;  %v3830_v49 = vmul.u32.u64.low 4042322161, %v3804_v46  ;;  %v3831_v4 = vmul.u32.u64.high 4042322161, %v3804_v46, %v3830_v49 }
 0x164   : > { %v720_v38 = vpop.f32.mrb[62].mxu1  ;;  %v2922_v27 = vpop.f32.mrb[63].mxu0  ;;  %v3845_v34 = vsub.s32 %v3745_v60, %v1498_v56  ;;  %v3861_v60 = vmul.u32.u64.low 4042322161, %v3826_v58  ;;  %v3862_v56 = vmul.u32.u64.high 4042322161, %v3826_v58, %v3861_v60  ;;  %v1916_v18 = vadd.s32 17, %v3809_v47 }
 0x165   : > { %5708 = vst [vmem:[#allocation14_spill] sm:$0xff] %v3790_v41  ;;  %v3806_v0 = vadd.f32 %v720_v38, %v494_v30  ;;  %v2992_v23 = vpop.f32.mrb[63].mxu1  ;;  %v1520_v30 = vmul.u32 17, %v1519_v26  ;;  %v3849_v27 = vmul.u32.u64.low 4042322161, %v3818_v6  ;;  %v3850_v45 = vmul.u32.u64.high 4042322161, %v3818_v6, %v3849_v27 }
 0x166   : > { %v3853_v23 = vadd.s32 104, %v3702_v48  ;;  %v1948_v27 = vsel %vm3838_vm13, %v1914_v39, %v3778_v62  ;;  %v1915_v41 = vadd.s32 17, %v3801_v12  ;;  %vm1815_vm2 = vcmp.ne.s32.totalorder %v3845_v34, 0 }
 0x167   : > { %5711 = vst [vmem:[#allocation15_spill] sm:$0xff] %v3806_v0  ;;  %v3858_v0 = vsub.s32 %v3749_v2, %v1509_v29  ;;  %v3885_v62 = vsub.s32 %v3757_v51, %v1520_v30  ;;  %vm1849_vm4 = vcmp.lt.s32.totalorder %v3845_v34, 0  ;;  %v1530_v39 = vshrl.u32 %v3815_v15, 4 }
 0x168   : > { %v3909_v30 = vadd.s32 112, %v3702_v48  ;;  %vm3916_vm7 = vcmp.lt.s32.totalorder %v1948_v27, 16  ;;  %v1949_v36 = vsel %vm3878_vm1, %v1915_v41, %v3801_v12  ;;  %v1917_v27 = vadd.s32 17, %v3845_v34 }
 0x169   : > { %v499_v10 = vpop.f32.mrb[64].mxu0  ;;  %vm1816_vm5 = vcmp.ne.s32.totalorder %v3858_v0, 0  ;;  %vm1850_vm6 = vcmp.lt.s32.totalorder %v3858_v0, 0  ;;  %v1918_v29 = vadd.s32 17, %v3858_v0  ;;  %vm1817_vm9 = vcmp.ne.s32.totalorder %v3885_v62, 0 }
 0x16a   : > { %v725_v31 = vpop.f32.mrb[64].mxu1  ;;  %v2925_v38 = vpop.f32.mrb[65].mxu0  ;;  %vm3943_vm10 = vmand %vm1850_vm6, %vm1816_vm5  ;;  %v1563_v14 = vshrl.u32 %v3862_v56, 4  ;;  %vm1983_vm12 = vcmp.lt.s32.totalorder %v1949_v36, 16 }
 0x16b   : > { %v3855_v13 = vadd.f32 %v725_v31, %v499_v10  ;;  %v2995_v49 = vpop.f32.mrb[65].mxu1  ;;  %v502_v1 = vpop.f32.mrb[66].mxu0  ;;  %v3869_v10 = vmul.u32.u64.low 4042322161, %v3834_v9  ;;  %v3870_v31 = vmul.u32.u64.high 4042322161, %v3834_v9, %v3869_v10 }
 0x16c   : > { %v728_v26 = vpop.f32.mrb[66].mxu1  ;;  %v2926_v38 = vpop.f32.mrb[67].mxu0 }
 0x16d   : > { %5716 = vst [vmem:[#allocation16_spill] sm:$0xff] %v3855_v13  ;;  %v3872_v49 = vadd.f32 %v728_v26, %v502_v1  ;;  %v2996_v2 = vpop.f32.mrb[67].mxu1  ;;  %v3898_v60 = vmul.u32.u64.low 4042322161, %v3853_v23  ;;  %v3899_v26 = vmul.u32.u64.high 4042322161, %v3853_v23, %v3898_v60  ;;  %v5722_v38 = vmov 0.0  }
 0x16e   : > { %v3904_v51 = vsel %vm3793_vm8, 1.0, %v5722_v38  ;;  %v3914_v15 = vsel %vm3820_vm11, 1.0, %v5722_v38  ;;  %v1541_v2 = vshrl.u32 %v3831_v4, 4  ;;  %vm3931_vm8 = vmand %vm1849_vm4, %vm1815_vm2  ;;  %vm1851_vm11 = vcmp.lt.s32.totalorder %v3885_v62, 0 }
 0x16f   : > { %5717 = vst [vmem:[#allocation17_spill] sm:$0xff] %v3872_v49  ;;  %v1950_v49 = vsel %vm3891_vm3, %v1916_v18, %v3809_v47  ;;  %v1531_v18 = vmul.u32 17, %v1530_v39  ;;  %v1552_v1 = vshrl.u32 %v3850_v45, 4  ;;  %v1574_v45 = vshrl.u32 %v3870_v31, 4  ;;  %vm3981_vm14 = vmand %vm1851_vm11, %vm1817_vm9 }
 0x170   : > { %v1542_v39 = vmul.u32 17, %v1541_v2  ;;  %vm3961_vm13 = vcmp.lt.s32.totalorder %v1950_v49, 16  ;;  %v1585_v31 = vshrl.u32 %v3899_v26, 4  ;;  %v3995_v26 = vsel %vm3916_vm7, 1.0, %v5722_v38 }
 0x171   : > { %v877_v60 = vpop.f32.mrb[68].mxu0  ;;  %v3998_v36 = vsel %vm1983_vm12, 1.0, %v5722_v38  ;;  %v1575_v52 = vmul.u32 17, %v1574_v45 }
 0x172   : > { %v1012_v41 = vadd.f32 %v877_v60, %v3600_v20  ;;  %v1191_v12 = vpop.f32.mrb[68].mxu1  ;;  %v3001_v4 = vpop.f32.mrb[69].mxu0  ;;  %v3951_v20 = vmul.u32.u64.low 4042322161, %v3909_v30  ;;  %v3952_v60 = vmul.u32.u64.high 4042322161, %v3909_v30, %v3951_v20  ;;  %5733 = vst [vmem:[#allocation18_spill] sm:$0xff] %v3998_v36  ;;  %v4001_v2 = vsub.s32 %v3804_v46, %v1542_v39 }
 0x173   : > { %v3071_v13 = vpop.f32.mrb[69].mxu1  ;;  %v880_v43 = vpop.f32.mrb[70].mxu0  ;;  %v3955_v4 = vadd.s32 120, %v3702_v48  ;;  %v1951_v20 = vsel %vm3931_vm8, %v1917_v27, %v3845_v34  ;;  %v3986_v34 = vsub.s32 %v3788_v22, %v1531_v18  ;;  %v1586_v39 = vmul.u32 17, %v1585_v31 }
 0x174   : > { %v3957_v55 = vadd.f32 %v1191_v12, %v1012_v41  ;;  %v1013_v40 = vadd.f32 %v880_v43, %v3602_v28  ;;  %v1194_v63 = vpop.f32.mrb[70].mxu1  ;;  %v3002_v8 = vpop.f32.mrb[71].mxu0  ;;  %v1952_v41 = vsel %vm3943_vm10, %v1918_v29, %v3858_v0  ;;  %v1553_v43 = vmul.u32 17, %v1552_v1 }
 0x175   : > { %v3072_v13 = vpop.f32.mrb[71].mxu1  ;;  %v3974_v8 = vadd.s32 17, %v3885_v62  ;;  %v1564_v0 = vmul.u32 17, %v1563_v14  ;;  %v4006_v14 = vsel %vm3961_vm13, 1.0, %v5722_v38  ;;  %vm4008_vm15 = vcmp.lt.s32.totalorder %v1951_v20, 16 }
 0x176   : > { %v3971_v28 = vadd.f32 %v1194_v63, %v1013_v40  ;;  %v3989_v63 = vmul.u32.u64.low 4042322161, %v3955_v4  ;;  %v3990_v40 = vmul.u32.u64.high 4042322161, %v3955_v4, %v3989_v63  ;;  %5734 = vst [vmem:[#allocation19_spill] sm:$0xff] %v4006_v14  ;;  %vm4012_vm0 = vcmp.lt.s32.totalorder %v1952_v41, 16 }
 0x177   : > { %v4017_v29 = vadd.s32 128, %v3702_v48  ;;  %v1953_v18 = vsel %vm3981_vm14, %v3974_v8, %v3885_v62  ;;  %v4025_v1 = vsub.s32 %v3818_v6, %v1553_v43  ;;  %vm1818_vm1 = vcmp.ne.s32.totalorder %v3986_v34, 0 }
 0x178   : > { %vm1852_vm2 = vcmp.lt.s32.totalorder %v3986_v34, 0  ;;  %v4030_v56 = vsub.s32 %v3826_v58, %v1564_v0  ;;  %vm1819_vm3 = vcmp.ne.s32.totalorder %v4001_v2, 0  ;;  %v4038_v6 = vsub.s32 %v3834_v9, %v1575_v52 }
 0x179   : > { %v885_v27 = vpop.f32.mrb[72].mxu0  ;;  %vm1853_vm4 = vcmp.lt.s32.totalorder %v4001_v2, 0  ;;  %v4042_v31 = vmul.u32.u64.low 4042322161, %v4017_v29  ;;  %v4043_v58 = vmul.u32.u64.high 4042322161, %v4017_v29, %v4042_v31  ;;  %vm1820_vm5 = vcmp.ne.s32.totalorder %v4025_v1, 0  ;;  %vm4059_vm7 = vmand %vm1852_vm2, %vm1818_vm1 }
 0x17a   : > { %v1014_v46 = vadd.f32 %v885_v27, %v3613_v37  ;;  %v1199_v12 = vpop.f32.mrb[72].mxu1  ;;  %v3005_v47 = vpop.f32.mrb[73].mxu0  ;;  %v1596_v37 = vshrl.u32 %v3952_v60, 4  ;;  %v4046_v60 = vadd.s32 136, %v3702_v48  ;;  %vm1854_vm6 = vcmp.lt.s32.totalorder %v4025_v1, 0  ;;  %vm4069_vm10 = vmand %vm1853_vm4, %vm1819_vm3 }
 0x17b   : > { %v3075_v45 = vpop.f32.mrb[73].mxu1  ;;  %v888_v13 = vpop.f32.mrb[74].mxu0  ;;  %vm1821_vm8 = vcmp.ne.s32.totalorder %v4030_v56, 0  ;;  %vm1855_vm9 = vcmp.lt.s32.totalorder %v4030_v56, 0  ;;  %v1607_v63 = vshrl.u32 %v3990_v40, 4  ;;  %v1920_v52 = vadd.s32 17, %v3986_v34  ;;  %vm4076_vm13 = vmand %vm1854_vm6, %vm1820_vm5 }
 0x17c   : > { %v4033_v20 = vadd.f32 %v1199_v12, %v1014_v46  ;;  %v1015_v41 = vadd.f32 %v888_v13, %v3615_v44  ;;  %v1202_v62 = vpop.f32.mrb[74].mxu1  ;;  %v3006_v8 = vpop.f32.mrb[75].mxu0  ;;  %v4053_v44 = vsub.s32 %v3853_v23, %v1586_v39  ;;  %v1597_v0 = vmul.u32 17, %v1596_v37  ;;  %vm4091_vm14 = vmand %vm1855_vm9, %vm1821_vm8 }
 0x17d   : > { %v3076_v43 = vpop.f32.mrb[75].mxu1  ;;  %v1921_v27 = vadd.s32 17, %v4001_v2  ;;  %vm1822_vm11 = vcmp.ne.s32.totalorder %v4038_v6, 0  ;;  %vm1856_vm12 = vcmp.lt.s32.totalorder %v4038_v6, 0  ;;  %v1922_v40 = vadd.s32 17, %v4025_v1 }
 0x17e   : > { %v4048_v49 = vadd.f32 %v1202_v62, %v1015_v41  ;;  %v1923_v47 = vadd.s32 17, %v4030_v56  ;;  %v4083_v39 = vmul.u32.u64.low 4042322161, %v4046_v60  ;;  %v4084_v45 = vmul.u32.u64.high 4042322161, %v4046_v60, %v4083_v39  ;;  %vm4112_vm3 = vmand %vm1856_vm12, %vm1822_vm11 }
 0x17f   : > { %v1924_v8 = vadd.s32 17, %v4038_v6  ;;  %vm1823_vm1 = vcmp.ne.s32.totalorder %v4053_v44, 0  ;;  %vm1857_vm2 = vcmp.lt.s32.totalorder %v4053_v44, 0  ;;  %v1925_v32 = vadd.s32 17, %v4053_v44 }
 0x180   : > { %v1954_v17 = vsel %vm4059_vm7, %v1920_v52, %v3986_v34  ;;  %v1956_v34 = vsel %vm4076_vm13, %v1922_v40, %v4025_v1  ;;  %v1629_v52 = vshrl.u32 %v4084_v45, 4  ;;  %vm2184_vm12 = vcmask 64512  }
 0x181   : > { %v893_v46 = vpop.f32.mrb[76].mxu0  ;;  %v1958_v9 = vsel %vm4112_vm3, %v1924_v8, %v4038_v6  ;;  %vm4164_vm6 = vcmp.lt.s32.totalorder %v1954_v17, 16  ;;  %vm4187_vm8 = vcmp.lt.s32.totalorder %v1956_v34, 16 }
 0x182   : > { %v1016_v13 = vadd.f32 %v893_v46, %v3626_v54  ;;  %v1207_v37 = vpop.f32.mrb[76].mxu1  ;;  %v3009_v41 = vpop.f32.mrb[77].mxu0  ;;  %v4101_v54 = vsel %vm4008_vm15, 1.0, %v5722_v38  ;;  %v4106_v46 = vsel %vm4012_vm0, 1.0, %v5722_v38  ;;  %vm4122_vm15 = vcmp.lt.s32.totalorder %v1953_v18, 16  ;;  %vm4137_vm0 = vmand %vm1857_vm2, %vm1823_vm1 }
 0x183   : > { %v3079_v43 = vpop.f32.mrb[77].mxu1  ;;  %v896_v31 = vpop.f32.mrb[78].mxu0  ;;  %v4117_v41 = vsub.s32 %v3909_v30, %v1597_v0  ;;  %v1955_v30 = vsel %vm4069_vm10, %v1921_v27, %v4001_v2  ;;  %v1618_v18 = vshrl.u32 %v4043_v58, 4  ;;  %v1957_v2 = vsel %vm4091_vm14, %v1923_v47, %v4030_v56 }
 0x184   : > { %v1608_v43 = vmul.u32 17, %v1607_v63  ;;  %v4119_v22 = vadd.f32 %v1207_v37, %v1016_v13  ;;  %v1017_v21 = vadd.f32 %v896_v31, %v3628_v59  ;;  %v1210_v53 = vpop.f32.mrb[78].mxu1  ;;  %v3010_v10 = vpop.f32.mrb[79].mxu0  ;;  %vm4168_vm7 = vcmp.lt.s32.totalorder %v1955_v30, 16 }
 0x185   : > { %v3080_v24 = vpop.f32.mrb[79].mxu1  ;;  %vm1824_vm4 = vcmp.ne.s32.totalorder %v4117_v41, 0  ;;  %vm1858_vm5 = vcmp.lt.s32.totalorder %v4117_v41, 0  ;;  %v1959_v56 = vsel %vm4137_vm0, %v1925_v32, %v4053_v44  ;;  %v1926_v6 = vadd.s32 17, %v4117_v41 }
 0x186   : > { %v4143_v24 = vadd.s32 144, %v3702_v48  ;;  %v4145_v0 = vadd.f32 %v1210_v53, %v1017_v21  ;;  %v4159_v58 = vsub.s32 %v3955_v4, %v1608_v43  ;;  %v4162_v53 = vadd.s32 152, %v3702_v48  ;;  %v4179_v4 = vld [vmem:[%s5664_s2] ss:$0 sm:$0xff]  ;;  %vm4203_vm11 = vmand %vm1858_vm5, %vm1824_vm4 }
 0x187   : > { %v1619_v17 = vmul.u32 17, %v1618_v18  ;;  %vm4191_vm9 = vcmp.lt.s32.totalorder %v1957_v2, 16  ;;  %vm4195_vm10 = vcmp.lt.s32.totalorder %v1958_v9, 16  ;;  %v4215_v31 = vadd.f32 %v4179_v4, %v3971_v28 }
 0x188   : > { %v4183_v23 = vmul.u32.u64.low 4042322161, %v4143_v24  ;;  %v4184_v27 = vmul.u32.u64.high 4042322161, %v4143_v24, %v4183_v23  ;;  %vm1825_vm13 = vcmp.ne.s32.totalorder %v4159_v58, 0  ;;  %vm1859_vm14 = vcmp.lt.s32.totalorder %v4159_v58, 0 }
 0x189   : > { %v901_v63 = vpop.f32.mrb[80].mxu0  ;;  %v4210_v62 = vmul.u32.u64.low 4042322161, %v4162_v53  ;;  %v4211_v8 = vmul.u32.u64.high 4042322161, %v4162_v53, %v4210_v62  ;;  %vm4220_vm1 = vcmp.lt.s32.totalorder %v1959_v56, 16  ;;  %v1960_v34 = vsel %vm4203_vm11, %v1926_v6, %v4117_v41  ;;  %vm4252_vm2 = vmand %vm1859_vm14, %vm1825_vm13 }
 0x18a   : > { %v1018_v12 = vadd.f32 %v901_v63, %v3639_v33  ;;  %v1215_v40 = vpop.f32.mrb[80].mxu1  ;;  %v3013_v47 = vpop.f32.mrb[81].mxu0  ;;  %v4228_v2 = vadd.s32 17, %v4159_v58  ;;  %v4231_v28 = vsub.s32 %v4017_v29, %v1619_v17  ;;  %v1630_v9 = vmul.u32 17, %v1629_v52 }
 0x18b   : > { %v3083_v45 = vpop.f32.mrb[81].mxu1  ;;  %v904_v37 = vpop.f32.mrb[82].mxu0  ;;  %v4239_v56 = vadd.f32 %v4179_v4, %v4033_v20  ;;  %v4246_v41 = vsel %vm4122_vm15, 1.0, %v5722_v38  ;;  %v4264_v20 = vsel %vm4168_vm7, 1.0, %v5722_v38  ;;  %v4269_v42 = vsel %vm4187_vm8, 1.0, %v5722_v38 }
 0x18c   : > { %v4217_v39 = vadd.f32 %v1215_v40, %v1018_v12  ;;  %v1019_v43 = vadd.f32 %v904_v37, %v3641_v5  ;;  %v1218_v10 = vpop.f32.mrb[82].mxu1  ;;  %v3014_v30 = vpop.f32.mrb[83].mxu0  ;;  %v4235_v5 = vadd.f32 %v4179_v4, %v3957_v55  ;;  %v4259_v55 = vsel %vm4164_vm6, 1.0, %v5722_v38  ;;  %5770 = vst [vmem:[#allocation21_spill] sm:$0xff] %v4264_v20  ;;  %5771 = vst [vmem:[#allocation22_spill] sm:$0xff] %v4269_v42 }
 0x18d   : > { %v3084_v18 = vpop.f32.mrb[83].mxu1  ;;  %5769 = vst [vmem:[#allocation20_spill] sm:$0xff] %v4259_v55  ;;  %v4274_v6 = vsel %vm4191_vm9, 1.0, %v5722_v38  ;;  %v2151_v21 = vmul.f32 %v3914_v15, %v4215_v31  ;;  %v4281_v17 = vsel %vm4195_vm10, 1.0, %v5722_v38  ;;  %v4286_v1 = vsel %vm4220_vm1, 1.0, %v5722_v38 }
 0x18e   : > { %v4241_v63 = vadd.f32 %v1218_v10, %v1019_v43  ;;  %5772 = vst [vmem:[#allocation23_spill] sm:$0xff] %v4281_v17  ;;  %5773 = vst [vmem:[#allocation24_spill] sm:$0xff] %v4286_v1  ;;  %vm4288_vm3 = vcmp.lt.s32.totalorder %v1960_v34, 16  ;;  %v1961_v12 = vsel %vm4252_vm2, %v4228_v2, %v4159_v58  ;;  %vm1826_vm15 = vcmp.ne.s32.totalorder %v4231_v28, 0 }
 0x18f   : > { %v4298_v40 = vsub.s32 %v4046_v60, %v1630_v9  ;;  %v1640_v47 = vshrl.u32 %v4184_v27, 4  ;;  %v2150_v32 = vmul.f32 %v3904_v51, %v4235_v5  ;;  %v2152_v44 = vmul.f32 %v3995_v26, %v4239_v56 }
 0x190   : > { %v4307_v13 = vadd.f32 %v4179_v4, %v4048_v49  ;;  %vm1860_vm0 = vcmp.lt.s32.totalorder %v4231_v28, 0  ;;  %v4312_v60 = vadd.s32 17, %v4231_v28  ;;  %v1651_v27 = vshrl.u32 %v4211_v8, 4 }
 0x191   : > { %v909_v23 = vpop.f32.mrb[84].mxu0  ;;  %v4316_v43 = vadd.s32 160, %v3702_v48  ;;  %v2186_v10 = vsel %vm2184_vm12, %v2151_v21, 0.0  ;;  %v4321_v49 = vadd.f32 %v4179_v4, %v4119_v22  ;;  %vm1827_vm4 = vcmp.ne.s32.totalorder %v4298_v40, 0  ;;  %vm4340_vm6 = vmand %vm1860_vm0, %vm1826_vm15 }
 0x192   : > { %v1020_v33 = vadd.f32 %v909_v23, %v3652_v57  ;;  %v1223_v58 = vpop.f32.mrb[84].mxu1  ;;  %v3017_v45 = vpop.f32.mrb[85].mxu0  ;;  %vm1861_vm5 = vcmp.lt.s32.totalorder %v4298_v40, 0  ;;  %v1929_v8 = vadd.s32 17, %v4298_v40  ;;  %v4328_v2 = vadd.s32 168, %v3702_v48 }
 0x193   : > { %v3087_v37 = vpop.f32.mrb[85].mxu1  ;;  %v912_v62 = vpop.f32.mrb[86].mxu0  ;;  %v2185_v9 = vsel %vm2184_vm12, %v2150_v32, 0.0  ;;  %v2188_v22 = vsel %vm2184_vm12, %v2152_v44, 0.0  ;;  %v2153_v29 = vmul.f32 %v3998_v36, %v4307_v13  ;;  %v2154_v44 = vmul.f32 %v4006_v14, %v4321_v49  ;;  %vm4361_vm7 = vmand %vm1861_vm5, %vm1827_vm4 }
 0x194   : > { %v1334_v57 = vadd.f32 %v1223_v58, %v1020_v33  ;;  %v1021_v30 = vadd.f32 %v912_v62, %v3654_v16  ;;  %v1226_v59 = vpop.f32.mrb[86].mxu1  ;;  %v3018_v18 = vpop.f32.mrb[87].mxu0  ;;  %v2187_v21 = vadd.f32 %v2186_v10, %v2185_v9  ;;  %v1641_v33 = vmul.u32 17, %v1640_v47 }
 0x195   : > { %v3088_v34 = vpop.f32.mrb[87].mxu1  ;;  %v4345_v58 = vmul.u32.u64.low 4042322161, %v4316_v43  ;;  %v4346_v32 = vmul.u32.u64.high 4042322161, %v4316_v43, %v4345_v58  ;;  %v4352_v45 = vadd.f32 %v4179_v4, %v4145_v0  ;;  %v4357_v37 = vsel %vm4288_vm3, 1.0, %v5722_v38 }
 0x196   : > { %v4334_v16 = vadd.f32 %v1226_v59, %v1021_v30  ;;  %5778 = vst [vmem:[#allocation25_spill] sm:$0xff] %v4357_v37  ;;  %v1652_v62 = vmul.u32 17, %v1651_v27  ;;  %v2189_v10 = vadd.f32 %v2188_v22, %v2187_v21  ;;  %v4370_v0 = vadd.s32 176, %v3702_v48 }
 0x197   : > { %v4366_v59 = vmul.u32.u64.low 4042322161, %v4328_v2  ;;  %v4367_v18 = vmul.u32.u64.high 4042322161, %v4328_v2, %v4366_v59  ;;  %v2190_v52 = vsel %vm2184_vm12, %v2153_v29, 0.0  ;;  %v4375_v34 = vadd.f32 %v4179_v4, %v4217_v39 }
 0x198   : > { %vm4378_vm8 = vcmp.lt.s32.totalorder %v1961_v12, 16  ;;  %v1962_v59 = vsel %vm4340_vm6, %v4312_v60, %v4231_v28  ;;  %v1963_v39 = vsel %vm4361_vm7, %v1929_v8, %v4298_v40  ;;  %v4390_v29 = vsub.s32 %v4143_v24, %v1641_v33 }
 0x199   : > { %v917_v30 = vpop.f32.mrb[88].mxu0  ;;  %v2155_v12 = vmul.f32 %v4101_v54, %v4352_v45  ;;  %v2191_v60 = vadd.f32 %v2190_v52, %v2189_v10  ;;  %v4400_v40 = vsub.s32 %v4162_v53, %v1652_v62  ;;  %v2156_v33 = vmul.f32 %v4106_v46, %v4375_v34 }
 0x19a   : > { %v1022_v9 = vadd.f32 %v917_v30, %v3665_v25  ;;  %v1231_v58 = vpop.f32.mrb[88].mxu1  ;;  %v3021_v14 = vpop.f32.mrb[89].mxu0  ;;  %v4393_v25 = vadd.s32 184, %v3702_v48  ;;  %v4403_v24 = vmul.u32.u64.low 4042322161, %v4370_v0  ;;  %v4404_v8 = vmul.u32.u64.high 4042322161, %v4370_v0, %v4403_v24 }
 0x19b   : > { %v3091_v22 = vpop.f32.mrb[89].mxu1  ;;  %v920_v21 = vpop.f32.mrb[90].mxu0  ;;  %v2192_v14 = vsel %vm2184_vm12, %v2154_v44, 0.0  ;;  %v4410_v44 = vadd.f32 %v4179_v4, %v4241_v63  ;;  %v1662_v53 = vshrl.u32 %v4346_v32, 4  ;;  %v2194_v52 = vsel %vm2184_vm12, %v2155_v12, 0.0 }
 0x19c   : > { %v1336_v30 = vadd.f32 %v1231_v58, %v1022_v9  ;;  %v1023_v22 = vadd.f32 %v920_v21, %v3667_v35  ;;  %v1234_v23 = vpop.f32.mrb[90].mxu1  ;;  %v3022_v28 = vpop.f32.mrb[91].mxu0  ;;  %v4415_v35 = vsel %vm4378_vm8, 1.0, %v5722_v38  ;;  %v4424_v9 = vadd.f32 %v4179_v4, %v1334_v57 }
 0x19d   : > { %v3092_v36 = vpop.f32.mrb[91].mxu1  ;;  %5783 = vst [vmem:[#allocation26_spill] sm:$0xff] %v4415_v35  ;;  %v4419_v62 = vmul.u32.u64.low 4042322161, %v4393_v25  ;;  %v4420_v10 = vmul.u32.u64.high 4042322161, %v4393_v25, %v4419_v62  ;;  %vm4426_vm9 = vcmp.lt.s32.totalorder %v1962_v59, 16  ;;  %vm4430_vm10 = vcmp.lt.s32.totalorder %v1963_v39, 16 }
 0x19e   : > { %v1337_v47 = vadd.f32 %v1234_v23, %v1023_v22  ;;  %v2193_v36 = vadd.f32 %v2192_v14, %v2191_v60  ;;  %vm1828_vm11 = vcmp.ne.s32.totalorder %v4390_v29, 0  ;;  %vm1862_vm13 = vcmp.lt.s32.totalorder %v4390_v29, 0 }
 0x19f   : > { %vm1829_vm14 = vcmp.ne.s32.totalorder %v4400_v40, 0  ;;  %vm1863_vm1 = vcmp.lt.s32.totalorder %v4400_v40, 0  ;;  %v2196_v57 = vsel %vm2184_vm12, %v2156_v33, 0.0  ;;  %v2157_v32 = vmul.f32 %v4246_v41, %v4410_v44  ;;  %vm4456_vm2 = vmand %vm1862_vm13, %vm1828_vm11 }
 0x1a0   : > { %v1673_v14 = vshrl.u32 %v4367_v18, 4  ;;  %v2195_v12 = vadd.f32 %v2194_v52, %v2193_v36  ;;  %v1930_v28 = vadd.s32 17, %v4390_v29  ;;  %v1931_v60 = vadd.s32 17, %v4400_v40  ;;  %vm4469_vm3 = vmand %vm1863_vm1, %vm1829_vm14 }
 0x1a1   : > { %v925_v27 = vpop.f32.mrb[92].mxu0  ;;  %v1663_v24 = vmul.u32 17, %v1662_v53  ;;  %v2158_v33 = vmul.f32 %v4259_v55, %v4424_v9  ;;  %v4449_v62 = vadd.f32 %v4179_v4, %v4334_v16  ;;  %v4463_v16 = vsel %vm4426_vm9, 1.0, %v5722_v38 }
 0x1a2   : > { %v1024_v21 = vadd.f32 %v925_v27, %v3680_v50  ;;  %v1239_v59 = vpop.f32.mrb[92].mxu1  ;;  %v3025_v39 = vpop.f32.mrb[93].mxu0  ;;  %v2197_v53 = vadd.f32 %v2196_v57, %v2195_v12  ;;  %5790 = vst [vmem:[#allocation27_spill] sm:$0xff] %v4463_v16  ;;  %v2198_v57 = vsel %vm2184_vm12, %v2157_v32, 0.0  ;;  %v4479_v12 = vadd.f32 %v4179_v4, %v1336_v30 }
 0x1a3   : > { %v3095_v22 = vpop.f32.mrb[93].mxu1  ;;  %v928_v23 = vpop.f32.mrb[94].mxu0  ;;  %v2200_v32 = vsel %vm2184_vm12, %v2158_v33, 0.0  ;;  %v2159_v30 = vmul.f32 %v4264_v20, %v4449_v62  ;;  %v1965_v58 = vsel %vm4469_vm3, %v1931_v60, %v4400_v40  ;;  %v4509_v36 = vadd.f32 %v4179_v4, %v1337_v47 }
 0x1a4   : > { %v1338_v50 = vadd.f32 %v1239_v59, %v1024_v21  ;;  %v1025_v27 = vadd.f32 %v928_v23, %v3682_v19  ;;  %v1242_v39 = vpop.f32.mrb[94].mxu1  ;;  %v3026_v18 = vpop.f32.mrb[95].mxu0  ;;  %v1684_v21 = vshrl.u32 %v4404_v8, 4  ;;  %v4475_v59 = vadd.s32 192, %v3702_v48 }
 0x1a5   : > { %v3096_v52 = vpop.f32.mrb[95].mxu1  ;;  %v1674_v22 = vmul.u32 17, %v1673_v14  ;;  %v4484_v23 = vsel %vm4430_vm10, 1.0, %v5722_v38  ;;  %v1964_v18 = vsel %vm4456_vm2, %v1930_v28, %v4390_v29  ;;  %v1695_v8 = vshrl.u32 %v4420_v10, 4 }
 0x1a6   : > { %v1339_v63 = vadd.f32 %v1242_v39, %v1025_v27  ;;  %5793 = vst [vmem:[#allocation28_spill] sm:$0xff] %v4484_v23  ;;  %v4491_v52 = vadd.s32 200, %v3702_v48  ;;  %v4500_v14 = vsub.s32 %v4316_v43, %v1663_v24  ;;  %v2199_v27 = vadd.f32 %v2198_v57, %v2197_v53 }
 0x1a7   : > { %v1685_v29 = vmul.u32 17, %v1684_v21  ;;  %v4503_v10 = vmul.u32.u64.low 4042322161, %v4475_v59  ;;  %v4504_v28 = vmul.u32.u64.high 4042322161, %v4475_v59, %v4503_v10  ;;  %v2160_v33 = vmul.f32 %v4269_v42, %v4479_v12 }
 0x1a8   : > { %v4513_v43 = vsub.s32 %v4328_v2, %v1674_v22  ;;  %v2201_v60 = vadd.f32 %v2200_v32, %v2199_v27  ;;  %v1696_v21 = vmul.u32 17, %v1695_v8  ;;  %v2202_v42 = vsel %vm2184_vm12, %v2159_v30, 0.0 }
 0x1a9   : > { %v933_v39 = vpop.f32.mrb[96].mxu0  ;;  %v4516_v57 = vmul.u32.u64.low 4042322161, %v4491_v52  ;;  %v4517_v10 = vmul.u32.u64.high 4042322161, %v4491_v52, %v4516_v57  ;;  %v4521_v47 = vadd.f32 %v4179_v4, %v1338_v50  ;;  %vm4524_vm15 = vcmp.lt.s32.totalorder %v1964_v18, 16 }
 0x1aa   : > { %v1026_v20 = vadd.f32 %v933_v39, %v3686_v61  ;;  %v1247_v19 = vpop.f32.mrb[96].mxu1  ;;  %v3029_v40 = vpop.f32.mrb[97].mxu0  ;;  %vm4528_vm0 = vcmp.lt.s32.totalorder %v1965_v58, 16  ;;  %vm1830_vm4 = vcmp.ne.s32.totalorder %v4500_v14, 0  ;;  %v4534_v32 = vsub.s32 %v4370_v0, %v1685_v29 }
 0x1ab   : > { %v3099_v24 = vpop.f32.mrb[97].mxu1  ;;  %v936_v53 = vpop.f32.mrb[98].mxu0  ;;  %vm1864_vm5 = vcmp.lt.s32.totalorder %v4500_v14, 0  ;;  %v2203_v18 = vadd.f32 %v2202_v42, %v2201_v60  ;;  %v1932_v30 = vadd.s32 17, %v4500_v14  ;;  %v4542_v58 = vsub.s32 %v4393_v25, %v1696_v21 }
 0x1ac   : > { %v1340_v55 = vadd.f32 %v1247_v19, %v1026_v20  ;;  %v1027_v61 = vadd.f32 %v936_v53, %v3688_v3  ;;  %v1250_v39 = vpop.f32.mrb[98].mxu1  ;;  %v3030_v40 = vpop.f32.mrb[99].mxu0  ;;  %v2204_v20 = vsel %vm2184_vm12, %v2160_v33, 0.0  ;;  %v2161_v3 = vmul.f32 %v4274_v6, %v4509_v36  ;;  %vm4569_vm10 = vmand %vm1864_vm5, %vm1830_vm4 }
 0x1ad   : > { %v3100_v2 = vpop.f32.mrb[99].mxu1  ;;  %v4545_v27 = vadd.s32 208, %v3702_v48  ;;  %v2162_v0 = vmul.f32 %v4281_v17, %v4521_v47  ;;  %v4550_v29 = vadd.f32 %v4179_v4, %v1339_v63  ;;  %vm1831_vm6 = vcmp.ne.s32.totalorder %v4513_v43, 0 }
 0x1ae   : > { %v1341_v50 = vadd.f32 %v1250_v39, %v1027_v61  ;;  %vm1865_vm7 = vcmp.lt.s32.totalorder %v4513_v43, 0  ;;  %v2205_v33 = vadd.f32 %v2204_v20, %v2203_v18  ;;  %v4555_v19 = vadd.s32 17, %v4513_v43 }
 0x1af   : > { %vm1832_vm8 = vcmp.ne.s32.totalorder %v4534_v32, 0  ;;  %v1706_v25 = vshrl.u32 %v4504_v28, 4  ;;  %v2206_v60 = vsel %vm2184_vm12, %v2161_v3, 0.0  ;;  %v4561_v24 = vadd.f32 %v4179_v4, %v1340_v55  ;;  %vm4599_vm14 = vmand %vm1865_vm7, %vm1831_vm6 }
 0x1b0   : > { %vm1866_vm9 = vcmp.lt.s32.totalorder %v4534_v32, 0  ;;  %vm1833_vm11 = vcmp.ne.s32.totalorder %v4542_v58, 0  ;;  %v1717_v55 = vshrl.u32 %v4517_v10, 4  ;;  %v2208_v40 = vsel %vm2184_vm12, %v2162_v0, 0.0 }
 0x1b1   : > { %v941_v42 = vpop.f32.mrb[100].mxu0  ;;  %5798 = vst [vmem:[#allocation29_spill] sm:$0xff] %v4561_v24  ;;  %v2163_v2 = vmul.f32 %v4286_v1, %v4550_v29  ;;  %vm1867_vm13 = vcmp.lt.s32.totalorder %v4542_v58, 0  ;;  %v1707_v17 = vmul.u32 17, %v1706_v25  ;;  %v4585_v10 = vadd.s32 216, %v3702_v48  ;;  %vm4607_vm1 = vmand %vm1866_vm9, %vm1832_vm8 }
 0x1b2   : > { %v1028_v63 = vadd.f32 %v941_v42, %v3690_v7  ;;  %v1255_v53 = vpop.f32.mrb[100].mxu1  ;;  %v3033_v21 = vpop.f32.mrb[101].mxu0  ;;  %v4576_v7 = vmul.u32.u64.low 4042322161, %v4545_v27  ;;  %v4577_v28 = vmul.u32.u64.high 4042322161, %v4545_v27, %v4576_v7  ;;  %v4590_v0 = vadd.f32 %v4179_v4, %v1341_v50  ;;  %vm4631_vm2 = vmand %vm1867_vm13, %vm1833_vm11 }
 0x1b3   : > { %v3103_v57 = vpop.f32.mrb[101].mxu1  ;;  %v944_v61 = vpop.f32.mrb[102].mxu0  ;;  %v2207_v21 = vadd.f32 %v2206_v60, %v2205_v33  ;;  %v2164_v7 = vmul.f32 %v4357_v37, %v4561_v24  ;;  %v1934_v60 = vadd.s32 17, %v4534_v32  ;;  %v4625_v39 = vsel %vm4528_vm0, 1.0, %v5722_v38 }
 0x1b4   : > { %v1342_v20 = vadd.f32 %v1255_v53, %v1028_v63  ;;  %v1029_v3 = vadd.f32 %v944_v61, %v3692_v11  ;;  %v1258_v18 = vpop.f32.mrb[102].mxu1  ;;  %v3034_v42 = vpop.f32.mrb[103].mxu0  ;;  %v1966_v11 = vsel %vm4569_vm10, %v1932_v30, %v4500_v14  ;;  %v1935_v14 = vadd.s32 17, %v4542_v58  ;;  %5806 = vst [vmem:[#allocation31_spill] sm:$0xff] %v4625_v39 }
 0x1b5   : > { %v3104_v57 = vpop.f32.mrb[103].mxu1  ;;  %v2209_v25 = vadd.f32 %v2208_v40, %v2207_v21  ;;  %v1718_v30 = vmul.u32 17, %v1717_v55  ;;  %v2210_v63 = vsel %vm2184_vm12, %v2163_v2, 0.0  ;;  %v4620_v61 = vsel %vm4524_vm15, 1.0, %v5722_v38  ;;  %v5811_v42 = vld [vmem:[#allocation2_spill] sm:$0xff] }
 0x1b6   : > { %v1343_v1 = vadd.f32 %v1258_v18, %v1029_v3  ;;  %v4615_v53 = vadd.f32 %v4179_v4, %v1342_v20  ;;  %5805 = vst [vmem:[#allocation30_spill] sm:$0xff] %v4620_v61  ;;  %vm4635_vm3 = vcmp.lt.s32.totalorder %v1966_v11, 16  ;;  %v4640_v22 = vsub.s32 %v4475_v59, %v1707_v17 }
 0x1b7   : > { %v4643_v8 = vmul.u32.u64.low 4042322161, %v4585_v10  ;;  %v4644_v20 = vmul.u32.u64.high 4042322161, %v4585_v10, %v4643_v8  ;;  %v2212_v3 = vsel %vm2184_vm12, %v2164_v7, 0.0  ;;  %v2165_v18 = vmul.f32 %v4415_v35, %v4590_v0 }
 0x1b8   : > { %v1967_v11 = vsel %vm4599_vm14, %v4555_v19, %v4513_v43  ;;  %v2211_v17 = vadd.f32 %v2210_v63, %v2209_v25  ;;  %v1968_v8 = vsel %vm4607_vm1, %v1934_v60, %v4534_v32  ;;  %v1969_v7 = vsel %vm4631_vm2, %v1935_v14, %v4542_v58  ;;  %v5812_v19 = vld [vmem:[#allocation3_spill] sm:$0xff] }
 0x1b9   : > { %v949_v40 = vpop.f32.mrb[104].mxu0  ;;  %v4666_v33 = vadd.f32 %v4179_v4, %v1343_v1  ;;  %v4672_v58 = vsel %vm4635_vm3, 1.0, %v5722_v38  ;;  %vm1834_vm15 = vcmp.ne.s32.totalorder %v4640_v22, 0  ;;  %v2214_v60 = vsel %vm2184_vm12, %v2165_v18, 0.0 }
 0x1ba   : > { %v1030_v21 = vadd.f32 %v949_v40, %v5811_v42  ;;  %v1263_v57 = vpop.f32.mrb[104].mxu1  ;;  %v3037_v37 = vpop.f32.mrb[105].mxu0  ;;  %v4661_v40 = vsub.s32 %v4491_v52, %v1718_v30  ;;  %v2213_v50 = vadd.f32 %v2212_v3, %v2211_v17  ;;  %5813 = vst [vmem:[#allocation2_spill] sm:$0xff] %v4672_v58  ;;  %v1728_v52 = vshrl.u32 %v4577_v28, 4 }
 0x1bb   : > { %v3107_v59 = vpop.f32.mrb[105].mxu1  ;;  %v952_v24 = vpop.f32.mrb[106].mxu0  ;;  %v2166_v37 = vmul.f32 %v4463_v16, %v4615_v53  ;;  %vm1868_vm0 = vcmp.lt.s32.totalorder %v4640_v22, 0  ;;  %vm4681_vm4 = vcmp.lt.s32.totalorder %v1967_v11, 16  ;;  %vm4685_vm5 = vcmp.lt.s32.totalorder %v1968_v8, 16 }
 0x1bc   : > { %v1344_v43 = vadd.f32 %v1263_v57, %v1030_v21  ;;  %v1031_v25 = vadd.f32 %v952_v24, %v5812_v19  ;;  %v1266_v63 = vpop.f32.mrb[106].mxu1  ;;  %v3038_v42 = vpop.f32.mrb[107].mxu0  ;;  %vm4689_vm6 = vcmp.lt.s32.totalorder %v1969_v7, 16  ;;  %v4694_v28 = vadd.s32 224, %v3702_v48  ;;  %vm4703_vm8 = vmand %vm1868_vm0, %vm1834_vm15 }
 0x1bd   : > { %v3108_v32 = vpop.f32.mrb[107].mxu1  ;;  %v2216_v2 = vsel %vm2184_vm12, %v2166_v37, 0.0  ;;  %v2167_v3 = vmul.f32 %v4484_v23, %v4666_v33  ;;  %v1936_v18 = vadd.s32 17, %v4640_v22  ;;  %vm1835_vm7 = vcmp.ne.s32.totalorder %v4661_v40, 0  ;;  %v5824_v23 = vld [vmem:[#allocation5_spill] sm:$0xff] }
 0x1be   : > { %v4678_v1 = vadd.f32 %v4179_v4, %v1344_v43  ;;  %v1345_v14 = vadd.f32 %v1266_v63, %v1031_v25  ;;  %v2215_v21 = vadd.f32 %v2214_v60, %v2213_v50  ;;  %v1729_v17 = vmul.u32 17, %v1728_v52  ;;  %v5823_v43 = vld [vmem:[#allocation4_spill] sm:$0xff] }
 0x1bf   : > { %v1739_v59 = vshrl.u32 %v4644_v20, 4  ;;  %v4709_v8 = vadd.s32 232, %v3702_v48  ;;  %vm1869_vm9 = vcmp.lt.s32.totalorder %v4661_v40, 0  ;;  %v4719_v20 = vadd.s32 17, %v4661_v40 }
 0x1c0   : > { %5814 = vst [vmem:[#allocation3_spill] sm:$0xff] %v4678_v1  ;;  %v2168_v7 = vmul.f32 %v4620_v61, %v4678_v1  ;;  %v4714_v37 = vadd.f32 %v4179_v4, %v1345_v14  ;;  %v2217_v42 = vadd.f32 %v2216_v2, %v2215_v21  ;;  %v2218_v61 = vsel %vm2184_vm12, %v2167_v3, 0.0  ;;  %vm4747_vm10 = vmand %vm1869_vm9, %vm1835_vm7 }
 0x1c1   : > { %v957_v57 = vpop.f32.mrb[108].mxu0  ;;  %v4722_v52 = vmul.u32.u64.low 4042322161, %v4694_v28  ;;  %v4723_v60 = vmul.u32.u64.high 4042322161, %v4694_v28, %v4722_v52  ;;  %v1970_v2 = vsel %vm4703_vm8, %v1936_v18, %v4640_v22  ;;  %v1971_v24 = vsel %vm4747_vm10, %v4719_v20, %v4661_v40 }
 0x1c2   : > { %v1032_v19 = vadd.f32 %v957_v57, %v5823_v43  ;;  %v1271_v25 = vpop.f32.mrb[108].mxu1  ;;  %v3041_v63 = vpop.f32.mrb[109].mxu0  ;;  %v4734_v1 = vmul.u32.u64.low 4042322161, %v4709_v8  ;;  %v4735_v35 = vmul.u32.u64.high 4042322161, %v4709_v8, %v4734_v1  ;;  %v2220_v3 = vsel %vm2184_vm12, %v2168_v7, 0.0 }
 0x1c3   : > { %v3111_v50 = vpop.f32.mrb[109].mxu1  ;;  %v960_v32 = vpop.f32.mrb[110].mxu0  ;;  %v4731_v63 = vsub.s32 %v4545_v27, %v1729_v17  ;;  %v2219_v22 = vadd.f32 %v2218_v61, %v2217_v42  ;;  %v4752_v1 = vadd.s32 240, %v3702_v48  ;;  %v4767_v17 = vsel %vm4685_vm5, 1.0, %v5722_v38 }
 0x1c4   : > { %v1346_v14 = vadd.f32 %v1271_v25, %v1032_v19  ;;  %v1033_v16 = vadd.f32 %v960_v32, %v5824_v23  ;;  %v1274_v57 = vpop.f32.mrb[110].mxu1  ;;  %v3042_v43 = vpop.f32.mrb[111].mxu0  ;;  %v1740_v50 = vmul.u32 17, %v1739_v59  ;;  %v2169_v23 = vmul.f32 %v4625_v39, %v4714_v37  ;;  %5830 = vst [vmem:[#allocation33_spill] sm:$0xff] %v4767_v17  ;;  %v5834_v32 = vld [vmem:[#allocation6_spill] sm:$0xff] }
 0x1c5   : > { %v3112_v21 = vpop.f32.mrb[111].mxu1  ;;  %v2221_v61 = vadd.f32 %v2220_v3, %v2219_v22  ;;  %v4772_v7 = vsel %vm4689_vm6, 1.0, %v5722_v38  ;;  %vm4774_vm11 = vcmp.lt.s32.totalorder %v1970_v2, 16  ;;  %vm1836_vm13 = vcmp.ne.s32.totalorder %v4731_v63, 0  ;;  %v5835_v22 = vld [vmem:[#allocation7_spill] sm:$0xff] }
 0x1c6   : > { %v4741_v19 = vadd.f32 %v4179_v4, %v1346_v14  ;;  %v1347_v25 = vadd.f32 %v1274_v57, %v1033_v16  ;;  %v4762_v16 = vsel %vm4681_vm4, 1.0, %v5722_v38  ;;  %5831 = vst [vmem:[#allocation34_spill] sm:$0xff] %v4772_v7  ;;  %v2222_v30 = vsel %vm2184_vm12, %v2169_v23, 0.0 }
 0x1c7   : > { %5829 = vst [vmem:[#allocation32_spill] sm:$0xff] %v4762_v16  ;;  %v4786_v55 = vsub.s32 %v4585_v10, %v1740_v50  ;;  %v1750_v21 = vshrl.u32 %v4723_v60, 4  ;;  %v4794_v40 = vadd.s32 248, %v3702_v48  ;;  %vm1870_vm14 = vcmp.lt.s32.totalorder %v4731_v63, 0 }
 0x1c8   : > { %5825 = vst [vmem:[#allocation4_spill] sm:$0xff] %v4741_v19  ;;  %v2170_v18 = vmul.f32 %v4672_v58, %v4741_v19  ;;  %v4757_v11 = vadd.f32 %v4179_v4, %v1347_v25  ;;  %v4790_v3 = vmul.u32.u64.low 4042322161, %v4752_v1  ;;  %v4791_v25 = vmul.u32.u64.high 4042322161, %v4752_v1, %v4790_v3  ;;  %vm4820_vm3 = vmand %vm1870_vm14, %vm1836_vm13 }
 0x1c9   : > { %v965_v59 = vpop.f32.mrb[112].mxu0  ;;  %v1938_v60 = vadd.s32 17, %v4731_v63  ;;  %vm1837_vm1 = vcmp.ne.s32.totalorder %v4786_v55, 0  ;;  %vm1871_vm2 = vcmp.lt.s32.totalorder %v4786_v55, 0  ;;  %vm4832_vm15 = vcmp.lt.s32.totalorder %v1971_v24, 16 }
 0x1ca   : > { %5828 = vst [vmem:[#allocation5_spill] sm:$0xff] %v4757_v11  ;;  %v1034_v52 = vadd.f32 %v965_v59, %v5834_v32  ;;  %v1279_v14 = vpop.f32.mrb[112].mxu1  ;;  %v3045_v57 = vpop.f32.mrb[113].mxu0  ;;  %v2224_v20 = vsel %vm2184_vm12, %v2170_v18, 0.0  ;;  %v2171_v23 = vmul.f32 %v4762_v16, %v4757_v11  ;;  %v2223_v32 = vadd.f32 %v2222_v30, %v2221_v61  ;;  %vm4851_vm0 = vmand %vm1871_vm2, %vm1837_vm1 }
 0x1cb   : > { %v3115_v43 = vpop.f32.mrb[113].mxu1  ;;  %v968_v2 = vpop.f32.mrb[114].mxu0  ;;  %v1939_v42 = vadd.s32 17, %v4786_v55 }
 0x1cc   : > { %v1348_v27 = vadd.f32 %v1279_v14, %v1034_v52  ;;  %v1035_v10 = vadd.f32 %v968_v2, %v5835_v22  ;;  %v1282_v50 = vpop.f32.mrb[114].mxu1  ;;  %v3046_v59 = vpop.f32.mrb[115].mxu0  ;;  %v1761_v43 = vshrl.u32 %v4735_v35, 4  ;;  %v2225_v52 = vadd.f32 %v2224_v20, %v2223_v32 }
 0x1cd   : > { %v3116_v57 = vpop.f32.mrb[115].mxu1  ;;  %v1751_v14 = vmul.u32 17, %v1750_v21  ;;  %v4809_v2 = vmul.u32.u64.low 4042322161, %v4794_v40  ;;  %v4810_v61 = vmul.u32.u64.high 4042322161, %v4794_v40, %v4809_v2  ;;  %v2226_v30 = vsel %vm2184_vm12, %v2171_v23, 0.0 }
 0x1ce   : > { %v4804_v3 = vadd.f32 %v4179_v4, %v1348_v27  ;;  %v1349_v18 = vadd.f32 %v1282_v50, %v1035_v10  ;;  %v4825_v21 = vadd.s32 264, %v3702_v48  ;;  %v4830_v23 = vsel %vm4774_vm11, 1.0, %v5722_v38 }
 0x1cf   : > { %5839 = vst [vmem:[#allocation7_spill] sm:$0xff] %v4830_v23  ;;  %v1762_v50 = vmul.u32 17, %v1761_v43  ;;  %v4837_v59 = vadd.s32 256, %v3702_v48  ;;  %v2227_v58 = vadd.f32 %v2226_v30, %v2225_v52  ;;  %v1972_v43 = vsel %vm4820_vm3, %v1938_v60, %v4731_v63  ;;  %v5845_v30 = vld [vmem:[#allocation9_spill] sm:$0xff] }
 0x1d0   : > { %5836 = vst [vmem:[#allocation6_spill] sm:$0xff] %v4804_v3  ;;  %v2172_v22 = vmul.f32 %v4767_v17, %v4804_v3  ;;  %v4816_v35 = vadd.f32 %v4179_v4, %v1349_v18  ;;  %v5842_v18 = vld [vmem:[#allocation8_spill] sm:$0xff]  ;;  %v4861_v63 = vmul.u32.u64.low 4042322161, %v4825_v21  ;;  %v4862_v60 = vmul.u32.u64.high 4042322161, %v4825_v21, %v4861_v63 }
 0x1d1   : > { %v973_v20 = vpop.f32.mrb[116].mxu0  ;;  %v4865_v39 = vsub.s32 %v4709_v8, %v1762_v50  ;;  %vm4883_vm4 = vcmp.lt.s32.totalorder %v1972_v43, 16 }
 0x1d2   : > { %v2228_v32 = vsel %vm2184_vm12, %v2172_v22, 0.0  ;;  %v2173_v57 = vmul.f32 %v4772_v7, %v4816_v35  ;;  %v1036_v2 = vadd.f32 %v973_v20, %v5842_v18  ;;  %v1287_v17 = vpop.f32.mrb[116].mxu1  ;;  %v3049_v16 = vpop.f32.mrb[117].mxu0  ;;  %v4856_v22 = vsub.s32 %v4694_v28, %v1751_v14 }
 0x1d3   : > { %v3119_v24 = vpop.f32.mrb[117].mxu1  ;;  %v976_v3 = vpop.f32.mrb[118].mxu0  ;;  %v1772_v16 = vshrl.u32 %v4791_v25, 4  ;;  %v2229_v27 = vadd.f32 %v2228_v32, %v2227_v58  ;;  %v4868_v11 = vmul.u32.u64.low 4042322161, %v4837_v59  ;;  %v4869_v28 = vmul.u32.u64.high 4042322161, %v4837_v59, %v4868_v11 }
 0x1d4   : > { %v1350_v52 = vadd.f32 %v1287_v17, %v1036_v2  ;;  %v1037_v20 = vadd.f32 %v976_v3, %v5845_v30  ;;  %v1290_v18 = vpop.f32.mrb[118].mxu1  ;;  %v3050_v24 = vpop.f32.mrb[119].mxu0  ;;  %v2230_v25 = vsel %vm2184_vm12, %v2173_v57, 0.0  ;;  %v1973_v14 = vsel %vm4851_vm0, %v1939_v42, %v4786_v55  ;;  %v5851_v42 = vld [vmem:[#allocation10_spill] sm:$0xff] }
 0x1d5   : > { %v3120_v7 = vpop.f32.mrb[119].mxu1  ;;  %v4881_v58 = vsel %vm4832_vm15, 1.0, %v5722_v38  ;;  %v1773_v11 = vmul.u32 17, %v1772_v16  ;;  %vm1838_vm5 = vcmp.ne.s32.totalorder %v4856_v22, 0  ;;  %vm1872_vm6 = vcmp.lt.s32.totalorder %v4856_v22, 0 }
 0x1d6   : > { %v4873_v17 = vadd.f32 %v4179_v4, %v1350_v52  ;;  %v1351_v3 = vadd.f32 %v1290_v18, %v1037_v20  ;;  %5846 = vst [vmem:[#allocation8_spill] sm:$0xff] %v4881_v58  ;;  %v1783_v7 = vshrl.u32 %v4810_v61, 4  ;;  %v2231_v55 = vadd.f32 %v2230_v25, %v2229_v27  ;;  %vm4910_vm10 = vmand %vm1872_vm6, %vm1838_vm5 }
 0x1d7   : > { %vm4895_vm7 = vcmp.lt.s32.totalorder %v1973_v14, 16  ;;  %vm1839_vm8 = vcmp.ne.s32.totalorder %v4865_v39, 0  ;;  %vm1873_vm9 = vcmp.lt.s32.totalorder %v4865_v39, 0  ;;  %v1940_v52 = vadd.s32 17, %v4856_v22 }
 0x1d8   : > { %v2174_v50 = vmul.f32 %v4830_v23, %v4873_v17  ;;  %v4891_v32 = vadd.f32 %v4179_v4, %v1351_v3  ;;  %v1941_v63 = vadd.s32 17, %v4865_v39  ;;  %v1774_v27 = vsub.s32 %v4752_v1, %v1773_v11  ;;  %vm4922_vm11 = vmand %vm1873_vm9, %vm1839_vm8 }
 0x1d9   : > { %v981_v10 = vpop.f32.mrb[120].mxu0  ;;  %v1784_v25 = vmul.u32 17, %v1783_v7  ;;  %v4930_v1 = vsel %vm4883_vm4, 1.0, %v5722_v38  ;;  %v1794_v7 = vshrl.u32 %v4869_v28, 4 }
 0x1da   : > { %v2232_v61 = vsel %vm2184_vm12, %v2174_v50, 0.0  ;;  %v2175_v2 = vmul.f32 %v4881_v58, %v4891_v32  ;;  %v1038_v43 = vadd.f32 %v981_v10, %v5851_v42  ;;  %v1295_v48 = vpop.f32.mrb[120].mxu1  ;;  %v3053_v16 = vpop.f32.mrb[121].mxu0  ;;  %v5854_v50 = vld [vmem:[#allocation11_spill] sm:$0xff]  ;;  %v1975_v8 = vsel %vm4922_vm11, %v1941_v63, %v4865_v39  ;;  %v5869_v42 = vld [vmem:[#allocation14_spill] sm:$0xff] }
 0x1db   : > { %v2233_v30 = vadd.f32 %v2232_v61, %v2231_v55  ;;  %v3123_v20 = vpop.f32.mrb[121].mxu1  ;;  %v984_v18 = vpop.f32.mrb[122].mxu0  ;;  %v1805_v16 = vshrl.u32 %v4862_v60, 4  ;;  %v4942_v60 = vsel %vm4895_vm7, 1.0, %v5722_v38  ;;  %vm1840_vm13 = vcmp.ne.s32.totalorder %v1774_v27, 0 }
 0x1dc   : > { %v2234_v3 = vsel %vm2184_vm12, %v2175_v2, 0.0  ;;  %v1352_v14 = vadd.f32 %v1295_v48, %v1038_v43  ;;  %v1039_v55 = vadd.f32 %v984_v18, %v5854_v50  ;;  %v1298_v10 = vpop.f32.mrb[122].mxu1  ;;  %v3054_v61 = vpop.f32.mrb[123].mxu0  ;;  %v1974_v48 = vsel %vm4910_vm10, %v1940_v52, %v4856_v22 }
 0x1dd   : > { %v2235_v20 = vadd.f32 %v2234_v3, %v2233_v30  ;;  %v3124_v11 = vpop.f32.mrb[123].mxu1  ;;  %v1785_v28 = vsub.s32 %v4794_v40, %v1784_v25  ;;  %vm1874_vm14 = vcmp.lt.s32.totalorder %v1774_v27, 0  ;;  %v1806_v22 = vmul.u32 17, %v1805_v16  ;;  %v5859_v40 = vld [vmem:[#allocation12_spill] sm:$0xff] }
 0x1de   : > { %v4934_v2 = vadd.f32 %v4179_v4, %v1352_v14  ;;  %v1353_v43 = vadd.f32 %v1298_v10, %v1039_v55  ;;  %vm4953_vm1 = vcmp.lt.s32.totalorder %v1974_v48, 16  ;;  %v1795_v24 = vmul.u32 17, %v1794_v7  ;;  %vm4967_vm3 = vmand %vm1874_vm14, %vm1840_vm13 }
 0x1df   : > { %v1942_v50 = vadd.s32 17, %v1774_v27  ;;  %vm4961_vm2 = vcmp.lt.s32.totalorder %v1975_v8, 16  ;;  %vm1841_vm15 = vcmp.ne.s32.totalorder %v1785_v28, 0  ;;  %vm1875_vm0 = vcmp.lt.s32.totalorder %v1785_v28, 0 }
 0x1e0   : > { %v2176_v30 = vmul.f32 %v4930_v1, %v4934_v2  ;;  %v4951_v18 = vadd.f32 %v4179_v4, %v1353_v43  ;;  %v5864_v43 = vld [vmem:[#allocation13_spill] sm:$0xff]  ;;  %v1807_v8 = vsub.s32 %v4825_v21, %v1806_v22  ;;  %vm4987_vm4 = vmand %vm1875_vm0, %vm1841_vm15  ;;  %v4994_v57 = vsel %vm4961_vm2, 1.0, %v5722_v38 }
 0x1e1   : > { %v989_v52 = vpop.f32.mrb[124].mxu0 }
 0x1e2   : > { %v2236_v3 = vsel %vm2184_vm12, %v2176_v30, 0.0  ;;  %v2177_v39 = vmul.f32 %v4942_v60, %v4951_v18  ;;  %v1040_v63 = vadd.f32 %v989_v52, %v5859_v40  ;;  %v1303_v25 = vpop.f32.mrb[124].mxu1  ;;  %v3057_v14 = vpop.f32.mrb[125].mxu0  ;;  %vm1843_vm5 = vcmp.ne.s32.totalorder %v1807_v8, 0 }
 0x1e3   : > { %v2237_v55 = vadd.f32 %v2236_v3, %v2235_v20  ;;  %v3127_v10 = vpop.f32.mrb[125].mxu1  ;;  %v992_v61 = vpop.f32.mrb[126].mxu0  ;;  %v4977_v3 = vsel %vm4953_vm1, 1.0, %v5722_v38  ;;  %v1943_v14 = vadd.s32 17, %v1785_v28  ;;  %vm1877_vm6 = vcmp.lt.s32.totalorder %v1807_v8, 0 }
 0x1e4   : > { %v2238_v11 = vsel %vm2184_vm12, %v2177_v39, 0.0  ;;  %v1354_v7 = vadd.f32 %v1303_v25, %v1040_v63  ;;  %v1041_v48 = vadd.f32 %v992_v61, %v5864_v43  ;;  %v1306_v20 = vpop.f32.mrb[126].mxu1  ;;  %v3058_v30 = vpop.f32.mrb[127].mxu0  ;;  %v1796_v10 = vsub.s32 %v4837_v59, %v1795_v24  ;;  %vm5013_vm10 = vmand %vm1877_vm6, %vm1843_vm5 }
 0x1e5   : > { %v2239_v52 = vadd.f32 %v2238_v11, %v2237_v55  ;;  %v3128_v40 = vpop.f32.mrb[127].mxu1  ;;  %v1976_v63 = vsel %vm4967_vm3, %v1942_v50, %v1774_v27  ;;  %v1977_v50 = vsel %vm4987_vm4, %v1943_v14, %v1785_v28  ;;  %vm2047_vm1 = vcmp.lt.s32.totalorder %v4825_v21, 271  ;;  %v5877_v28 = vld [vmem:[#allocation16_spill] sm:$0xff] }
 0x1e6   : > { %v4981_v58 = vadd.f32 %v4179_v4, %v1354_v7  ;;  %v1355_v39 = vadd.f32 %v1306_v20, %v1041_v48  ;;  %vm5001_vm7 = vcmp.lt.s32.totalorder %v1976_v63, 16  ;;  %vm1842_vm8 = vcmp.ne.s32.totalorder %v1796_v10, 0 }
 0x1e7   : > { %vm1876_vm9 = vcmp.lt.s32.totalorder %v1796_v10, 0  ;;  %v1945_v7 = vadd.s32 17, %v1807_v8  ;;  %v1944_v30 = vadd.s32 17, %v1796_v10  ;;  %vm2011_vm11 = vcmp.lt.s32.totalorder %v1977_v50, 16 }
 0x1e8   : > { %v2178_v59 = vmul.f32 %v4977_v3, %v4981_v58  ;;  %v4999_v24 = vadd.f32 %v4179_v4, %v1355_v39  ;;  %v5872_v39 = vld [vmem:[#allocation15_spill] sm:$0xff]  ;;  %vm5021_vm13 = vmand %vm1876_vm9, %vm1842_vm8 }
 0x1e9   : > { %v997_v27 = vpop.f32.mrb[128].mxu0 }
 0x1ea   : > { %v2240_v55 = vsel %vm2184_vm12, %v2178_v59, 0.0  ;;  %v2179_v61 = vmul.f32 %v4994_v57, %v4999_v24  ;;  %v1042_v4 = vadd.f32 %v997_v27, %v5869_v42  ;;  %v1311_v16 = vpop.f32.mrb[128].mxu1  ;;  %v3061_v11 = vpop.f32.mrb[129].mxu0 }
 0x1eb   : > { %v2241_v43 = vadd.f32 %v2240_v55, %v2239_v52  ;;  %v3131_v48 = vpop.f32.mrb[129].mxu1  ;;  %v1000_v20 = vpop.f32.mrb[130].mxu0  ;;  %v5028_v55 = vsel %vm5001_vm7, 1.0, %v5722_v38  ;;  %v2780_v11 = vsel %vm2011_vm11, 1.0, %v5722_v38 }
 0x1ec   : > { %v2242_v40 = vsel %vm2184_vm12, %v2179_v61, 0.0  ;;  %v1356_v14 = vadd.f32 %v1311_v16, %v1042_v4  ;;  %v1043_v63 = vadd.f32 %v1000_v20, %v5872_v39  ;;  %v1314_v22 = vpop.f32.mrb[130].mxu1  ;;  %v3062_v59 = vpop.f32.mrb[131].mxu0  ;;  %v3223_v61 = vld [vmem:[%s5664_s2] ss:$0 sm:$0xff]  ;;  %v1979_v16 = vsel %vm5013_vm10, %v1945_v7, %v1807_v8 }
 0x1ed   : > { %v2243_v27 = vadd.f32 %v2242_v40, %v2241_v43  ;;  %v3132_v42 = vpop.f32.mrb[131].mxu1  ;;  %v1978_v43 = vsel %vm5021_vm13, %v1944_v30, %v1796_v10  ;;  %vm5039_vm14 = vcmp.lt.s32.totalorder %v1979_v16, 16 }
 0x1ee   : > { %v1397_v4 = vadd.f32 %v3223_v61, %v1356_v14  ;;  %v1357_v50 = vadd.f32 %v1314_v22, %v1043_v63  ;;  %vm2012_vm2 = vcmp.lt.s32.totalorder %v1978_v43, 16  ;;  %v5878_v42 = vld [vmem:[#allocation17_spill] sm:$0xff]  ;;  %vm2081_vm3 = vmand %vm5039_vm14, %vm2047_vm1 }
 0x1ef   : > { %v2781_v23 = vsel %vm2012_vm2, 1.0, %v5722_v38 }
 0x1f0   : > { %v2180_v48 = vmul.f32 %v5028_v55, %v1397_v4  ;;  %v1398_v25 = vadd.f32 %v3223_v61, %v1357_v50 }
 0x1f1   : > { %v1005_v20 = vpop.f32.mrb[132].mxu0 }
 0x1f2   : > { %v2244_v14 = vsel %vm2184_vm12, %v2180_v48, 0.0  ;;  %v2181_v39 = vmul.f32 %v2780_v11, %v1398_v25  ;;  %v1044_v8 = vadd.f32 %v1005_v20, %v5877_v28  ;;  %v1319_v7 = vpop.f32.mrb[132].mxu1  ;;  %v3065_v63 = vpop.f32.mrb[133].mxu0 }
 0x1f3   : > { %v2245_v22 = vadd.f32 %v2244_v14, %v2243_v27  ;;  %v3135_v10 = vpop.f32.mrb[133].mxu1  ;;  %v1008_v30 = vpop.f32.mrb[134].mxu0  ;;  %v2782_v27 = vsel %vm2081_vm3, 1.0, %v5722_v38 }
 0x1f4   : > { %v2246_v59 = vsel %vm2184_vm12, %v2181_v39, 0.0  ;;  %v1358_v52 = vadd.f32 %v1319_v7, %v1044_v8  ;;  %v1045_v50 = vadd.f32 %v1008_v30, %v5878_v42  ;;  %v1322_v16 = vpop.f32.mrb[134].mxu1  ;;  %v3066_v21 = vpop.f32.mrb[135].mxu0 }
 0x1f5   : > { %v2247_v48 = vadd.f32 %v2246_v59, %v2245_v22  ;;  %v3136_v20 = vpop.f32.mrb[135].mxu1 }
 0x1f6   : > { %v1399_v28 = vadd.f32 %v3223_v61, %v1358_v52  ;;  %v1359_v43 = vadd.f32 %v1322_v16, %v1045_v50 }
 0x1f8   : > { %v2182_v14 = vmul.f32 %v2781_v23, %v1399_v28  ;;  %v1400_v63 = vadd.f32 %v3223_v61, %v1359_v43 }
 0x1fa   : > { %v2248_v39 = vsel %vm2184_vm12, %v2182_v14, 0.0  ;;  %v2183_v8 = vmul.f32 %v2782_v27, %v1400_v63 }
 0x1fb   : > { %v2249_v7 = vadd.f32 %v2248_v39, %v2247_v48 }
 0x1fc   : > { %v2250_v10 = vsel %vm2184_vm12, %v2183_v8, 0.0 }
 0x1fd   : > { %v2251_v30 = vadd.f32 %v2250_v10, %v2249_v7 }
 0x1ff   : > { %v2252_v40 = vrot.slane %v2251_v30, 4 }
 0x201   : > { %v2253_v42 = vadd.f32 %v2252_v40, %v2251_v30 }
 0x203   : > { %v2254_v21 = vrot.slane %v2253_v42, 2 }
 0x205   : > { %v2255_v22 = vadd.f32 %v2254_v21, %v2253_v42 }
 0x207   : > { %v2256_v59 = vrot.slane %v2255_v22, 1 }
 0x209   : > { %v2257_v19 = vadd.f32 %v2256_v59, %v2255_v22 }
 0x20b   : > { %v5054_v20 = vmul.f32 0.00390625, %v2257_v19 }
 0x20d   : > { %v5058_v38 = vsub.f32 %v4816_v35, %v5054_v20  ;;  %v5062_v61 = vsub.f32 %v4873_v17, %v5054_v20  ;;  %v5066_v52 = vsub.f32 %v4891_v32, %v5054_v20  ;;  %v5070_v50 = vsub.f32 %v4934_v2, %v5054_v20 }
 0x20e   : > { %v5074_v19 = vsub.f32 %v4951_v18, %v5054_v20  ;;  %v5078_v35 = vsub.f32 %v4981_v58, %v5054_v20  ;;  %v5082_v17 = vsub.f32 %v4999_v24, %v5054_v20  ;;  %v5085_v16 = vsub.f32 %v1397_v4, %v5054_v20 }
 0x20f   : > { %v5088_v32 = vsub.f32 %v1398_v25, %v5054_v20  ;;  %v5091_v2 = vsub.f32 %v1399_v28, %v5054_v20  ;;  %v5094_v18 = vsub.f32 %v1400_v63, %v5054_v20  ;;  %v5098_v58 = vsub.f32 %v4235_v5, %v5054_v20 }
 0x210   : > { %v5102_v24 = vsub.f32 %v4215_v31, %v5054_v20  ;;  %v5106_v4 = vsub.f32 %v4239_v56, %v5054_v20  ;;  %v5110_v25 = vmul.f32 %v4930_v1, %v5070_v50  ;;  %v5114_v48 = vmul.f32 %v4942_v60, %v5074_v19 }
 0x211   : > { %v5118_v5 = vmul.f32 %v4977_v3, %v5078_v35  ;;  %v5122_v31 = vmul.f32 %v4994_v57, %v5082_v17  ;;  %v5126_v56 = vmul.f32 %v5028_v55, %v5085_v16  ;;  %v5129_v28 = vmul.f32 %v2780_v11, %v5088_v32 }
 0x212   : > { %v5132_v1 = vmul.f32 %v2781_v23, %v5091_v2  ;;  %v5135_v60 = vmul.f32 %v2782_v27, %v5094_v18  ;;  %v5139_v3 = vsub.f32 %v4307_v13, %v5054_v20  ;;  %v2294_v57 = vmul.f32 %v3904_v51, %v5098_v58  ;;  %v5879_v13 = vld [vmem:[#allocation18_spill] sm:$0xff] }
 0x213   : > { %v2295_v55 = vmul.f32 %v3914_v15, %v5102_v24  ;;  %v5147_v11 = vsub.f32 %v4321_v49, %v5054_v20  ;;  %v2296_v23 = vmul.f32 %v3995_v26, %v5106_v4  ;;  %v5153_v43 = vsub.f32 %v4352_v45, %v5054_v20  ;;  %v5880_v15 = vld [vmem:[#allocation19_spill] sm:$0xff] }
 0x214   : > { %v2297_v27 = vmul.f32 %v5879_v13, %v5139_v3  ;;  %v2328_v14 = vmul.f32 %v2294_v57, %v2294_v57  ;;  %v5159_v51 = vsub.f32 %v4375_v34, %v5054_v20  ;;  %v5165_v26 = vsub.f32 %v4410_v44, %v5054_v20 }
 0x215   : > { %v2329_v63 = vmul.f32 %v2295_v55, %v2295_v55  ;;  %v2298_v49 = vmul.f32 %v5880_v15, %v5147_v11  ;;  %v2330_v39 = vmul.f32 %v2296_v23, %v2296_v23  ;;  %v2299_v45 = vmul.f32 %v4101_v54, %v5153_v43 }
 0x216   : > { %v2331_v8 = vmul.f32 %v2297_v27, %v2297_v27  ;;  %v2362_v7 = vsel %vm2184_vm12, %v2328_v14, 0.0  ;;  %v5173_v34 = vsub.f32 %v4424_v9, %v5054_v20  ;;  %v2300_v40 = vmul.f32 %v4106_v46, %v5159_v51  ;;  %v5881_v46 = vld [vmem:[#allocation20_spill] sm:$0xff] }
 0x217   : > { %v2363_v10 = vsel %vm2184_vm12, %v2329_v63, 0.0  ;;  %v2332_v42 = vmul.f32 %v2298_v49, %v2298_v49  ;;  %v2365_v44 = vsel %vm2184_vm12, %v2330_v39, 0.0  ;;  %v5180_v54 = vsub.f32 %v4449_v62, %v5054_v20 }
 0x218   : > { %v2364_v30 = vadd.f32 %v2363_v10, %v2362_v7  ;;  %v2301_v22 = vmul.f32 %v4246_v41, %v5165_v26  ;;  %v2333_v59 = vmul.f32 %v2299_v45, %v2299_v45  ;;  %v2367_v57 = vsel %vm2184_vm12, %v2331_v8, 0.0  ;;  %v5882_v41 = vld [vmem:[#allocation21_spill] sm:$0xff]  ;;  %v5883_v45 = vld [vmem:[#allocation22_spill] sm:$0xff] }
 0x219   : > { %v5187_v9 = vsub.f32 %v4479_v12, %v5054_v20  ;;  %v2302_v23 = vmul.f32 %v5881_v46, %v5173_v34  ;;  %v2334_v13 = vmul.f32 %v2300_v40, %v2300_v40  ;;  %v2369_v27 = vsel %vm2184_vm12, %v2332_v42, 0.0 }
 0x21a   : > { %v2366_v21 = vadd.f32 %v2365_v44, %v2364_v30  ;;  %v5194_v62 = vsub.f32 %v4509_v36, %v5054_v20  ;;  %v2303_v63 = vmul.f32 %v5882_v41, %v5180_v54  ;;  %v2335_v15 = vmul.f32 %v2301_v22, %v2301_v22 }
 0x21b   : > { %v2371_v49 = vsel %vm2184_vm12, %v2333_v59, 0.0  ;;  %v5201_v12 = vsub.f32 %v4521_v47, %v5054_v20  ;;  %v2304_v8 = vmul.f32 %v5883_v45, %v5187_v9  ;;  %v2336_v7 = vmul.f32 %v2302_v23, %v2302_v23  ;;  %v5884_v47 = vld [vmem:[#allocation29_spill] sm:$0xff]  ;;  %v5885_v59 = vld [vmem:[#allocation23_spill] sm:$0xff] }
 0x21c   : > { %v2368_v55 = vadd.f32 %v2367_v57, %v2366_v21  ;;  %v2373_v10 = vsel %vm2184_vm12, %v2334_v13, 0.0  ;;  %v5208_v36 = vsub.f32 %v4550_v29, %v5054_v20  ;;  %v2305_v40 = vmul.f32 %v4274_v6, %v5194_v62  ;;  %v5886_v6 = vld [vmem:[#allocation24_spill] sm:$0xff] }
 0x21d   : > { %v2337_v42 = vmul.f32 %v2303_v63, %v2303_v63  ;;  %v2375_v44 = vsel %vm2184_vm12, %v2335_v15, 0.0  ;;  %v5215_v22 = vsub.f32 %v5884_v47, %v5054_v20  ;;  %v2306_v57 = vmul.f32 %v5885_v59, %v5201_v12  ;;  %v5887_v15 = vld [vmem:[#allocation25_spill] sm:$0xff] }
 0x21e   : > { %v2370_v14 = vadd.f32 %v2369_v27, %v2368_v55  ;;  %v2338_v55 = vmul.f32 %v2304_v8, %v2304_v8  ;;  %v2377_v46 = vsel %vm2184_vm12, %v2336_v7, 0.0  ;;  %v5222_v29 = vsub.f32 %v4590_v0, %v5054_v20  ;;  %v5888_v7 = vld [vmem:[#allocation26_spill] sm:$0xff] }
 0x21f   : > { %v2307_v13 = vmul.f32 %v5886_v6, %v5208_v36  ;;  %v2339_v27 = vmul.f32 %v2305_v40, %v2305_v40  ;;  %v5229_v63 = vsub.f32 %v4615_v53, %v5054_v20  ;;  %v5236_v0 = vsub.f32 %v4666_v33, %v5054_v20  ;;  %v5889_v53 = vld [vmem:[#allocation3_spill] sm:$0xff] }
 0x220   : > { %v2372_v39 = vadd.f32 %v2371_v49, %v2370_v14  ;;  %v2379_v14 = vsel %vm2184_vm12, %v2337_v42, 0.0  ;;  %v2308_v49 = vmul.f32 %v5887_v15, %v5215_v22  ;;  %v2381_v45 = vsel %vm2184_vm12, %v2338_v55, 0.0  ;;  %v5893_v15 = vld [vmem:[#allocation30_spill] sm:$0xff] }
 0x221   : > { %v2383_v40 = vsel %vm2184_vm12, %v2339_v27, 0.0  ;;  %v5250_v33 = vsub.f32 %v4714_v37, %v5054_v20  ;;  %v5894_v37 = vld [vmem:[#allocation5_spill] sm:$0xff] }
 0x222   : > { %v2374_v30 = vadd.f32 %v2373_v10, %v2372_v39  ;;  %v2340_v39 = vmul.f32 %v2306_v57, %v2306_v57  ;;  %v2309_v10 = vmul.f32 %v5888_v7, %v5222_v29  ;;  %v2342_v59 = vmul.f32 %v2308_v49, %v2308_v49 }
 0x223   : > { %v5264_v7 = vsub.f32 %v5894_v37, %v5054_v20 }
 0x224   : > { %v2376_v21 = vadd.f32 %v2375_v44, %v2374_v30  ;;  %v2341_v30 = vmul.f32 %v2307_v13, %v2307_v13  ;;  %v5243_v44 = vsub.f32 %v5889_v53, %v5054_v20  ;;  %v2385_v57 = vsel %vm2184_vm12, %v2340_v39, 0.0 }
 0x225   : > { %v2343_v6 = vmul.f32 %v2309_v10, %v2309_v10  ;;  %v5895_v10 = vld [vmem:[#allocation31_spill] sm:$0xff] }
 0x226   : > { %v2378_v23 = vadd.f32 %v2377_v46, %v2376_v21  ;;  %v5890_v21 = vld [vmem:[#allocation27_spill] sm:$0xff]  ;;  %v5891_v46 = vld [vmem:[#allocation28_spill] sm:$0xff]  ;;  %v2387_v13 = vsel %vm2184_vm12, %v2341_v30, 0.0  ;;  %v2312_v49 = vmul.f32 %v5893_v15, %v5243_v44 }
 0x227   : > { %v2310_v47 = vmul.f32 %v5890_v21, %v5229_v63  ;;  %v5896_v21 = vld [vmem:[#allocation6_spill] sm:$0xff] }
 0x228   : > { %v2380_v41 = vadd.f32 %v2379_v14, %v2378_v23  ;;  %v2311_v23 = vmul.f32 %v5891_v46, %v5236_v0  ;;  %v5892_v14 = vld [vmem:[#allocation4_spill] sm:$0xff] }
 0x229   : > { %v2344_v39 = vmul.f32 %v2310_v47, %v2310_v47  ;;  %v5897_v47 = vld [vmem:[#allocation2_spill] sm:$0xff] }
 0x22a   : > { %v2382_v8 = vadd.f32 %v2381_v45, %v2380_v41  ;;  %v5257_v41 = vsub.f32 %v5892_v14, %v5054_v20  ;;  %v2389_v45 = vsel %vm2184_vm12, %v2342_v59, 0.0  ;;  %v2345_v30 = vmul.f32 %v2311_v23, %v2311_v23 }
 0x22b   : > { %v2346_v59 = vmul.f32 %v2312_v49, %v2312_v49  ;;  %v2393_v46 = vsel %vm2184_vm12, %v2344_v39, 0.0 }
 0x22c   : > { %v2384_v42 = vadd.f32 %v2383_v40, %v2382_v8  ;;  %v2313_v40 = vmul.f32 %v5895_v10, %v5250_v33  ;;  %v2395_v23 = vsel %vm2184_vm12, %v2345_v30, 0.0 }
 0x22e   : > { %v2386_v55 = vadd.f32 %v2385_v57, %v2384_v42  ;;  %v2391_v42 = vsel %vm2184_vm12, %v2343_v6, 0.0  ;;  %v5271_v57 = vsub.f32 %v5896_v21, %v5054_v20  ;;  %v2347_v15 = vmul.f32 %v2313_v40, %v2313_v40  ;;  %v5899_v6 = vld [vmem:[#allocation33_spill] sm:$0xff] }
 0x22f   : > { %v2397_v20 = vsel %vm2184_vm12, %v2346_v59, 0.0 }
 0x230   : > { %v2388_v27 = vadd.f32 %v2387_v13, %v2386_v55  ;;  %v2314_v55 = vmul.f32 %v5897_v47, %v5257_v41  ;;  %v2399_v39 = vsel %vm2184_vm12, %v2347_v15, 0.0  ;;  %v5901_v47 = vld [vmem:[#allocation7_spill] sm:$0xff] }
 0x231   : > { %v2318_v40 = vmul.f32 %v5901_v47, %v5062_v61  ;;  %v2356_v47 = vmul.f32 %v5118_v5, %v5118_v5 }
 0x232   : > { %v2390_v8 = vadd.f32 %v2389_v45, %v2388_v27  ;;  %v5898_v27 = vld [vmem:[#allocation32_spill] sm:$0xff]  ;;  %v2348_v37 = vmul.f32 %v2314_v55, %v2314_v55 }
 0x233   : > { %v2315_v14 = vmul.f32 %v5898_v27, %v5264_v7  ;;  %v5902_v27 = vld [vmem:[#allocation8_spill] sm:$0xff] }
 0x234   : > { %v2392_v53 = vadd.f32 %v2391_v42, %v2390_v8  ;;  %v2316_v8 = vmul.f32 %v5899_v6, %v5271_v57  ;;  %v5900_v42 = vld [vmem:[#allocation34_spill] sm:$0xff]  ;;  %v2401_v30 = vsel %vm2184_vm12, %v2348_v37, 0.0  ;;  %v2319_v55 = vmul.f32 %v5902_v27, %v5066_v52 }
 0x235   : > { %v2317_v49 = vmul.f32 %v5900_v42, %v5058_v38  ;;  %v2349_v21 = vmul.f32 %v2315_v14, %v2315_v14  ;;  %v2352_v6 = vmul.f32 %v2318_v40, %v2318_v40  ;;  %v2358_v27 = vmul.f32 %v5126_v56, %v5126_v56 }
 0x236   : > { %v2394_v13 = vadd.f32 %v2393_v46, %v2392_v53  ;;  %v2350_v46 = vmul.f32 %v2316_v8, %v2316_v8  ;;  %v2353_v15 = vmul.f32 %v2319_v55, %v2319_v55  ;;  %v2354_v8 = vmul.f32 %v5110_v25, %v5110_v25 }
 0x237   : > { %v2403_v59 = vsel %vm2184_vm12, %v2349_v21, 0.0  ;;  %v2409_v37 = vsel %vm2184_vm12, %v2352_v6, 0.0 }
 0x238   : > { %v2396_v45 = vadd.f32 %v2395_v23, %v2394_v13  ;;  %v2351_v23 = vmul.f32 %v2317_v49, %v2317_v49  ;;  %v2405_v14 = vsel %vm2184_vm12, %v2350_v46, 0.0  ;;  %v2355_v49 = vmul.f32 %v5114_v48, %v5114_v48 }
 0x239   : > { %v2411_v21 = vsel %vm2184_vm12, %v2353_v15, 0.0  ;;  %v2413_v40 = vsel %vm2184_vm12, %v2354_v8, 0.0  ;;  %v2417_v48 = vsel %vm2184_vm12, %v2356_v47, 0.0 }
 0x23a   : > { %v2398_v10 = vadd.f32 %v2397_v20, %v2396_v45  ;;  %v2415_v25 = vsel %vm2184_vm12, %v2355_v49, 0.0 }
 0x23c   : > { %v2400_v53 = vadd.f32 %v2399_v39, %v2398_v10  ;;  %v2407_v10 = vsel %vm2184_vm12, %v2351_v23, 0.0  ;;  %v2359_v23 = vmul.f32 %v5129_v28, %v5129_v28 }
 0x23e   : > { %v2402_v13 = vadd.f32 %v2401_v30, %v2400_v53  ;;  %v2357_v30 = vmul.f32 %v5122_v31, %v5122_v31  ;;  %v2421_v31 = vsel %vm2184_vm12, %v2358_v27, 0.0  ;;  %v2423_v56 = vsel %vm2184_vm12, %v2359_v23, 0.0 }
 0x240   : > { %v2404_v45 = vadd.f32 %v2403_v59, %v2402_v13  ;;  %v2419_v5 = vsel %vm2184_vm12, %v2357_v30, 0.0 }
 0x242   : > { %v2406_v20 = vadd.f32 %v2405_v14, %v2404_v45  ;;  %v2360_v45 = vmul.f32 %v5132_v1, %v5132_v1  ;;  %v2361_v14 = vmul.f32 %v5135_v60, %v5135_v60 }
 0x244   : > { %v2408_v42 = vadd.f32 %v2407_v10, %v2406_v20  ;;  %v2425_v15 = vsel %vm2184_vm12, %v2360_v45, 0.0  ;;  %v2427_v28 = vsel %vm2184_vm12, %v2361_v14, 0.0 }
 0x246   : > { %v2410_v39 = vadd.f32 %v2409_v37, %v2408_v42 }
 0x248   : > { %v2412_v53 = vadd.f32 %v2411_v21, %v2410_v39 }
 0x24a   : > { %v2414_v46 = vadd.f32 %v2413_v40, %v2412_v53 }
 0x24c   : > { %v2416_v13 = vadd.f32 %v2415_v25, %v2414_v46 }
 0x24e   : > { %v2418_v55 = vadd.f32 %v2417_v48, %v2416_v13 }
 0x250   : > { %v2420_v59 = vadd.f32 %v2419_v5, %v2418_v55 }
 0x252   : > { %v2422_v6 = vadd.f32 %v2421_v31, %v2420_v59 }
 0x254   : > { %v2424_v20 = vadd.f32 %v2423_v56, %v2422_v6 }
 0x256   : > { %v2426_v10 = vadd.f32 %v2425_v15, %v2424_v20 }
 0x258   : > { %v2428_v42 = vadd.f32 %v2427_v28, %v2426_v10 }
 0x25a   : > { %v2429_v8 = vrot.slane %v2428_v42, 4 }
 0x25c   : > { %v2430_v37 = vadd.f32 %v2429_v8, %v2428_v42 }
 0x25e   : > { %v2431_v39 = vrot.slane %v2430_v37, 2 }
 0x260   : > { %v2432_v49 = vadd.f32 %v2431_v39, %v2430_v37 }
 0x262   : > { %v2433_v1 = vrot.slane %v2432_v49, 1 }
 0x264   : > { %v2434_v21 = vadd.f32 %v2433_v1, %v2432_v49 }
 0x266   : > { %v2435_v53 = vmul.f32 0.00390625, %v2434_v21 }
 0x268   : > { %v2436_v47 = vadd.f32 1e-05, %v2435_v53 }
 0x26a   : > { %3221 = vrsqrt.f32 %v2436_v47 }
 0x274   : > { %v3222_v40 = vpop.eup %3221 }
 0x275   : > { %v5320_v60 = vmul.f32 %v3222_v40, %v5066_v52  ;;  %v5323_v46 = vmul.f32 %v3222_v40, %v5070_v50  ;;  %v5326_v30 = vmul.f32 %v3222_v40, %v5074_v19  ;;  %v5329_v25 = vmul.f32 %v3222_v40, %v5078_v35 }
 0x276   : > { %v5332_v13 = vmul.f32 %v3222_v40, %v5082_v17  ;;  %v5335_v27 = vmul.f32 %v3222_v40, %v5085_v16  ;;  %v5338_v48 = vmul.f32 %v3222_v40, %v5088_v32  ;;  %v2438_v52 = vmul.f32 %v3222_v40, %v5098_v58 }
 0x277   : > { %v5342_v50 = vmul.f32 %v3222_v40, %v5091_v2  ;;  %v5345_v19 = vmul.f32 %v3222_v40, %v5094_v18  ;;  %v5348_v35 = vmul.f32 %v3222_v40, %v5102_v24  ;;  %v5351_v17 = vmul.f32 %v3222_v40, %v5106_v4 }
 0x278   : > { %v5354_v16 = vmul.f32 %v3222_v40, %v5139_v3  ;;  %v5357_v32 = vmul.f32 %v3222_v40, %v5147_v11  ;;  %v5360_v58 = vmul.f32 %v3222_v40, %v5153_v43  ;;  %v5363_v2 = vmul.f32 %v3222_v40, %v5159_v51 }
 0x279   : > { %v5366_v18 = vmul.f32 %v3222_v40, %v5165_v26  ;;  %v5369_v24 = vmul.f32 %v3222_v40, %v5173_v34  ;;  %v5372_v4 = vmul.f32 %v3222_v40, %v5180_v54  ;;  %v5375_v3 = vmul.f32 %v3222_v40, %v5187_v9 }
 0x27a   : > { %v5378_v11 = vmul.f32 %v3222_v40, %v5194_v62  ;;  %v5381_v43 = vmul.f32 %v3222_v40, %v5201_v12  ;;  %v5384_v51 = vmul.f32 %v3222_v40, %v5208_v36  ;;  %v5387_v26 = vmul.f32 %v3222_v40, %v5215_v22 }
 0x27b   : > { %v5390_v34 = vmul.f32 %v3222_v40, %v5222_v29  ;;  %v5393_v54 = vmul.f32 %v3222_v40, %v5229_v63  ;;  %v5397_v9 = vmul.f32 %v3222_v40, %v5236_v0  ;;  %v5400_v62 = vmul.f32 %v3222_v40, %v5243_v44 }
 0x27c   : > { %v5403_v12 = vmul.f32 %v3222_v40, %v5250_v33  ;;  %v5406_v36 = vmul.f32 %v3222_v40, %v5257_v41  ;;  %v5409_v22 = vmul.f32 %v3222_v40, %v5264_v7  ;;  %v5412_v29 = vmul.f32 %v3222_v40, %v5271_v57 }
 0x27d   : > { %v5415_v63 = vmul.f32 %v3222_v40, %v5058_v38  ;;  %vm2472_vm15 = vcmp.ge.f32.partialorder %v2438_v52, 0.0  ;;  %vm2473_vm0 = vcmp.ge.f32.partialorder %v5348_v35, 0.0  ;;  %vm2474_vm4 = vcmp.ge.f32.partialorder %v5351_v17, 0.0 }
 0x27e   : > { %vm2475_vm5 = vcmp.ge.f32.partialorder %v5354_v16, 0.0  ;;  %vm2476_vm6 = vcmp.ge.f32.partialorder %v5357_v32, 0.0  ;;  %vm2477_vm7 = vcmp.ge.f32.partialorder %v5360_v58, 0.0  ;;  %vm2478_vm8 = vcmp.ge.f32.partialorder %v5363_v2, 0.0 }
 0x27f   : > { %vm2479_vm9 = vcmp.ge.f32.partialorder %v5366_v18, 0.0  ;;  %v5431_v38 = vmul.f32 %v3222_v40, %v5062_v61  ;;  %v2506_v0 = vmul.f32 0.2, %v2438_v52  ;;  %v2507_v44 = vmul.f32 0.2, %v5348_v35 }
 0x280   : > { %v2508_v33 = vmul.f32 0.2, %v5351_v17  ;;  %vm2485_vm2 = vcmp.ge.f32.partialorder %v5384_v51, 0.0  ;;  %v2509_v61 = vmul.f32 0.2, %v5354_v16  ;;  %vm2490_vm11 = vcmp.ge.f32.partialorder %v5400_v62, 0.0 }
 0x281   : > { %v2510_v41 = vmul.f32 0.2, %v5357_v32  ;;  %v2511_v7 = vmul.f32 0.2, %v5360_v58  ;;  %vm2491_vm1 = vcmp.ge.f32.partialorder %v5403_v12, 0.0  ;;  %v2540_v5 = vsel %vm2472_vm15, %v2438_v52, %v2506_v0 }
 0x282   : > { %v2512_v57 = vmul.f32 0.2, %v5363_v2  ;;  %v2513_v55 = vmul.f32 0.2, %v5366_v18  ;;  %v2514_v23 = vmul.f32 0.2, %v5369_v24  ;;  %v2541_v6 = vsel %vm2473_vm0, %v5348_v35, %v2507_v44 }
 0x283   : > { %vm2492_vm10 = vcmp.ge.f32.partialorder %v5406_v36, 0.0  ;;  %v2515_v59 = vmul.f32 0.2, %v5372_v4  ;;  %v2516_v45 = vmul.f32 0.2, %v5375_v3  ;;  %2574 = vst.msk [vmem:[%s5428_s6] sm:$0xff] %vm2184_vm12, %v2540_v5  ;;  %v2542_v15 = vsel %vm2474_vm4, %v5351_v17, %v2508_v33 }
 0x284   : > { %v2517_v31 = vmul.f32 0.2, %v5378_v11  ;;  %vm2496_vm15 = vcmp.ge.f32.partialorder %v5431_v38, 0.0  ;;  %v2518_v14 = vmul.f32 0.2, %v5381_v43  ;;  %2575 = vst.msk [vmem:[%s5428_s6 + $0x8] sm:$0xff] %vm2184_vm12, %v2541_v6  ;;  %v2543_v8 = vsel %vm2475_vm5, %v5354_v16, %v2509_v61 }
 0x285   : > { %v2519_v56 = vmul.f32 0.2, %v5384_v51  ;;  %v2520_v20 = vmul.f32 0.2, %v5387_v26  ;;  %vm2500_vm0 = vcmp.ge.f32.partialorder %v5329_v25, 0.0  ;;  %vm2501_vm3 = vcmp.ge.f32.partialorder %v5332_v13, 0.0 }
 0x286   : > { %vm2503_vm13 = vcmp.ge.f32.partialorder %v5338_v48, 0.0  ;;  %v2521_v10 = vmul.f32 0.2, %v5390_v34  ;;  %v2522_v28 = vmul.f32 0.2, %v5393_v54  ;;  %2576 = vst.msk [vmem:[%s5428_s6 + $0x10] sm:$0xff] %vm2184_vm12, %v2542_v15  ;;  %v2544_v1 = vsel %vm2476_vm6, %v5357_v32, %v2510_v41 }
 0x287   : > { %v2523_v42 = vmul.f32 0.2, %v5397_v9  ;;  %vm2504_vm4 = vcmp.ge.f32.partialorder %v5342_v50, 0.0  ;;  %vm2505_vm14 = vcmp.ge.f32.partialorder %v5345_v19, 0.0  ;;  %v2524_v37 = vmul.f32 0.2, %v5400_v62 }
 0x288   : > { %v2525_v39 = vmul.f32 0.2, %v5403_v12  ;;  %v2526_v49 = vmul.f32 0.2, %v5406_v36  ;;  %2577 = vst.msk [vmem:[%s5428_s6 + $0x18] sm:$0xff] %vm2184_vm12, %v2543_v8  ;;  %v2545_v40 = vsel %vm2477_vm7, %v5360_v58, %v2511_v7  ;;  %2578 = vst.msk [vmem:[%s5428_s6 + $0x20] sm:$0xff] %vm2184_vm12, %v2544_v1  ;;  %v2546_v16 = vsel %vm2478_vm8, %v5363_v2, %v2512_v57 }
 0x289   : > { %v2527_v21 = vmul.f32 0.2, %v5409_v22  ;;  %v2528_v53 = vmul.f32 0.2, %v5412_v29  ;;  %v2529_v47 = vmul.f32 0.2, %v5415_v63  ;;  %v2547_v44 = vsel %vm2479_vm9, %v5366_v18, %v2513_v55 }
 0x28a   : > { %v2530_v52 = vmul.f32 0.2, %v5431_v38  ;;  %v2531_v35 = vmul.f32 0.2, %v5320_v60  ;;  %v2532_v17 = vmul.f32 0.2, %v5323_v46 }
 0x28b   : > { %2579 = vst.msk [vmem:[%s5428_s6 + $0x28] sm:$0xff] %vm2184_vm12, %v2545_v40  ;;  %v2533_v32 = vmul.f32 0.2, %v5326_v30  ;;  %v2534_v58 = vmul.f32 0.2, %v5329_v25  ;;  %2580 = vst.msk [vmem:[%s5428_s6 + $0x30] sm:$0xff] %vm2184_vm12, %v2546_v16 }
 0x28c   : > { %v2535_v0 = vmul.f32 0.2, %v5332_v13  ;;  %v2536_v33 = vmul.f32 0.2, %v5335_v27  ;;  %v2537_v2 = vmul.f32 0.2, %v5338_v48 }
 0x28d   : > { %v2538_v61 = vmul.f32 0.2, %v5342_v50  ;;  %vm5903_vm5 = vcmp.ge.f32.partialorder %v5369_v24, 0.0  ;;  %2581 = vst.msk [vmem:[%s5428_s6 + $0x38] sm:$0xff] %vm2184_vm12, %v2547_v44  ;;  %v2539_v7 = vmul.f32 0.2, %v5345_v19 }
 0x28e   : > { %v2548_v41 = vsel %vm5903_vm5, %v5369_v24, %v2514_v23  ;;  %vm5904_vm6 = vcmp.ge.f32.partialorder %v5372_v4, 0.0  ;;  %vm5905_vm7 = vcmp.ge.f32.partialorder %v5375_v3, 0.0  ;;  %vm5906_vm8 = vcmp.ge.f32.partialorder %v5378_v11, 0.0 }
 0x28f   : > { %v2549_v18 = vsel %vm5904_vm6, %v5372_v4, %v2515_v59  ;;  %v2550_v57 = vsel %vm5905_vm7, %v5375_v3, %v2516_v45  ;;  %v2551_v55 = vsel %vm5906_vm8, %v5378_v11, %v2517_v31  ;;  %2582 = vst.msk [vmem:[%s5428_s6 + $0x40] sm:$0xff] %vm2184_vm12, %v2548_v41  ;;  %vm5907_vm9 = vcmp.ge.f32.partialorder %v5381_v43, 0.0 }
 0x290   : > { %v2552_v24 = vsel %vm5907_vm9, %v5381_v43, %v2518_v14  ;;  %v2553_v4 = vsel %vm2485_vm2, %v5384_v51, %v2519_v56  ;;  %vm5908_vm5 = vcmp.ge.f32.partialorder %v5387_v26, 0.0  ;;  %vm5909_vm6 = vcmp.ge.f32.partialorder %v5390_v34, 0.0  ;;  %2583 = vst.msk [vmem:[%s5428_s6 + $0x48] sm:$0xff] %vm2184_vm12, %v2549_v18  ;;  %2584 = vst.msk [vmem:[%s5428_s6 + $0x50] sm:$0xff] %vm2184_vm12, %v2550_v57 }
 0x291   : > { %v2554_v3 = vsel %vm5908_vm5, %v5387_v26, %v2520_v20  ;;  %v2555_v23 = vsel %vm5909_vm6, %v5390_v34, %v2521_v10  ;;  %2585 = vst.msk [vmem:[%s5428_s6 + $0x58] sm:$0xff] %vm2184_vm12, %v2551_v55  ;;  %vm5910_vm2 = vcmp.ge.f32.partialorder %v5393_v54, 0.0  ;;  %vm5911_vm7 = vcmp.ge.f32.partialorder %v5397_v9, 0.0  ;;  %2586 = vst.msk [vmem:[%s5428_s6 + $0x60] sm:$0xff] %vm2184_vm12, %v2552_v24 }
 0x292   : > { %v2556_v11 = vsel %vm5910_vm2, %v5393_v54, %v2522_v28  ;;  %v2557_v43 = vsel %vm5911_vm7, %v5397_v9, %v2523_v42  ;;  %v2558_v51 = vsel %vm2490_vm11, %v5400_v62, %v2524_v37  ;;  %v2559_v26 = vsel %vm2491_vm1, %v5403_v12, %v2525_v39  ;;  %2587 = vst.msk [vmem:[%s5428_s6 + $0x68] sm:$0xff] %vm2184_vm12, %v2553_v4 }
 0x293   : > { %2588 = vst.msk [vmem:[%s5428_s6 + $0x70] sm:$0xff] %vm2184_vm12, %v2554_v3  ;;  %2589 = vst.msk [vmem:[%s5428_s6 + $0x78] sm:$0xff] %vm2184_vm12, %v2555_v23  ;;  %v2560_v34 = vsel %vm2492_vm10, %v5406_v36, %v2526_v49  ;;  %vm5912_vm11 = vcmp.ge.f32.partialorder %v5409_v22, 0.0  ;;  %vm5913_vm1 = vcmp.ge.f32.partialorder %v5412_v29, 0.0  ;;  %vm5914_vm8 = vcmp.ge.f32.partialorder %v5415_v63, 0.0 }
 0x294   : > { %v2561_v54 = vsel %vm5912_vm11, %v5409_v22, %v2527_v21  ;;  %v2562_v9 = vsel %vm5913_vm1, %v5412_v29, %v2528_v53  ;;  %v2563_v62 = vsel %vm5914_vm8, %v5415_v63, %v2529_v47  ;;  %2590 = vst.msk [vmem:[%s5428_s6 + $0x80] sm:$0xff] %vm2184_vm12, %v2556_v11  ;;  %2591 = vst.msk [vmem:[%s5428_s6 + $0x88] sm:$0xff] %vm2184_vm12, %v2557_v43  ;;  %vm5915_vm10 = vcmp.ge.f32.partialorder %v5320_v60, 0.0 }
 0x295   : > { %2592 = vst.msk [vmem:[%s5428_s6 + $0x90] sm:$0xff] %vm2184_vm12, %v2558_v51  ;;  %2593 = vst.msk [vmem:[%s5428_s6 + $0x98] sm:$0xff] %vm2184_vm12, %v2559_v26  ;;  %v2564_v12 = vsel %vm2496_vm15, %v5431_v38, %v2530_v52  ;;  %v2565_v36 = vsel %vm5915_vm10, %v5320_v60, %v2531_v35  ;;  %vm5916_vm9 = vcmp.ge.f32.partialorder %v5323_v46, 0.0  ;;  %vm5917_vm5 = vcmp.ge.f32.partialorder %v5326_v30, 0.0 }
 0x296   : > { %v2566_v22 = vsel %vm5916_vm9, %v5323_v46, %v2532_v17  ;;  %v2567_v29 = vsel %vm5917_vm5, %v5326_v30, %v2533_v32  ;;  %2594 = vst.msk [vmem:[%s5428_s6 + $0xa0] sm:$0xff] %vm2184_vm12, %v2560_v34  ;;  %2595 = vst.msk [vmem:[%s5428_s6 + $0xa8] sm:$0xff] %vm2184_vm12, %v2561_v54  ;;  %v2568_v60 = vsel %vm2500_vm0, %v5329_v25, %v2534_v58  ;;  %vm5918_vm15 = vcmp.ge.f32.partialorder %v5335_v27, 0.0 }
 0x297   : > { %2596 = vst.msk [vmem:[%s5428_s6 + $0xb0] sm:$0xff] %vm2184_vm12, %v2562_v9  ;;  %2597 = vst.msk [vmem:[%s5428_s6 + $0xb8] sm:$0xff] %vm2184_vm12, %v2563_v62  ;;  %v2569_v46 = vsel %vm2501_vm3, %v5332_v13, %v2535_v0  ;;  %v2570_v30 = vsel %vm5918_vm15, %v5335_v27, %v2536_v33  ;;  %v2571_v63 = vsel %vm2503_vm13, %v5338_v48, %v2537_v2 }
 0x298   : > { %2598 = vst.msk [vmem:[%s5428_s6 + $0xc0] sm:$0xff] %vm2184_vm12, %v2564_v12  ;;  %2599 = vst.msk [vmem:[%s5428_s6 + $0xc8] sm:$0xff] %vm2184_vm12, %v2565_v36  ;;  %v2572_v25 = vsel %vm2504_vm4, %v5342_v50, %v2538_v61  ;;  %v2573_v13 = vsel %vm2505_vm14, %v5345_v19, %v2539_v7 }
 0x299   : > { %2600 = vst.msk [vmem:[%s5428_s6 + $0xd0] sm:$0xff] %vm2184_vm12, %v2566_v22  ;;  %2601 = vst.msk [vmem:[%s5428_s6 + $0xd8] sm:$0xff] %vm2184_vm12, %v2567_v29 }
 0x29a   : > { %2602 = vst.msk [vmem:[%s5428_s6 + $0xe0] sm:$0xff] %vm2184_vm12, %v2568_v60  ;;  %2603 = vst.msk [vmem:[%s5428_s6 + $0xe8] sm:$0xff] %vm2184_vm12, %v2569_v46 }
 0x29b   : > { %2604 = vst.msk [vmem:[%s5428_s6 + $0xf0] sm:$0xff] %vm2184_vm12, %v2570_v30  ;;  %2605 = vst.msk [vmem:[%s5428_s6 + $0xf8] sm:$0xff] %vm2184_vm12, %v2571_v63 }
 0x29c   : > { %2606 = vst.msk [vmem:[%s5428_s6 + $0x100] sm:$0xff] %vm2184_vm12, %v2572_v25  ;;  %2607 = vst.msk [vmem:[%s5428_s6 + $0x108] sm:$0xff] %vm2184_vm12, %v2573_v13 }
 0x29d PF: > { %s13_s12 = sadd.s32 1, %s3230_s12  }
 0x29e   : > { %p10_p4 = scmp.ge.s32.totalorder %s13_s12, 4  }
 0x2a0   :  { %12 = sbr.rel (!%p10_p4) target bundleno = 1 (0x1), region = 65 }

// kernel: msdisc_forward.8
= control target key start
LH: loop header
LB: loop body
LE: loop exit
PB: predicated region body
PF: predicated region fallthrough
CT: control target
= control target key end

     0   :  { %s1364_s12 = smov 0   ;;  %s1831_s0 = inlined_call_operand.vmem [shape: f32[2,90,32], index: 0, kind: input, shape index: {}]   ;;  %s1832_s1 = inlined_call_operand.vmem [shape: bf16[4,32,16], index: 1, kind: input, shape index: {}]   ;;  %s1833_s2 = inlined_call_operand.vmem [shape: f32[1,16], index: 2, kind: input, shape index: {}]   ;;  %s1834_s3 = inlined_call_operand.vmem [shape: f32[2,80,16], index: 3, kind: output, shape index: {}]  }
   0x1 LB: > { %s1111_s13 = sadd.s32 4294967295, %s1340_s12   ;;  %p1115_p0 = scmp.ge.s32.totalorder %s1340_s12, 1  ;;  %s1340_s12 = sphi %s1364_s12, %s13_s12  }
   0x2   : > { %p137_p1 = scmp.lt.s32.totalorder %s1340_s12, 3 }
   0x4   : > { %p138_p2 = pnand %p1115_p0, %p137_p1 }
   0x5   : > { %v1324_v0 = vld [vmem:[%s1832_s1 + $0x10] sm:$0xff] (!%p138_p2)   ;;  %v1342_v1 = vmov (!%p138_p2), 0.0   ;;  %v1325_v2 = vld [vmem:[%s1832_s1] sm:$0xff] (!%p138_p2)   ;;  %v1326_v3 = vld [vmem:[%s1832_s1 + $0x18] sm:$0xff] (!%p138_p2)   ;;  %vm1343_vm0 = vmmov (!%p138_p2), 0   ;;  %p161_p3 = scmp.lt.s32.totalorder (!%p138_p2), %s1111_s13, 1  ;;  %v689_v60 = vlaneseq (!%p138_p2) }
   0x6   : > { %141 = sbr.rel (%p138_p2) target bundleno = 397 (0x18d), region = 32  ;;  %1198 = vmatprep.subr.bf16.mxu0 (!%p138_p2), %v1342_v1  ;;  %1222 = vmatprep.subr.bf16.mxu1 (!%p138_p2), %v1342_v1  ;;  %v1327_v4 = vld [vmem:[%s1832_s1 + $0x8] sm:$0xff] (!%p138_p2)   ;;  %v1328_v5 = vld [vmem:[%s1832_s1 + $0x20] sm:$0xff] (!%p138_p2)   ;;  %vm223_vm1 = vcmask (!%p138_p2), 261120   ;;  %v1329_v11 = vld [vmem:[%s1832_s1 + $0x30] sm:$0xff] (!%p138_p2)  }
   0x7   : > { %1199 = vmatpush3.bf16.msra.mxu0 (!%p138_p2), %v1324_v0  ;;  %1202 = vmatprep.mubr.msk.bf16.mxu0 (!%p138_p2), %vm1343_vm0, %v1342_v1  ;;  %v1330_v15 = vld [vmem:[%s1832_s1 + $0x28] sm:$0xff] (!%p138_p2)   ;;  %v1331_v18 = vld [vmem:[%s1832_s1 + $0x38] sm:$0xff] (!%p138_p2)  }
   0x8   : > { %1223 = vmatpush3.bf16.msra.mxu1 (!%p138_p2), %v1325_v2  ;;  %1200 = vmatprep.subr.bf16.mxu0 (!%p138_p2), %v1342_v1 }
   0x9   : > { %1224 = vmatprep.subr.bf16.mxu1 (!%p138_p2), %v1342_v1  ;;  %1226 = vmatprep.mubr.msk.bf16.mxu1 (!%p138_p2), %vm1343_vm0, %v1342_v1 }
   0xb   : > { %1201 = vmatpush3.bf16.msra.mxu0 (!%p138_p2), %v1326_v3 }
   0xc   : > { %1225 = vmatpush3.bf16.msra.mxu1 (!%p138_p2), %v1327_v4  ;;  %1246 = vmatprep.subr.bf16.mxu0 (!%p138_p2), %v1342_v1 }
   0xd   : > { %s1860_s13 = smov (!%p161_p3, %s1111_s13), 1  ;;  %1270 = vmatprep.subr.bf16.mxu1 %v1342_v1 }
   0xe   : > { %s1294_s22 = smul.u32 96, %s1860_s13 }
   0xf   : > { %s1295_s9 = smul.u32 80, %s1860_s13 }
  0x10   : > { %s1399_s25 = scalar_lea.vmem %s1831_s0, %s1294_s22 }
  0x11   : > { %v191_v6 = vld [vmem:[%s1399_s25 + $0x1] sm:$0xff]  ;;  %v1407_v7 = vld [vmem:[%s1399_s25 + $0x9] sm:$0xff]  ;;  %v193_v13 = vld [vmem:[%s1399_s25 + $0x11] sm:$0xff]  ;;  %s170_s13 = scalar_lea.vmem %s1834_s3, %s1295_s9 }
  0x12   : > { %v172_v8 = vld [vmem:[%s1399_s25] sm:$0xff]  ;;  %v201_v9 = vpack.c.bf16 %v1407_v7, %v191_v6  ;;  %v173_v10 = vld [vmem:[%s1399_s25 + $0x8] sm:$0xff]  ;;  %v174_v16 = vld [vmem:[%s1399_s25 + $0x10] sm:$0xff]  ;;  %v422_v41 = vpack.c.bf16 %v193_v13, %v1407_v7  ;;  %v1509_v6 = vshrl.u32 %v689_v60, 7 }
  0x13   : > { %v182_v12 = vpack.c.bf16 %v173_v10, %v172_v8  ;;  %v194_v14 = vld [vmem:[%s1399_s25 + $0x19] sm:$0xff]  ;;  %v195_v21 = vld [vmem:[%s1399_s25 + $0x21] sm:$0xff]  ;;  %v196_v22 = vld [vmem:[%s1399_s25 + $0x29] sm:$0xff] }
  0x14   : > { %1203 = vmatmul.mubr.msk.bf16.vlgmr.msra.gmra.mrb[0].mxu0 %vm223_vm1, %v201_v9  ;;  %v175_v17 = vld [vmem:[%s1399_s25 + $0x18] sm:$0xff]  ;;  %v202_v19 = vpack.c.bf16 %v194_v14, %v193_v13  ;;  %v176_v23 = vld [vmem:[%s1399_s25 + $0x20] sm:$0xff]  ;;  %v177_v24 = vld [vmem:[%s1399_s25 + $0x28] sm:$0xff]  ;;  %v203_v25 = vpack.c.bf16 %v196_v22, %v195_v21  ;;  %v423_v45 = vpack.c.bf16 %v195_v21, %v194_v14  ;;  %v691_v14 = vadd.s32 8, %v1509_v6 }
  0x15   : > { %1227 = vmatmul.mubr.msk.bf16.vlgmr.msra.gmra.mrb[0].mxu1 %vm223_vm1, %v182_v12  ;;  %1247 = vmatpush3.bf16.msra.mxu0 %v1328_v5  ;;  %v183_v20 = vpack.c.bf16 %v175_v17, %v174_v16  ;;  %v184_v26 = vpack.c.bf16 %v177_v24, %v176_v23  ;;  %v197_v27 = vld [vmem:[%s1399_s25 + $0x31] sm:$0xff]  ;;  %v198_v28 = vld [vmem:[%s1399_s25 + $0x39] sm:$0xff]  ;;  %v199_v33 = vld [vmem:[%s1399_s25 + $0x41] sm:$0xff]  ;;  %v1514_v9 = vmul.u32.u64.low 3817748708, %v1509_v6  ;;  %v1515_v10 = vmul.u32.u64.high 3817748708, %v1509_v6, %v1514_v9 }
  0x16   : > { %1271 = vmatpush3.bf16.msra.mxu1 %v1329_v11  ;;  %1206 = vmatprep.mubr.msk.bf16.mxu0 %vm1343_vm0, %v1342_v1  ;;  %v178_v29 = vld [vmem:[%s1399_s25 + $0x30] sm:$0xff]  ;;  %v179_v30 = vld [vmem:[%s1399_s25 + $0x38] sm:$0xff]  ;;  %v204_v31 = vpack.c.bf16 %v198_v28, %v197_v27  ;;  %v180_v35 = vld [vmem:[%s1399_s25 + $0x40] sm:$0xff]  ;;  %v424_v49 = vpack.c.bf16 %v197_v27, %v196_v22  ;;  %v425_v53 = vpack.c.bf16 %v199_v33, %v198_v28  ;;  %v692_v24 = vadd.s32 16, %v1509_v6 }
  0x17   : > { %1230 = vmatprep.mubr.msk.bf16.mxu1 %vm1343_vm0, %v1342_v1  ;;  %1248 = vmatprep.subr.bf16.mxu0 %v1342_v1  ;;  %v185_v32 = vpack.c.bf16 %v179_v30, %v178_v29  ;;  %v200_v34 = vld [vmem:[%s1399_s25 + $0x49] sm:$0xff]  ;;  %v543_v40 = vld [vmem:[%s1399_s25 + $0x12] sm:$0xff]  ;;  %v544_v43 = vld [vmem:[%s1399_s25 + $0x1a] sm:$0xff]  ;;  %v1522_v22 = vmul.u32.u64.low 3817748708, %v691_v14  ;;  %v1523_v23 = vmul.u32.u64.high 3817748708, %v691_v14, %v1522_v22 }
  0x18   : > { %1272 = vmatprep.subr.bf16.mxu1 %v1342_v1  ;;  %v181_v36 = vld [vmem:[%s1399_s25 + $0x48] sm:$0xff]  ;;  %v205_v37 = vpack.c.bf16 %v200_v34, %v199_v33  ;;  %v547_v48 = vld [vmem:[%s1399_s25 + $0x32] sm:$0xff]  ;;  %v548_v51 = vld [vmem:[%s1399_s25 + $0x3a] sm:$0xff] }
  0x19   : > { %1249 = vmatpush3.bf16.msra.mxu0 %v1330_v15  ;;  %v186_v38 = vpack.c.bf16 %v181_v36, %v180_v35  ;;  %v542_v39 = vld [vmem:[%s1399_s25 + $0xa] sm:$0xff]  ;;  %v545_v44 = vld [vmem:[%s1399_s25 + $0x22] sm:$0xff]  ;;  %v551_v57 = vld [vmem:[%s1399_s25 + $0x52] sm:$0xff] }
  0x1a   : > { %1273 = vmatpush3.bf16.msra.mxu1 %v1331_v18  ;;  %v552_v42 = vpack.c.bf16 %v543_v40, %v542_v39  ;;  %v553_v46 = vpack.c.bf16 %v545_v44, %v544_v43  ;;  %v546_v47 = vld [vmem:[%s1399_s25 + $0x2a] sm:$0xff]  ;;  %v549_v52 = vld [vmem:[%s1399_s25 + $0x42] sm:$0xff]  ;;  %v1540_v43 = vadd.s32 32, %v1509_v6 }
  0x1b   : > { %v554_v50 = vpack.c.bf16 %v547_v48, %v546_v47  ;;  %v555_v54 = vpack.c.bf16 %v549_v52, %v548_v51  ;;  %v421_v55 = vld [vmem:[%s1399_s25 + $0x51] sm:$0xff] }
  0x1c   : > { %1207 = vmatmul.mubr.msk.bf16.gmra.mrb[4].mxu0 %vm223_vm1, %v202_v19  ;;  %v550_v56 = vld [vmem:[%s1399_s25 + $0x4a] sm:$0xff]  ;;  %v426_v58 = vpack.c.bf16 %v421_v55, %v200_v34  ;;  %v1530_v33 = vmul.u32.u64.low 3817748708, %v692_v24  ;;  %v1531_v34 = vmul.u32.u64.high 3817748708, %v692_v24, %v1530_v33 }
  0x1d   : > { %1231 = vmatmul.mubr.msk.bf16.gmra.mrb[4].mxu1 %vm223_vm1, %v183_v20  ;;  %1210 = vmatprep.mubr.msk.bf16.mxu0 %vm1343_vm0, %v1342_v1  ;;  %v556_v59 = vpack.c.bf16 %v551_v57, %v550_v56 }
  0x1e   : > { %1234 = vmatprep.mubr.msk.bf16.mxu1 %vm1343_vm0, %v1342_v1 }
  0x24   : > { %1211 = vmatmul.mubr.msk.bf16.gmra.mrb[8].mxu0 %vm223_vm1, %v203_v25  ;;  %v706_v25 = vshrl.u32 %v1515_v10, 3  ;;  %v1568_v10 = vadd.s32 56, %v1509_v6 }
  0x25   : > { %1235 = vmatmul.mubr.msk.bf16.gmra.mrb[8].mxu1 %vm223_vm1, %v184_v26  ;;  %1214 = vmatprep.mubr.msk.bf16.mxu0 %vm1343_vm0, %v1342_v1  ;;  %v693_v26 = vadd.s32 24, %v1509_v6 }
  0x26   : > { %1238 = vmatprep.mubr.msk.bf16.mxu1 %vm1343_vm0, %v1342_v1 }
  0x2c   : > { %1215 = vmatmul.mubr.msk.bf16.gmra.mrb[12].mxu0 %vm223_vm1, %v204_v31 }
  0x2d   : > { %1239 = vmatmul.mubr.msk.bf16.gmra.mrb[12].mxu1 %vm223_vm1, %v185_v32  ;;  %1218 = vmatprep.mubr.msk.bf16.mxu0 %vm1343_vm0, %v1342_v1 }
  0x2e   : > { %1242 = vmatprep.mubr.msk.bf16.mxu1 %vm1343_vm0, %v1342_v1 }
  0x34   : > { %1219 = vmatmul.mubr.msk.bf16.gmra.mrb[16].mxu0 %vm223_vm1, %v205_v37  ;;  %v707_v37 = vmul.u32 9, %v706_v25 }
  0x35   : > { %1243 = vmatmul.mubr.msk.bf16.gmra.mrb[16].mxu1 %vm223_vm1, %v186_v38  ;;  %1250 = vmatprep.mubr.msk.bf16.mxu0 %vm1343_vm0, %v1342_v1  ;;  %v1533_v38 = vmul.u32.u64.low 3817748708, %v693_v26  ;;  %v1534_v39 = vmul.u32.u64.high 3817748708, %v693_v26, %v1533_v38 }
  0x36   : > { %1274 = vmatprep.mubr.msk.bf16.mxu1 %vm1343_vm0, %v1342_v1  ;;  %v708_v44 = vsub.s32 %v1509_v6, %v707_v37 }
  0x38   : > { %vm810_vm2 = vcmp.ne.s32.totalorder %v708_v44, 0  ;;  %vm820_vm3 = vcmp.lt.s32.totalorder %v708_v44, 0 }
  0x39   : > { %vm1560_vm4 = vmand %vm820_vm3, %vm810_vm2 }
  0x3c   : > { %1251 = vmatmul.mubr.msk.bf16.vlgmr.msra.gmra.mrb[20].mxu0 %vm223_vm1, %v422_v41 }
  0x3d   : > { %1275 = vmatmul.mubr.msk.bf16.vlgmr.msra.gmra.mrb[20].mxu1 %vm223_vm1, %v552_v42  ;;  %1254 = vmatprep.mubr.msk.bf16.mxu0 %vm1343_vm0, %v1342_v1  ;;  %v717_v42 = vshrl.u32 %v1523_v23, 3 }
  0x3e   : > { %1278 = vmatprep.mubr.msk.bf16.mxu1 %vm1343_vm0, %v1342_v1 }
  0x44   : > { %1255 = vmatmul.mubr.msk.bf16.gmra.mrb[24].mxu0 %vm223_vm1, %v423_v45 }
  0x45   : > { %1279 = vmatmul.mubr.msk.bf16.gmra.mrb[24].mxu1 %vm223_vm1, %v553_v46  ;;  %1258 = vmatprep.mubr.msk.bf16.mxu0 %vm1343_vm0, %v1342_v1  ;;  %v1544_v46 = vadd.s32 40, %v1509_v6 }
  0x46   : > { %1282 = vmatprep.mubr.msk.bf16.mxu1 %vm1343_vm0, %v1342_v1 }
  0x4c   : > { %1259 = vmatmul.mubr.msk.bf16.gmra.mrb[28].mxu0 %vm223_vm1, %v424_v49  ;;  %v718_v49 = vmul.u32 9, %v717_v42 }
  0x4d   : > { %1283 = vmatmul.mubr.msk.bf16.gmra.mrb[28].mxu1 %vm223_vm1, %v554_v50  ;;  %1262 = vmatprep.mubr.msk.bf16.mxu0 %vm1343_vm0, %v1342_v1 }
  0x4e   : > { %1286 = vmatprep.mubr.msk.bf16.mxu1 %vm1343_vm0, %v1342_v1 }
  0x54   : > { %1263 = vmatmul.mubr.msk.bf16.gmra.mrb[32].mxu0 %vm223_vm1, %v425_v53  ;;  %v728_v53 = vshrl.u32 %v1531_v34, 3  ;;  %v1585_v33 = vmul.u32.u64.low 3817748708, %v1568_v10  ;;  %v1586_v34 = vmul.u32.u64.high 3817748708, %v1568_v10, %v1585_v33 }
  0x55   : > { %1287 = vmatmul.mubr.msk.bf16.gmra.mrb[32].mxu1 %vm223_vm1, %v555_v54  ;;  %1266 = vmatprep.mubr.msk.bf16.mxu0 %vm1343_vm0, %v1342_v1  ;;  %v1550_v54 = vmul.u32.u64.low 3817748708, %v1540_v43  ;;  %v1551_v55 = vmul.u32.u64.high 3817748708, %v1540_v43, %v1550_v54 }
  0x56   : > { %1290 = vmatprep.mubr.msk.bf16.mxu1 %vm1343_vm0, %v1342_v1  ;;  %vm920_vm0 = vcmask 130048  }
  0x5c   : > { %1267 = vmatmul.mubr.msk.bf16.gmra.mrb[36].mxu0 %vm223_vm1, %v426_v58  ;;  %v739_v58 = vshrl.u32 %v1534_v39, 3 }
  0x5d   : > { %1291 = vmatmul.mubr.msk.bf16.gmra.mrb[36].mxu1 %vm223_vm1, %v556_v59 }
  0xe7   : > { %v273_v61 = vpop.f32.mrb[0].mxu0 }
  0xe8   : > { %v373_v62 = vpop.f32.mrb[0].mxu1  ;;  %v1204_v63 = vpop.f32.mrb[1].mxu0 }
  0xe9   : > { %v1507_v0 = vadd.f32 %v373_v62, %v273_v61  ;;  %v1228_v2 = vpop.f32.mrb[1].mxu1  ;;  %v276_v3 = vpop.f32.mrb[2].mxu0  ;;  %v1557_v61 = vmul.u32.u64.low 3817748708, %v1544_v46  ;;  %v1558_v62 = vmul.u32.u64.high 3817748708, %v1544_v46, %v1557_v61  ;;  %v840_v63 = vadd.s32 9, %v708_v44 }
  0xea   : > { %v376_v4 = vpop.f32.mrb[2].mxu1  ;;  %v1205_v5 = vpop.f32.mrb[3].mxu0  ;;  %v719_v2 = vsub.s32 %v691_v14, %v718_v49 }
  0xeb   : > { %v1511_v7 = vadd.f32 %v376_v4, %v276_v3  ;;  %v1229_v8 = vpop.f32.mrb[3].mxu1  ;;  %v729_v4 = vmul.u32 9, %v728_v53  ;;  %v740_v5 = vmul.u32 9, %v739_v58 }
  0xec   : > { %v1565_v8 = vadd.s32 48, %v1509_v6  ;;  %vm811_vm5 = vcmp.ne.s32.totalorder %v719_v2, 0  ;;  %vm821_vm6 = vcmp.lt.s32.totalorder %v719_v2, 0  ;;  %v841_v23 = vadd.s32 9, %v719_v2 }
  0xed   : > { %v1575_v25 = vsub.s32 %v693_v26, %v740_v5  ;;  %vm1589_vm7 = vmand %vm821_vm6, %vm811_vm5  ;;  %v1594_v26 = vadd.s32 64, %v1509_v6 }
  0xee   : > { %v851_v37 = vsel %vm1589_vm7, %v841_v23, %v719_v2 }
  0xef   : > { %v281_v11 = vpop.f32.mrb[4].mxu0  ;;  %vm813_vm11 = vcmp.ne.s32.totalorder %v1575_v25, 0  ;;  %vm823_vm13 = vcmp.lt.s32.totalorder %v1575_v25, 0  ;;  %vm861_vm14 = vcmp.lt.s32.totalorder %v851_v37, 8 }
  0xf0   : > { %v381_v12 = vpop.f32.mrb[4].mxu1  ;;  %v1208_v13 = vpop.f32.mrb[5].mxu0  ;;  %vm1626_vm15 = vmand %vm823_vm13, %vm813_vm11  ;;  %v1639_v3 = vsel %vm861_vm14, 1.0, %v1342_v1 }
  0xf1   : > { %v1518_v15 = vadd.f32 %v381_v12, %v281_v11  ;;  %v1232_v16 = vpop.f32.mrb[5].mxu1  ;;  %v284_v17 = vpop.f32.mrb[6].mxu0  ;;  %v850_v13 = vsel %vm1560_vm4, %v840_v63, %v708_v44 }
  0xf2   : > { %v384_v18 = vpop.f32.mrb[6].mxu1  ;;  %v1209_v19 = vpop.f32.mrb[7].mxu0  ;;  %vm860_vm10 = vcmp.lt.s32.totalorder %v850_v13, 8 }
  0xf3   : > { %v1520_v20 = vadd.f32 %v384_v18, %v284_v17  ;;  %v1233_v21 = vpop.f32.mrb[7].mxu1  ;;  %v730_v18 = vsub.s32 %v692_v24, %v729_v4  ;;  %v750_v19 = vshrl.u32 %v1551_v55, 3  ;;  %v1615_v49 = vsel %vm860_vm10, 1.0, %v1342_v1 }
  0xf5   : > { %vm812_vm8 = vcmp.ne.s32.totalorder %v730_v18, 0  ;;  %vm822_vm9 = vcmp.lt.s32.totalorder %v730_v18, 0  ;;  %v842_v38 = vadd.s32 9, %v730_v18 }
  0xf6   : > { %vm1600_vm12 = vmand %vm822_vm9, %vm812_vm8 }
  0xf7   : > { %v289_v27 = vpop.f32.mrb[8].mxu0 }
  0xf8   : > { %v389_v28 = vpop.f32.mrb[8].mxu1  ;;  %v1212_v29 = vpop.f32.mrb[9].mxu0 }
  0xf9   : > { %v1528_v30 = vadd.f32 %v389_v28, %v289_v27  ;;  %v1236_v31 = vpop.f32.mrb[9].mxu1  ;;  %v292_v32 = vpop.f32.mrb[10].mxu0  ;;  %v1578_v27 = vmul.u32.u64.low 3817748708, %v1565_v8  ;;  %v1579_v28 = vmul.u32.u64.high 3817748708, %v1565_v8, %v1578_v27 }
  0xfa   : > { %v392_v35 = vpop.f32.mrb[10].mxu1  ;;  %v1213_v36 = vpop.f32.mrb[11].mxu0 }
  0xfb   : > { %v1536_v40 = vadd.f32 %v392_v35, %v292_v32  ;;  %v1237_v41 = vpop.f32.mrb[11].mxu1  ;;  %v761_v32 = vshrl.u32 %v1558_v62, 3  ;;  %v751_v35 = vmul.u32 9, %v750_v19  ;;  %v783_v62 = vshrl.u32 %v1586_v34, 3 }
  0xfd   : > { %v762_v39 = vmul.u32 9, %v761_v32  ;;  %v784_v13 = vmul.u32 9, %v783_v62 }
  0xff   : > { %v297_v45 = vpop.f32.mrb[12].mxu0 }
 0x100   : > { %v397_v47 = vpop.f32.mrb[12].mxu1  ;;  %v1216_v48 = vpop.f32.mrb[13].mxu0 }
 0x101   : > { %v1546_v50 = vadd.f32 %v397_v47, %v297_v45  ;;  %v1240_v51 = vpop.f32.mrb[13].mxu1  ;;  %v300_v52 = vpop.f32.mrb[14].mxu0  ;;  %v1606_v6 = vmul.u32.u64.low 3817748708, %v1594_v26  ;;  %v1607_v47 = vmul.u32.u64.high 3817748708, %v1594_v26, %v1606_v6  ;;  %v1612_v48 = vld [vmem:[%s1833_s2] ss:$0 sm:$0xff] }
 0x102   : > { %v400_v56 = vpop.f32.mrb[14].mxu1  ;;  %v1217_v57 = vpop.f32.mrb[15].mxu0 }
 0x103   : > { %v1554_v59 = vadd.f32 %v400_v56, %v300_v52  ;;  %v1241_v60 = vpop.f32.mrb[15].mxu1  ;;  %v752_v52 = vsub.s32 %v1540_v43, %v751_v35  ;;  %v843_v57 = vadd.s32 9, %v1575_v25  ;;  %v1631_v43 = vsub.s32 %v1544_v46, %v762_v39 }
 0x104   : > { %v852_v60 = vsel %vm1600_vm12, %v842_v38, %v730_v18 }
 0x105   : > { %vm814_vm1 = vcmp.ne.s32.totalorder %v752_v52, 0  ;;  %vm824_vm2 = vcmp.lt.s32.totalorder %v752_v52, 0  ;;  %vm862_vm3 = vcmp.lt.s32.totalorder %v852_v60, 8  ;;  %v853_v5 = vsel %vm1626_vm15, %v843_v57, %v1575_v25 }
 0x106   : > { %vm815_vm4 = vcmp.ne.s32.totalorder %v1631_v43, 0  ;;  %vm1654_vm5 = vmand %vm824_vm2, %vm814_vm1  ;;  %vm825_vm6 = vcmp.lt.s32.totalorder %v1631_v43, 0  ;;  %v1661_v23 = vsel %vm862_vm3, 1.0, %v1342_v1  ;;  %vm1663_vm7 = vcmp.lt.s32.totalorder %v853_v5, 8 }
 0x107   : > { %v305_v9 = vpop.f32.mrb[16].mxu0  ;;  %vm1677_vm8 = vmand %vm825_vm6, %vm815_vm4  ;;  %v1689_v6 = vsel %vm1663_vm7, 1.0, %v1342_v1 }
 0x108   : > { %v405_v11 = vpop.f32.mrb[16].mxu1  ;;  %v1220_v12 = vpop.f32.mrb[17].mxu0 }
 0x109   : > { %v1572_v14 = vadd.f32 %v405_v11, %v305_v9  ;;  %v1244_v16 = vpop.f32.mrb[17].mxu1  ;;  %v308_v17 = vpop.f32.mrb[18].mxu0  ;;  %v844_v11 = vadd.s32 9, %v752_v52 }
 0x10a   : > { %v408_v21 = vpop.f32.mrb[18].mxu1  ;;  %v1221_v22 = vpop.f32.mrb[19].mxu0 }
 0x10b   : > { %v1581_v29 = vadd.f32 %v408_v21, %v308_v17  ;;  %v1245_v31 = vpop.f32.mrb[19].mxu1  ;;  %v794_v22 = vshrl.u32 %v1607_v47, 3  ;;  %v854_v38 = vsel %vm1654_vm5, %v844_v11, %v752_v52 }
 0x10c   : > { %vm1696_vm9 = vcmp.lt.s32.totalorder %v854_v38, 8 }
 0x10d   : > { %v795_v45 = vmul.u32 9, %v794_v22 }
 0x10f   : > { %v493_v36 = vpop.f32.mrb[20].mxu0  ;;  %v796_v57 = vsub.s32 %v1594_v26, %v795_v45 }
 0x110   : > { %v532_v41 = vadd.f32 %v493_v36, %v1507_v0  ;;  %v623_v42 = vpop.f32.mrb[20].mxu1  ;;  %v1252_v44 = vpop.f32.mrb[21].mxu0 }
 0x111   : > { %v1276_v0 = vpop.f32.mrb[21].mxu1  ;;  %v496_v51 = vpop.f32.mrb[22].mxu0  ;;  %vm818_vm2 = vcmp.ne.s32.totalorder %v796_v57, 0  ;;  %vm828_vm3 = vcmp.lt.s32.totalorder %v796_v57, 0 }
 0x112   : > { %v662_v53 = vadd.f32 %v623_v42, %v532_v41  ;;  %v533_v54 = vadd.f32 %v496_v51, %v1511_v7  ;;  %v626_v55 = vpop.f32.mrb[22].mxu1  ;;  %v1253_v56 = vpop.f32.mrb[23].mxu0  ;;  %v772_v7 = vshrl.u32 %v1579_v28, 3  ;;  %v785_v42 = vsub.s32 %v1568_v10, %v784_v13  ;;  %vm1748_vm4 = vmand %vm828_vm3, %vm818_vm2 }
 0x113   : > { %v1277_v58 = vpop.f32.mrb[23].mxu1  ;;  %v1723_v13 = vsel %vm1696_vm9, 1.0, %v1342_v1  ;;  %v848_v28 = vadd.s32 9, %v796_v57 }
 0x114   : > { %v1636_v63 = vadd.f32 %v1612_v48, %v662_v53  ;;  %v663_v2 = vadd.f32 %v626_v55, %v533_v54  ;;  %v773_v12 = vmul.u32 9, %v772_v7  ;;  %vm817_vm12 = vcmp.ne.s32.totalorder %v785_v42, 0 }
 0x115   : > { %vm827_vm13 = vcmp.lt.s32.totalorder %v785_v42, 0  ;;  %v847_v11 = vadd.s32 9, %v785_v42 }
 0x116   : > { %v910_v4 = vmul.f32 %v1615_v49, %v1636_v63  ;;  %v1644_v46 = vadd.f32 %v1612_v48, %v663_v2  ;;  %v774_v41 = vsub.s32 %v1565_v8, %v773_v12  ;;  %vm1727_vm1 = vmand %vm827_vm13, %vm817_vm12 }
 0x117   : > { %v501_v9 = vpop.f32.mrb[24].mxu0 }
 0x118   : > { %v911_v16 = vmul.f32 %v1639_v3, %v1644_v46  ;;  %v534_v17 = vadd.f32 %v501_v9, %v1518_v15  ;;  %v631_v18 = vpop.f32.mrb[24].mxu1  ;;  %v1256_v19 = vpop.f32.mrb[25].mxu0  ;;  %v845_v15 = vadd.s32 9, %v1631_v43  ;;  %v921_v31 = vsel %vm920_vm0, %v910_v4, 0.0 }
 0x119   : > { %v1280_v25 = vpop.f32.mrb[25].mxu1  ;;  %v504_v27 = vpop.f32.mrb[26].mxu0  ;;  %vm816_vm10 = vcmp.ne.s32.totalorder %v774_v41, 0  ;;  %vm826_vm11 = vcmp.lt.s32.totalorder %v774_v41, 0  ;;  %v846_v7 = vadd.s32 9, %v774_v41 }
 0x11a   : > { %v922_v32 = vsel %vm920_vm0, %v911_v16, 0.0  ;;  %v664_v33 = vadd.f32 %v631_v18, %v534_v17  ;;  %v535_v34 = vadd.f32 %v504_v27, %v1520_v20  ;;  %v634_v24 = vpop.f32.mrb[26].mxu1  ;;  %v1257_v35 = vpop.f32.mrb[27].mxu0  ;;  %v855_v10 = vsel %vm1677_vm8, %v845_v15, %v1631_v43  ;;  %vm1716_vm15 = vmand %vm826_vm11, %vm816_vm10 }
 0x11b   : > { %v923_v36 = vadd.f32 %v922_v32, %v921_v31  ;;  %v1281_v37 = vpop.f32.mrb[27].mxu1  ;;  %vm1708_vm14 = vcmp.lt.s32.totalorder %v855_v10, 8  ;;  %v856_v21 = vsel %vm1716_vm15, %v846_v7, %v774_v41  ;;  %v857_v27 = vsel %vm1727_vm1, %v847_v11, %v785_v42 }
 0x11c   : > { %v1684_v20 = vadd.f32 %v1612_v48, %v664_v33  ;;  %v665_v44 = vadd.f32 %v634_v24, %v535_v34  ;;  %v1737_v19 = vsel %vm1708_vm14, 1.0, %v1342_v1  ;;  %vm866_vm5 = vcmp.lt.s32.totalorder %v856_v21, 8 }
 0x11d   : > { %vm867_vm6 = vcmp.lt.s32.totalorder %v857_v27, 8  ;;  %vm878_vm8 = vcmp.lt.s32.totalorder %v1594_v26, 71 }
 0x11e   : > { %v912_v47 = vmul.f32 %v1661_v23, %v1684_v20  ;;  %v1694_v0 = vadd.f32 %v1612_v48, %v665_v44 }
 0x11f   : > { %v509_v51 = vpop.f32.mrb[28].mxu0 }
 0x120   : > { %v924_v52 = vsel %vm920_vm0, %v912_v47, 0.0  ;;  %v913_v53 = vmul.f32 %v1689_v6, %v1694_v0  ;;  %v536_v54 = vadd.f32 %v509_v51, %v1528_v30  ;;  %v639_v55 = vpop.f32.mrb[28].mxu1  ;;  %v1260_v56 = vpop.f32.mrb[29].mxu0  ;;  %v858_v47 = vsel %vm1748_vm4, %v848_v28, %v796_v57 }
 0x121   : > { %v925_v58 = vadd.f32 %v924_v52, %v923_v36  ;;  %v1284_v60 = vpop.f32.mrb[29].mxu1  ;;  %v512_v61 = vpop.f32.mrb[30].mxu0  ;;  %vm868_vm7 = vcmp.lt.s32.totalorder %v858_v47, 8 }
 0x122   : > { %v926_v62 = vsel %vm920_vm0, %v913_v53, 0.0  ;;  %v666_v2 = vadd.f32 %v639_v55, %v536_v54  ;;  %v537_v4 = vadd.f32 %v512_v61, %v1536_v40  ;;  %v642_v5 = vpop.f32.mrb[30].mxu1  ;;  %v1261_v9 = vpop.f32.mrb[31].mxu0  ;;  %v1765_v53 = vsel %vm867_vm6, 1.0, %v1342_v1  ;;  %vm888_vm9 = vmand %vm868_vm7, %vm878_vm8 }
 0x123   : > { %v927_v12 = vadd.f32 %v926_v62, %v925_v58  ;;  %v1285_v16 = vpop.f32.mrb[31].mxu1  ;;  %v1167_v11 = vsel %vm888_vm9, 1.0, %v1342_v1 }
 0x124   : > { %v1732_v17 = vadd.f32 %v1612_v48, %v666_v2  ;;  %v667_v18 = vadd.f32 %v642_v5, %v537_v4 }
 0x126   : > { %v914_v22 = vmul.f32 %v1723_v13, %v1732_v17  ;;  %v1744_v25 = vadd.f32 %v1612_v48, %v667_v18 }
 0x127   : > { %v517_v15 = vpop.f32.mrb[32].mxu0 }
 0x128   : > { %v928_v32 = vsel %vm920_vm0, %v914_v22, 0.0  ;;  %v915_v33 = vmul.f32 %v1737_v19, %v1744_v25  ;;  %v538_v34 = vadd.f32 %v517_v15, %v1546_v50  ;;  %v647_v24 = vpop.f32.mrb[32].mxu1  ;;  %v1264_v35 = vpop.f32.mrb[33].mxu0  ;;  %v1761_v50 = vsel %vm866_vm5, 1.0, %v1342_v1 }
 0x129   : > { %v929_v36 = vadd.f32 %v928_v32, %v927_v12  ;;  %v1288_v37 = vpop.f32.mrb[33].mxu1  ;;  %v520_v38 = vpop.f32.mrb[34].mxu0 }
 0x12a   : > { %v930_v39 = vsel %vm920_vm0, %v915_v33, 0.0  ;;  %v668_v41 = vadd.f32 %v647_v24, %v538_v34  ;;  %v539_v42 = vadd.f32 %v520_v38, %v1554_v59  ;;  %v650_v44 = vpop.f32.mrb[34].mxu1  ;;  %v1265_v45 = vpop.f32.mrb[35].mxu0 }
 0x12b   : > { %v931_v8 = vadd.f32 %v930_v39, %v929_v36  ;;  %v1289_v10 = vpop.f32.mrb[35].mxu1 }
 0x12c   : > { %v685_v51 = vadd.f32 %v1612_v48, %v668_v41  ;;  %v669_v52 = vadd.f32 %v650_v44, %v539_v42 }
 0x12e   : > { %v916_v59 = vmul.f32 %v1761_v50, %v685_v51  ;;  %v686_v54 = vadd.f32 %v1612_v48, %v669_v52 }
 0x12f   : > { %v525_v55 = vpop.f32.mrb[36].mxu0 }
 0x130   : > { %v932_v56 = vsel %vm920_vm0, %v916_v59, 0.0  ;;  %v917_v57 = vmul.f32 %v1765_v53, %v686_v54  ;;  %v540_v58 = vadd.f32 %v525_v55, %v1572_v14  ;;  %v655_v60 = vpop.f32.mrb[36].mxu1  ;;  %v1268_v61 = vpop.f32.mrb[37].mxu0 }
 0x131   : > { %v933_v43 = vadd.f32 %v932_v56, %v931_v8  ;;  %v1292_v7 = vpop.f32.mrb[37].mxu1  ;;  %v528_v62 = vpop.f32.mrb[38].mxu0 }
 0x132   : > { %v934_v2 = vsel %vm920_vm0, %v917_v57, 0.0  ;;  %v670_v26 = vadd.f32 %v655_v60, %v540_v58  ;;  %v541_v4 = vadd.f32 %v528_v62, %v1581_v29  ;;  %v658_v5 = vpop.f32.mrb[38].mxu1  ;;  %v1269_v9 = vpop.f32.mrb[39].mxu0 }
 0x133   : > { %v935_v30 = vadd.f32 %v934_v2, %v933_v43  ;;  %v1293_v12 = vpop.f32.mrb[39].mxu1 }
 0x134   : > { %v687_v16 = vadd.f32 %v1612_v48, %v670_v26  ;;  %v671_v14 = vadd.f32 %v658_v5, %v541_v4 }
 0x136   : > { %v918_v40 = vmul.f32 %v1167_v11, %v687_v16  ;;  %v688_v18 = vadd.f32 %v1612_v48, %v671_v14 }
 0x138   : > { %v936_v21 = vsel %vm920_vm0, %v918_v40, 0.0  ;;  %v919_v22 = vmul.f32 0.0, %v688_v18 }
 0x139   : > { %v937_v27 = vadd.f32 %v936_v21, %v935_v30 }
 0x13a   : > { %v938_v28 = vsel %vm920_vm0, %v919_v22, 0.0 }
 0x13b   : > { %v939_v15 = vadd.f32 %v938_v28, %v937_v27 }
 0x13d   : > { %v940_v29 = vrot.slane %v939_v15, 4 }
 0x13f   : > { %v941_v31 = vadd.f32 %v940_v29, %v939_v15 }
 0x141   : > { %v942_v32 = vrot.slane %v941_v31, 2 }
 0x143   : > { %v943_v33 = vadd.f32 %v942_v32, %v941_v31 }
 0x145   : > { %v944_v34 = vrot.slane %v943_v33, 1 }
 0x147   : > { %v945_v1 = vadd.f32 %v944_v34, %v943_v33 }
 0x149   : > { %v947_v24 = vmul.f32 0.015625, %v945_v1 }
 0x14b   : > { %v948_v35 = vsub.f32 %v1636_v63, %v947_v24  ;;  %v949_v36 = vsub.f32 %v1644_v46, %v947_v24  ;;  %v950_v48 = vsub.f32 %v1684_v20, %v947_v24  ;;  %v951_v37 = vsub.f32 %v1694_v0, %v947_v24 }
 0x14c   : > { %v952_v38 = vsub.f32 %v1732_v17, %v947_v24  ;;  %v953_v39 = vsub.f32 %v1744_v25, %v947_v24  ;;  %v954_v41 = vsub.f32 %v685_v51, %v947_v24  ;;  %v955_v42 = vsub.f32 %v686_v54, %v947_v24 }
 0x14d   : > { %v956_v44 = vsub.f32 %v687_v16, %v947_v24  ;;  %v957_v45 = vsub.f32 %v688_v18, %v947_v24  ;;  %v958_v47 = vmul.f32 %v1615_v49, %v948_v35  ;;  %v959_v8 = vmul.f32 %v1639_v3, %v949_v36 }
 0x14e   : > { %v960_v63 = vmul.f32 %v1661_v23, %v950_v48  ;;  %v961_v46 = vmul.f32 %v1689_v6, %v951_v37  ;;  %v962_v20 = vmul.f32 %v1723_v13, %v952_v38  ;;  %v963_v17 = vmul.f32 %v1737_v19, %v953_v39 }
 0x14f   : > { %v968_v10 = vmul.f32 %v958_v47, %v958_v47  ;;  %v969_v0 = vmul.f32 %v959_v8, %v959_v8  ;;  %v964_v49 = vmul.f32 %v1761_v50, %v954_v41  ;;  %v965_v6 = vmul.f32 %v1765_v53, %v955_v42 }
 0x150   : > { %v970_v52 = vmul.f32 %v960_v63, %v960_v63  ;;  %v971_v25 = vmul.f32 %v961_v46, %v961_v46  ;;  %v972_v3 = vmul.f32 %v962_v20, %v962_v20  ;;  %v973_v13 = vmul.f32 %v963_v17, %v963_v17 }
 0x151   : > { %v978_v51 = vsel %vm920_vm0, %v968_v10, 0.0  ;;  %v979_v59 = vsel %vm920_vm0, %v969_v0, 0.0  ;;  %v966_v58 = vmul.f32 %v1167_v11, %v956_v44  ;;  %v974_v19 = vmul.f32 %v964_v49, %v964_v49 }
 0x152   : > { %v980_v54 = vadd.f32 %v979_v59, %v978_v51  ;;  %v981_v23 = vsel %vm920_vm0, %v970_v52, 0.0  ;;  %v983_v56 = vsel %vm920_vm0, %v971_v25, 0.0  ;;  %v985_v60 = vsel %vm920_vm0, %v972_v3, 0.0 }
 0x153   : > { %v967_v43 = vmul.f32 0.0, %v957_v45  ;;  %v975_v7 = vmul.f32 %v965_v6, %v965_v6  ;;  %v987_v62 = vsel %vm920_vm0, %v973_v13, 0.0  ;;  %v976_v2 = vmul.f32 %v966_v58, %v966_v58 }
 0x154   : > { %v982_v55 = vadd.f32 %v981_v23, %v980_v54  ;;  %v989_v26 = vsel %vm920_vm0, %v974_v19, 0.0 }
 0x155   : > { %v977_v5 = vmul.f32 %v967_v43, %v967_v43  ;;  %v991_v53 = vsel %vm920_vm0, %v975_v7, 0.0  ;;  %v993_v30 = vsel %vm920_vm0, %v976_v2, 0.0 }
 0x156   : > { %v984_v57 = vadd.f32 %v983_v56, %v982_v55 }
 0x157   : > { %v995_v12 = vsel %vm920_vm0, %v977_v5, 0.0 }
 0x158   : > { %v986_v61 = vadd.f32 %v985_v60, %v984_v57 }
 0x15a   : > { %v988_v50 = vadd.f32 %v987_v62, %v986_v61 }
 0x15c   : > { %v990_v4 = vadd.f32 %v989_v26, %v988_v50 }
 0x15e   : > { %v992_v9 = vadd.f32 %v991_v53, %v990_v4 }
 0x160   : > { %v994_v11 = vadd.f32 %v993_v30, %v992_v9 }
 0x162   : > { %v996_v16 = vadd.f32 %v995_v12, %v994_v11 }
 0x164   : > { %v997_v14 = vrot.slane %v996_v16, 4 }
 0x166   : > { %v998_v40 = vadd.f32 %v997_v14, %v996_v16 }
 0x168   : > { %v999_v18 = vrot.slane %v998_v40, 2 }
 0x16a   : > { %v1000_v21 = vadd.f32 %v999_v18, %v998_v40 }
 0x16c   : > { %v1001_v22 = vrot.slane %v1000_v21, 1 }
 0x16e   : > { %v1002_v27 = vadd.f32 %v1001_v22, %v1000_v21 }
 0x170   : > { %v1003_v28 = vmul.f32 0.015625, %v1002_v27 }
 0x172   : > { %v1004_v15 = vadd.f32 1e-05, %v1003_v28 }
 0x174   : > { %1332 = vrsqrt.f32 %v1004_v15 }
 0x17e   : > { %v1333_v29 = vpop.eup %1332 }
 0x17f   : > { %v1006_v31 = vmul.f32 %v1333_v29, %v948_v35  ;;  %v1007_v32 = vmul.f32 %v1333_v29, %v949_v36  ;;  %v1008_v33 = vmul.f32 %v1333_v29, %v950_v48  ;;  %v1009_v34 = vmul.f32 %v1333_v29, %v951_v37 }
 0x180   : > { %v1010_v1 = vmul.f32 %v1333_v29, %v952_v38  ;;  %v1011_v24 = vmul.f32 %v1333_v29, %v953_v39  ;;  %v1012_v47 = vmul.f32 %v1333_v29, %v954_v41  ;;  %v1013_v8 = vmul.f32 %v1333_v29, %v955_v42 }
 0x181   : > { %v1014_v63 = vmul.f32 %v1333_v29, %v956_v44  ;;  %v1015_v46 = vmul.f32 %v1333_v29, %v957_v45  ;;  %vm1016_vm10 = vcmp.ge.f32.partialorder %v1006_v31, 0.0  ;;  %vm1017_vm11 = vcmp.ge.f32.partialorder %v1007_v32, 0.0 }
 0x182   : > { %vm1018_vm12 = vcmp.ge.f32.partialorder %v1008_v33, 0.0  ;;  %vm1019_vm13 = vcmp.ge.f32.partialorder %v1009_v34, 0.0  ;;  %vm1020_vm14 = vcmp.ge.f32.partialorder %v1010_v1, 0.0  ;;  %vm1021_vm15 = vcmp.ge.f32.partialorder %v1011_v24, 0.0 }
 0x183   : > { %vm1022_vm1 = vcmp.ge.f32.partialorder %v1012_v47, 0.0  ;;  %vm1023_vm2 = vcmp.ge.f32.partialorder %v1013_v8, 0.0  ;;  %vm1024_vm3 = vcmp.ge.f32.partialorder %v1014_v63, 0.0  ;;  %vm1025_vm4 = vcmp.ge.f32.partialorder %v1015_v46, 0.0 }
 0x184   : > { %v1026_v35 = vmul.f32 0.2, %v1006_v31  ;;  %v1027_v36 = vmul.f32 0.2, %v1007_v32  ;;  %v1028_v48 = vmul.f32 0.2, %v1008_v33 }
 0x185   : > { %v1029_v37 = vmul.f32 0.2, %v1009_v34  ;;  %v1030_v38 = vmul.f32 0.2, %v1010_v1  ;;  %v1031_v39 = vmul.f32 0.2, %v1011_v24 }
 0x186   : > { %v1032_v41 = vmul.f32 0.2, %v1012_v47  ;;  %v1033_v42 = vmul.f32 0.2, %v1013_v8  ;;  %v1034_v44 = vmul.f32 0.2, %v1014_v63  ;;  %v1036_v45 = vsel %vm1016_vm10, %v1006_v31, %v1026_v35 }
 0x187   : > { %v1035_v20 = vmul.f32 0.2, %v1015_v46  ;;  %v1037_v10 = vsel %vm1017_vm11, %v1007_v32, %v1027_v36  ;;  %v1038_v0 = vsel %vm1018_vm12, %v1008_v33, %v1028_v48  ;;  %v1039_v52 = vsel %vm1019_vm13, %v1009_v34, %v1029_v37  ;;  %1046 = vst.msk [vmem:[%s170_s13] sm:$0xff] %vm920_vm0, %v1036_v45 }
 0x188   : > { %v1040_v17 = vsel %vm1020_vm14, %v1010_v1, %v1030_v38  ;;  %v1041_v25 = vsel %vm1021_vm15, %v1011_v24, %v1031_v39  ;;  %v1042_v51 = vsel %vm1022_vm1, %v1012_v47, %v1032_v41  ;;  %v1043_v59 = vsel %vm1023_vm2, %v1013_v8, %v1033_v42  ;;  %1047 = vst.msk [vmem:[%s170_s13 + $0x8] sm:$0xff] %vm920_vm0, %v1037_v10 }
 0x189   : > { %1048 = vst.msk [vmem:[%s170_s13 + $0x10] sm:$0xff] %vm920_vm0, %v1038_v0  ;;  %1049 = vst.msk [vmem:[%s170_s13 + $0x18] sm:$0xff] %vm920_vm0, %v1039_v52  ;;  %v1044_v54 = vsel %vm1024_vm3, %v1014_v63, %v1034_v44  ;;  %v1045_v49 = vsel %vm1025_vm4, %v1015_v46, %v1035_v20 }
 0x18a   : > { %1050 = vst.msk [vmem:[%s170_s13 + $0x20] sm:$0xff] %vm920_vm0, %v1040_v17  ;;  %1051 = vst.msk [vmem:[%s170_s13 + $0x28] sm:$0xff] %vm920_vm0, %v1041_v25 }
 0x18b   : > { %1052 = vst.msk [vmem:[%s170_s13 + $0x30] sm:$0xff] %vm920_vm0, %v1042_v51  ;;  %1053 = vst.msk [vmem:[%s170_s13 + $0x38] sm:$0xff] %vm920_vm0, %v1043_v59 }
 0x18c   : > { %1054 = vst.msk [vmem:[%s170_s13 + $0x40] sm:$0xff] %vm920_vm0, %v1044_v54  ;;  %1055 = vst.msk [vmem:[%s170_s13 + $0x48] sm:$0xff] %vm920_vm0, %v1045_v49 }
 0x18d PF: > { %s13_s12 = sadd.s32 1, %s1340_s12  }
 0x18e   : > { %p10_p4 = scmp.ge.s32.totalorder %s13_s12, 4  }
 0x190   :  { %12 = sbr.rel (!%p10_p4) target bundleno = 1 (0x1), region = 65 }

// kernel: msdisc_forward.9
= control target key start
LH: loop header
LB: loop body
LE: loop exit
PB: predicated region body
PF: predicated region fallthrough
CT: control target
= control target key end

     0   :  { %s989_s12 = smov 0   ;;  %s1117_s0 = inlined_call_operand.vmem [shape: f32[2,38,64], index: 0, kind: input, shape index: {}]   ;;  %s1118_s1 = inlined_call_operand.vmem [shape: bf16[4,64,32], index: 1, kind: input, shape index: {}]   ;;  %s1119_s2 = inlined_call_operand.vmem [shape: f32[1,32], index: 2, kind: input, shape index: {}]   ;;  %s1120_s3 = inlined_call_operand.vmem [shape: f32[2,32,32], index: 3, kind: output, shape index: {}]  }
   0x1 LB: > { %s779_s13 = sadd.s32 4294967295, %s966_s12   ;;  %p783_p0 = scmp.ge.s32.totalorder %s966_s12, 1  ;;  %s966_s12 = sphi %s989_s12, %s13_s12  }
   0x2   : > { %p137_p1 = scmp.lt.s32.totalorder %s966_s12, 3 }
   0x4   : > { %p138_p2 = pnand %p783_p0, %p137_p1 }
   0x5   : > { %v942_v0 = vld [vmem:[%s1118_s1 + $0x20] sm:$0xff] (!%p138_p2)   ;;  %p161_p3 = scmp.lt.s32.totalorder (!%p138_p2), %s779_s13, 1  ;;  %v944_v2 = vld [vmem:[%s1118_s1 + $0x28] sm:$0xff] (!%p138_p2)   ;;  %v946_v4 = vld [vmem:[%s1118_s1 + $0x30] sm:$0xff] (!%p138_p2)   ;;  %vm225_vm0 = vcmask (!%p138_p2), 523264   ;;  %v567_v40 = vlaneseq (!%p138_p2)  ;;  %vm660_vm15 = vcmask (!%p138_p2), 261120  }
   0x6   : > { %141 = sbr.rel (%p138_p2) target bundleno = 329 (0x149), region = 32  ;;  %v943_v1 = vld [vmem:[%s1118_s1 + $0x40] sm:$0xff] (!%p138_p2)   ;;  %866 = vmatprep.subr.bf16.mxu1 (!%p138_p2), %v942_v0  ;;  %v945_v3 = vld [vmem:[%s1118_s1 + $0x48] sm:$0xff] (!%p138_p2)   ;;  %v947_v5 = vld [vmem:[%s1118_s1 + $0x50] sm:$0xff] (!%p138_p2)  }
   0x7   : > { %890 = vmatprep.subr.bf16.mxu0 (!%p138_p2), %v943_v1  ;;  %867 = vmatpush3.bf16.msra.mxu1 (!%p138_p2), %v942_v0  ;;  %v948_v6 = vld [vmem:[%s1118_s1 + $0x38] sm:$0xff] (!%p138_p2)   ;;  %v950_v13 = vld [vmem:[%s1118_s1] sm:$0xff] (!%p138_p2)   ;;  %v952_v22 = vld [vmem:[%s1118_s1 + $0x8] sm:$0xff] (!%p138_p2)   ;;  %v568_v41 = vshrl.u32 (!%p138_p2), %v567_v40, 7 }
   0x8   : > { %891 = vmatpush3.bf16.msra.mxu0 (!%p138_p2), %v943_v1  ;;  %868 = vmatprep.subr.bf16.mxu1 (!%p138_p2), %v944_v2  ;;  %v949_v9 = vld [vmem:[%s1118_s1 + $0x58] sm:$0xff] (!%p138_p2)   ;;  %v951_v19 = vld [vmem:[%s1118_s1 + $0x60] sm:$0xff] (!%p138_p2)   ;;  %v953_v23 = vld [vmem:[%s1118_s1 + $0x68] sm:$0xff] (!%p138_p2)  }
   0x9   : > { %892 = vmatprep.subr.bf16.mxu0 (!%p138_p2), %v945_v3  ;;  %v954_v28 = vld [vmem:[%s1118_s1 + $0x10] sm:$0xff] (!%p138_p2)   ;;  %v956_v32 = vld [vmem:[%s1118_s1 + $0x18] sm:$0xff] (!%p138_p2)   ;;  %v570_v42 = vadd.s32 (!%p138_p2), 16, %v568_v41  ;;  %v569_v43 = vadd.s32 (!%p138_p2), 8, %v568_v41  ;;  %v1080_v46 = vmul.u32.u64.low (!%p138_p2), 3435973837, %v568_v41  ;;  %v1081_v47 = vmul.u32.u64.high 3435973837, %v568_v41, %v1080_v46 }
   0xa   : > { %v955_v31 = vld [vmem:[%s1118_s1 + $0x70] sm:$0xff] (!%p138_p2)   ;;  %v957_v33 = vld [vmem:[%s1118_s1 + $0x78] sm:$0xff] (!%p138_p2)  }
   0xb   : > { %869 = vmatpush3.bf16.msra.mxu1 (!%p138_p2), %v944_v2  ;;  %v1077_v44 = vmul.u32.u64.low (!%p138_p2), 3435973837, %v570_v42  ;;  %v1078_v45 = vmul.u32.u64.high 3435973837, %v570_v42, %v1077_v44  ;;  %v1083_v48 = vmul.u32.u64.low (!%p138_p2), 3435973837, %v569_v43  ;;  %v1084_v49 = vmul.u32.u64.high 3435973837, %v569_v43, %v1083_v48 }
   0xc   : > { %893 = vmatpush3.bf16.msra.mxu0 (!%p138_p2), %v945_v3  ;;  %870 = vmatprep.subr.bf16.mxu1 (!%p138_p2), %v946_v4  ;;  %v578_v51 = vshrl.u32 (!%p138_p2), %v1081_v47, 2  ;;  %vm642_vm11 = vcmp.lt.s32.totalorder (!%p138_p2), %v570_v42, 19 }
   0xd   : > { %s1124_s13 = smov (!%p161_p3, %s779_s13), 1  ;;  %894 = vmatprep.subr.bf16.mxu0 %v947_v5  ;;  %v600_v50 = vshrl.u32 %v1078_v45, 2  ;;  %v589_v52 = vshrl.u32 %v1084_v49, 2 }
   0xe   : > { %s926_s24 = smul.u32 40, %s1124_s13  ;;  %v579_v54 = vmul.u32 5, %v578_v51  ;;  %s841_s27 = sshll.u32 %s1124_s13, 5 }
   0xf   : > { %871 = vmatpush3.bf16.msra.mxu1 %v946_v4  ;;  %v601_v53 = vmul.u32 5, %v600_v50  ;;  %v590_v55 = vmul.u32 5, %v589_v52  ;;  %s170_s30 = scalar_lea.vmem %s1120_s3, %s841_s27 }
  0x10   : > { %s1021_s29 = scalar_lea.vmem %s1117_s0, %s926_s24  ;;  %895 = vmatpush3.bf16.msra.mxu0 %v947_v5  ;;  %872 = vmatprep.subr.bf16.mxu1 %v948_v6  ;;  %v580_v57 = vsub.s32 %v568_v41, %v579_v54 }
  0x11   : > { %v186_v7 = vld [vmem:[%s1021_s29 + $0x1] sm:$0xff]  ;;  %v187_v8 = vld [vmem:[%s1021_s29 + $0x9] sm:$0xff]  ;;  %v188_v15 = vld [vmem:[%s1021_s29 + $0x11] sm:$0xff]  ;;  %896 = vmatprep.subr.bf16.mxu0 %v949_v9  ;;  %v602_v56 = vsub.s32 %v570_v42, %v601_v53  ;;  %v591_v58 = vsub.s32 %v569_v43, %v590_v55 }
  0x12   : > { %v190_v10 = vpack.c.bf16 %v187_v8, %v186_v7  ;;  %v360_v11 = vld [vmem:[%s1021_s29 + $0x5] sm:$0xff]  ;;  %v361_v12 = vld [vmem:[%s1021_s29 + $0xd] sm:$0xff]  ;;  %v189_v16 = vld [vmem:[%s1021_s29 + $0x19] sm:$0xff]  ;;  %vm616_vm3 = vcmp.ne.s32.totalorder %v580_v57, 0  ;;  %vm620_vm4 = vcmp.lt.s32.totalorder %v580_v57, 0  ;;  %v628_v60 = vadd.s32 5, %v580_v57 }
  0x13   : > { %v364_v14 = vpack.c.bf16 %v361_v12, %v360_v11  ;;  %v362_v17 = vld [vmem:[%s1021_s29 + $0x15] sm:$0xff]  ;;  %v363_v18 = vld [vmem:[%s1021_s29 + $0x1d] sm:$0xff]  ;;  %v191_v20 = vpack.c.bf16 %v189_v16, %v188_v15  ;;  %873 = vmatpush3.bf16.msra.mxu1 %v948_v6  ;;  %v173_v25 = vld [vmem:[%s1021_s29 + $0x8] sm:$0xff]  ;;  %vm618_vm1 = vcmp.ne.s32.totalorder %v602_v56, 0  ;;  %vm622_vm2 = vcmp.lt.s32.totalorder %v602_v56, 0 }
  0x14   : > { %874 = vmatprep.mubr.msk.bf16.mxu1 %vm225_vm0, %v190_v10  ;;  %v365_v21 = vpack.c.bf16 %v363_v18, %v362_v17  ;;  %897 = vmatpush3.bf16.msra.mxu0 %v949_v9  ;;  %v172_v24 = vld [vmem:[%s1021_s29] sm:$0xff]  ;;  %v459_v27 = vld [vmem:[%s1021_s29 + $0xe] sm:$0xff]  ;;  %v175_v35 = vld [vmem:[%s1021_s29 + $0x18] sm:$0xff]  ;;  %v630_v59 = vadd.s32 5, %v602_v56  ;;  %vm617_vm6 = vcmp.ne.s32.totalorder %v591_v58, 0  ;;  %vm621_vm7 = vcmp.lt.s32.totalorder %v591_v58, 0 }
  0x15   : > { %898 = vmatprep.mubr.msk.bf16.mxu0 %vm225_vm0, %v364_v14  ;;  %878 = vmatprep.subr.bf16.mxu1 %v950_v13  ;;  %v458_v26 = vld [vmem:[%s1021_s29 + $0x6] sm:$0xff]  ;;  %v176_v29 = vpack.c.bf16 %v173_v25, %v172_v24  ;;  %v174_v34 = vld [vmem:[%s1021_s29 + $0x10] sm:$0xff]  ;;  %v461_v37 = vld [vmem:[%s1021_s29 + $0x1e] sm:$0xff]  ;;  %v629_v61 = vadd.s32 5, %v591_v58  ;;  %v968_v12 = vmov 0.0  }
  0x16   : > { %902 = vmatprep.subr.bf16.mxu0 %v951_v19  ;;  %875 = vmatmul.mubr.msk.bf16.vlgmr.msra.gmra.mrb[0].mxu1 %vm225_vm0, %v191_v20  ;;  %v462_v30 = vpack.c.bf16 %v459_v27, %v458_v26  ;;  %v460_v36 = vld [vmem:[%s1021_s29 + $0x16] sm:$0xff]  ;;  %v177_v38 = vpack.c.bf16 %v175_v35, %v174_v34  ;;  %vm626_vm5 = vmand %vm622_vm2, %vm618_vm1  ;;  %v835_v6 = vld [vmem:[%s1119_s2] ss:$0 sm:$0xff] }
  0x17   : > { %879 = vmatpush3.bf16.msra.mxu1 %v950_v13  ;;  %899 = vmatmul.mubr.msk.bf16.vlgmr.msra.gmra.mrb[0].mxu0 %vm225_vm0, %v365_v21  ;;  %v463_v39 = vpack.c.bf16 %v461_v37, %v460_v36  ;;  %vm624_vm8 = vmand %vm620_vm4, %vm616_vm3  ;;  %v634_v62 = vsel %vm626_vm5, %v630_v59, %v602_v56 }
  0x18   : > { %903 = vmatpush3.bf16.msra.mxu0 %v951_v19  ;;  %880 = vmatprep.subr.bf16.mxu1 %v952_v22  ;;  %vm1089_vm9 = vmand %vm621_vm7, %vm617_vm6  ;;  %v632_v0 = vsel %vm624_vm8, %v628_v60, %v580_v57  ;;  %vm638_vm10 = vcmp.lt.s32.totalorder %v634_v62, 4 }
  0x19   : > { %904 = vmatprep.subr.bf16.mxu0 %v953_v23  ;;  %886 = vmatprep.mubr.msk.bf16.mxu1 %vm225_vm0, %v176_v29  ;;  %v633_v2 = vsel %vm1089_vm9, %v629_v61, %v591_v58  ;;  %vm636_vm12 = vcmp.lt.s32.totalorder %v632_v0, 4  ;;  %vm646_vm13 = vmand %vm638_vm10, %vm642_vm11 }
  0x1a   : > { %910 = vmatprep.mubr.msk.bf16.mxu0 %vm225_vm0, %v462_v30  ;;  %vm637_vm14 = vcmp.lt.s32.totalorder %v633_v2, 4  ;;  %v836_v13 = vsel %vm636_vm12, 1.0, %v968_v12  ;;  %v838_v19 = vsel %vm646_vm13, 1.0, %v968_v12 }
  0x1b   : > { %881 = vmatpush3.bf16.msra.mxu1 %v952_v22  ;;  %v837_v20 = vsel %vm637_vm14, 1.0, %v968_v12 }
  0x1c   : > { %905 = vmatpush3.bf16.msra.mxu0 %v953_v23  ;;  %882 = vmatprep.subr.bf16.mxu1 %v954_v28 }
  0x1d   : > { %906 = vmatprep.subr.bf16.mxu0 %v955_v31 }
  0x1f   : > { %883 = vmatpush3.bf16.msra.mxu1 %v954_v28 }
  0x20   : > { %907 = vmatpush3.bf16.msra.mxu0 %v955_v31  ;;  %884 = vmatprep.subr.bf16.mxu1 %v956_v32 }
  0x21   : > { %908 = vmatprep.subr.bf16.mxu0 %v957_v33 }
  0x23   : > { %885 = vmatpush3.bf16.msra.mxu1 %v956_v32 }
  0x24   : > { %909 = vmatpush3.bf16.msra.mxu0 %v957_v33 }
  0x26   : > { %887 = vmatmul.mubr.msk.bf16.vlgmr.msra.gmra.mrb[0].mxu1 %vm225_vm0, %v177_v38 }
  0x27   : > { %911 = vmatmul.mubr.msk.bf16.vlgmr.msra.gmra.mrb[0].mxu0 %vm225_vm0, %v463_v39 }
  0xf9   : > { %v888_v1 = vpop.f32.mrb[0].mxu1 }
  0xfa   : > { %v912_v3 = vpop.f32.mrb[0].mxu0  ;;  %v345_v4 = vpop.f32.mrb[1].mxu1 }
  0xfb   : > { %v914_v5 = vadd.f32 %v912_v3, %v888_v1  ;;  %v537_v7 = vpop.f32.mrb[1].mxu0  ;;  %v889_v8 = vpop.f32.mrb[2].mxu1 }
  0xfc   : > { %v915_v9 = vadd.f32 %v537_v7, %v345_v4  ;;  %v913_v10 = vpop.f32.mrb[2].mxu0  ;;  %v348_v11 = vpop.f32.mrb[3].mxu1 }
  0xfd   : > { %v916_v14 = vadd.f32 %v913_v10, %v889_v8  ;;  %v540_v15 = vpop.f32.mrb[3].mxu0  ;;  %v565_v16 = vadd.f32 %v914_v5, %v835_v6 }
  0xfe   : > { %v563_v17 = vadd.f32 %v915_v9, %v835_v6  ;;  %v917_v18 = vadd.f32 %v540_v15, %v348_v11 }
  0xff   : > { %v566_v22 = vadd.f32 %v916_v14, %v835_v6  ;;  %v658_v24 = vmul.f32 %v838_v19, %v565_v16 }
 0x100   : > { %v656_v21 = vmul.f32 %v836_v13, %v563_v17  ;;  %v564_v23 = vadd.f32 %v917_v18, %v835_v6 }
 0x101   : > { %v659_v27 = vmul.f32 0.0, %v566_v22  ;;  %v664_v30 = vsel %vm660_vm15, %v658_v24, 0.0 }
 0x102   : > { %v657_v25 = vmul.f32 %v837_v20, %v564_v23  ;;  %v661_v26 = vsel %vm660_vm15, %v656_v21, 0.0 }
 0x103   : > { %v666_v32 = vsel %vm660_vm15, %v659_v27, 0.0 }
 0x104   : > { %v662_v28 = vsel %vm660_vm15, %v657_v25, 0.0 }
 0x105   : > { %v663_v29 = vadd.f32 %v662_v28, %v661_v26 }
 0x107   : > { %v665_v31 = vadd.f32 %v664_v30, %v663_v29 }
 0x109   : > { %v667_v33 = vadd.f32 %v666_v32, %v665_v31 }
 0x10b   : > { %v668_v34 = vrot.slane %v667_v33, 4 }
 0x10d   : > { %v669_v35 = vadd.f32 %v668_v34, %v667_v33 }
 0x10f   : > { %v670_v36 = vrot.slane %v669_v35, 2 }
 0x111   : > { %v671_v37 = vadd.f32 %v670_v36, %v669_v35 }
 0x113   : > { %v672_v38 = vrot.slane %v671_v37, 1 }
 0x115   : > { %v673_v39 = vadd.f32 %v672_v38, %v671_v37 }
 0x117   : > { %v675_v40 = vmul.f32 0.0625, %v673_v39 }
 0x119   : > { %v676_v41 = vsub.f32 %v563_v17, %v675_v40  ;;  %v677_v42 = vsub.f32 %v564_v23, %v675_v40  ;;  %v678_v43 = vsub.f32 %v565_v16, %v675_v40  ;;  %v679_v44 = vsub.f32 %v566_v22, %v675_v40 }
 0x11b   : > { %v680_v45 = vmul.f32 %v836_v13, %v676_v41  ;;  %v681_v46 = vmul.f32 %v837_v20, %v677_v42  ;;  %v682_v47 = vmul.f32 %v838_v19, %v678_v43  ;;  %v683_v48 = vmul.f32 0.0, %v679_v44 }
 0x11d   : > { %v684_v49 = vmul.f32 %v680_v45, %v680_v45  ;;  %v685_v50 = vmul.f32 %v681_v46, %v681_v46  ;;  %v686_v51 = vmul.f32 %v682_v47, %v682_v47  ;;  %v687_v52 = vmul.f32 %v683_v48, %v683_v48 }
 0x11f   : > { %v688_v53 = vsel %vm660_vm15, %v684_v49, 0.0  ;;  %v689_v54 = vsel %vm660_vm15, %v685_v50, 0.0  ;;  %v691_v56 = vsel %vm660_vm15, %v686_v51, 0.0  ;;  %v693_v58 = vsel %vm660_vm15, %v687_v52, 0.0 }
 0x120   : > { %v690_v55 = vadd.f32 %v689_v54, %v688_v53 }
 0x122   : > { %v692_v57 = vadd.f32 %v691_v56, %v690_v55 }
 0x124   : > { %v694_v59 = vadd.f32 %v693_v58, %v692_v57 }
 0x126   : > { %v695_v60 = vrot.slane %v694_v59, 4 }
 0x128   : > { %v696_v61 = vadd.f32 %v695_v60, %v694_v59 }
 0x12a   : > { %v697_v62 = vrot.slane %v696_v61, 2 }
 0x12c   : > { %v698_v63 = vadd.f32 %v697_v62, %v696_v61 }
 0x12e   : > { %v699_v0 = vrot.slane %v698_v63, 1 }
 0x130   : > { %v700_v1 = vadd.f32 %v699_v0, %v698_v63 }
 0x132   : > { %v701_v2 = vmul.f32 0.0625, %v700_v1 }
 0x134   : > { %v702_v3 = vadd.f32 1e-05, %v701_v2 }
 0x136   : > { %958 = vrsqrt.f32 %v702_v3 }
 0x140   : > { %v959_v4 = vpop.eup %958 }
 0x141   : > { %v704_v5 = vmul.f32 %v959_v4, %v676_v41  ;;  %v705_v6 = vmul.f32 %v959_v4, %v677_v42  ;;  %v706_v7 = vmul.f32 %v959_v4, %v678_v43  ;;  %v707_v8 = vmul.f32 %v959_v4, %v679_v44 }
 0x143   : > { %vm708_vm0 = vcmp.ge.f32.partialorder %v704_v5, 0.0  ;;  %vm709_vm1 = vcmp.ge.f32.partialorder %v705_v6, 0.0  ;;  %vm710_vm2 = vcmp.ge.f32.partialorder %v706_v7, 0.0  ;;  %vm711_vm3 = vcmp.ge.f32.partialorder %v707_v8, 0.0 }
 0x144   : > { %v712_v9 = vmul.f32 0.2, %v704_v5  ;;  %v713_v10 = vmul.f32 0.2, %v705_v6  ;;  %v714_v11 = vmul.f32 0.2, %v706_v7 }
 0x145   : > { %v715_v12 = vmul.f32 0.2, %v707_v8 }
 0x146   : > { %v716_v13 = vsel %vm708_vm0, %v704_v5, %v712_v9  ;;  %v717_v14 = vsel %vm709_vm1, %v705_v6, %v713_v10  ;;  %v718_v15 = vsel %vm710_vm2, %v706_v7, %v714_v11 }
 0x147   : > { %v719_v16 = vsel %vm711_vm3, %v707_v8, %v715_v12  ;;  %720 = vst.msk [vmem:[%s170_s30] sm:$0xff] %vm660_vm15, %v716_v13  ;;  %721 = vst.msk [vmem:[%s170_s30 + $0x8] sm:$0xff] %vm660_vm15, %v717_v14 }
 0x148   : > { %722 = vst.msk [vmem:[%s170_s30 + $0x10] sm:$0xff] %vm660_vm15, %v718_v15  ;;  %723 = vst.msk [vmem:[%s170_s30 + $0x18] sm:$0xff] %vm660_vm15, %v719_v16 }
 0x149 PF: > { %s13_s12 = sadd.s32 1, %s966_s12  }
 0x14a   : > { %p10_p4 = scmp.ge.s32.totalorder %s13_s12, 4  }
 0x14c   :  { %12 = sbr.rel (!%p10_p4) target bundleno = 1 (0x1), region = 65 }

// kernel: msdisc_forward.10
= control target key start
LH: loop header
LB: loop body
LE: loop exit
PB: predicated region body
PF: predicated region fallthrough
CT: control target
= control target key end

     0   :  { %s1048_s12 = smov 0   ;;  %s1233_s0 = inlined_call_operand.vmem [shape: f32[2,20,128], index: 0, kind: input, shape index: {}]   ;;  %s1234_s1 = inlined_call_operand.vmem [shape: bf16[4,128,64], index: 1, kind: input, shape index: {}]   ;;  %s1235_s2 = inlined_call_operand.vmem [shape: f32[1,64], index: 2, kind: input, shape index: {}]   ;;  %s1236_s3 = inlined_call_operand.vmem [shape: f32[2,16,64], index: 3, kind: output, shape index: {}]  }
   0x1 LB: > { %s762_s13 = sadd.s32 4294967295, %s1024_s12   ;;  %p766_p0 = scmp.ge.s32.totalorder %s1024_s12, 1  ;;  %s1024_s12 = sphi %s1048_s12, %s13_s12  }
   0x2   : > { %p137_p1 = scmp.lt.s32.totalorder %s1024_s12, 3 }
   0x4   : > { %p138_p2 = pnand %p766_p0, %p137_p1 }
   0x5   : > { %v984_v0 = vld [vmem:[%s1234_s1 + $0x40] sm:$0xff] (!%p138_p2)   ;;  %v1026_v1 = vmov (!%p138_p2), 0.0   ;;  %v986_v3 = vld [vmem:[%s1234_s1 + $0x48] sm:$0xff] (!%p138_p2)   ;;  %vm1027_vm0 = vmmov (!%p138_p2), 0   ;;  %v988_v5 = vld [vmem:[%s1234_s1 + $0x50] sm:$0xff] (!%p138_p2)   ;;  %p161_p3 = scmp.lt.s32.totalorder (!%p138_p2), %s762_s13, 1  ;;  %v620_v45 = vlaneseq (!%p138_p2) }
   0x6   : > { %141 = sbr.rel (%p138_p2) target bundleno = 351 (0x15f), region = 32  ;;  %891 = vmatprep.subr.bf16.mxu0 (!%p138_p2), %v1026_v1  ;;  %911 = vmatprep.subr.bf16.mxu1 (!%p138_p2), %v1026_v1  ;;  %v985_v2 = vld [vmem:[%s1234_s1] sm:$0xff] (!%p138_p2)   ;;  %v987_v4 = vld [vmem:[%s1234_s1 + $0x8] sm:$0xff] (!%p138_p2)   ;;  %v989_v6 = vld [vmem:[%s1234_s1 + $0x10] sm:$0xff] (!%p138_p2)   ;;  %vm667_vm7 = vcmask (!%p138_p2), 523264  }
   0x7   : > { %892 = vmatpush3.bf16.msra.mxu0 (!%p138_p2), %v984_v0  ;;  %907 = vmatprep.mubr.msk.bf16.mxu0 (!%p138_p2), %vm1027_vm0, %v1026_v1  ;;  %v990_v7 = vld [vmem:[%s1234_s1 + $0x58] sm:$0xff] (!%p138_p2)   ;;  %v992_v9 = vld [vmem:[%s1234_s1 + $0x60] sm:$0xff] (!%p138_p2)   ;;  %v994_v11 = vld [vmem:[%s1234_s1 + $0x68] sm:$0xff] (!%p138_p2)   ;;  %v621_v46 = vshrl.u32 (!%p138_p2), %v620_v45, 7 }
   0x8   : > { %912 = vmatpush3.bf16.msra.mxu1 (!%p138_p2), %v985_v2  ;;  %893 = vmatprep.subr.bf16.mxu0 (!%p138_p2), %v1026_v1  ;;  %v991_v8 = vld [vmem:[%s1234_s1 + $0x18] sm:$0xff] (!%p138_p2)   ;;  %v993_v10 = vld [vmem:[%s1234_s1 + $0x20] sm:$0xff] (!%p138_p2)   ;;  %v995_v12 = vld [vmem:[%s1234_s1 + $0x28] sm:$0xff] (!%p138_p2)  }
   0x9   : > { %913 = vmatprep.subr.bf16.mxu1 (!%p138_p2), %v1026_v1  ;;  %927 = vmatprep.mubr.msk.bf16.mxu1 (!%p138_p2), %vm1027_vm0, %v1026_v1  ;;  %v996_v13 = vld [vmem:[%s1234_s1 + $0x70] sm:$0xff] (!%p138_p2)   ;;  %v998_v15 = vld [vmem:[%s1234_s1 + $0x78] sm:$0xff] (!%p138_p2)   ;;  %v1000_v23 = vld [vmem:[%s1234_s1 + $0x80] sm:$0xff] (!%p138_p2)   ;;  %v1212_v50 = vmul.u32.u64.low (!%p138_p2), 2863311531, %v621_v46  ;;  %v1213_v51 = vmul.u32.u64.high 2863311531, %v621_v46, %v1212_v50  ;;  %vm657_vm5 = vcmp.lt.s32.totalorder (!%p138_p2), %v621_v46, 5 }
   0xa   : > { %v997_v14 = vld [vmem:[%s1234_s1 + $0x30] sm:$0xff] (!%p138_p2)   ;;  %v999_v17 = vld [vmem:[%s1234_s1 + $0x38] sm:$0xff] (!%p138_p2)   ;;  %v1001_v24 = vld [vmem:[%s1234_s1 + $0xc0] sm:$0xff] (!%p138_p2)  }
   0xb   : > { %894 = vmatpush3.bf16.msra.mxu0 (!%p138_p2), %v986_v3  ;;  %v1002_v25 = vld [vmem:[%s1234_s1 + $0x88] sm:$0xff] (!%p138_p2)   ;;  %v1004_v27 = vld [vmem:[%s1234_s1 + $0x90] sm:$0xff] (!%p138_p2)   ;;  %v1006_v29 = vld [vmem:[%s1234_s1 + $0x98] sm:$0xff] (!%p138_p2)   ;;  %v629_v59 = vshrl.u32 (!%p138_p2), %v1213_v51, 1 }
   0xc   : > { %914 = vmatpush3.bf16.msra.mxu1 (!%p138_p2), %v987_v4  ;;  %895 = vmatprep.subr.bf16.mxu0 (!%p138_p2), %v1026_v1  ;;  %v1003_v26 = vld [vmem:[%s1234_s1 + $0xc8] sm:$0xff] (!%p138_p2)   ;;  %v1005_v28 = vld [vmem:[%s1234_s1 + $0xd0] sm:$0xff] (!%p138_p2)   ;;  %v1007_v30 = vld [vmem:[%s1234_s1 + $0xd8] sm:$0xff] (!%p138_p2)  }
   0xd   : > { %915 = vmatprep.subr.bf16.mxu1 %v1026_v1  ;;  %s1238_s13 = smov (!%p161_p3, %s762_s13), 1  ;;  %v1008_v31 = vld [vmem:[%s1234_s1 + $0xa0] sm:$0xff]   ;;  %v1010_v33 = vld [vmem:[%s1234_s1 + $0xa8] sm:$0xff]   ;;  %v1012_v35 = vld [vmem:[%s1234_s1 + $0xb0] sm:$0xff]   ;;  %v630_v60 = vmul.u32 3, %v629_v59 }
   0xe   : > { %s971_s7 = smul.u32 24, %s1238_s13  ;;  %v1009_v32 = vld [vmem:[%s1234_s1 + $0xe0] sm:$0xff]   ;;  %v1011_v34 = vld [vmem:[%s1234_s1 + $0xe8] sm:$0xff]   ;;  %v1013_v36 = vld [vmem:[%s1234_s1 + $0xf0] sm:$0xff]  }
   0xf   : > { %896 = vmatpush3.bf16.msra.mxu0 %v988_v5  ;;  %v1014_v37 = vld [vmem:[%s1234_s1 + $0xb8] sm:$0xff]   ;;  %v631_v61 = vsub.s32 %v621_v46, %v630_v60  ;;  %v850_v5 = vld [vmem:[%s1235_s2] ss:$0 sm:$0xff] }
  0x10   : > { %916 = vmatpush3.bf16.msra.mxu1 %v989_v6  ;;  %897 = vmatprep.subr.bf16.mxu0 %v1026_v1  ;;  %s1118_s16 = scalar_lea.vmem %s1233_s0, %s971_s7  ;;  %v1015_v40 = vld [vmem:[%s1234_s1 + $0xf8] sm:$0xff]   ;;  %s854_s7 = sshll.u32 %s1238_s13, 4 }
  0x11   : > { %917 = vmatprep.subr.bf16.mxu1 %v1026_v1  ;;  %v191_v16 = vld [vmem:[%s1118_s16 + $0x1] sm:$0xff]  ;;  %v192_v18 = vld [vmem:[%s1118_s16 + $0x9] sm:$0xff]  ;;  %vm645_vm1 = vcmp.ne.s32.totalorder %v631_v61, 0  ;;  %vm647_vm2 = vcmp.lt.s32.totalorder %v631_v61, 0  ;;  %v651_v62 = vadd.s32 3, %v631_v61  ;;  %s170_s10 = scalar_lea.vmem %s1236_s3, %s854_s7 }
  0x12   : > { %v172_v19 = vld [vmem:[%s1118_s16] sm:$0xff]  ;;  %v173_v20 = vld [vmem:[%s1118_s16 + $0x8] sm:$0xff]  ;;  %v193_v21 = vpack.c.bf16 %v192_v18, %v191_v16  ;;  %vm649_vm3 = vmand %vm647_vm2, %vm645_vm1 }
  0x13   : > { %898 = vmatpush3.bf16.msra.mxu0 %v990_v7  ;;  %v174_v22 = vpack.c.bf16 %v173_v20, %v172_v19  ;;  %v389_v38 = vld [vmem:[%s1118_s16 + $0x3] sm:$0xff]  ;;  %v390_v39 = vld [vmem:[%s1118_s16 + $0xb] sm:$0xff]  ;;  %v653_v63 = vsel %vm649_vm3, %v651_v62, %v631_v61 }
  0x14   : > { %918 = vmatpush3.bf16.msra.mxu1 %v991_v8  ;;  %899 = vmatprep.subr.bf16.mxu0 %v1026_v1  ;;  %v500_v41 = vld [vmem:[%s1118_s16 + $0x4] sm:$0xff]  ;;  %v501_v42 = vld [vmem:[%s1118_s16 + $0xc] sm:$0xff]  ;;  %v391_v43 = vpack.c.bf16 %v390_v39, %v389_v38  ;;  %vm655_vm4 = vcmp.lt.s32.totalorder %v653_v63, 2 }
  0x15   : > { %919 = vmatprep.subr.bf16.mxu1 %v1026_v1  ;;  %v502_v44 = vpack.c.bf16 %v501_v42, %v500_v41  ;;  %vm659_vm6 = vmand %vm655_vm4, %vm657_vm5 }
  0x17   : > { %900 = vmatpush3.bf16.msra.mxu0 %v992_v9 }
  0x18   : > { %920 = vmatpush3.bf16.msra.mxu1 %v993_v10  ;;  %901 = vmatprep.subr.bf16.mxu0 %v1026_v1 }
  0x19   : > { %921 = vmatprep.subr.bf16.mxu1 %v1026_v1 }
  0x1b   : > { %902 = vmatpush3.bf16.msra.mxu0 %v994_v11 }
  0x1c   : > { %922 = vmatpush3.bf16.msra.mxu1 %v995_v12  ;;  %903 = vmatprep.subr.bf16.mxu0 %v1026_v1  ;;  %v851_v12 = vsel %vm659_vm6, 1.0, %v1026_v1 }
  0x1d   : > { %923 = vmatprep.subr.bf16.mxu1 %v1026_v1 }
  0x1f   : > { %904 = vmatpush3.bf16.msra.mxu0 %v996_v13 }
  0x20   : > { %924 = vmatpush3.bf16.msra.mxu1 %v997_v14  ;;  %905 = vmatprep.subr.bf16.mxu0 %v1026_v1 }
  0x21   : > { %925 = vmatprep.subr.bf16.mxu1 %v1026_v1 }
  0x23   : > { %906 = vmatpush3.bf16.msra.mxu0 %v998_v15 }
  0x24   : > { %926 = vmatpush3.bf16.msra.mxu1 %v999_v17  ;;  %931 = vmatprep.subr.bf16.mxu0 %v1026_v1 }
  0x25   : > { %951 = vmatprep.subr.bf16.mxu1 %v1026_v1 }
  0x26   : > { %908 = vmatmul.mubr.bf16.vlgmr.msra.gmra.mrb[0].mxu0 %v193_v21 }
  0x27   : > { %928 = vmatmul.mubr.bf16.vlgmr.msra.gmra.mrb[0].mxu1 %v174_v22  ;;  %932 = vmatpush3.bf16.msra.mxu0 %v1000_v23 }
  0x28   : > { %952 = vmatpush3.bf16.msra.mxu1 %v1001_v24  ;;  %933 = vmatprep.subr.bf16.mxu0 %v1026_v1 }
  0x29   : > { %953 = vmatprep.subr.bf16.mxu1 %v1026_v1  ;;  %947 = vmatprep.mubr.msk.bf16.mxu0 %vm1027_vm0, %v1026_v1 }
  0x2a   : > { %967 = vmatprep.mubr.msk.bf16.mxu1 %vm1027_vm0, %v1026_v1 }
  0x2b   : > { %934 = vmatpush3.bf16.msra.mxu0 %v1002_v25 }
  0x2c   : > { %954 = vmatpush3.bf16.msra.mxu1 %v1003_v26  ;;  %935 = vmatprep.subr.bf16.mxu0 %v1026_v1 }
  0x2d   : > { %955 = vmatprep.subr.bf16.mxu1 %v1026_v1 }
  0x2f   : > { %936 = vmatpush3.bf16.msra.mxu0 %v1004_v27 }
  0x30   : > { %956 = vmatpush3.bf16.msra.mxu1 %v1005_v28  ;;  %937 = vmatprep.subr.bf16.mxu0 %v1026_v1 }
  0x31   : > { %957 = vmatprep.subr.bf16.mxu1 %v1026_v1 }
  0x33   : > { %938 = vmatpush3.bf16.msra.mxu0 %v1006_v29 }
  0x34   : > { %958 = vmatpush3.bf16.msra.mxu1 %v1007_v30  ;;  %939 = vmatprep.subr.bf16.mxu0 %v1026_v1 }
  0x35   : > { %959 = vmatprep.subr.bf16.mxu1 %v1026_v1 }
  0x37   : > { %940 = vmatpush3.bf16.msra.mxu0 %v1008_v31 }
  0x38   : > { %960 = vmatpush3.bf16.msra.mxu1 %v1009_v32  ;;  %941 = vmatprep.subr.bf16.mxu0 %v1026_v1 }
  0x39   : > { %961 = vmatprep.subr.bf16.mxu1 %v1026_v1 }
  0x3b   : > { %942 = vmatpush3.bf16.msra.mxu0 %v1010_v33 }
  0x3c   : > { %962 = vmatpush3.bf16.msra.mxu1 %v1011_v34  ;;  %943 = vmatprep.subr.bf16.mxu0 %v1026_v1 }
  0x3d   : > { %963 = vmatprep.subr.bf16.mxu1 %v1026_v1 }
  0x3f   : > { %944 = vmatpush3.bf16.msra.mxu0 %v1012_v35 }
  0x40   : > { %964 = vmatpush3.bf16.msra.mxu1 %v1013_v36  ;;  %945 = vmatprep.subr.bf16.mxu0 %v1026_v1 }
  0x41   : > { %965 = vmatprep.subr.bf16.mxu1 %v1026_v1 }
  0x43   : > { %946 = vmatpush3.bf16.msra.mxu0 %v1014_v37 }
  0x44   : > { %966 = vmatpush3.bf16.msra.mxu1 %v1015_v40 }
  0x46   : > { %948 = vmatmul.mubr.bf16.vlgmr.msra.gmra.mrb[4].mxu0 %v391_v43 }
  0x47   : > { %968 = vmatmul.mubr.bf16.vlgmr.msra.gmra.mrb[4].mxu1 %v502_v44 }
  0xf9   : > { %v293_v47 = vpop.f32.mrb[0].mxu0 }
  0xfa   : > { %v382_v48 = vpop.f32.mrb[0].mxu1  ;;  %v909_v49 = vpop.f32.mrb[1].mxu0 }
  0xfb   : > { %v383_v52 = vadd.f32 %v382_v48, %v293_v47  ;;  %v929_v53 = vpop.f32.mrb[1].mxu1  ;;  %v296_v54 = vpop.f32.mrb[2].mxu0 }
  0xfc   : > { %v385_v55 = vpop.f32.mrb[2].mxu1  ;;  %v910_v56 = vpop.f32.mrb[3].mxu0 }
  0xfd   : > { %v386_v57 = vadd.f32 %v385_v55, %v296_v54  ;;  %v930_v58 = vpop.f32.mrb[3].mxu1 }
 0x119   : > { %v491_v0 = vpop.f32.mrb[4].mxu0 }
 0x11a   : > { %v498_v2 = vadd.f32 %v491_v0, %v383_v52  ;;  %v602_v3 = vpop.f32.mrb[4].mxu1  ;;  %v949_v4 = vpop.f32.mrb[5].mxu0 }
 0x11b   : > { %v969_v6 = vpop.f32.mrb[5].mxu1  ;;  %v494_v7 = vpop.f32.mrb[6].mxu0 }
 0x11c   : > { %v609_v8 = vadd.f32 %v602_v3, %v498_v2  ;;  %v499_v9 = vadd.f32 %v494_v7, %v386_v57  ;;  %v605_v10 = vpop.f32.mrb[6].mxu1  ;;  %v950_v11 = vpop.f32.mrb[7].mxu0 }
 0x11d   : > { %v970_v13 = vpop.f32.mrb[7].mxu1 }
 0x11e   : > { %v618_v14 = vadd.f32 %v850_v5, %v609_v8  ;;  %v610_v15 = vadd.f32 %v605_v10, %v499_v9 }
 0x120   : > { %v665_v16 = vmul.f32 %v851_v12, %v618_v14  ;;  %v619_v17 = vadd.f32 %v850_v5, %v610_v15 }
 0x122   : > { %v666_v18 = vmul.f32 0.0, %v619_v17  ;;  %v668_v19 = vsel %vm667_vm7, %v665_v16, 0.0 }
 0x124   : > { %v669_v20 = vsel %vm667_vm7, %v666_v18, 0.0 }
 0x125   : > { %v670_v21 = vadd.f32 %v669_v20, %v668_v19 }
 0x127   : > { %v671_v22 = vrot.slane %v670_v21, 4 }
 0x129   : > { %v672_v23 = vadd.f32 %v671_v22, %v670_v21 }
 0x12b   : > { %v673_v24 = vrot.slane %v672_v23, 2 }
 0x12d   : > { %v674_v25 = vadd.f32 %v673_v24, %v672_v23 }
 0x12f   : > { %v675_v26 = vrot.slane %v674_v25, 1 }
 0x131   : > { %v676_v27 = vadd.f32 %v675_v26, %v674_v25 }
 0x133   : > { %v678_v28 = vmul.f32 0.25, %v676_v27 }
 0x135   : > { %v679_v1 = vsub.f32 %v618_v14, %v678_v28  ;;  %v680_v29 = vsub.f32 %v619_v17, %v678_v28 }
 0x137   : > { %v681_v30 = vmul.f32 %v851_v12, %v679_v1  ;;  %v682_v31 = vmul.f32 0.0, %v680_v29 }
 0x139   : > { %v683_v32 = vmul.f32 %v681_v30, %v681_v30  ;;  %v684_v33 = vmul.f32 %v682_v31, %v682_v31 }
 0x13b   : > { %v685_v34 = vsel %vm667_vm7, %v683_v32, 0.0  ;;  %v686_v35 = vsel %vm667_vm7, %v684_v33, 0.0 }
 0x13c   : > { %v687_v36 = vadd.f32 %v686_v35, %v685_v34 }
 0x13e   : > { %v688_v37 = vrot.slane %v687_v36, 4 }
 0x140   : > { %v689_v38 = vadd.f32 %v688_v37, %v687_v36 }
 0x142   : > { %v690_v39 = vrot.slane %v689_v38, 2 }
 0x144   : > { %v691_v40 = vadd.f32 %v690_v39, %v689_v38 }
 0x146   : > { %v692_v41 = vrot.slane %v691_v40, 1 }
 0x148   : > { %v693_v42 = vadd.f32 %v692_v41, %v691_v40 }
 0x14a   : > { %v694_v43 = vmul.f32 0.25, %v693_v42 }
 0x14c   : > { %v695_v44 = vadd.f32 1e-05, %v694_v43 }
 0x14e   : > { %1016 = vrsqrt.f32 %v695_v44 }
 0x158   : > { %v1017_v45 = vpop.eup %1016 }
 0x159   : > { %v697_v46 = vmul.f32 %v1017_v45, %v679_v1  ;;  %v698_v47 = vmul.f32 %v1017_v45, %v680_v29 }
 0x15b   : > { %vm699_vm8 = vcmp.ge.f32.partialorder %v697_v46, 0.0  ;;  %vm700_vm9 = vcmp.ge.f32.partialorder %v698_v47, 0.0  ;;  %v701_v48 = vmul.f32 0.2, %v697_v46  ;;  %v702_v49 = vmul.f32 0.2, %v698_v47 }
 0x15d   : > { %v703_v50 = vsel %vm699_vm8, %v697_v46, %v701_v48  ;;  %v704_v51 = vsel %vm700_vm9, %v698_v47, %v702_v49 }
 0x15e   : > { %705 = vst.msk [vmem:[%s170_s10] sm:$0xff] %vm667_vm7, %v703_v50  ;;  %706 = vst.msk [vmem:[%s170_s10 + $0x8] sm:$0xff] %vm667_vm7, %v704_v51 }
 0x15f PF: > { %s13_s12 = sadd.s32 1, %s1024_s12  }
 0x160   : > { %p10_p4 = scmp.ge.s32.totalorder %s13_s12, 4  }
 0x162   :  { %12 = sbr.rel (!%p10_p4) target bundleno = 1 (0x1), region = 65 }

// kernel: msdisc_forward.11
= control target key start
LH: loop header
LB: loop body
LE: loop exit
PB: predicated region body
PF: predicated region fallthrough
CT: control target
= control target key end

     0   :  { %s2160_s14 = smov 0   ;;  %s2585_s0 = inlined_call_operand.vmem [shape: f32[2,31,64], index: 0, kind: input, shape index: {}]   ;;  %s2586_s1 = inlined_call_operand.vmem [shape: bf16[16,64,1], index: 1, kind: input, shape index: {}]   ;;  %s2587_s2 = inlined_call_operand.<no memory space> [shape: f32[1,1], index: 2, kind: input, shape index: {}]   ;;  %s2588_s3 = inlined_call_operand.vmem [shape: f32[2,16,1], index: 3, kind: output, shape index: {}]  }
   0x1   :  { %v8_v0 = vstv %s2587_s2 }
   0x2   :  { %9 = vst [vmem:[#allocation2] sm:$0x1] %v8_v0 }
   0x3 LB: > { %s1559_s15 = sadd.s32 4294967295, %s2133_s14   ;;  %p1563_p0 = scmp.ge.s32.totalorder %s2133_s14, 1  ;;  %s2133_s14 = sphi %s2160_s14, %s15_s14  }
   0x4   : > { %p139_p1 = scmp.lt.s32.totalorder %s2133_s14, 3 }
   0x6   : > { %p140_p2 = pnand %p1563_p0, %p139_p1 }
   0x7   : > { %v2055_v1 = vld [vmem:[%s2586_s1 + $0x20] sm:$0xff] (!%p140_p2)   ;;  %v2135_v2 = vmov (!%p140_p2), 0.0   ;;  %v2057_v4 = vld [vmem:[%s2586_s1 + $0x28] sm:$0xff] (!%p140_p2)   ;;  %vm2136_vm0 = vmmov (!%p140_p2), 0   ;;  %p163_p3 = scmp.lt.s32.totalorder (!%p140_p2), %s1559_s15, 1  ;;  %v2059_v6 = vld [vmem:[%s2586_s1 + $0x30] sm:$0xff] (!%p140_p2)  }
   0x8   : > { %143 = sbr.rel (%p140_p2) target bundleno = 385 (0x181), region = 32  ;;  %1853 = vmatprep.subr.bf16.mxu0 (!%p140_p2), %v2135_v2  ;;  %1865 = vmatprep.subr.bf16.mxu1 (!%p140_p2), %v2135_v2  ;;  %v2056_v3 = vld [vmem:[%s2586_s1] sm:$0xff] (!%p140_p2)   ;;  %v2058_v5 = vld [vmem:[%s2586_s1 + $0x8] sm:$0xff] (!%p140_p2)   ;;  %v2060_v7 = vld [vmem:[%s2586_s1 + $0x10] sm:$0xff] (!%p140_p2)   ;;  %vm221_vm1 = vcmask (!%p140_p2), 523264   ;;  %vm1501_vm2 = vcmask (!%p140_p2), 7168  }
   0x9   : > { %1854 = vmatpush3.bf16.msra.mxu0 (!%p140_p2), %v2055_v1  ;;  %1861 = vmatprep.mubr.msk.bf16.mxu0 (!%p140_p2), %vm2136_vm0, %v2135_v2  ;;  %v2061_v8 = vld [vmem:[%s2586_s1 + $0x38] sm:$0xff] (!%p140_p2)   ;;  %v2063_v16 = vld [vmem:[%s2586_s1 + $0x40] sm:$0xff] (!%p140_p2)   ;;  %v2065_v18 = vld [vmem:[%s2586_s1 + $0x48] sm:$0xff] (!%p140_p2)  }
   0xa   : > { %1866 = vmatpush3.bf16.msra.mxu1 (!%p140_p2), %v2056_v3  ;;  %1855 = vmatprep.subr.bf16.mxu0 (!%p140_p2), %v2135_v2  ;;  %v2062_v10 = vld [vmem:[%s2586_s1 + $0x18] sm:$0xff] (!%p140_p2)   ;;  %v2064_v17 = vld [vmem:[%s2586_s1 + $0x60] sm:$0xff] (!%p140_p2)   ;;  %v2066_v19 = vld [vmem:[%s2586_s1 + $0x68] sm:$0xff] (!%p140_p2)  }
   0xb   : > { %1867 = vmatprep.subr.bf16.mxu1 (!%p140_p2), %v2135_v2  ;;  %1873 = vmatprep.mubr.msk.bf16.mxu1 (!%p140_p2), %vm2136_vm0, %v2135_v2  ;;  %v2067_v20 = vld [vmem:[%s2586_s1 + $0x50] sm:$0xff] (!%p140_p2)   ;;  %v2069_v22 = vld [vmem:[%s2586_s1 + $0x58] sm:$0xff] (!%p140_p2)   ;;  %v2071_v30 = vld [vmem:[%s2586_s1 + $0x80] sm:$0xff] (!%p140_p2)  }
   0xc   : > { %v2068_v21 = vld [vmem:[%s2586_s1 + $0x70] sm:$0xff] (!%p140_p2)   ;;  %v2070_v25 = vld [vmem:[%s2586_s1 + $0x78] sm:$0xff] (!%p140_p2)   ;;  %v2072_v31 = vld [vmem:[%s2586_s1 + $0xa0] sm:$0xff] (!%p140_p2)  }
   0xd   : > { %1856 = vmatpush3.bf16.msra.mxu0 (!%p140_p2), %v2057_v4  ;;  %v2073_v32 = vld [vmem:[%s2586_s1 + $0x88] sm:$0xff] (!%p140_p2)   ;;  %v2075_v34 = vld [vmem:[%s2586_s1 + $0x90] sm:$0xff] (!%p140_p2)   ;;  %v2077_v36 = vld [vmem:[%s2586_s1 + $0x98] sm:$0xff] (!%p140_p2)  }
   0xe   : > { %1868 = vmatpush3.bf16.msra.mxu1 (!%p140_p2), %v2058_v5  ;;  %1857 = vmatprep.subr.bf16.mxu0 (!%p140_p2), %v2135_v2  ;;  %v2074_v33 = vld [vmem:[%s2586_s1 + $0xa8] sm:$0xff] (!%p140_p2)   ;;  %v2076_v35 = vld [vmem:[%s2586_s1 + $0xb0] sm:$0xff] (!%p140_p2)   ;;  %v2078_v38 = vld [vmem:[%s2586_s1 + $0xb8] sm:$0xff] (!%p140_p2)  }
   0xf   : > { %s2590_s15 = smov (!%p163_p3, %s1559_s15), 1  ;;  %1869 = vmatprep.subr.bf16.mxu1 %v2135_v2  ;;  %v2079_v45 = vld [vmem:[%s2586_s1 + $0xc0] sm:$0xff]   ;;  %v2081_v48 = vld [vmem:[%s2586_s1 + $0xc8] sm:$0xff]   ;;  %v2083_v50 = vld [vmem:[%s2586_s1 + $0xd0] sm:$0xff]  }
  0x10   : > { %s1771_s25 = sshll.u32 %s2590_s15, 5  ;;  %v2080_v47 = vld [vmem:[%s2586_s1 + $0xe0] sm:$0xff]   ;;  %v2082_v49 = vld [vmem:[%s2586_s1 + $0xe8] sm:$0xff]   ;;  %v2084_v53 = vld [vmem:[%s2586_s1 + $0xf0] sm:$0xff]   ;;  %s1772_s19 = sshll.u32 %s2590_s15, 4 }
  0x11   : > { %s2201_s30 = scalar_lea.vmem %s2585_s0, %s1771_s25  ;;  %1858 = vmatpush3.bf16.msra.mxu0 %v2059_v6  ;;  %v2085_v56 = vld [vmem:[%s2586_s1 + $0xd8] sm:$0xff]   ;;  %v2087_v63 = vld [vmem:[%s2586_s1 + $0x100] sm:$0xff]   ;;  %s172_s22 = scalar_lea.vmem %s2588_s3, %s1772_s19 }
  0x12   : > { %v185_v9 = vld [vmem:[%s2201_s30 + $0x1] sm:$0xff]  ;;  %v2212_v11 = vld [vmem:[%s2201_s30 + $0x9] sm:$0xff]  ;;  %1870 = vmatpush3.bf16.msra.mxu1 %v2060_v7  ;;  %1859 = vmatprep.subr.bf16.mxu0 %v2135_v2  ;;  %v2318_v43 = vld [vmem:[%s2201_s30 + $0x11] sm:$0xff] }
  0x13   : > { %v174_v12 = vld [vmem:[%s2201_s30] sm:$0xff]  ;;  %v2217_v13 = vld [vmem:[%s2201_s30 + $0x8] sm:$0xff]  ;;  %1871 = vmatprep.subr.bf16.mxu1 %v2135_v2  ;;  %v187_v14 = vpack.c.bf16 %v2212_v11, %v185_v9  ;;  %v910_v46 = vpack.c.bf16 %v2318_v43, %v2212_v11  ;;  %v2349_v51 = vld [vmem:[%s2201_s30 + $0x12] sm:$0xff] }
  0x14   : > { %v176_v15 = vpack.c.bf16 %v2217_v13, %v174_v12  ;;  %v334_v23 = vld [vmem:[%s2201_s30 + $0x2] sm:$0xff]  ;;  %v2257_v24 = vld [vmem:[%s2201_s30 + $0xa] sm:$0xff]  ;;  %v2352_v52 = vld [vmem:[%s2201_s30 + $0x13] sm:$0xff] }
  0x15   : > { %1860 = vmatpush3.bf16.msra.mxu0 %v2061_v8  ;;  %v416_v26 = vld [vmem:[%s2201_s30 + $0x3] sm:$0xff]  ;;  %v2265_v27 = vld [vmem:[%s2201_s30 + $0xb] sm:$0xff]  ;;  %v336_v28 = vpack.c.bf16 %v2257_v24, %v334_v23  ;;  %v992_v54 = vpack.c.bf16 %v2349_v51, %v2257_v24  ;;  %v2086_v58 = vld [vmem:[%s2586_s1 + $0xf8] sm:$0xff]  }
  0x16   : > { %1872 = vmatpush3.bf16.msra.mxu1 %v2062_v10  ;;  %1877 = vmatprep.subr.bf16.mxu0 %v2135_v2  ;;  %v418_v29 = vpack.c.bf16 %v2265_v27, %v416_v26  ;;  %v498_v37 = vld [vmem:[%s2201_s30 + $0x4] sm:$0xff]  ;;  %v2308_v39 = vld [vmem:[%s2201_s30 + $0xc] sm:$0xff]  ;;  %v1074_v55 = vpack.c.bf16 %v2352_v52, %v2265_v27  ;;  %v2388_v3 = vld [vmem:[%s2201_s30 + $0x14] sm:$0xff] }
  0x17   : > { %1889 = vmatprep.subr.bf16.mxu1 %v2135_v2  ;;  %v580_v40 = vld [vmem:[%s2201_s30 + $0x5] sm:$0xff]  ;;  %v2313_v41 = vld [vmem:[%s2201_s30 + $0xd] sm:$0xff]  ;;  %v500_v42 = vpack.c.bf16 %v2308_v39, %v498_v37  ;;  %v1156_v4 = vpack.c.bf16 %v2388_v3, %v2308_v39  ;;  %v2394_v5 = vld [vmem:[%s2201_s30 + $0x15] sm:$0xff] }
  0x18   : > { %1862 = vmatmul.mubr.msk.bf16.vlgmr.msra.gmra.mrb[0].mxu0 %vm221_vm1, %v187_v14  ;;  %v582_v44 = vpack.c.bf16 %v2313_v41, %v580_v40  ;;  %v662_v57 = vld [vmem:[%s2201_s30 + $0x6] sm:$0xff]  ;;  %v2371_v59 = vld [vmem:[%s2201_s30 + $0xe] sm:$0xff]  ;;  %v1238_v6 = vpack.c.bf16 %v2394_v5, %v2313_v41  ;;  %v2421_v12 = vld [vmem:[%s2201_s30 + $0x16] sm:$0xff] }
  0x19   : > { %1874 = vmatmul.mubr.msk.bf16.vlgmr.msra.gmra.mrb[0].mxu1 %vm221_vm1, %v176_v15  ;;  %1878 = vmatpush3.bf16.msra.mxu0 %v2063_v16  ;;  %v744_v60 = vld [vmem:[%s2201_s30 + $0x7] sm:$0xff]  ;;  %v2376_v61 = vld [vmem:[%s2201_s30 + $0xf] sm:$0xff]  ;;  %v664_v62 = vpack.c.bf16 %v2371_v59, %v662_v57  ;;  %v2424_v14 = vld [vmem:[%s2201_s30 + $0x17] sm:$0xff]  ;;  %v1320_v15 = vpack.c.bf16 %v2421_v12, %v2371_v59 }
  0x1a   : > { %1890 = vmatpush3.bf16.msra.mxu1 %v2064_v17  ;;  %1879 = vmatprep.subr.bf16.mxu0 %v2135_v2  ;;  %v746_v0 = vpack.c.bf16 %v2376_v61, %v744_v60  ;;  %v2088_v1 = vld [vmem:[%s2586_s1 + $0x120] sm:$0xff]   ;;  %v2089_v7 = vld [vmem:[%s2586_s1 + $0x108] sm:$0xff]   ;;  %v2091_v9 = vld [vmem:[%s2586_s1 + $0x110] sm:$0xff]   ;;  %v1402_v16 = vpack.c.bf16 %v2424_v14, %v2376_v61 }
  0x1b   : > { %1891 = vmatprep.subr.bf16.mxu1 %v2135_v2  ;;  %1885 = vmatprep.mubr.msk.bf16.mxu0 %vm2136_vm0, %v2135_v2  ;;  %v2090_v8 = vld [vmem:[%s2586_s1 + $0x128] sm:$0xff]   ;;  %v2092_v10 = vld [vmem:[%s2586_s1 + $0x130] sm:$0xff]   ;;  %v2093_v17 = vld [vmem:[%s2586_s1 + $0x118] sm:$0xff]  }
  0x1c   : > { %1897 = vmatprep.mubr.msk.bf16.mxu1 %vm2136_vm0, %v2135_v2  ;;  %v2098_v23 = vld [vmem:[%s2586_s1 + $0x168] sm:$0xff]   ;;  %v2099_v11 = vld [vmem:[%s2586_s1 + $0x150] sm:$0xff]   ;;  %v2101_v26 = vld [vmem:[%s2586_s1 + $0x158] sm:$0xff]  }
  0x1d   : > { %1880 = vmatpush3.bf16.msra.mxu0 %v2065_v18  ;;  %v827_v18 = vld [vmem:[%s2201_s30 + $0x10] sm:$0xff]  ;;  %v2113_v37 = vld [vmem:[%s2586_s1 + $0x1c8] sm:$0xff]   ;;  %v2117_v41 = vld [vmem:[%s2586_s1 + $0x1d8] sm:$0xff]  }
  0x1e   : > { %1892 = vmatpush3.bf16.msra.mxu1 %v2066_v19  ;;  %1881 = vmatprep.subr.bf16.mxu0 %v2135_v2  ;;  %v2094_v19 = vld [vmem:[%s2586_s1 + $0x138] sm:$0xff]   ;;  %v2107_v24 = vld [vmem:[%s2586_s1 + $0x190] sm:$0xff]  }
  0x1f   : > { %1893 = vmatprep.subr.bf16.mxu1 %v2135_v2  ;;  %v2108_v27 = vld [vmem:[%s2586_s1 + $0x1b0] sm:$0xff]  }
  0x20   : > { %v2115_v39 = vld [vmem:[%s2586_s1 + $0x1d0] sm:$0xff]  }
  0x21   : > { %1882 = vmatpush3.bf16.msra.mxu0 %v2067_v20  ;;  %v828_v20 = vpack.c.bf16 %v827_v18, %v2217_v13  ;;  %v2097_v13 = vld [vmem:[%s2586_s1 + $0x148] sm:$0xff]   ;;  %v2116_v40 = vld [vmem:[%s2586_s1 + $0x1f0] sm:$0xff]  }
  0x22   : > { %1894 = vmatpush3.bf16.msra.mxu1 %v2068_v21  ;;  %1883 = vmatprep.subr.bf16.mxu0 %v2135_v2  ;;  %v2095_v21 = vld [vmem:[%s2586_s1 + $0x140] sm:$0xff]  }
  0x23   : > { %1895 = vmatprep.subr.bf16.mxu1 %v2135_v2 }
  0x25   : > { %1884 = vmatpush3.bf16.msra.mxu0 %v2069_v22  ;;  %v2096_v22 = vld [vmem:[%s2586_s1 + $0x160] sm:$0xff]  }
  0x26   : > { %1896 = vmatpush3.bf16.msra.mxu1 %v2070_v25  ;;  %1901 = vmatprep.subr.bf16.mxu0 %v2135_v2  ;;  %v2100_v25 = vld [vmem:[%s2586_s1 + $0x170] sm:$0xff]  }
  0x27   : > { %1913 = vmatprep.subr.bf16.mxu1 %v2135_v2 }
  0x28   : > { %1886 = vmatmul.mubr.msk.bf16.vlgmr.msra.gmra.mrb[4].mxu0 %vm221_vm1, %v336_v28  ;;  %v2102_v28 = vld [vmem:[%s2586_s1 + $0x178] sm:$0xff]  }
  0x29   : > { %1898 = vmatmul.mubr.msk.bf16.vlgmr.msra.gmra.mrb[4].mxu1 %vm221_vm1, %v418_v29  ;;  %1902 = vmatpush3.bf16.msra.mxu0 %v2071_v30  ;;  %v2103_v29 = vld [vmem:[%s2586_s1 + $0x180] sm:$0xff]  }
  0x2a   : > { %1914 = vmatpush3.bf16.msra.mxu1 %v2072_v31  ;;  %1903 = vmatprep.subr.bf16.mxu0 %v2135_v2  ;;  %v2104_v30 = vld [vmem:[%s2586_s1 + $0x1a0] sm:$0xff]   ;;  %v2105_v31 = vld [vmem:[%s2586_s1 + $0x188] sm:$0xff]  }
  0x2b   : > { %1915 = vmatprep.subr.bf16.mxu1 %v2135_v2  ;;  %1909 = vmatprep.mubr.msk.bf16.mxu0 %vm2136_vm0, %v2135_v2 }
  0x2c   : > { %1921 = vmatprep.mubr.msk.bf16.mxu1 %vm2136_vm0, %v2135_v2 }
  0x2d   : > { %1904 = vmatpush3.bf16.msra.mxu0 %v2073_v32  ;;  %v2106_v32 = vld [vmem:[%s2586_s1 + $0x1a8] sm:$0xff]  }
  0x2e   : > { %1916 = vmatpush3.bf16.msra.mxu1 %v2074_v33  ;;  %1905 = vmatprep.subr.bf16.mxu0 %v2135_v2  ;;  %v2109_v33 = vld [vmem:[%s2586_s1 + $0x198] sm:$0xff]  }
  0x2f   : > { %1917 = vmatprep.subr.bf16.mxu1 %v2135_v2 }
  0x31   : > { %1906 = vmatpush3.bf16.msra.mxu0 %v2075_v34  ;;  %v2110_v34 = vld [vmem:[%s2586_s1 + $0x1b8] sm:$0xff]  }
  0x32   : > { %1918 = vmatpush3.bf16.msra.mxu1 %v2076_v35  ;;  %1907 = vmatprep.subr.bf16.mxu0 %v2135_v2  ;;  %v2111_v35 = vld [vmem:[%s2586_s1 + $0x1c0] sm:$0xff]  }
  0x33   : > { %1919 = vmatprep.subr.bf16.mxu1 %v2135_v2 }
  0x35   : > { %1908 = vmatpush3.bf16.msra.mxu0 %v2077_v36  ;;  %v2112_v36 = vld [vmem:[%s2586_s1 + $0x1e0] sm:$0xff]  }
  0x36   : > { %1920 = vmatpush3.bf16.msra.mxu1 %v2078_v38  ;;  %1925 = vmatprep.subr.bf16.mxu0 %v2135_v2  ;;  %v2114_v38 = vld [vmem:[%s2586_s1 + $0x1e8] sm:$0xff]  }
  0x37   : > { %1937 = vmatprep.subr.bf16.mxu1 %v2135_v2 }
  0x38   : > { %1910 = vmatmul.mubr.msk.bf16.vlgmr.msra.gmra.mrb[8].mxu0 %vm221_vm1, %v500_v42  ;;  %v2118_v42 = vld [vmem:[%s2586_s1 + $0x1f8] sm:$0xff]  }
  0x39   : > { %1922 = vmatmul.mubr.msk.bf16.vlgmr.msra.gmra.mrb[8].mxu1 %vm221_vm1, %v582_v44  ;;  %1926 = vmatpush3.bf16.msra.mxu0 %v2079_v45 }
  0x3a   : > { %1938 = vmatpush3.bf16.msra.mxu1 %v2080_v47  ;;  %1927 = vmatprep.subr.bf16.mxu0 %v2135_v2 }
  0x3b   : > { %1939 = vmatprep.subr.bf16.mxu1 %v2135_v2  ;;  %1933 = vmatprep.mubr.msk.bf16.mxu0 %vm2136_vm0, %v2135_v2 }
  0x3c   : > { %1945 = vmatprep.mubr.msk.bf16.mxu1 %vm2136_vm0, %v2135_v2 }
  0x3d   : > { %1928 = vmatpush3.bf16.msra.mxu0 %v2081_v48 }
  0x3e   : > { %1940 = vmatpush3.bf16.msra.mxu1 %v2082_v49  ;;  %1929 = vmatprep.subr.bf16.mxu0 %v2135_v2 }
  0x3f   : > { %1941 = vmatprep.subr.bf16.mxu1 %v2135_v2 }
  0x41   : > { %1930 = vmatpush3.bf16.msra.mxu0 %v2083_v50 }
  0x42   : > { %1942 = vmatpush3.bf16.msra.mxu1 %v2084_v53  ;;  %1931 = vmatprep.subr.bf16.mxu0 %v2135_v2 }
  0x43   : > { %1943 = vmatprep.subr.bf16.mxu1 %v2135_v2 }
  0x45   : > { %1932 = vmatpush3.bf16.msra.mxu0 %v2085_v56 }
  0x46   : > { %1944 = vmatpush3.bf16.msra.mxu1 %v2086_v58  ;;  %1949 = vmatprep.subr.bf16.mxu0 %v2135_v2 }
  0x47   : > { %1961 = vmatprep.subr.bf16.mxu1 %v2135_v2 }
  0x48   : > { %1934 = vmatmul.mubr.msk.bf16.vlgmr.msra.gmra.mrb[12].mxu0 %vm221_vm1, %v664_v62 }
  0x49   : > { %1946 = vmatmul.mubr.msk.bf16.vlgmr.msra.gmra.mrb[12].mxu1 %vm221_vm1, %v746_v0  ;;  %1950 = vmatpush3.bf16.msra.mxu0 %v2087_v63 }
  0x4a   : > { %1962 = vmatpush3.bf16.msra.mxu1 %v2088_v1  ;;  %1951 = vmatprep.subr.bf16.mxu0 %v2135_v2 }
  0x4b   : > { %1963 = vmatprep.subr.bf16.mxu1 %v2135_v2  ;;  %1957 = vmatprep.mubr.msk.bf16.mxu0 %vm2136_vm0, %v2135_v2 }
  0x4c   : > { %1969 = vmatprep.mubr.msk.bf16.mxu1 %vm2136_vm0, %v2135_v2 }
  0x4d   : > { %1952 = vmatpush3.bf16.msra.mxu0 %v2089_v7 }
  0x4e   : > { %1964 = vmatpush3.bf16.msra.mxu1 %v2090_v8  ;;  %1953 = vmatprep.subr.bf16.mxu0 %v2135_v2 }
  0x4f   : > { %1965 = vmatprep.subr.bf16.mxu1 %v2135_v2 }
  0x51   : > { %1954 = vmatpush3.bf16.msra.mxu0 %v2091_v9 }
  0x52   : > { %1966 = vmatpush3.bf16.msra.mxu1 %v2092_v10  ;;  %1955 = vmatprep.subr.bf16.mxu0 %v2135_v2 }
  0x53   : > { %1967 = vmatprep.subr.bf16.mxu1 %v2135_v2 }
  0x55   : > { %1956 = vmatpush3.bf16.msra.mxu0 %v2093_v17 }
  0x56   : > { %1968 = vmatpush3.bf16.msra.mxu1 %v2094_v19  ;;  %1973 = vmatprep.subr.bf16.mxu0 %v2135_v2 }
  0x57   : > { %1985 = vmatprep.subr.bf16.mxu1 %v2135_v2 }
  0x58   : > { %1958 = vmatmul.mubr.msk.bf16.vlgmr.msra.gmra.mrb[16].mxu0 %vm221_vm1, %v828_v20 }
  0x59   : > { %1970 = vmatmul.mubr.msk.bf16.vlgmr.msra.gmra.mrb[16].mxu1 %vm221_vm1, %v910_v46  ;;  %1974 = vmatpush3.bf16.msra.mxu0 %v2095_v21 }
  0x5a   : > { %1986 = vmatpush3.bf16.msra.mxu1 %v2096_v22  ;;  %1975 = vmatprep.subr.bf16.mxu0 %v2135_v2 }
  0x5b   : > { %1987 = vmatprep.subr.bf16.mxu1 %v2135_v2  ;;  %1981 = vmatprep.mubr.msk.bf16.mxu0 %vm2136_vm0, %v2135_v2 }
  0x5c   : > { %1993 = vmatprep.mubr.msk.bf16.mxu1 %vm2136_vm0, %v2135_v2 }
  0x5d   : > { %1976 = vmatpush3.bf16.msra.mxu0 %v2097_v13 }
  0x5e   : > { %1988 = vmatpush3.bf16.msra.mxu1 %v2098_v23  ;;  %1977 = vmatprep.subr.bf16.mxu0 %v2135_v2 }
  0x5f   : > { %1989 = vmatprep.subr.bf16.mxu1 %v2135_v2 }
  0x61   : > { %1978 = vmatpush3.bf16.msra.mxu0 %v2099_v11 }
  0x62   : > { %1990 = vmatpush3.bf16.msra.mxu1 %v2100_v25  ;;  %1979 = vmatprep.subr.bf16.mxu0 %v2135_v2 }
  0x63   : > { %1991 = vmatprep.subr.bf16.mxu1 %v2135_v2 }
  0x65   : > { %1980 = vmatpush3.bf16.msra.mxu0 %v2101_v26 }
  0x66   : > { %1992 = vmatpush3.bf16.msra.mxu1 %v2102_v28  ;;  %1997 = vmatprep.subr.bf16.mxu0 %v2135_v2 }
  0x67   : > { %2009 = vmatprep.subr.bf16.mxu1 %v2135_v2 }
  0x68   : > { %1982 = vmatmul.mubr.msk.bf16.vlgmr.msra.gmra.mrb[20].mxu0 %vm221_vm1, %v992_v54 }
  0x69   : > { %1994 = vmatmul.mubr.msk.bf16.vlgmr.msra.gmra.mrb[20].mxu1 %vm221_vm1, %v1074_v55  ;;  %1998 = vmatpush3.bf16.msra.mxu0 %v2103_v29 }
  0x6a   : > { %2010 = vmatpush3.bf16.msra.mxu1 %v2104_v30  ;;  %1999 = vmatprep.subr.bf16.mxu0 %v2135_v2 }
  0x6b   : > { %2011 = vmatprep.subr.bf16.mxu1 %v2135_v2  ;;  %2005 = vmatprep.mubr.msk.bf16.mxu0 %vm2136_vm0, %v2135_v2 }
  0x6c   : > { %2017 = vmatprep.mubr.msk.bf16.mxu1 %vm2136_vm0, %v2135_v2 }
  0x6d   : > { %2000 = vmatpush3.bf16.msra.mxu0 %v2105_v31 }
  0x6e   : > { %2012 = vmatpush3.bf16.msra.mxu1 %v2106_v32  ;;  %2001 = vmatprep.subr.bf16.mxu0 %v2135_v2 }
  0x6f   : > { %2013 = vmatprep.subr.bf16.mxu1 %v2135_v2 }
  0x71   : > { %2002 = vmatpush3.bf16.msra.mxu0 %v2107_v24 }
  0x72   : > { %2014 = vmatpush3.bf16.msra.mxu1 %v2108_v27  ;;  %2003 = vmatprep.subr.bf16.mxu0 %v2135_v2 }
  0x73   : > { %2015 = vmatprep.subr.bf16.mxu1 %v2135_v2 }
  0x75   : > { %2004 = vmatpush3.bf16.msra.mxu0 %v2109_v33 }
  0x76   : > { %2016 = vmatpush3.bf16.msra.mxu1 %v2110_v34  ;;  %2021 = vmatprep.subr.bf16.mxu0 %v2135_v2 }
  0x77   : > { %2033 = vmatprep.subr.bf16.mxu1 %v2135_v2 }
  0x78   : > { %2006 = vmatmul.mubr.msk.bf16.vlgmr.msra.gmra.mrb[24].mxu0 %vm221_vm1, %v1156_v4 }
  0x79   : > { %2018 = vmatmul.mubr.msk.bf16.vlgmr.msra.gmra.mrb[24].mxu1 %vm221_vm1, %v1238_v6  ;;  %2022 = vmatpush3.bf16.msra.mxu0 %v2111_v35 }
  0x7a   : > { %2034 = vmatpush3.bf16.msra.mxu1 %v2112_v36  ;;  %2023 = vmatprep.subr.bf16.mxu0 %v2135_v2 }
  0x7b   : > { %2035 = vmatprep.subr.bf16.mxu1 %v2135_v2  ;;  %2029 = vmatprep.mubr.msk.bf16.mxu0 %vm2136_vm0, %v2135_v2 }
  0x7c   : > { %2041 = vmatprep.mubr.msk.bf16.mxu1 %vm2136_vm0, %v2135_v2 }
  0x7d   : > { %2024 = vmatpush3.bf16.msra.mxu0 %v2113_v37 }
  0x7e   : > { %2036 = vmatpush3.bf16.msra.mxu1 %v2114_v38  ;;  %2025 = vmatprep.subr.bf16.mxu0 %v2135_v2 }
  0x7f   : > { %2037 = vmatprep.subr.bf16.mxu1 %v2135_v2 }
  0x81   : > { %2026 = vmatpush3.bf16.msra.mxu0 %v2115_v39 }
  0x82   : > { %2038 = vmatpush3.bf16.msra.mxu1 %v2116_v40  ;;  %2027 = vmatprep.subr.bf16.mxu0 %v2135_v2 }
  0x83   : > { %2039 = vmatprep.subr.bf16.mxu1 %v2135_v2 }
  0x85   : > { %2028 = vmatpush3.bf16.msra.mxu0 %v2117_v41 }
  0x86   : > { %2040 = vmatpush3.bf16.msra.mxu1 %v2118_v42 }
  0x88   : > { %2030 = vmatmul.mubr.msk.bf16.vlgmr.msra.gmra.mrb[28].mxu0 %vm221_vm1, %v1320_v15 }
  0x89   : > { %2042 = vmatmul.mubr.msk.bf16.vlgmr.msra.gmra.mrb[28].mxu1 %vm221_vm1, %v1402_v16 }
  0xeb   : > { %v259_v43 = vpop.f32.mrb[0].mxu0 }
  0xec   : > { %v327_v44 = vpop.f32.mrb[0].mxu1  ;;  %v1863_v45 = vpop.f32.mrb[1].mxu0 }
  0xed   : > { %v328_v46 = vadd.f32 %v327_v44, %v259_v43  ;;  %v1875_v47 = vpop.f32.mrb[1].mxu1  ;;  %v262_v48 = vpop.f32.mrb[2].mxu0 }
  0xee   : > { %v330_v49 = vpop.f32.mrb[2].mxu1  ;;  %v1864_v2 = vpop.f32.mrb[3].mxu0 }
  0xef   : > { %v331_v50 = vadd.f32 %v330_v49, %v262_v48  ;;  %v1876_v51 = vpop.f32.mrb[3].mxu1 }
  0xfb   : > { %v407_v52 = vpop.f32.mrb[4].mxu0 }
  0xfc   : > { %v414_v53 = vadd.f32 %v407_v52, %v328_v46  ;;  %v489_v54 = vpop.f32.mrb[4].mxu1  ;;  %v1887_v55 = vpop.f32.mrb[5].mxu0 }
  0xfd   : > { %v1899_v56 = vpop.f32.mrb[5].mxu1  ;;  %v410_v57 = vpop.f32.mrb[6].mxu0 }
  0xfe   : > { %v496_v58 = vadd.f32 %v489_v54, %v414_v53  ;;  %v415_v59 = vadd.f32 %v410_v57, %v331_v50  ;;  %v492_v60 = vpop.f32.mrb[6].mxu1  ;;  %v1888_v61 = vpop.f32.mrb[7].mxu0 }
  0xff   : > { %v1900_v62 = vpop.f32.mrb[7].mxu1 }
 0x100   : > { %v497_v63 = vadd.f32 %v492_v60, %v415_v59 }
 0x10b   : > { %v571_v0 = vpop.f32.mrb[8].mxu0 }
 0x10c   : > { %v578_v1 = vadd.f32 %v571_v0, %v496_v58  ;;  %v653_v3 = vpop.f32.mrb[8].mxu1  ;;  %v1911_v4 = vpop.f32.mrb[9].mxu0  ;;  %v1768_v0 = vld [vmem:[#allocation2] ss:$0 sm:$0xff] }
 0x10d   : > { %v1923_v5 = vpop.f32.mrb[9].mxu1  ;;  %v574_v6 = vpop.f32.mrb[10].mxu0 }
 0x10e   : > { %v660_v7 = vadd.f32 %v653_v3, %v578_v1  ;;  %v579_v8 = vadd.f32 %v574_v6, %v497_v63  ;;  %v656_v9 = vpop.f32.mrb[10].mxu1  ;;  %v1912_v10 = vpop.f32.mrb[11].mxu0 }
 0x10f   : > { %v1924_v12 = vpop.f32.mrb[11].mxu1 }
 0x110   : > { %v661_v14 = vadd.f32 %v656_v9, %v579_v8 }
 0x11b   : > { %v735_v15 = vpop.f32.mrb[12].mxu0 }
 0x11c   : > { %v742_v16 = vadd.f32 %v735_v15, %v660_v7  ;;  %v817_v17 = vpop.f32.mrb[12].mxu1  ;;  %v1935_v18 = vpop.f32.mrb[13].mxu0 }
 0x11d   : > { %v1947_v19 = vpop.f32.mrb[13].mxu1  ;;  %v738_v20 = vpop.f32.mrb[14].mxu0 }
 0x11e   : > { %v824_v21 = vadd.f32 %v817_v17, %v742_v16  ;;  %v743_v22 = vadd.f32 %v738_v20, %v661_v14  ;;  %v820_v13 = vpop.f32.mrb[14].mxu1  ;;  %v1936_v23 = vpop.f32.mrb[15].mxu0 }
 0x11f   : > { %v1948_v11 = vpop.f32.mrb[15].mxu1 }
 0x120   : > { %v825_v25 = vadd.f32 %v820_v13, %v743_v22 }
 0x12b   : > { %v899_v26 = vpop.f32.mrb[16].mxu0 }
 0x12c   : > { %v906_v28 = vadd.f32 %v899_v26, %v824_v21  ;;  %v981_v29 = vpop.f32.mrb[16].mxu1  ;;  %v1959_v30 = vpop.f32.mrb[17].mxu0 }
 0x12d   : > { %v1971_v31 = vpop.f32.mrb[17].mxu1  ;;  %v902_v32 = vpop.f32.mrb[18].mxu0 }
 0x12e   : > { %v988_v24 = vadd.f32 %v981_v29, %v906_v28  ;;  %v907_v27 = vadd.f32 %v902_v32, %v825_v25  ;;  %v984_v33 = vpop.f32.mrb[18].mxu1  ;;  %v1960_v34 = vpop.f32.mrb[19].mxu0 }
 0x12f   : > { %v1972_v35 = vpop.f32.mrb[19].mxu1 }
 0x130   : > { %v989_v36 = vadd.f32 %v984_v33, %v907_v27 }
 0x13b   : > { %v1063_v37 = vpop.f32.mrb[20].mxu0 }
 0x13c   : > { %v1070_v38 = vadd.f32 %v1063_v37, %v988_v24  ;;  %v1145_v39 = vpop.f32.mrb[20].mxu1  ;;  %v1983_v40 = vpop.f32.mrb[21].mxu0 }
 0x13d   : > { %v1995_v41 = vpop.f32.mrb[21].mxu1  ;;  %v1066_v42 = vpop.f32.mrb[22].mxu0 }
 0x13e   : > { %v1152_v43 = vadd.f32 %v1145_v39, %v1070_v38  ;;  %v1071_v44 = vadd.f32 %v1066_v42, %v989_v36  ;;  %v1148_v45 = vpop.f32.mrb[22].mxu1  ;;  %v1984_v46 = vpop.f32.mrb[23].mxu0 }
 0x13f   : > { %v1996_v47 = vpop.f32.mrb[23].mxu1 }
 0x140   : > { %v1153_v48 = vadd.f32 %v1148_v45, %v1071_v44 }
 0x14b   : > { %v1227_v49 = vpop.f32.mrb[24].mxu0 }
 0x14c   : > { %v1234_v2 = vadd.f32 %v1227_v49, %v1152_v43  ;;  %v1309_v50 = vpop.f32.mrb[24].mxu1  ;;  %v2007_v51 = vpop.f32.mrb[25].mxu0 }
 0x14d   : > { %v2019_v52 = vpop.f32.mrb[25].mxu1  ;;  %v1230_v53 = vpop.f32.mrb[26].mxu0 }
 0x14e   : > { %v1316_v54 = vadd.f32 %v1309_v50, %v1234_v2  ;;  %v1235_v55 = vadd.f32 %v1230_v53, %v1153_v48  ;;  %v1312_v56 = vpop.f32.mrb[26].mxu1  ;;  %v2008_v57 = vpop.f32.mrb[27].mxu0 }
 0x14f   : > { %v2020_v58 = vpop.f32.mrb[27].mxu1 }
 0x150   : > { %v1317_v59 = vadd.f32 %v1312_v56, %v1235_v55 }
 0x15b   : > { %v1391_v60 = vpop.f32.mrb[28].mxu0 }
 0x15c   : > { %v1398_v61 = vadd.f32 %v1391_v60, %v1316_v54  ;;  %v1473_v62 = vpop.f32.mrb[28].mxu1  ;;  %v2031_v63 = vpop.f32.mrb[29].mxu0 }
 0x15d   : > { %v2043_v1 = vpop.f32.mrb[29].mxu1  ;;  %v1394_v3 = vpop.f32.mrb[30].mxu0 }
 0x15e   : > { %v1480_v4 = vadd.f32 %v1473_v62, %v1398_v61  ;;  %v1399_v5 = vadd.f32 %v1394_v3, %v1317_v59  ;;  %v1476_v6 = vpop.f32.mrb[30].mxu1  ;;  %v2032_v7 = vpop.f32.mrb[31].mxu0 }
 0x15f   : > { %v2044_v8 = vpop.f32.mrb[31].mxu1 }
 0x160   : > { %v1489_v9 = vadd.f32 %v1768_v0, %v1480_v4  ;;  %v1481_v10 = vadd.f32 %v1476_v6, %v1399_v5 }
 0x162   : > { %v1491_v12 = vsub.f32 0.0, %v1489_v9  ;;  %v1490_v14 = vadd.f32 %v1768_v0, %v1481_v10 }
 0x164   : > { %v1493_v15 = vmul.f32 1.442695, %v1491_v12  ;;  %v1492_v16 = vsub.f32 0.0, %v1490_v14 }
 0x166   : > { %2119 = vpow2.f32 %v1493_v15  ;;  %v1495_v17 = vmul.f32 1.442695, %v1492_v16 }
 0x168   : > { %2121 = vpow2.f32 %v1495_v17 }
 0x170   : > { %v2120_v18 = vpop.eup %2119 }
 0x171   : > { %v1497_v19 = vadd.f32 1.0, %v2120_v18 }
 0x172   : > { %v2122_v20 = vpop.eup %2121 }
 0x173   : > { %2123 = vrcp.f32 %v1497_v19  ;;  %v1498_v21 = vadd.f32 1.0, %v2122_v20 }
 0x175   : > { %2125 = vrcp.f32 %v1498_v21 }
 0x17d   : > { %v2124_v22 = vpop.eup %2123 }
 0x17e   : > { %1502 = vst.msk [vmem:[%s172_s22] sm:$0xff] %vm1501_vm2, %v2124_v22 }
 0x17f   : > { %v2126_v13 = vpop.eup %2125 }
 0x180   : > { %1503 = vst.msk [vmem:[%s172_s22 + $0x8] sm:$0xff] %vm1501_vm2, %v2126_v13 }
 0x181 PF: > { %s15_s14 = sadd.s32 1, %s2133_s14  }
 0x182   : > { %p12_p4 = scmp.ge.s32.totalorder %s15_s14, 4  }
 0x184   :  { %14 = sbr.rel (!%p12_p4) target bundleno = 3 (0x3), region = 77 }

</bundles_post_ra>
